<compile_context>
chip_gen: v7x
topology: tpu7x:2x2x1
jax: 0.10.0
libtpu: 0.0.40
codegen_flags: <defaults>
</compile_context>

<pallas_src>
import functools

import numpy as np
import jax
import jax.numpy as jnp
from jax.experimental import pallas as pl
from jax.experimental.pallas import tpu as pltpu

OBS_DIM = 17
ACT_DIM = 17
NUM_DIMS = 2
D_IN  = OBS_DIM ** NUM_DIMS    # 289
D_H1  = 21 * 21 * 4            # 1764
D_H2  = 21 * 21 * 2            # 882
D_H3  = 21 * 21                # 441
D_OUT = ACT_DIM ** NUM_DIMS    # 289
BN_EPS = 1e-5


def _pad_to(n, m):
    return ((n + m - 1) // m) * m


P_IN  = _pad_to(D_IN, 128)     # 384
P_H1  = _pad_to(D_H1, 128)     # 1792
P_H2  = _pad_to(D_H2, 128)     # 896
P_H3  = _pad_to(D_H3, 128)     # 512
P_OUT = _pad_to(D_OUT, 128)    # 384


def _choose_tb(batch):
    """Adaptive batch tile: 256 amortizes MXU weight reloads / step overhead,
    but keep the grid >= 2 steps so v7x's two TensorCores both get work."""
    bp = _pad_to(max(batch, 1), 128)
    if bp >= 2 * 256:
        return 256
    return 128


# ----------------------------------------------------------------------------- kernel
def primme_mlp_kernel(x_ref,
                      w1_ref, b1_ref,
                      w2_ref, b2_ref,
                      w3_ref, b3_ref,
                      w4_ref, b4_ref,
                      o_ref):
    # x_ref is already bf16; weights are bf16; accumulation is f32 on the MXU.
    # Biases are (1, P) f32 blocks (== full array dims, a valid block); the add is a
    # sublane-splat broadcast, all elementwise math stays in f32 (v5e-safe).
    h = jnp.dot(x_ref[...], w1_ref[...], preferred_element_type=jnp.float32)
    h = jnp.maximum(h + b1_ref[...], 0.0)

    h = jnp.dot(h.astype(jnp.bfloat16), w2_ref[...],
                preferred_element_type=jnp.float32)
    h = jnp.maximum(h + b2_ref[...], 0.0)

    h = jnp.dot(h.astype(jnp.bfloat16), w3_ref[...],
                preferred_element_type=jnp.float32)
    h = jnp.maximum(h + b3_ref[...], 0.0)

    h = jnp.dot(h.astype(jnp.bfloat16), w4_ref[...],
                preferred_element_type=jnp.float32)
    o_ref[...] = jnp.maximum(h + b4_ref[...], 0.0)


# ------------------------------------------------------------------------ host helpers
def _pad2d(a, rows, cols):
    r, c = a.shape
    return jnp.pad(a, ((0, rows - r), (0, cols - c)))


def _fold_bn_into_next(scale, shift, w_next, b_next):
    # (h*scale + shift) @ W + b  ==  h @ (scale[:,None]*W) + (shift @ W + b)
    # Fold is done in f32; the bf16 cast happens afterwards.
    return scale[:, None] * w_next, shift @ w_next + b_next


def prepare_params(params):
    """Fold eval-mode BN into the following Linear (f32), cast weights to bf16, pad."""
    (w1, b1, bn1, w2, b2, bn2, w3, b3, bn3, w4, b4) = params
    w2f, b2f = _fold_bn_into_next(bn1[0], bn1[1], w2, b2)
    w3f, b3f = _fold_bn_into_next(bn2[0], bn2[1], w3, b3)
    w4f, b4f = _fold_bn_into_next(bn3[0], bn3[1], w4, b4)

    def prep_w(w, rows, cols):
        return _pad2d(w.astype(jnp.bfloat16), rows, cols)

    def prep_b(b, cols):
        return _pad2d(b.astype(jnp.float32)[None, :], 1, cols)

    return (prep_w(w1,  P_IN, P_H1),  prep_b(b1,  P_H1),
            prep_w(w2f, P_H1, P_H2),  prep_b(b2f, P_H2),
            prep_w(w3f, P_H2, P_H3),  prep_b(b3f, P_H3),
            prep_w(w4f, P_H3, P_OUT), prep_b(b4f, P_OUT))


@functools.partial(jax.jit, static_argnames=("tb",))
def _primme_forward_jit(x, w1, b1, w2, b2, w3, b3, w4, b4, *, tb):
    B = x.shape[0]
    Bp = _pad_to(max(B, tb), tb)
    # bf16 input: halves the per-tile input DMA and removes the in-kernel cast.
    x_p = _pad2d(x.astype(jnp.bfloat16), Bp, P_IN)

    const = lambda shape: pl.BlockSpec(shape, lambda i: (0, 0))

    out_p = pl.pallas_call(
        primme_mlp_kernel,
        out_shape=jax.ShapeDtypeStruct((Bp, P_OUT), jnp.float32),
        grid_spec=pltpu.PrefetchScalarGridSpec(
            num_scalar_prefetch=0,
            grid=(Bp // tb,),
            in_specs=[
                pl.BlockSpec((tb, P_IN), lambda i: (i, 0)),
                const((P_IN, P_H1)),  const((1, P_H1)),
                const((P_H1, P_H2)),  const((1, P_H2)),
                const((P_H2, P_H3)),  const((1, P_H3)),
                const((P_H3, P_OUT)), const((1, P_OUT)),
            ],
            out_specs=pl.BlockSpec((tb, P_OUT), lambda i: (i, 0)),
        ),
        compiler_params=pltpu.CompilerParams(
            dimension_semantics=("parallel",),   # shard batch tiles across TCs
            vmem_limit_bytes=32 * 1024 * 1024,   # actual footprint ~15-20 MiB @ TB=256
        ),
    )(x_p, w1, b1, w2, b2, w3, b3, w4, b4)

    return out_p[:B, :D_OUT]


def primme_forward(x, prepared):
    """x: (B, 289) float -> (B, 289) float32, matching PRIMME.forward (eval mode)."""
    tb = _choose_tb(x.shape[0])
    return _primme_forward_jit(x, *prepared, tb=tb)


# ---------------------------------------------------------------------------- params
def init_params(key):
    """Deterministic synthetic parameters mirroring PRIMME.__init__ shapes.
    Linear: PyTorch default U(-1/sqrt(fan_in), 1/sqrt(fan_in)); weights stored
    transposed as (in_features, out_features).  BatchNorm1d: default init, folded to
    per-feature (scale, shift) rows for eval-mode application."""
    keys = jax.random.split(key, 8)

    def linear(kw, kb, fan_in, fan_out):
        bound = 1.0 / np.sqrt(fan_in)
        w = jax.random.uniform(kw, (fan_in, fan_out), jnp.float32, -bound, bound)
        b = jax.random.uniform(kb, (fan_out,), jnp.float32, -bound, bound)
        return w, b

    def bn_affine(dim):
        gamma = jnp.ones((dim,), jnp.float32)
        beta = jnp.zeros((dim,), jnp.float32)
        running_mean = jnp.zeros((dim,), jnp.float32)
        running_var = jnp.ones((dim,), jnp.float32)
        scale = gamma / jnp.sqrt(running_var + BN_EPS)
        shift = beta - running_mean * scale
        return jnp.stack([scale, shift], axis=0)  # (2, dim)

    w1, b1 = linear(keys[0], keys[1], D_IN, D_H1)
    w2, b2 = linear(keys[2], keys[3], D_H1, D_H2)
    w3, b3 = linear(keys[4], keys[5], D_H2, D_H3)
    w4, b4 = linear(keys[6], keys[7], D_H3, D_OUT)
    return (w1, b1, bn_affine(D_H1),
            w2, b2, bn_affine(D_H2),
            w3, b3, bn_affine(D_H3),
            w4, b4)


# ------------------------------------------------------------------------- references
def primme_forward_ref_f32(x, params):
    """Pure-JAX f32 reference of PRIMME.forward (eval mode), BN applied explicitly."""
    (w1, b1, bn1, w2, b2, bn2, w3, b3, bn3, w4, b4) = params
    h = jnp.maximum(x @ w1 + b1, 0.0)
    h = h * bn1[0] + bn1[1]
    h = jnp.maximum(h @ w2 + b2, 0.0)
    h = h * bn2[0] + bn2[1]
    h = jnp.maximum(h @ w3 + b3, 0.0)
    h = h * bn3[0] + bn3[1]
    return jnp.maximum(h @ w4 + b4, 0.0)


def primme_forward_ref_matched(x, params):
    """Reference doing the same math as the kernel: BN folded (f32) into the next
    Linear, bf16 operands, f32 accumulation, f32 bias-add/ReLU."""
    (w1, b1, bn1, w2, b2, bn2, w3, b3, bn3, w4, b4) = params
    w2f, b2f = _fold_bn_into_next(bn1[0], bn1[1], w2, b2)
    w3f, b3f = _fold_bn_into_next(bn2[0], bn2[1], w3, b3)
    w4f, b4f = _fold_bn_into_next(bn3[0], bn3[1], w4, b4)

    def layer(h, w, b):
        acc = jnp.dot(h.astype(jnp.bfloat16), w.astype(jnp.bfloat16),
                      preferred_element_type=jnp.float32)
        return jnp.maximum(acc + b, 0.0)

    h = layer(x, w1, b1)
    h = layer(h, w2f, b2f)
    h = layer(h, w3f, b3f)
    return layer(h, w4f, b4f)


if __name__ == "__main__":
    key = jax.random.PRNGKey(0)
    k_param, k_x = jax.random.split(key)
    params = init_params(k_param)
    prepared = prepare_params(params)

    B = 200  # small batch of 17x17-neighborhood feature vectors (not tile-aligned on purpose)
    x = jax.random.uniform(k_x, (B, D_IN), jnp.float32)  # features in [0, 1)

    y = jax.block_until_ready(primme_forward(x, prepared))

    # Tight check against a reference doing the identical bf16-weight math.
    y_matched = jax.block_until_ready(primme_forward_ref_matched(x, params))
    np.testing.assert_allclose(np.asarray(y), np.asarray(y_matched), rtol=1e-2, atol=1e-2)

    # Looser sanity check against the full-precision eval-mode forward.
    y_f32 = jax.block_until_ready(primme_forward_ref_f32(x, params))
    np.testing.assert_allclose(np.asarray(y), np.asarray(y_f32), rtol=5e-2, atol=5e-2)

    assert y.shape == (B, ACT_DIM ** NUM_DIMS)
    print("KERNEL_OK")
</pallas_src>

<mosaic_0001>
module attributes {stable_mosaic.version = 11 : i64} {
  func.func @primme_mlp_kernel(%arg0: i32, %arg1: memref<128x384xbf16, #tpu.memory_space<vmem>>, %arg2: memref<384x1792xbf16, #tpu.memory_space<vmem>>, %arg3: memref<1x1792xf32, #tpu.memory_space<vmem>>, %arg4: memref<1792x896xbf16, #tpu.memory_space<vmem>>, %arg5: memref<1x896xf32, #tpu.memory_space<vmem>>, %arg6: memref<896x512xbf16, #tpu.memory_space<vmem>>, %arg7: memref<1x512xf32, #tpu.memory_space<vmem>>, %arg8: memref<512x384xbf16, #tpu.memory_space<vmem>>, %arg9: memref<1x384xf32, #tpu.memory_space<vmem>>, %arg10: memref<128x384xf32, #tpu.memory_space<vmem>>) attributes {dimension_semantics = [#tpu.dimension_semantics<parallel>], iteration_bounds = array<i64: 2>, scalar_prefetch = 0 : i64, scratch_operands = 0 : i64, tpu.core_type = #tpu.core_type<tc>, window_params = [{transform_indices = @transform_0, window_bounds = array<i64: 128, 384>}, {pipeline_mode = #tpu.pipeline_mode<synchronous>, transform_indices = @transform_1, window_bounds = array<i64: 384, 1792>}, {pipeline_mode = #tpu.pipeline_mode<synchronous>, transform_indices = @transform_2, window_bounds = array<i64: 1, 1792>}, {pipeline_mode = #tpu.pipeline_mode<synchronous>, transform_indices = @transform_3, window_bounds = array<i64: 1792, 896>}, {pipeline_mode = #tpu.pipeline_mode<synchronous>, transform_indices = @transform_4, window_bounds = array<i64: 1, 896>}, {pipeline_mode = #tpu.pipeline_mode<synchronous>, transform_indices = @transform_5, window_bounds = array<i64: 896, 512>}, {pipeline_mode = #tpu.pipeline_mode<synchronous>, transform_indices = @transform_6, window_bounds = array<i64: 1, 512>}, {pipeline_mode = #tpu.pipeline_mode<synchronous>, transform_indices = @transform_7, window_bounds = array<i64: 512, 384>}, {pipeline_mode = #tpu.pipeline_mode<synchronous>, transform_indices = @transform_8, window_bounds = array<i64: 1, 384>}, {transform_indices = @transform_9, window_bounds = array<i64: 128, 384>}]} {
    %c0 = arith.constant 0 : index
    %c0_0 = arith.constant 0 : index
    %0 = vector.load %arg1[%c0, %c0_0] : memref<128x384xbf16, #tpu.memory_space<vmem>>, vector<128x384xbf16>
    %c0_1 = arith.constant 0 : index
    %c0_2 = arith.constant 0 : index
    %1 = vector.load %arg2[%c0_1, %c0_2] : memref<384x1792xbf16, #tpu.memory_space<vmem>>, vector<384x1792xbf16>
    %cst = arith.constant dense<0.000000e+00> : vector<128x1792xf32>
    %2 = tpu.matmul %0, %1, %cst {dimension_numbers = #tpu.dot_dimension_numbers<[1], [0], [0], [1], [0, 0, 1, 1], [], []>} : vector<128x384xbf16>, vector<384x1792xbf16>, vector<128x1792xf32> -> vector<128x1792xf32>
    %c0_3 = arith.constant 0 : index
    %c0_4 = arith.constant 0 : index
    %3 = vector.load %arg3[%c0_3, %c0_4] : memref<1x1792xf32, #tpu.memory_space<vmem>>, vector<1x1792xf32>
    %4 = vector.broadcast %3 : vector<1x1792xf32> to vector<128x1792xf32>
    %5 = arith.addf %2, %4 : vector<128x1792xf32>
    %cst_5 = arith.constant 0.000000e+00 : f32
    %6 = vector.broadcast %cst_5 : f32 to vector<128x1792xf32>
    %7 = arith.maximumf %5, %6 : vector<128x1792xf32>
    %8 = arith.truncf %7 : vector<128x1792xf32> to vector<128x1792xbf16>
    %c0_6 = arith.constant 0 : index
    %c0_7 = arith.constant 0 : index
    %9 = vector.load %arg4[%c0_6, %c0_7] : memref<1792x896xbf16, #tpu.memory_space<vmem>>, vector<1792x896xbf16>
    %cst_8 = arith.constant dense<0.000000e+00> : vector<128x896xf32>
    %10 = tpu.matmul %8, %9, %cst_8 {dimension_numbers = #tpu.dot_dimension_numbers<[1], [0], [0], [1], [0, 0, 1, 1], [], []>} : vector<128x1792xbf16>, vector<1792x896xbf16>, vector<128x896xf32> -> vector<128x896xf32>
    %c0_9 = arith.constant 0 : index
    %c0_10 = arith.constant 0 : index
    %11 = vector.load %arg5[%c0_9, %c0_10] : memref<1x896xf32, #tpu.memory_space<vmem>>, vector<1x896xf32>
    %12 = vector.broadcast %11 : vector<1x896xf32> to vector<128x896xf32>
    %13 = arith.addf %10, %12 : vector<128x896xf32>
    %cst_11 = arith.constant 0.000000e+00 : f32
    %14 = vector.broadcast %cst_11 : f32 to vector<128x896xf32>
    %15 = arith.maximumf %13, %14 : vector<128x896xf32>
    %16 = arith.truncf %15 : vector<128x896xf32> to vector<128x896xbf16>
    %c0_12 = arith.constant 0 : index
    %c0_13 = arith.constant 0 : index
    %17 = vector.load %arg6[%c0_12, %c0_13] : memref<896x512xbf16, #tpu.memory_space<vmem>>, vector<896x512xbf16>
    %cst_14 = arith.constant dense<0.000000e+00> : vector<128x512xf32>
    %18 = tpu.matmul %16, %17, %cst_14 {dimension_numbers = #tpu.dot_dimension_numbers<[1], [0], [0], [1], [0, 0, 1, 1], [], []>} : vector<128x896xbf16>, vector<896x512xbf16>, vector<128x512xf32> -> vector<128x512xf32>
    %c0_15 = arith.constant 0 : index
    %c0_16 = arith.constant 0 : index
    %19 = vector.load %arg7[%c0_15, %c0_16] : memref<1x512xf32, #tpu.memory_space<vmem>>, vector<1x512xf32>
    %20 = vector.broadcast %19 : vector<1x512xf32> to vector<128x512xf32>
    %21 = arith.addf %18, %20 : vector<128x512xf32>
    %cst_17 = arith.constant 0.000000e+00 : f32
    %22 = vector.broadcast %cst_17 : f32 to vector<128x512xf32>
    %23 = arith.maximumf %21, %22 : vector<128x512xf32>
    %24 = arith.truncf %23 : vector<128x512xf32> to vector<128x512xbf16>
    %c0_18 = arith.constant 0 : index
    %c0_19 = arith.constant 0 : index
    %25 = vector.load %arg8[%c0_18, %c0_19] : memref<512x384xbf16, #tpu.memory_space<vmem>>, vector<512x384xbf16>
    %cst_20 = arith.constant dense<0.000000e+00> : vector<128x384xf32>
    %26 = tpu.matmul %24, %25, %cst_20 {dimension_numbers = #tpu.dot_dimension_numbers<[1], [0], [0], [1], [0, 0, 1, 1], [], []>} : vector<128x512xbf16>, vector<512x384xbf16>, vector<128x384xf32> -> vector<128x384xf32>
    %c0_21 = arith.constant 0 : index
    %c0_22 = arith.constant 0 : index
    %27 = vector.load %arg9[%c0_21, %c0_22] : memref<1x384xf32, #tpu.memory_space<vmem>>, vector<1x384xf32>
    %28 = vector.broadcast %27 : vector<1x384xf32> to vector<128x384xf32>
    %29 = arith.addf %26, %28 : vector<128x384xf32>
    %cst_23 = arith.constant 0.000000e+00 : f32
    %30 = vector.broadcast %cst_23 : f32 to vector<128x384xf32>
    %31 = arith.maximumf %29, %30 : vector<128x384xf32>
    %c0_24 = arith.constant 0 : index
    %c0_25 = arith.constant 0 : index
    %32 = vector.load %arg10[%c0_24, %c0_25] : memref<128x384xf32, #tpu.memory_space<vmem>>, vector<128x384xf32>
    tpu.vector_store %arg10[%c0_24, %c0_25], %31 {strides = array<i32>} : memref<128x384xf32, #tpu.memory_space<vmem>>, vector<128x384xf32>,
    return
  }
  func.func @transform_0(%arg0: i32) -> (i32, i32) {
    %c0_i32 = arith.constant 0 : i32
    %c0_i32_0 = arith.constant 0 : i32
    return %arg0, %c0_i32 : i32, i32
  }
  func.func @transform_1(%arg0: i32) -> (i32, i32) {
    %c0_i32 = arith.constant 0 : i32
    %c0_i32_0 = arith.constant 0 : i32
    %c0_i32_1 = arith.constant 0 : i32
    return %c0_i32, %c0_i32_0 : i32, i32
  }
  func.func @transform_2(%arg0: i32) -> (i32, i32) {
    %c0_i32 = arith.constant 0 : i32
    %c0_i32_0 = arith.constant 0 : i32
    %c0_i32_1 = arith.constant 0 : i32
    return %c0_i32, %c0_i32_0 : i32, i32
  }
  func.func @transform_3(%arg0: i32) -> (i32, i32) {
    %c0_i32 = arith.constant 0 : i32
    %c0_i32_0 = arith.constant 0 : i32
    %c0_i32_1 = arith.constant 0 : i32
    return %c0_i32, %c0_i32_0 : i32, i32
  }
  func.func @transform_4(%arg0: i32) -> (i32, i32) {
    %c0_i32 = arith.constant 0 : i32
    %c0_i32_0 = arith.constant 0 : i32
    %c0_i32_1 = arith.constant 0 : i32
    return %c0_i32, %c0_i32_0 : i32, i32
  }
  func.func @transform_5(%arg0: i32) -> (i32, i32) {
    %c0_i32 = arith.constant 0 : i32
    %c0_i32_0 = arith.constant 0 : i32
    %c0_i32_1 = arith.constant 0 : i32
    return %c0_i32, %c0_i32_0 : i32, i32
  }
  func.func @transform_6(%arg0: i32) -> (i32, i32) {
    %c0_i32 = arith.constant 0 : i32
    %c0_i32_0 = arith.constant 0 : i32
    %c0_i32_1 = arith.constant 0 : i32
    return %c0_i32, %c0_i32_0 : i32, i32
  }
  func.func @transform_7(%arg0: i32) -> (i32, i32) {
    %c0_i32 = arith.constant 0 : i32
    %c0_i32_0 = arith.constant 0 : i32
    %c0_i32_1 = arith.constant 0 : i32
    return %c0_i32, %c0_i32_0 : i32, i32
  }
  func.func @transform_8(%arg0: i32) -> (i32, i32) {
    %c0_i32 = arith.constant 0 : i32
    %c0_i32_0 = arith.constant 0 : i32
    %c0_i32_1 = arith.constant 0 : i32
    return %c0_i32, %c0_i32_0 : i32, i32
  }
  func.func @transform_9(%arg0: i32) -> (i32, i32) {
    %c0_i32 = arith.constant 0 : i32
    %c0_i32_0 = arith.constant 0 : i32
    return %arg0, %c0_i32 : i32, i32
  }
}

</mosaic_0001>

<bundles_post_ra>
// kernel: _primme_forward_jit.1
= control target key start
LH: loop header
LB: loop body
LE: loop exit
PB: predicated region body
PF: predicated region fallthrough
CT: control target
= control target key end

     0   :  { %14 = vsyncpa [#allocation3], 0  ;;  %s24871_s0 = inlined_call_operand.vmem [shape: bf16[256,384], index: 0, kind: input, shape index: {}]   ;;  %s24872_s1 = inlined_call_operand.hbm [shape: bf16[384,1792], index: 1, kind: input, shape index: {}]   ;;  %s24873_s2 = inlined_call_operand.hbm [shape: f32[1,1792], index: 2, kind: input, shape index: {}]   ;;  %s24874_s3 = inlined_call_operand.hbm [shape: bf16[1792,896], index: 3, kind: input, shape index: {}]   ;;  %s24875_s4 = inlined_call_operand.hbm [shape: f32[1,896], index: 4, kind: input, shape index: {}]   ;;  %s24876_s5 = inlined_call_operand.hbm [shape: bf16[896,512], index: 5, kind: input, shape index: {}]   ;;  %s24877_s6 = inlined_call_operand.hbm [shape: f32[1,512], index: 6, kind: input, shape index: {}]   ;;  %s24878_s7 = inlined_call_operand.hbm [shape: bf16[512,384], index: 7, kind: input, shape index: {}]   ;;  %s24879_s8 = inlined_call_operand.hbm [shape: f32[1,384], index: 8, kind: input, shape index: {}]   ;;  %s24880_s9 = inlined_call_operand.vmem [shape: f32[256,384], index: 9, kind: output, shape index: {}]  }
   0x1   :  { %15 = vsyncpa [#allocation5], 0 }
   0x2   :  { %16 = vsyncpa [#allocation8], 0 }
   0x3   :  { %17 = vsyncpa [#allocation11], 0 }
   0x4   :  { %18 = vsyncpa [#allocation14], 0  ;;  %s22598_s30 = smov 0  }
   0x5 LB: > { %s22531_s10 = smov [#allocation4]   ;;  %s16480_s12 = sadd.s32 4294967295, %s22529_s30   ;;  %s22529_s30 = sphi %s22598_s30, %s24_s30  }
   0x6   : > { %s275_s11 = sshll.u32 %s22531_s10, 4  ;;  %p16482_p0 = scmp.ge.s32.totalorder %s22529_s30, 1  ;;  %s22612_s11 = int_to_ptr.vmem [resolvable:$true] %s275_s11 }
   0x7   : > { %p249_p1 = scmp.lt.s32.totalorder %s22529_s30, 3  ;;  %p22608_p2 = scmp.eq.s32.totalorder %s16480_s12, 0 }
   0x8   : > { %s22532_s15 = smov [#allocation7]   ;;  %s22533_s17 = smov [#allocation10]  }
   0x9   : > { %s25130_s13 = scalar_select %p22608_p2, 1, 0 }
   0xa   : > { %p22614_p3 = pnand %p16482_p0, %p249_p1  ;;  %s299_s16 = sshll.u32 %s22532_s15, 4  ;;  %s22620_s16 = int_to_ptr.vmem [resolvable:$true] %s299_s16 }
   0xb   : > { %s323_s18 = sshll.u32 %s22533_s17, 4  ;;  %s22534_s20 = smov [#allocation2]   ;;  %s22628_s18 = int_to_ptr.vmem [resolvable:$true] %s323_s18 }
   0xc   : > { %s25131_s14 = scalar_select %p22614_p3, 1, 0 }
   0xd   : > { %p20021_p4 = pneg %p22614_p3  ;;  %s261_s21 = sshll.u32 %s22534_s20, 4  ;;  %s22630_s21 = int_to_ptr.vmem [resolvable:$true] %s261_s21 }
   0xe   : > { %s22279_s24 = scalar_lea.hbm %s24873_s2, 224 }
   0xf   : > { %p22624_p5 = pnand %p22608_p2, %p20021_p4  ;;  %p22280_p6 = scmp.ne.s32.totalorder %s24873_s2, %s22279_s24 }
  0x10   : > { %p22286_p10 = scmp.lt.u32.totalorder %s22279_s24, %s24873_s2 }
  0x11   : > { %p22640_p7 = pneg %p22624_p5 }
  0x13   : > { %p22282_p8 = pnand %p22640_p7, %p22280_p6 }
  0x15   : > { %p22283_p9 = pneg %p22282_p8 }
  0x17   : > { %p22288_p11 = pnand %p22286_p10, %p22283_p9 }
  0x19   : > { %22291 = shalt.err (!%p22288_p11)
}
  0x1a   : > { %s22292_s10 = scalar_lea.vmem %s22612_s11, 224  ;;  %p22300_p1 = scmp.lt.s32.totalorder %s22612_s11, %s22612_s11 }
  0x1b   : > { %p22293_p12 = scmp.ne.s32.totalorder %s22612_s11, %s22292_s10  ;;  %p22301_p4 = scmp.lt.s32.totalorder %s22292_s10, %s22292_s10 }
  0x1d   : > { %p22295_p13 = pnand %p22293_p12, %p22640_p7  ;;  %p22302_p6 = por %p22301_p4, %p22300_p1 }
  0x1f   : > { %p22296_p0 = pneg %p22295_p13 }
  0x21   : > { %p22303_p8 = pnand %p22302_p6, %p22296_p0 }
  0x23   : > { %22306 = shalt.err (!%p22303_p8)
}
  0x24   : > { %20027 = dma.hbm_to_vmem [thread:$0]  (!%p22624_p5), %s24873_s2, 224, %s22612_s11, [#allocation5]  }
  0x25   : > { %s22307_s23 = scalar_lea.hbm %s24875_s4, 112 }
  0x26   : > { %p22308_p9 = scmp.ne.s32.totalorder %s24875_s4, %s22307_s23  ;;  %p22314_p12 = scmp.lt.u32.totalorder %s22307_s23, %s24875_s4 }
  0x28   : > { %p22310_p10 = pnand %p22308_p9, %p22640_p7 }
  0x2a   : > { %p22311_p11 = pneg %p22310_p10 }
  0x2c   : > { %p22316_p13 = pnand %p22314_p12, %p22311_p11 }
  0x2e   : > { %22319 = shalt.err (!%p22316_p13)
}
  0x2f   : > { %s22320_s11 = scalar_lea.vmem %s22620_s16, 112  ;;  %s22327_s29 = scalar_lea.vmem %s22620_s16, 128 }
  0x30   : > { %p22321_p0 = scmp.ne.s32.totalorder %s22620_s16, %s22320_s11  ;;  %p22328_p6 = scmp.lt.s32.totalorder %s22620_s16, %s22620_s16 }
  0x31   : > { %p22329_p8 = scmp.lt.s32.totalorder %s22327_s29, %s22320_s11 }
  0x32   : > { %p22323_p1 = pnand %p22321_p0, %p22640_p7 }
  0x33   : > { %p22330_p9 = por %p22329_p8, %p22328_p6 }
  0x34   : > { %p22324_p4 = pneg %p22323_p1 }
  0x36   : > { %p22331_p10 = pnand %p22330_p9, %p22324_p4 }
  0x38   : > { %22334 = shalt.err (!%p22331_p10)
}
  0x39   : > { %20033 = dma.hbm_to_vmem [thread:$0]  (!%p22624_p5), %s24875_s4, 112, %s22620_s16, [#allocation8]  }
  0x3a   : > { %s22335_s22 = scalar_lea.hbm %s24877_s6, 64 }
  0x3b   : > { %p22336_p11 = scmp.ne.s32.totalorder %s24877_s6, %s22335_s22  ;;  %p22342_p0 = scmp.lt.u32.totalorder %s22335_s22, %s24877_s6 }
  0x3d   : > { %p22338_p12 = pnand %p22336_p11, %p22640_p7 }
  0x3f   : > { %p22339_p13 = pneg %p22338_p12 }
  0x41   : > { %p22344_p1 = pnand %p22342_p0, %p22339_p13 }
  0x43   : > { %22347 = shalt.err (!%p22344_p1)
}
  0x44   : > { %s22348_s16 = scalar_lea.vmem %s22628_s18, 64  ;;  %p22356_p9 = scmp.lt.s32.totalorder %s22628_s18, %s22628_s18 }
  0x45   : > { %p22349_p4 = scmp.ne.s32.totalorder %s22628_s18, %s22348_s16  ;;  %p22357_p10 = scmp.lt.s32.totalorder %s22348_s16, %s22348_s16 }
  0x47   : > { %p22351_p6 = pnand %p22349_p4, %p22640_p7  ;;  %p22358_p11 = por %p22357_p10, %p22356_p9 }
  0x49   : > { %p22352_p8 = pneg %p22351_p6 }
  0x4b   : > { %p22359_p12 = pnand %p22358_p11, %p22352_p8 }
  0x4d   : > { %22362 = shalt.err (!%p22359_p12)
}
  0x4e   : > { %20039 = dma.hbm_to_vmem [thread:$0]  (!%p22624_p5), %s24877_s6, 64, %s22628_s18, [#allocation11]  }
  0x4f   : > { %s22363_s15 = scalar_lea.hbm %s24872_s1, 43008 }
  0x50   : > { %p22364_p13 = scmp.ne.s32.totalorder %s24872_s1, %s22363_s15  ;;  %p22370_p4 = scmp.lt.u32.totalorder %s22363_s15, %s24872_s1 }
  0x52   : > { %p22366_p0 = pnand %p22364_p13, %p22640_p7 }
  0x54   : > { %p22367_p1 = pneg %p22366_p0 }
  0x56   : > { %p22372_p6 = pnand %p22370_p4, %p22367_p1 }
  0x58   : > { %22375 = shalt.err (!%p22372_p6)
}
  0x59   : > { %s22376_s18 = scalar_lea.vmem %s22630_s21, 43008  ;;  %p22384_p11 = scmp.lt.s32.totalorder %s22630_s21, %s22630_s21 }
  0x5a   : > { %p22377_p8 = scmp.ne.s32.totalorder %s22630_s21, %s22376_s18  ;;  %p22385_p12 = scmp.lt.s32.totalorder %s22376_s18, %s22376_s18 }
  0x5c   : > { %p22379_p9 = pnand %p22377_p8, %p22640_p7  ;;  %p22386_p13 = por %p22385_p12, %p22384_p11 }
  0x5e   : > { %p22380_p10 = pneg %p22379_p9 }
  0x60   : > { %p22387_p0 = pnand %p22386_p13, %p22380_p10 }
  0x62   : > { %22390 = shalt.err (!%p22387_p0)
}
  0x63   : > { %s22535_s24 = smov 896   ;;  %s22536_s25 = smov 56  }
  0x64   : > { %20024 = dma.hbm_to_vmem [thread:$0]  (!%p22624_p5), %s24872_s1, 43008, %s22630_s21, [#allocation3], %s22535_s24, %s22535_s24, %s22536_s25  }
  0x65   : > { %s22537_s28 = smov [#allocation6]   ;;  %s22391_s15 = scalar_lea.hbm %s24874_s3, 100352 }
  0x66   : > { %s285_s11 = sshll.u32 %s22537_s28, 4  ;;  %p22392_p1 = scmp.ne.s32.totalorder %s24874_s3, %s22391_s15  ;;  %s286_s11 = int_to_ptr.vmem [resolvable:$true] %s285_s11 }
  0x67   : > { %p22398_p8 = scmp.lt.u32.totalorder %s22391_s15, %s24874_s3 }
  0x68   : > { %p22394_p4 = pnand %p22392_p1, %p22640_p7 }
  0x6a   : > { %p22395_p6 = pneg %p22394_p4 }
  0x6c   : > { %p22400_p9 = pnand %p22398_p8, %p22395_p6 }
  0x6e   : > { %22403 = shalt.err (!%p22400_p9)
}
  0x6f   : > { %s22404_s21 = scalar_lea.vmem %s286_s11, 100352  ;;  %p22412_p13 = scmp.lt.s32.totalorder %s286_s11, %s286_s11 }
  0x70   : > { %p22405_p10 = scmp.ne.s32.totalorder %s286_s11, %s22404_s21  ;;  %p22413_p0 = scmp.lt.s32.totalorder %s22404_s21, %s22404_s21 }
  0x72   : > { %p22407_p11 = pnand %p22405_p10, %p22640_p7  ;;  %p22414_p2 = por %p22413_p0, %p22412_p13 }
  0x74   : > { %p22408_p12 = pneg %p22407_p11 }
  0x76   : > { %p22415_p3 = pnand %p22414_p2, %p22408_p12 }
  0x78   : > { %22418 = shalt.err (!%p22415_p3)
}
  0x79   : > { %s22538_s18 = smov 448   ;;  %s22539_s24 = smov 28  }
  0x7a   : > { %20030 = dma.hbm_to_vmem [thread:$0]  (!%p22624_p5), %s24874_s3, 100352, %s286_s11, [#allocation5], %s22538_s18, %s22538_s18, %s22539_s24  }
  0x7b   : > { %s22540_s16 = smov [#allocation9]   ;;  %s22419_s15 = scalar_lea.hbm %s24876_s5, 28672 }
  0x7c   : > { %s309_s28 = sshll.u32 %s22540_s16, 4  ;;  %p22420_p2 = scmp.ne.s32.totalorder %s24876_s5, %s22419_s15  ;;  %s310_s28 = int_to_ptr.vmem [resolvable:$true] %s309_s28 }
  0x7d   : > { %p22426_p4 = scmp.lt.u32.totalorder %s22419_s15, %s24876_s5 }
  0x7e   : > { %p22422_p3 = pnand %p22420_p2, %p22640_p7 }
  0x80   : > { %p22423_p1 = pneg %p22422_p3 }
  0x82   : > { %p22428_p6 = pnand %p22426_p4, %p22423_p1 }
  0x84   : > { %22431 = shalt.err (!%p22428_p6)
}
  0x85   : > { %s22432_s11 = scalar_lea.vmem %s310_s28, 28672  ;;  %p22440_p11 = scmp.lt.s32.totalorder %s310_s28, %s310_s28 }
  0x86   : > { %p22433_p8 = scmp.ne.s32.totalorder %s310_s28, %s22432_s11  ;;  %p22441_p12 = scmp.lt.s32.totalorder %s22432_s11, %s22432_s11 }
  0x88   : > { %p22435_p9 = pnand %p22433_p8, %p22640_p7  ;;  %p22442_p13 = por %p22441_p12, %p22440_p11 }
  0x8a   : > { %p22436_p10 = pneg %p22435_p9 }
  0x8c   : > { %p22443_p0 = pnand %p22442_p13, %p22436_p10 }
  0x8e   : > { %22446 = shalt.err (!%p22443_p0)
}
  0x8f   : > { %s22541_s21 = smov 256   ;;  %s22542_s18 = smov 16  }
  0x90   : > { %20036 = dma.hbm_to_vmem [thread:$0]  (!%p22624_p5), %s24876_s5, 28672, %s310_s28, [#allocation8], %s22541_s21, %s22541_s21, %s22542_s18  }
  0x91   : > { %s22543_s26 = smov [#allocation12]   ;;  %s22447_s15 = scalar_lea.hbm %s24878_s7, 12288 }
  0x92   : > { %s333_s16 = sshll.u32 %s22543_s26, 4  ;;  %p22448_p2 = scmp.ne.s32.totalorder %s24878_s7, %s22447_s15  ;;  %s334_s16 = int_to_ptr.vmem [resolvable:$true] %s333_s16 }
  0x93   : > { %p22454_p4 = scmp.lt.u32.totalorder %s22447_s15, %s24878_s7 }
  0x94   : > { %p22450_p3 = pnand %p22448_p2, %p22640_p7 }
  0x96   : > { %p22451_p1 = pneg %p22450_p3 }
  0x98   : > { %p22456_p6 = pnand %p22454_p4, %p22451_p1 }
  0x9a   : > { %22459 = shalt.err (!%p22456_p6)
}
  0x9b   : > { %s22460_s28 = scalar_lea.vmem %s334_s16, 12288  ;;  %p22468_p11 = scmp.lt.s32.totalorder %s334_s16, %s334_s16 }
  0x9c   : > { %p22461_p8 = scmp.ne.s32.totalorder %s334_s16, %s22460_s28  ;;  %p22469_p12 = scmp.lt.s32.totalorder %s22460_s28, %s22460_s28 }
  0x9e   : > { %p22463_p9 = pnand %p22461_p8, %p22640_p7  ;;  %p22470_p13 = por %p22469_p12, %p22468_p11 }
  0xa0   : > { %p22464_p10 = pneg %p22463_p9 }
  0xa2   : > { %p22471_p0 = pnand %p22470_p13, %p22464_p10 }
  0xa4   : > { %22474 = shalt.err (!%p22471_p0)
}
  0xa5   : > { %s22544_s11 = smov 192   ;;  %s22545_s21 = smov 12  }
  0xa6   : > { %20042 = dma.hbm_to_vmem [thread:$0]  (!%p22624_p5), %s24878_s7, 12288, %s334_s16, [#allocation11], %s22544_s11, %s22544_s11, %s22545_s21  }
  0xa7   : > { %s22546_s25 = smov [#allocation13]   ;;  %s22475_s15 = scalar_lea.hbm %s24879_s8, 48 }
  0xa8   : > { %s347_s26 = sshll.u32 %s22546_s25, 4  ;;  %p22476_p2 = scmp.ne.s32.totalorder %s24879_s8, %s22475_s15  ;;  %s348_s26 = int_to_ptr.vmem [resolvable:$true] %s347_s26 }
  0xa9   : > { %p22482_p4 = scmp.lt.u32.totalorder %s22475_s15, %s24879_s8 }
  0xaa   : > { %p22478_p3 = pnand %p22476_p2, %p22640_p7 }
  0xac   : > { %p22479_p1 = pneg %p22478_p3 }
  0xae   : > { %p22484_p6 = pnand %p22482_p4, %p22479_p1 }
  0xb0   : > { %22487 = shalt.err (!%p22484_p6)
}
  0xb1   : > { %s22488_s16 = scalar_lea.vmem %s348_s26, 48  ;;  %s22495_s28 = scalar_lea.vmem %s348_s26, 64 }
  0xb2   : > { %p22489_p8 = scmp.ne.s32.totalorder %s348_s26, %s22488_s16  ;;  %p22496_p11 = scmp.lt.s32.totalorder %s348_s26, %s348_s26 }
  0xb3   : > { %p22497_p12 = scmp.lt.s32.totalorder %s22495_s28, %s22488_s16 }
  0xb4   : > { %p22491_p9 = pnand %p22489_p8, %p22640_p7 }
  0xb5   : > { %p22498_p13 = por %p22497_p12, %p22496_p11 }
  0xb6   : > { %p22492_p10 = pneg %p22491_p9 }
  0xb8   : > { %p22499_p0 = pnand %p22498_p13, %p22492_p10 }
  0xba   : > { %22502 = shalt.err (!%p22499_p0)
}
  0xbb   : > { %20045 = dma.hbm_to_vmem [thread:$0]  (!%p22624_p5), %s24879_s8, 48, %s348_s26, [#allocation14]  }
  0xbc   : > { %p25134_p2 = scmp.ne.s32.totalorder %s25131_s14, 0 }
  0xbe   : > { %370 = sbr.rel (%p25134_p2) target bundleno = 2382 (0x94e), region = 56 }
  0xc5   : > { %p25135_p3 = scmp.ne.s32.totalorder %s25130_s13, 0 }
  0xc7   : > { %22508 = dma.done.wait (%p25135_p3), [#allocation3], 43008  }
  0xc8   : > { %22510 = vsyncadd (%p25135_p3), [#allocation3], 4294924288 }
  0xc9   : > { %22512 = dma.done.wait (%p25135_p3), [#allocation5], 100576  }
  0xca   : > { %22514 = vsyncadd (%p25135_p3), [#allocation5], 4294866720 }
  0xcb   : > { %22516 = dma.done.wait (%p25135_p3), [#allocation8], 28784  }
  0xcc   : > { %22518 = vsyncadd (%p25135_p3), [#allocation8], 4294938512 }
  0xcd   : > { %22520 = dma.done.wait (%p25135_p3), [#allocation11], 12352  }
  0xce   : > { %22522 = vsyncadd (%p25135_p3), [#allocation11], 4294954944 }
  0xcf   : > { %22524 = dma.done.wait (%p25135_p3), [#allocation14], 48  }
  0xd0   : > { %22526 = vsyncadd (%p25135_p3), [#allocation14], 4294967248  ;;  %v20087_v0 = vld [vmem:[#allocation2 + $0x4] ss:$56 sps:$4 sm:$0xff]   ;;  %v20091_v2 = vld [vmem:[#allocation2] ss:$56 sps:$4 sm:$0xff]  }
  0xd1   : > { %v20089_v1 = vld [vmem:[#allocation2 + $0xc] ss:$56 sps:$4 sm:$0xff]   ;;  %2701 = vmatprep.subr.bf16.mxu0 %v20087_v0  ;;  %v20092_v3 = vld [vmem:[#allocation2 + $0x8] ss:$56 sps:$4 sm:$0xff]   ;;  %v20095_v5 = vld [vmem:[#allocation2 + $0x7c] ss:$56 sps:$4 sm:$0xff]  }
  0xd2   : > { %2927 = vmatprep.subr.bf16.mxu1 %v20089_v1  ;;  %v20093_v4 = vld [vmem:[#allocation2 + $0x74] ss:$56 sps:$4 sm:$0xff]   ;;  %2702 = vmatpush1.bf16.msra.mxu0 %v20091_v2  ;;  %v20097_v6 = vld [vmem:[#allocation2 + $0x70] ss:$56 sps:$4 sm:$0xff]   ;;  %v20099_v8 = vld [vmem:[#allocation2 + $0xe4] ss:$56 sps:$4 sm:$0xff]  }
  0xd3   : > { %2928 = vmatpush1.bf16.msra.mxu1 %v20092_v3  ;;  %2703 = vmatprep.subr.bf16.mxu0 %v20093_v4  ;;  %v20098_v7 = vld [vmem:[#allocation2 + $0x78] ss:$56 sps:$4 sm:$0xff]   ;;  %v20101_v9 = vld [vmem:[#allocation2 + $0xec] ss:$56 sps:$4 sm:$0xff]   ;;  %v20104_v11 = vld [vmem:[#allocation2 + $0xe8] ss:$56 sps:$4 sm:$0xff]  }
  0xd4   : > { %2929 = vmatprep.subr.bf16.mxu1 %v20095_v5  ;;  %v20103_v10 = vld [vmem:[#allocation2 + $0xe0] ss:$56 sps:$4 sm:$0xff]   ;;  %v20105_v12 = vld [vmem:[#allocation2 + $0x154] ss:$56 sps:$4 sm:$0xff]   ;;  %v20109_v14 = vld [vmem:[#allocation2 + $0x150] ss:$56 sps:$4 sm:$0xff]  }
  0xd5   : > { %v20107_v13 = vld [vmem:[#allocation2 + $0x15c] ss:$56 sps:$4 sm:$0xff]   ;;  %v20110_v15 = vld [vmem:[#allocation2 + $0x158] ss:$56 sps:$4 sm:$0xff]   ;;  %v20113_v17 = vld [vmem:[#allocation2 + $0x1cc] ss:$56 sps:$4 sm:$0xff]  }
  0xd6   : > { %2704 = vmatpush1.bf16.msra.mxu0 %v20097_v6  ;;  %v20111_v16 = vld [vmem:[#allocation2 + $0x1c4] ss:$56 sps:$4 sm:$0xff]   ;;  %v20115_v18 = vld [vmem:[#allocation2 + $0x1c0] ss:$56 sps:$4 sm:$0xff]   ;;  %v20117_v20 = vld [vmem:[#allocation2 + $0x234] ss:$56 sps:$4 sm:$0xff]  }
  0xd7   : > { %2930 = vmatpush1.bf16.msra.mxu1 %v20098_v7  ;;  %2705 = vmatprep.subr.bf16.mxu0 %v20099_v8  ;;  %v20116_v19 = vld [vmem:[#allocation2 + $0x1c8] ss:$56 sps:$4 sm:$0xff]   ;;  %v20119_v21 = vld [vmem:[#allocation2 + $0x23c] ss:$56 sps:$4 sm:$0xff]   ;;  %v20122_v23 = vld [vmem:[#allocation2 + $0x238] ss:$56 sps:$4 sm:$0xff]  }
  0xd8   : > { %2931 = vmatprep.subr.bf16.mxu1 %v20101_v9  ;;  %v20121_v22 = vld [vmem:[#allocation2 + $0x230] ss:$56 sps:$4 sm:$0xff]   ;;  %v20123_v24 = vld [vmem:[#allocation2 + $0x2a4] ss:$56 sps:$4 sm:$0xff]   ;;  %v20127_v26 = vld [vmem:[#allocation2 + $0x2a0] ss:$56 sps:$4 sm:$0xff]  }
  0xd9   : > { %v20125_v25 = vld [vmem:[#allocation2 + $0x2ac] ss:$56 sps:$4 sm:$0xff]   ;;  %v20128_v27 = vld [vmem:[#allocation2 + $0x2a8] ss:$56 sps:$4 sm:$0xff]   ;;  %v20131_v29 = vld [vmem:[#allocation2 + $0x31c] ss:$56 sps:$4 sm:$0xff]  }
  0xda   : > { %2706 = vmatpush1.bf16.msra.mxu0 %v20103_v10  ;;  %v20129_v28 = vld [vmem:[#allocation2 + $0x314] ss:$56 sps:$4 sm:$0xff]   ;;  %s16501_s13 = sshll.u32 %s16480_s12, 4  ;;  %v20133_v30 = vld [vmem:[#allocation2 + $0x310] ss:$56 sps:$4 sm:$0xff]  }
  0xdb   : > { %2932 = vmatpush1.bf16.msra.mxu1 %v20104_v11  ;;  %2707 = vmatprep.subr.bf16.mxu0 %v20105_v12  ;;  %v20134_v31 = vld [vmem:[#allocation2 + $0x318] ss:$56 sps:$4 sm:$0xff]   ;;  %v20135_v32 = vld [vmem:[#allocation2 + $0x384] ss:$56 sps:$4 sm:$0xff]   ;;  %p437_p5 = scmp.lt.s32.totalorder %s16501_s13, 31 }
  0xdc   : > { %2933 = vmatprep.subr.bf16.mxu1 %v20107_v13  ;;  %v20137_v33 = vld [vmem:[#allocation2 + $0x38c] ss:$56 sps:$4 sm:$0xff]   ;;  %v20139_v34 = vld [vmem:[#allocation2 + $0x380] ss:$56 sps:$4 sm:$0xff]   ;;  %v20143_v37 = vld [vmem:[#allocation2 + $0x3fc] ss:$56 sps:$4 sm:$0xff]  }
  0xdd   : > { %v20140_v35 = vld [vmem:[#allocation2 + $0x388] ss:$56 sps:$4 sm:$0xff]   ;;  %v20141_v36 = vld [vmem:[#allocation2 + $0x3f4] ss:$56 sps:$4 sm:$0xff]   ;;  %s25502_s13 = smov (!%p437_p5, %s16501_s13), 31 }
  0xde   : > { %2708 = vmatpush1.bf16.msra.mxu0 %v20109_v14  ;;  %v20145_v38 = vld [vmem:[#allocation2 + $0x3f0] ss:$56 sps:$4 sm:$0xff]   ;;  %v20147_v40 = vld [vmem:[#allocation2 + $0x464] ss:$56 sps:$4 sm:$0xff]   ;;  %s19987_s12 = smul.u32 12, %s25502_s13 }
  0xdf   : > { %2934 = vmatpush1.bf16.msra.mxu1 %v20110_v15  ;;  %2709 = vmatprep.subr.bf16.mxu0 %v20111_v16  ;;  %v20146_v39 = vld [vmem:[#allocation2 + $0x3f8] ss:$56 sps:$4 sm:$0xff]   ;;  %v20149_v41 = vld [vmem:[#allocation2 + $0x46c] ss:$56 sps:$4 sm:$0xff]   ;;  %v20152_v43 = vld [vmem:[#allocation2 + $0x468] ss:$56 sps:$4 sm:$0xff]  }
  0xe0   : > { %2935 = vmatprep.subr.bf16.mxu1 %v20113_v17  ;;  %v20151_v42 = vld [vmem:[#allocation2 + $0x460] ss:$56 sps:$4 sm:$0xff]   ;;  %v20153_v44 = vld [vmem:[#allocation2 + $0x4d4] ss:$56 sps:$4 sm:$0xff]   ;;  %s22833_s27 = scalar_lea.vmem %s24871_s0, %s19987_s12  ;;  %v20157_v46 = vld [vmem:[#allocation2 + $0x4d0] ss:$56 sps:$4 sm:$0xff]  }
  0xe1   : > { %v20155_v45 = vld [vmem:[#allocation2 + $0x4dc] ss:$56 sps:$4 sm:$0xff]   ;;  %v20158_v47 = vld [vmem:[#allocation2 + $0x4d8] ss:$56 sps:$4 sm:$0xff]   ;;  %v20161_v50 = vld [vmem:[#allocation2 + $0x54c] ss:$56 sps:$4 sm:$0xff]  }
  0xe2   : > { %2710 = vmatpush1.bf16.msra.mxu0 %v20115_v18  ;;  %v20183_v48 = vld [vmem:[%s22833_s27 + $0x4] ss:$12 sps:$4 sm:$0xff]   ;;  %v20163_v51 = vld [vmem:[#allocation2 + $0x540] ss:$56 sps:$4 sm:$0xff]   ;;  %v20165_v53 = vld [vmem:[#allocation2 + $0x5b4] ss:$56 sps:$4 sm:$0xff]  }
  0xe3   : > { %2936 = vmatpush1.bf16.msra.mxu1 %v20116_v19  ;;  %2711 = vmatprep.subr.bf16.mxu0 %v20117_v20  ;;  %v20159_v49 = vld [vmem:[#allocation2 + $0x544] ss:$56 sps:$4 sm:$0xff]   ;;  %v20164_v52 = vld [vmem:[#allocation2 + $0x548] ss:$56 sps:$4 sm:$0xff]   ;;  %v20170_v56 = vld [vmem:[#allocation2 + $0x5b8] ss:$56 sps:$4 sm:$0xff]  }
  0xe4   : > { %2937 = vmatprep.subr.bf16.mxu1 %v20119_v21  ;;  %2733 = vmatprep.mubr.bf16.mxu0 %v20183_v48  ;;  %v20167_v54 = vld [vmem:[#allocation2 + $0x5bc] ss:$56 sps:$4 sm:$0xff]   ;;  %v20169_v55 = vld [vmem:[#allocation2 + $0x5b0] ss:$56 sps:$4 sm:$0xff]   ;;  %v20173_v58 = vld [vmem:[#allocation2 + $0x62c] ss:$56 sps:$4 sm:$0xff]  }
  0xe5   : > { %2959 = vmatprep.mubr.bf16.mxu1 %v20183_v48  ;;  %v20171_v57 = vld [vmem:[#allocation2 + $0x624] ss:$56 sps:$4 sm:$0xff]   ;;  %v20175_v59 = vld [vmem:[#allocation2 + $0x620] ss:$56 sps:$4 sm:$0xff]   ;;  %v20177_v61 = vld [vmem:[#allocation2 + $0x694] ss:$56 sps:$4 sm:$0xff]  }
  0xe6   : > { %2712 = vmatpush1.bf16.msra.mxu0 %v20121_v22  ;;  %v20176_v60 = vld [vmem:[#allocation2 + $0x628] ss:$56 sps:$4 sm:$0xff]   ;;  %v20179_v62 = vld [vmem:[#allocation2 + $0x69c] ss:$56 sps:$4 sm:$0xff]   ;;  %v20182_v0 = vld [vmem:[#allocation2 + $0x698] ss:$56 sps:$4 sm:$0xff]  }
  0xe7   : > { %2938 = vmatpush1.bf16.msra.mxu1 %v20122_v23  ;;  %2713 = vmatprep.subr.bf16.mxu0 %v20123_v24  ;;  %v20181_v63 = vld [vmem:[#allocation2 + $0x690] ss:$56 sps:$4 sm:$0xff]   ;;  %v20188_v1 = vld [vmem:[#allocation2 + $0x704] ss:$56 sps:$4 sm:$0xff]   ;;  %v22837_v3 = vld [vmem:[%s22833_s27] ss:$12 sps:$4 sm:$0xff]  }
  0xe8   : > { %2939 = vmatprep.subr.bf16.mxu1 %v20125_v25  ;;  %v20215_v2 = vld [vmem:[#allocation2 + $0x70c] ss:$56 sps:$4 sm:$0xff]   ;;  %v20186_v4 = vld [vmem:[#allocation2 + $0x700] ss:$56 sps:$4 sm:$0xff]   ;;  %v22840_v5 = vld [vmem:[%s22833_s27 + $0x1c] ss:$12 sps:$4 sm:$0xff]  }
  0xe9   : > { %v20194_v6 = vld [vmem:[#allocation2 + $0x774] ss:$56 sps:$4 sm:$0xff]   ;;  %v20213_v7 = vld [vmem:[#allocation2 + $0x708] ss:$56 sps:$4 sm:$0xff]   ;;  %v20200_v10 = vld [vmem:[#allocation2 + $0x7e4] ss:$56 sps:$4 sm:$0xff]  }
  0xea   : > { %2714 = vmatpush1.bf16.msra.mxu0 %v20127_v26  ;;  %v20218_v8 = vld [vmem:[#allocation2 + $0x77c] ss:$56 sps:$4 sm:$0xff]   ;;  %v20192_v9 = vld [vmem:[#allocation2 + $0x770] ss:$56 sps:$4 sm:$0xff]   ;;  %v22847_v12 = vld [vmem:[%s22833_s27 + $0x18] ss:$12 sps:$4 sm:$0xff]  }
  0xeb   : > { %2940 = vmatpush1.bf16.msra.mxu1 %v20128_v27  ;;  %2715 = vmatprep.subr.bf16.mxu0 %v20129_v28  ;;  %v20216_v11 = vld [vmem:[#allocation2 + $0x778] ss:$56 sps:$4 sm:$0xff]   ;;  %v22850_v13 = vld [vmem:[%s22833_s27 + $0x34] ss:$12 sps:$4 sm:$0xff]   ;;  %v20227_v15 = vld [vmem:[#allocation2 + $0x7ec] ss:$56 sps:$4 sm:$0xff]  }
  0xec   : > { %2941 = vmatprep.subr.bf16.mxu1 %v20131_v29  ;;  %v20198_v14 = vld [vmem:[#allocation2 + $0x7e0] ss:$56 sps:$4 sm:$0xff]   ;;  %v20206_v16 = vld [vmem:[#allocation2 + $0x854] ss:$56 sps:$4 sm:$0xff]   ;;  %v20204_v19 = vld [vmem:[#allocation2 + $0x850] ss:$56 sps:$4 sm:$0xff]  }
  0xed   : > { %v20225_v17 = vld [vmem:[#allocation2 + $0x7e8] ss:$56 sps:$4 sm:$0xff]   ;;  %v20230_v18 = vld [vmem:[#allocation2 + $0x85c] ss:$56 sps:$4 sm:$0xff]   ;;  %v20228_v21 = vld [vmem:[#allocation2 + $0x858] ss:$56 sps:$4 sm:$0xff]  }
  0xee   : > { %2716 = vmatpush1.bf16.msra.mxu0 %v20133_v30  ;;  %v20212_v20 = vld [vmem:[#allocation2 + $0x8c4] ss:$56 sps:$4 sm:$0xff]   ;;  %v20201_v23 = vld [vmem:[%s22833_s27 + $0x4c] ss:$12 sps:$4 sm:$0xff]   ;;  %v20237_v27 = vld [vmem:[#allocation2 + $0x8c8] ss:$56 sps:$4 sm:$0xff]  }
  0xef   : > { %2942 = vmatpush1.bf16.msra.mxu1 %v20134_v31  ;;  %2717 = vmatprep.subr.bf16.mxu0 %v20135_v32  ;;  %v20197_v22 = vld [vmem:[%s22833_s27 + $0x30] ss:$12 sps:$4 sm:$0xff]   ;;  %v20210_v24 = vld [vmem:[#allocation2 + $0x8c0] ss:$56 sps:$4 sm:$0xff]   ;;  %v20224_v25 = vld [vmem:[#allocation2 + $0x934] ss:$56 sps:$4 sm:$0xff]  }
  0xf0   : > { %2943 = vmatprep.subr.bf16.mxu1 %v20137_v33  ;;  %v20239_v26 = vld [vmem:[#allocation2 + $0x8cc] ss:$56 sps:$4 sm:$0xff]   ;;  %v20242_v28 = vld [vmem:[#allocation2 + $0x93c] ss:$56 sps:$4 sm:$0xff]   ;;  %v20222_v29 = vld [vmem:[#allocation2 + $0x930] ss:$56 sps:$4 sm:$0xff]  }
  0xf1   : > { %v20236_v30 = vld [vmem:[#allocation2 + $0x9a4] ss:$56 sps:$4 sm:$0xff]   ;;  %v20240_v31 = vld [vmem:[#allocation2 + $0x938] ss:$56 sps:$4 sm:$0xff]   ;;  %v20203_v32 = vld [vmem:[%s22833_s27 + $0x48] ss:$12 sps:$4 sm:$0xff]  }
  0xf2   : > { %2718 = vmatpush1.bf16.msra.mxu0 %v20139_v34  ;;  %v20207_v33 = vld [vmem:[%s22833_s27 + $0x64] ss:$12 sps:$4 sm:$0xff]   ;;  %v20234_v34 = vld [vmem:[#allocation2 + $0x9a0] ss:$56 sps:$4 sm:$0xff]   ;;  %s19988_s18 = smul.u32 24, %s25502_s13 }
  0xf3   : > { %2944 = vmatpush1.bf16.msra.mxu1 %v20140_v35  ;;  %2719 = vmatprep.subr.bf16.mxu0 %v20141_v36  ;;  %v20251_v35 = vld [vmem:[#allocation2 + $0x9ac] ss:$56 sps:$4 sm:$0xff]  }
  0xf4   : > { %2945 = vmatprep.subr.bf16.mxu1 %v20143_v37  ;;  %v20248_v36 = vld [vmem:[#allocation2 + $0xa14] ss:$56 sps:$4 sm:$0xff]   ;;  %v20249_v37 = vld [vmem:[#allocation2 + $0x9a8] ss:$56 sps:$4 sm:$0xff]   ;;  %s24758_s26 = scalar_lea.vmem %s24880_s9, %s19988_s18 }
  0xf5   : > { %v20243_v48 = vld [vmem:[%s22833_s27 + $0xac] ss:$12 sps:$4 sm:$0xff]  }
  0xf6   : > { %2720 = vmatpush1.bf16.msra.mxu0 %v20145_v38  ;;  %v20254_v38 = vld [vmem:[#allocation2 + $0xa1c] ss:$56 sps:$4 sm:$0xff]  }
  0xf7   : > { %2946 = vmatpush1.bf16.msra.mxu1 %v20146_v39  ;;  %2721 = vmatprep.subr.bf16.mxu0 %v20147_v40  ;;  %v20246_v39 = vld [vmem:[#allocation2 + $0xa10] ss:$56 sps:$4 sm:$0xff]  }
  0xf8   : > { %2947 = vmatprep.subr.bf16.mxu1 %v20149_v41  ;;  %v20252_v40 = vld [vmem:[#allocation2 + $0xa18] ss:$56 sps:$4 sm:$0xff]   ;;  %v20258_v41 = vld [vmem:[#allocation2 + $0x14] ss:$56 sps:$4 sm:$0xff]  }
  0xfa   : > { %2722 = vmatpush1.bf16.msra.mxu0 %v20151_v42  ;;  %v20209_v42 = vld [vmem:[%s22833_s27 + $0x60] ss:$12 sps:$4 sm:$0xff]  }
  0xfb   : > { %2948 = vmatpush1.bf16.msra.mxu1 %v20152_v43  ;;  %2723 = vmatprep.subr.bf16.mxu0 %v20153_v44  ;;  %v20219_v43 = vld [vmem:[%s22833_s27 + $0x7c] ss:$12 sps:$4 sm:$0xff]  }
  0xfc   : > { %2949 = vmatprep.subr.bf16.mxu1 %v20155_v45  ;;  %v20261_v44 = vld [vmem:[#allocation2 + $0x1c] ss:$56 sps:$4 sm:$0xff]   ;;  %v20221_v45 = vld [vmem:[%s22833_s27 + $0x78] ss:$12 sps:$4 sm:$0xff]  }
  0xfe   : > { %2724 = vmatpush1.bf16.msra.mxu0 %v20157_v46  ;;  %v20231_v46 = vld [vmem:[%s22833_s27 + $0x94] ss:$12 sps:$4 sm:$0xff]  }
  0xff   : > { %2950 = vmatpush1.bf16.msra.mxu1 %v20158_v47  ;;  %2725 = vmatprep.subr.bf16.mxu0 %v20159_v49  ;;  %v20233_v47 = vld [vmem:[%s22833_s27 + $0x90] ss:$12 sps:$4 sm:$0xff]   ;;  %v20245_v49 = vld [vmem:[%s22833_s27 + $0xa8] ss:$12 sps:$4 sm:$0xff]  }
 0x100   : > { %2951 = vmatprep.subr.bf16.mxu1 %v20161_v50  ;;  %v24885_v50 = vmov 0  }
 0x102   : > { %2726 = vmatpush1.bf16.msra.mxu0 %v20163_v51  ;;  %v20255_v51 = vld [vmem:[%s22833_s27 + $0x8] ss:$12 sps:$4 sm:$0xff]  }
 0x103   : > { %2952 = vmatpush1.bf16.msra.mxu1 %v20164_v52  ;;  %2727 = vmatprep.subr.bf16.mxu0 %v20165_v53  ;;  %v20256_v52 = vld [vmem:[#allocation2 + $0x10] ss:$56 sps:$4 sm:$0xff]  }
 0x104   : > { %2953 = vmatprep.subr.bf16.mxu1 %v20167_v54  ;;  %v20259_v53 = vld [vmem:[#allocation2 + $0x18] ss:$56 sps:$4 sm:$0xff]   ;;  %v20264_v54 = vld [vmem:[#allocation2 + $0x84] ss:$56 sps:$4 sm:$0xff]  }
 0x106   : > { %2728 = vmatpush1.bf16.msra.mxu0 %v20169_v55  ;;  %v20267_v55 = vld [vmem:[#allocation2 + $0x8c] ss:$56 sps:$4 sm:$0xff]  }
 0x107   : > { %2954 = vmatpush1.bf16.msra.mxu1 %v20170_v56  ;;  %2729 = vmatprep.subr.bf16.mxu0 %v20171_v57  ;;  %v20262_v56 = vld [vmem:[#allocation2 + $0x80] ss:$56 sps:$4 sm:$0xff]  }
 0x108   : > { %2955 = vmatprep.subr.bf16.mxu1 %v20173_v58  ;;  %v20265_v57 = vld [vmem:[#allocation2 + $0x88] ss:$56 sps:$4 sm:$0xff]   ;;  %v20271_v58 = vld [vmem:[#allocation2 + $0xf4] ss:$56 sps:$4 sm:$0xff]  }
 0x10a   : > { %2730 = vmatpush1.bf16.msra.mxu0 %v20175_v59  ;;  %v20274_v59 = vld [vmem:[#allocation2 + $0xfc] ss:$56 sps:$4 sm:$0xff]  }
 0x10b   : > { %2956 = vmatpush1.bf16.msra.mxu1 %v20176_v60  ;;  %2731 = vmatprep.subr.bf16.mxu0 %v20177_v61  ;;  %v20268_v60 = vld [vmem:[%s22833_s27 + $0x20] ss:$12 sps:$4 sm:$0xff]   ;;  %v20269_v61 = vld [vmem:[#allocation2 + $0xf0] ss:$56 sps:$4 sm:$0xff]  }
 0x10c   : > { %2957 = vmatprep.subr.bf16.mxu1 %v20179_v62  ;;  %v20272_v62 = vld [vmem:[#allocation2 + $0xf8] ss:$56 sps:$4 sm:$0xff]  }
 0x10e   : > { %2732 = vmatpush1.bf16.msra.mxu0 %v20181_v63  ;;  %v20277_v63 = vld [vmem:[#allocation2 + $0x164] ss:$56 sps:$4 sm:$0xff]  }
 0x10f   : > { %2958 = vmatpush1.bf16.msra.mxu1 %v20182_v0  ;;  %2814 = vmatprep.subr.bf16.mxu0 %v20188_v1  ;;  %v20280_v0 = vld [vmem:[#allocation2 + $0x16c] ss:$56 sps:$4 sm:$0xff]   ;;  %v20275_v1 = vld [vmem:[#allocation2 + $0x160] ss:$56 sps:$4 sm:$0xff]  }
 0x110   : > { %3040 = vmatprep.subr.bf16.mxu1 %v20215_v2  ;;  %v20278_v2 = vld [vmem:[#allocation2 + $0x168] ss:$56 sps:$4 sm:$0xff]  }
 0x111   : > { %2734 = vmatmul.mubr.bf16.vlgmr.msra.gmra.mrb[0].mxu0 %v22837_v3 }
 0x112   : > { %2960 = vmatmul.mubr.bf16.vlgmr.msra.gmra.mrb[0].mxu1 %v22837_v3  ;;  %2815 = vmatpush1.bf16.msra.mxu0 %v20186_v4  ;;  %v20284_v4 = vld [vmem:[#allocation2 + $0x1d4] ss:$56 sps:$4 sm:$0xff]  }
 0x113   : > { %2743 = vmatprep.mubr.bf16.mxu0 %v22840_v5  ;;  %2969 = vmatprep.mubr.bf16.mxu1 %v22840_v5 }
 0x114   : > { %2816 = vmatprep.subr.bf16.mxu0 %v20194_v6  ;;  %3041 = vmatpush1.bf16.msra.mxu1 %v20213_v7  ;;  %v20287_v6 = vld [vmem:[#allocation2 + $0x1dc] ss:$56 sps:$4 sm:$0xff]   ;;  %v20281_v7 = vld [vmem:[%s22833_s27 + $0x38] ss:$12 sps:$4 sm:$0xff]  }
 0x115   : > { %3042 = vmatprep.subr.bf16.mxu1 %v20218_v8  ;;  %v20282_v8 = vld [vmem:[#allocation2 + $0x1d0] ss:$56 sps:$4 sm:$0xff]  }
 0x116   : > { %2817 = vmatpush1.bf16.msra.mxu0 %v20192_v9  ;;  %v20285_v9 = vld [vmem:[#allocation2 + $0x1d8] ss:$56 sps:$4 sm:$0xff]  }
 0x117   : > { %2818 = vmatprep.subr.bf16.mxu0 %v20200_v10  ;;  %v20290_v10 = vld [vmem:[#allocation2 + $0x244] ss:$56 sps:$4 sm:$0xff]  }
 0x118   : > { %3043 = vmatpush1.bf16.msra.mxu1 %v20216_v11  ;;  %v20293_v11 = vld [vmem:[#allocation2 + $0x24c] ss:$56 sps:$4 sm:$0xff]  }
 0x119   : > { %2744 = vmatmul.mubr.bf16.gmra.mrb[4].mxu0 %v22847_v12  ;;  %3044 = vmatprep.subr.bf16.mxu1 %v20227_v15  ;;  %v20291_v15 = vld [vmem:[#allocation2 + $0x248] ss:$56 sps:$4 sm:$0xff]  }
 0x11a   : > { %2970 = vmatmul.mubr.bf16.gmra.mrb[4].mxu1 %v22847_v12  ;;  %2753 = vmatprep.mubr.bf16.mxu0 %v22850_v13 }
 0x11b   : > { %2979 = vmatprep.mubr.bf16.mxu1 %v22850_v13  ;;  %2819 = vmatpush1.bf16.msra.mxu0 %v20198_v14  ;;  %v20288_v14 = vld [vmem:[#allocation2 + $0x240] ss:$56 sps:$4 sm:$0xff]  }
 0x11c   : > { %2820 = vmatprep.subr.bf16.mxu0 %v20206_v16  ;;  %3045 = vmatpush1.bf16.msra.mxu1 %v20225_v17  ;;  %v20297_v16 = vld [vmem:[#allocation2 + $0x2b4] ss:$56 sps:$4 sm:$0xff]  }
 0x11d   : > { %3046 = vmatprep.subr.bf16.mxu1 %v20230_v18  ;;  %v20300_v17 = vld [vmem:[#allocation2 + $0x2bc] ss:$56 sps:$4 sm:$0xff]  }
 0x11e   : > { %v20294_v18 = vld [vmem:[%s22833_s27 + $0x50] ss:$12 sps:$4 sm:$0xff]  }
 0x11f   : > { %2821 = vmatpush1.bf16.msra.mxu0 %v20204_v19  ;;  %v20295_v19 = vld [vmem:[#allocation2 + $0x2b0] ss:$56 sps:$4 sm:$0xff]  }
 0x120   : > { %2822 = vmatprep.subr.bf16.mxu0 %v20212_v20  ;;  %3047 = vmatpush1.bf16.msra.mxu1 %v20228_v21  ;;  %v20298_v20 = vld [vmem:[#allocation2 + $0x2b8] ss:$56 sps:$4 sm:$0xff]   ;;  %v20303_v21 = vld [vmem:[#allocation2 + $0x324] ss:$56 sps:$4 sm:$0xff]  }
 0x121   : > { %2754 = vmatmul.mubr.bf16.gmra.mrb[8].mxu0 %v20197_v22  ;;  %3048 = vmatprep.subr.bf16.mxu1 %v20239_v26  ;;  %v20313_v26 = vld [vmem:[#allocation2 + $0x39c] ss:$56 sps:$4 sm:$0xff]  }
 0x122   : > { %2980 = vmatmul.mubr.bf16.gmra.mrb[8].mxu1 %v20197_v22  ;;  %2763 = vmatprep.mubr.bf16.mxu0 %v20201_v23  ;;  %v20306_v22 = vld [vmem:[#allocation2 + $0x32c] ss:$56 sps:$4 sm:$0xff]  }
 0x123   : > { %2989 = vmatprep.mubr.bf16.mxu1 %v20201_v23  ;;  %2823 = vmatpush1.bf16.msra.mxu0 %v20210_v24  ;;  %v20301_v23 = vld [vmem:[#allocation2 + $0x320] ss:$56 sps:$4 sm:$0xff]  }
 0x124   : > { %2824 = vmatprep.subr.bf16.mxu0 %v20224_v25  ;;  %3049 = vmatpush1.bf16.msra.mxu1 %v20237_v27  ;;  %v20304_v24 = vld [vmem:[#allocation2 + $0x328] ss:$56 sps:$4 sm:$0xff]   ;;  %v20310_v25 = vld [vmem:[#allocation2 + $0x394] ss:$56 sps:$4 sm:$0xff]  }
 0x125   : > { %3050 = vmatprep.subr.bf16.mxu1 %v20242_v28  ;;  %v20307_v27 = vld [vmem:[%s22833_s27 + $0x68] ss:$12 sps:$4 sm:$0xff]  }
 0x126   : > { %v20308_v28 = vld [vmem:[#allocation2 + $0x390] ss:$56 sps:$4 sm:$0xff]  }
 0x127   : > { %2825 = vmatpush1.bf16.msra.mxu0 %v20222_v29  ;;  %v20311_v29 = vld [vmem:[#allocation2 + $0x398] ss:$56 sps:$4 sm:$0xff]  }
 0x128   : > { %2826 = vmatprep.subr.bf16.mxu0 %v20236_v30  ;;  %3051 = vmatpush1.bf16.msra.mxu1 %v20240_v31  ;;  %v20316_v30 = vld [vmem:[#allocation2 + $0x404] ss:$56 sps:$4 sm:$0xff]  }
 0x129   : > { %2764 = vmatmul.mubr.bf16.gmra.mrb[12].mxu0 %v20203_v32  ;;  %3052 = vmatprep.subr.bf16.mxu1 %v20251_v35  ;;  %v20319_v31 = vld [vmem:[#allocation2 + $0x40c] ss:$56 sps:$4 sm:$0xff]   ;;  %v20326_v35 = vld [vmem:[#allocation2 + $0x47c] ss:$56 sps:$4 sm:$0xff]  }
 0x12a   : > { %2990 = vmatmul.mubr.bf16.gmra.mrb[12].mxu1 %v20203_v32  ;;  %2773 = vmatprep.mubr.bf16.mxu0 %v20207_v33  ;;  %v20314_v32 = vld [vmem:[#allocation2 + $0x400] ss:$56 sps:$4 sm:$0xff]  }
 0x12b   : > { %2999 = vmatprep.mubr.bf16.mxu1 %v20207_v33  ;;  %2827 = vmatpush1.bf16.msra.mxu0 %v20234_v34  ;;  %v20317_v33 = vld [vmem:[#allocation2 + $0x408] ss:$56 sps:$4 sm:$0xff]   ;;  %v20323_v34 = vld [vmem:[#allocation2 + $0x474] ss:$56 sps:$4 sm:$0xff]  }
 0x12c   : > { %2828 = vmatprep.subr.bf16.mxu0 %v20248_v36  ;;  %3053 = vmatpush1.bf16.msra.mxu1 %v20249_v37  ;;  %v20320_v36 = vld [vmem:[%s22833_s27 + $0x80] ss:$12 sps:$4 sm:$0xff]   ;;  %v20321_v37 = vld [vmem:[#allocation2 + $0x470] ss:$56 sps:$4 sm:$0xff]  }
 0x12d   : > { %3054 = vmatprep.subr.bf16.mxu1 %v20254_v38  ;;  %v20324_v38 = vld [vmem:[#allocation2 + $0x478] ss:$56 sps:$4 sm:$0xff]  }
 0x12f   : > { %2829 = vmatpush1.bf16.msra.mxu0 %v20246_v39  ;;  %v20329_v39 = vld [vmem:[#allocation2 + $0x4e4] ss:$56 sps:$4 sm:$0xff]  }
 0x130   : > { %3055 = vmatpush1.bf16.msra.mxu1 %v20252_v40  ;;  %3153 = vmatprep.subr.bf16.mxu0 %v20258_v41  ;;  %v20332_v40 = vld [vmem:[#allocation2 + $0x4ec] ss:$56 sps:$4 sm:$0xff]   ;;  %v20327_v41 = vld [vmem:[#allocation2 + $0x4e0] ss:$56 sps:$4 sm:$0xff]  }
 0x131   : > { %2774 = vmatmul.mubr.bf16.gmra.mrb[16].mxu0 %v20209_v42  ;;  %3379 = vmatprep.subr.bf16.mxu1 %v20261_v44  ;;  %v20339_v44 = vld [vmem:[#allocation2 + $0x55c] ss:$56 sps:$4 sm:$0xff]  }
 0x132   : > { %3000 = vmatmul.mubr.bf16.gmra.mrb[16].mxu1 %v20209_v42  ;;  %2783 = vmatprep.mubr.bf16.mxu0 %v20219_v43  ;;  %v20330_v42 = vld [vmem:[#allocation2 + $0x4e8] ss:$56 sps:$4 sm:$0xff]  }
 0x133   : > { %3009 = vmatprep.mubr.bf16.mxu1 %v20219_v43  ;;  %v20336_v43 = vld [vmem:[#allocation2 + $0x554] ss:$56 sps:$4 sm:$0xff]  }
 0x139   : > { %2784 = vmatmul.mubr.bf16.gmra.mrb[20].mxu0 %v20221_v45 }
 0x13a   : > { %3010 = vmatmul.mubr.bf16.gmra.mrb[20].mxu1 %v20221_v45  ;;  %2793 = vmatprep.mubr.bf16.mxu0 %v20231_v46  ;;  %v20333_v45 = vld [vmem:[%s22833_s27 + $0x98] ss:$12 sps:$4 sm:$0xff]  }
 0x13b   : > { %3019 = vmatprep.mubr.bf16.mxu1 %v20231_v46  ;;  %v20334_v46 = vld [vmem:[#allocation2 + $0x550] ss:$56 sps:$4 sm:$0xff]  }
 0x141   : > { %2794 = vmatmul.mubr.bf16.gmra.mrb[24].mxu0 %v20233_v47 }
 0x142   : > { %3020 = vmatmul.mubr.bf16.gmra.mrb[24].mxu1 %v20233_v47  ;;  %2803 = vmatprep.mubr.bf16.mxu0 %v20243_v48  ;;  %v20337_v47 = vld [vmem:[#allocation2 + $0x558] ss:$56 sps:$4 sm:$0xff]  }
 0x143   : > { %3029 = vmatprep.mubr.bf16.mxu1 %v20243_v48  ;;  %v20342_v48 = vld [vmem:[#allocation2 + $0x5c4] ss:$56 sps:$4 sm:$0xff]  }
 0x149   : > { %2804 = vmatmul.mubr.bf16.gmra.mrb[28].mxu0 %v20245_v49 }
 0x14a   : > { %3030 = vmatmul.mubr.bf16.gmra.mrb[28].mxu1 %v20245_v49  ;;  %2846 = vmatprep.mubr.bf16.mxu0 %v24885_v50  ;;  %v20345_v49 = vld [vmem:[#allocation2 + $0x5cc] ss:$56 sps:$4 sm:$0xff]  }
 0x14b   : > { %3072 = vmatprep.mubr.bf16.mxu1 %v24885_v50 }
 0x151   : > { %2847 = vmatmul.mubr.bf16.vlgmr.msra.gmra.mrb[0].mxu0 %v20255_v51 }
 0x152   : > { %3073 = vmatmul.mubr.bf16.vlgmr.msra.gmra.mrb[0].mxu1 %v20255_v51  ;;  %3154 = vmatpush1.bf16.msra.mxu0 %v20256_v52  ;;  %v20340_v51 = vld [vmem:[#allocation2 + $0x5c0] ss:$56 sps:$4 sm:$0xff]  }
 0x153   : > { %3380 = vmatpush1.bf16.msra.mxu1 %v20259_v53  ;;  %3155 = vmatprep.subr.bf16.mxu0 %v20264_v54  ;;  %v20343_v52 = vld [vmem:[#allocation2 + $0x5c8] ss:$56 sps:$4 sm:$0xff]   ;;  %v20349_v53 = vld [vmem:[#allocation2 + $0x634] ss:$56 sps:$4 sm:$0xff]  }
 0x154   : > { %3381 = vmatprep.subr.bf16.mxu1 %v20267_v55  ;;  %2856 = vmatprep.mubr.bf16.mxu0 %v24885_v50  ;;  %v20352_v54 = vld [vmem:[#allocation2 + $0x63c] ss:$56 sps:$4 sm:$0xff]  }
 0x155   : > { %3082 = vmatprep.mubr.bf16.mxu1 %v24885_v50  ;;  %v20346_v55 = vld [vmem:[%s22833_s27 + $0xb0] ss:$12 sps:$4 sm:$0xff]  }
 0x156   : > { %3156 = vmatpush1.bf16.msra.mxu0 %v20262_v56  ;;  %v20347_v56 = vld [vmem:[#allocation2 + $0x630] ss:$56 sps:$4 sm:$0xff]  }
 0x157   : > { %3382 = vmatpush1.bf16.msra.mxu1 %v20265_v57  ;;  %3157 = vmatprep.subr.bf16.mxu0 %v20271_v58  ;;  %v20350_v57 = vld [vmem:[#allocation2 + $0x638] ss:$56 sps:$4 sm:$0xff]   ;;  %v20355_v58 = vld [vmem:[#allocation2 + $0x6a4] ss:$56 sps:$4 sm:$0xff]  }
 0x158   : > { %3383 = vmatprep.subr.bf16.mxu1 %v20274_v59  ;;  %v20358_v59 = vld [vmem:[#allocation2 + $0x6ac] ss:$56 sps:$4 sm:$0xff]  }
 0x159   : > { %2857 = vmatmul.mubr.bf16.gmra.mrb[4].mxu0 %v20268_v60 }
 0x15a   : > { %3083 = vmatmul.mubr.bf16.gmra.mrb[4].mxu1 %v20268_v60  ;;  %3158 = vmatpush1.bf16.msra.mxu0 %v20269_v61  ;;  %v20353_v60 = vld [vmem:[#allocation2 + $0x6a0] ss:$56 sps:$4 sm:$0xff]  }
 0x15b   : > { %3384 = vmatpush1.bf16.msra.mxu1 %v20272_v62  ;;  %3159 = vmatprep.subr.bf16.mxu0 %v20277_v63  ;;  %v20356_v61 = vld [vmem:[#allocation2 + $0x6a8] ss:$56 sps:$4 sm:$0xff]   ;;  %v20361_v62 = vld [vmem:[#allocation2 + $0x714] ss:$56 sps:$4 sm:$0xff]  }
 0x15c   : > { %3385 = vmatprep.subr.bf16.mxu1 %v20280_v0  ;;  %2866 = vmatprep.mubr.bf16.mxu0 %v24885_v50  ;;  %v20376_v63 = vld [vmem:[#allocation2 + $0x71c] ss:$56 sps:$4 sm:$0xff]   ;;  %v22207_v0 = vld [vmem:[%s22833_s27 + $0x4] ss:$12 sps:$4 sm:$0xff]  }
 0x15d   : > { %3092 = vmatprep.mubr.bf16.mxu1 %v24885_v50 }
 0x15e   : > { %3160 = vmatpush1.bf16.msra.mxu0 %v20275_v1  ;;  %v20359_v1 = vld [vmem:[#allocation2 + $0x710] ss:$56 sps:$4 sm:$0xff]  }
 0x15f   : > { %3386 = vmatpush1.bf16.msra.mxu1 %v20278_v2  ;;  %3161 = vmatprep.subr.bf16.mxu0 %v20284_v4  ;;  %v20364_v2 = vld [vmem:[#allocation2 + $0x784] ss:$56 sps:$4 sm:$0xff]   ;;  %v20374_v4 = vld [vmem:[#allocation2 + $0x718] ss:$56 sps:$4 sm:$0xff]  }
 0x160   : > { %3387 = vmatprep.subr.bf16.mxu1 %v20287_v6  ;;  %v20362_v6 = vld [vmem:[#allocation2 + $0x780] ss:$56 sps:$4 sm:$0xff]  }
 0x161   : > { %2867 = vmatmul.mubr.bf16.gmra.mrb[8].mxu0 %v20281_v7 }
 0x162   : > { %3093 = vmatmul.mubr.bf16.gmra.mrb[8].mxu1 %v20281_v7  ;;  %3162 = vmatpush1.bf16.msra.mxu0 %v20282_v8  ;;  %v20367_v7 = vld [vmem:[#allocation2 + $0x7f4] ss:$56 sps:$4 sm:$0xff]  }
 0x163   : > { %3388 = vmatpush1.bf16.msra.mxu1 %v20285_v9  ;;  %3163 = vmatprep.subr.bf16.mxu0 %v20290_v10  ;;  %v20379_v8 = vld [vmem:[#allocation2 + $0x78c] ss:$56 sps:$4 sm:$0xff]   ;;  %v20377_v9 = vld [vmem:[#allocation2 + $0x788] ss:$56 sps:$4 sm:$0xff]  }
 0x164   : > { %3389 = vmatprep.subr.bf16.mxu1 %v20293_v11  ;;  %2876 = vmatprep.mubr.bf16.mxu0 %v24885_v50  ;;  %v20365_v10 = vld [vmem:[#allocation2 + $0x7f0] ss:$56 sps:$4 sm:$0xff]   ;;  %v20385_v11 = vld [vmem:[#allocation2 + $0x7fc] ss:$56 sps:$4 sm:$0xff]  }
 0x165   : > { %3102 = vmatprep.mubr.bf16.mxu1 %v24885_v50 }
 0x166   : > { %3164 = vmatpush1.bf16.msra.mxu0 %v20288_v14  ;;  %v20370_v14 = vld [vmem:[#allocation2 + $0x864] ss:$56 sps:$4 sm:$0xff]  }
 0x167   : > { %3390 = vmatpush1.bf16.msra.mxu1 %v20291_v15  ;;  %3165 = vmatprep.subr.bf16.mxu0 %v20297_v16  ;;  %v20383_v15 = vld [vmem:[#allocation2 + $0x7f8] ss:$56 sps:$4 sm:$0xff]   ;;  %v20388_v16 = vld [vmem:[#allocation2 + $0x86c] ss:$56 sps:$4 sm:$0xff]  }
 0x168   : > { %3391 = vmatprep.subr.bf16.mxu1 %v20300_v17  ;;  %v20386_v17 = vld [vmem:[#allocation2 + $0x868] ss:$56 sps:$4 sm:$0xff]  }
 0x169   : > { %2877 = vmatmul.mubr.bf16.gmra.mrb[12].mxu0 %v20294_v18 }
 0x16a   : > { %3103 = vmatmul.mubr.bf16.gmra.mrb[12].mxu1 %v20294_v18  ;;  %3166 = vmatpush1.bf16.msra.mxu0 %v20295_v19  ;;  %v20371_v18 = vld [vmem:[#allocation2 + $0x8d0] ss:$56 sps:$4 sm:$0xff]   ;;  %v20394_v19 = vld [vmem:[#allocation2 + $0x8dc] ss:$56 sps:$4 sm:$0xff]  }
 0x16b   : > { %3392 = vmatpush1.bf16.msra.mxu1 %v20298_v20  ;;  %3167 = vmatprep.subr.bf16.mxu0 %v20303_v21  ;;  %v20382_v20 = vld [vmem:[#allocation2 + $0x944] ss:$56 sps:$4 sm:$0xff]   ;;  %v20392_v21 = vld [vmem:[#allocation2 + $0x8d8] ss:$56 sps:$4 sm:$0xff]  }
 0x16c   : > { %3393 = vmatprep.subr.bf16.mxu1 %v20306_v22  ;;  %2886 = vmatprep.mubr.bf16.mxu0 %v24885_v50  ;;  %v20380_v22 = vld [vmem:[#allocation2 + $0x940] ss:$56 sps:$4 sm:$0xff]  }
 0x16d   : > { %3112 = vmatprep.mubr.bf16.mxu1 %v24885_v50 }
 0x16e   : > { %3168 = vmatpush1.bf16.msra.mxu0 %v20301_v23  ;;  %v22209_v23 = vld [vmem:[%s22833_s27 + $0x4c] ss:$12 sps:$4 sm:$0xff]  }
 0x16f   : > { %3394 = vmatpush1.bf16.msra.mxu1 %v20304_v24  ;;  %3169 = vmatprep.subr.bf16.mxu0 %v20310_v25  ;;  %v20391_v24 = vld [vmem:[#allocation2 + $0x9b4] ss:$56 sps:$4 sm:$0xff]   ;;  %v20395_v25 = vld [vmem:[#allocation2 + $0x948] ss:$56 sps:$4 sm:$0xff]  }
 0x170   : > { %3395 = vmatprep.subr.bf16.mxu1 %v20313_v26  ;;  %v20389_v26 = vld [vmem:[#allocation2 + $0x9b0] ss:$56 sps:$4 sm:$0xff]  }
 0x171   : > { %2887 = vmatmul.mubr.bf16.gmra.mrb[16].mxu0 %v20307_v27 }
 0x172   : > { %3113 = vmatmul.mubr.bf16.gmra.mrb[16].mxu1 %v20307_v27  ;;  %3170 = vmatpush1.bf16.msra.mxu0 %v20308_v28  ;;  %v20403_v27 = vld [vmem:[#allocation2 + $0x9bc] ss:$56 sps:$4 sm:$0xff]  }
 0x173   : > { %3396 = vmatpush1.bf16.msra.mxu1 %v20311_v29  ;;  %3171 = vmatprep.subr.bf16.mxu0 %v20316_v30  ;;  %v20400_v28 = vld [vmem:[#allocation2 + $0xa24] ss:$56 sps:$4 sm:$0xff]   ;;  %v20401_v29 = vld [vmem:[#allocation2 + $0x9b8] ss:$56 sps:$4 sm:$0xff]  }
 0x174   : > { %3397 = vmatprep.subr.bf16.mxu1 %v20319_v31  ;;  %2896 = vmatprep.mubr.bf16.mxu0 %v24885_v50  ;;  %v20406_v30 = vld [vmem:[#allocation2 + $0xa2c] ss:$56 sps:$4 sm:$0xff]   ;;  %v22210_v31 = vld [vmem:[%s22833_s27 + $0x48] ss:$12 sps:$4 sm:$0xff]  }
 0x175   : > { %3122 = vmatprep.mubr.bf16.mxu1 %v24885_v50 }
 0x176   : > { %3172 = vmatpush1.bf16.msra.mxu0 %v20314_v32  ;;  %v20398_v32 = vld [vmem:[#allocation2 + $0xa20] ss:$56 sps:$4 sm:$0xff]  }
 0x177   : > { %3398 = vmatpush1.bf16.msra.mxu1 %v20317_v33  ;;  %3173 = vmatprep.subr.bf16.mxu0 %v20323_v34  ;;  %v22211_v33 = vld [vmem:[%s22833_s27 + $0x64] ss:$12 sps:$4 sm:$0xff]   ;;  %v20404_v34 = vld [vmem:[#allocation2 + $0xa28] ss:$56 sps:$4 sm:$0xff]  }
 0x178   : > { %3399 = vmatprep.subr.bf16.mxu1 %v20326_v35  ;;  %v20409_v35 = vld [vmem:[#allocation2 + $0x24] ss:$56 sps:$4 sm:$0xff]  }
 0x179   : > { %2897 = vmatmul.mubr.bf16.gmra.mrb[20].mxu0 %v20320_v36 }
 0x17a   : > { %3123 = vmatmul.mubr.bf16.gmra.mrb[20].mxu1 %v20320_v36  ;;  %3174 = vmatpush1.bf16.msra.mxu0 %v20321_v37  ;;  %v20412_v36 = vld [vmem:[#allocation2 + $0x2c] ss:$56 sps:$4 sm:$0xff]  }
 0x17b   : > { %3400 = vmatpush1.bf16.msra.mxu1 %v20324_v38  ;;  %3175 = vmatprep.subr.bf16.mxu0 %v20329_v39  ;;  %v22212_v37 = vld [vmem:[%s22833_s27 + $0x60] ss:$12 sps:$4 sm:$0xff]   ;;  %v22213_v38 = vld [vmem:[%s22833_s27 + $0x7c] ss:$12 sps:$4 sm:$0xff]   ;;  %v22214_v39 = vld [vmem:[%s22833_s27 + $0x78] ss:$12 sps:$4 sm:$0xff]  }
 0x17c   : > { %3401 = vmatprep.subr.bf16.mxu1 %v20332_v40  ;;  %2906 = vmatprep.mubr.bf16.mxu0 %v24885_v50  ;;  %v22215_v40 = vld [vmem:[%s22833_s27 + $0x94] ss:$12 sps:$4 sm:$0xff]  }
 0x17d   : > { %3132 = vmatprep.mubr.bf16.mxu1 %v24885_v50 }
 0x17e   : > { %3176 = vmatpush1.bf16.msra.mxu0 %v20327_v41  ;;  %v22216_v41 = vld [vmem:[%s22833_s27 + $0x90] ss:$12 sps:$4 sm:$0xff]  }
 0x17f   : > { %3402 = vmatpush1.bf16.msra.mxu1 %v20330_v42  ;;  %3177 = vmatprep.subr.bf16.mxu0 %v20336_v43  ;;  %v22217_v42 = vld [vmem:[%s22833_s27 + $0xac] ss:$12 sps:$4 sm:$0xff]   ;;  %v22218_v43 = vld [vmem:[%s22833_s27 + $0xa8] ss:$12 sps:$4 sm:$0xff]  }
 0x180   : > { %3403 = vmatprep.subr.bf16.mxu1 %v20339_v44  ;;  %v20407_v44 = vld [vmem:[#allocation2 + $0x20] ss:$56 sps:$4 sm:$0xff]  }
 0x181   : > { %2907 = vmatmul.mubr.bf16.gmra.mrb[24].mxu0 %v20333_v45 }
 0x182   : > { %3133 = vmatmul.mubr.bf16.gmra.mrb[24].mxu1 %v20333_v45  ;;  %3178 = vmatpush1.bf16.msra.mxu0 %v20334_v46  ;;  %v20410_v45 = vld [vmem:[#allocation2 + $0x28] ss:$56 sps:$4 sm:$0xff]   ;;  %v20415_v46 = vld [vmem:[#allocation2 + $0x94] ss:$56 sps:$4 sm:$0xff]  }
 0x183   : > { %3404 = vmatpush1.bf16.msra.mxu1 %v20337_v47  ;;  %3179 = vmatprep.subr.bf16.mxu0 %v20342_v48  ;;  %v20418_v47 = vld [vmem:[#allocation2 + $0x9c] ss:$56 sps:$4 sm:$0xff]   ;;  %v20413_v48 = vld [vmem:[#allocation2 + $0x90] ss:$56 sps:$4 sm:$0xff]  }
 0x184   : > { %3405 = vmatprep.subr.bf16.mxu1 %v20345_v49  ;;  %2916 = vmatprep.mubr.bf16.mxu0 %v24885_v50  ;;  %v20416_v49 = vld [vmem:[#allocation2 + $0x98] ss:$56 sps:$4 sm:$0xff]  }
 0x185   : > { %3142 = vmatprep.mubr.bf16.mxu1 %v24885_v50 }
 0x186   : > { %3180 = vmatpush1.bf16.msra.mxu0 %v20340_v51  ;;  %v22219_v51 = vld [vmem:[%s22833_s27 + $0x8] ss:$12 sps:$4 sm:$0xff]  }
 0x187   : > { %3406 = vmatpush1.bf16.msra.mxu1 %v20343_v52  ;;  %3181 = vmatprep.subr.bf16.mxu0 %v20349_v53  ;;  %v20421_v52 = vld [vmem:[#allocation2 + $0x104] ss:$56 sps:$4 sm:$0xff]  }
 0x188   : > { %3407 = vmatprep.subr.bf16.mxu1 %v20352_v54  ;;  %v20424_v53 = vld [vmem:[#allocation2 + $0x10c] ss:$56 sps:$4 sm:$0xff]   ;;  %v20419_v54 = vld [vmem:[#allocation2 + $0x100] ss:$56 sps:$4 sm:$0xff]  }
 0x189   : > { %2917 = vmatmul.mubr.bf16.gmra.mrb[28].mxu0 %v20346_v55 }
 0x18a   : > { %3143 = vmatmul.mubr.bf16.gmra.mrb[28].mxu1 %v20346_v55  ;;  %3182 = vmatpush1.bf16.msra.mxu0 %v20347_v56  ;;  %v20422_v55 = vld [vmem:[#allocation2 + $0x108] ss:$56 sps:$4 sm:$0xff]   ;;  %v20427_v56 = vld [vmem:[#allocation2 + $0x174] ss:$56 sps:$4 sm:$0xff]  }
 0x18b   : > { %3408 = vmatpush1.bf16.msra.mxu1 %v20350_v57  ;;  %3183 = vmatprep.subr.bf16.mxu0 %v20355_v58  ;;  %v20430_v57 = vld [vmem:[#allocation2 + $0x17c] ss:$56 sps:$4 sm:$0xff]   ;;  %v20425_v58 = vld [vmem:[#allocation2 + $0x170] ss:$56 sps:$4 sm:$0xff]  }
 0x18c   : > { %3409 = vmatprep.subr.bf16.mxu1 %v20358_v59  ;;  %3185 = vmatprep.mubr.bf16.mxu0 %v22207_v0  ;;  %v20428_v59 = vld [vmem:[#allocation2 + $0x178] ss:$56 sps:$4 sm:$0xff]  }
 0x18d   : > { %3411 = vmatprep.mubr.bf16.mxu1 %v22207_v0  ;;  %v20434_v0 = vld [vmem:[#allocation2 + $0x1e8] ss:$56 sps:$4 sm:$0xff]  }
 0x18e   : > { %3184 = vmatpush1.bf16.msra.mxu0 %v20353_v60  ;;  %v22220_v60 = vld [vmem:[%s22833_s27 + $0x20] ss:$12 sps:$4 sm:$0xff]  }
 0x18f   : > { %3410 = vmatpush1.bf16.msra.mxu1 %v20356_v61  ;;  %3266 = vmatprep.subr.bf16.mxu0 %v20361_v62  ;;  %v20433_v61 = vld [vmem:[#allocation2 + $0x1e4] ss:$56 sps:$4 sm:$0xff]  }
 0x190   : > { %3492 = vmatprep.subr.bf16.mxu1 %v20376_v63  ;;  %v20436_v62 = vld [vmem:[#allocation2 + $0x1ec] ss:$56 sps:$4 sm:$0xff]   ;;  %v20431_v63 = vld [vmem:[#allocation2 + $0x1e0] ss:$56 sps:$4 sm:$0xff]  }
 0x191   : > { %3186 = vmatmul.mubr.bf16.vlgmr.msra.gmra.mrb[32].mxu0 %v22837_v3 }
 0x192   : > { %3412 = vmatmul.mubr.bf16.vlgmr.msra.gmra.mrb[32].mxu1 %v22837_v3  ;;  %3267 = vmatpush1.bf16.msra.mxu0 %v20359_v1  ;;  %v20368_v3 = vld [vmem:[#allocation2 + $0x860] ss:$56 sps:$4 sm:$0xff]   ;;  %v20439_v1 = vld [vmem:[#allocation2 + $0x254] ss:$56 sps:$4 sm:$0xff]  }
 0x193   : > { %3195 = vmatprep.mubr.bf16.mxu0 %v22840_v5  ;;  %3421 = vmatprep.mubr.bf16.mxu1 %v22840_v5  ;;  %v20373_v5 = vld [vmem:[#allocation2 + $0x8d4] ss:$56 sps:$4 sm:$0xff]  }
 0x194   : > { %3268 = vmatprep.subr.bf16.mxu0 %v20364_v2  ;;  %3493 = vmatpush1.bf16.msra.mxu1 %v20374_v4  ;;  %v20442_v2 = vld [vmem:[#allocation2 + $0x25c] ss:$56 sps:$4 sm:$0xff]   ;;  %v20437_v4 = vld [vmem:[#allocation2 + $0x250] ss:$56 sps:$4 sm:$0xff]  }
 0x195   : > { %3494 = vmatprep.subr.bf16.mxu1 %v20379_v8  ;;  %v20445_v8 = vld [vmem:[#allocation2 + $0x2c4] ss:$56 sps:$4 sm:$0xff]  }
 0x196   : > { %3269 = vmatpush1.bf16.msra.mxu0 %v20362_v6  ;;  %v20440_v6 = vld [vmem:[#allocation2 + $0x258] ss:$56 sps:$4 sm:$0xff]  }
 0x197   : > { %3270 = vmatprep.subr.bf16.mxu0 %v20367_v7  ;;  %v22221_v7 = vld [vmem:[%s22833_s27 + $0x38] ss:$12 sps:$4 sm:$0xff]  }
 0x198   : > { %3495 = vmatpush1.bf16.msra.mxu1 %v20377_v9  ;;  %v20448_v9 = vld [vmem:[#allocation2 + $0x2cc] ss:$56 sps:$4 sm:$0xff]  }
 0x199   : > { %3196 = vmatmul.mubr.bf16.gmra.mrb[36].mxu0 %v22847_v12  ;;  %3496 = vmatprep.subr.bf16.mxu1 %v20385_v11  ;;  %v20446_v11 = vld [vmem:[#allocation2 + $0x2c8] ss:$56 sps:$4 sm:$0xff]  }
 0x19a   : > { %3422 = vmatmul.mubr.bf16.gmra.mrb[36].mxu1 %v22847_v12  ;;  %3205 = vmatprep.mubr.bf16.mxu0 %v22850_v13  ;;  %v22208_v12 = vld [vmem:[%s22833_s27 + $0x30] ss:$12 sps:$4 sm:$0xff]  }
 0x19b   : > { %3431 = vmatprep.mubr.bf16.mxu1 %v22850_v13  ;;  %3271 = vmatpush1.bf16.msra.mxu0 %v20365_v10  ;;  %v20397_v13 = vld [vmem:[#allocation2 + $0x94c] ss:$56 sps:$4 sm:$0xff]   ;;  %v20443_v10 = vld [vmem:[#allocation2 + $0x2c0] ss:$56 sps:$4 sm:$0xff]  }
 0x19c   : > { %3272 = vmatprep.subr.bf16.mxu0 %v20370_v14  ;;  %3497 = vmatpush1.bf16.msra.mxu1 %v20383_v15  ;;  %v20451_v14 = vld [vmem:[#allocation2 + $0x334] ss:$56 sps:$4 sm:$0xff]  }
 0x19d   : > { %3498 = vmatprep.subr.bf16.mxu1 %v20388_v16  ;;  %v20454_v15 = vld [vmem:[#allocation2 + $0x33c] ss:$56 sps:$4 sm:$0xff]   ;;  %v20449_v16 = vld [vmem:[#allocation2 + $0x330] ss:$56 sps:$4 sm:$0xff]  }
 0x19f   : > { %3273 = vmatpush1.bf16.msra.mxu0 %v20368_v3  ;;  %v22222_v3 = vld [vmem:[%s22833_s27 + $0x50] ss:$12 sps:$4 sm:$0xff]  }
 0x1a0   : > { %3274 = vmatprep.subr.bf16.mxu0 %v20373_v5  ;;  %3499 = vmatpush1.bf16.msra.mxu1 %v20386_v17  ;;  %v20452_v5 = vld [vmem:[#allocation2 + $0x338] ss:$56 sps:$4 sm:$0xff]   ;;  %v20457_v17 = vld [vmem:[#allocation2 + $0x3a4] ss:$56 sps:$4 sm:$0xff]  }
 0x1a1   : > { %3206 = vmatmul.mubr.bf16.gmra.mrb[40].mxu0 %v22208_v12  ;;  %3500 = vmatprep.subr.bf16.mxu1 %v20394_v19  ;;  %v20455_v19 = vld [vmem:[#allocation2 + $0x3a0] ss:$56 sps:$4 sm:$0xff]  }
 0x1a2   : > { %3432 = vmatmul.mubr.bf16.gmra.mrb[40].mxu1 %v22208_v12  ;;  %3215 = vmatprep.mubr.bf16.mxu0 %v22209_v23  ;;  %v20466_v12 = vld [vmem:[#allocation2 + $0x41c] ss:$56 sps:$4 sm:$0xff]  }
 0x1a3   : > { %3441 = vmatprep.mubr.bf16.mxu1 %v22209_v23  ;;  %3275 = vmatpush1.bf16.msra.mxu0 %v20371_v18  ;;  %v20460_v18 = vld [vmem:[#allocation2 + $0x3ac] ss:$56 sps:$4 sm:$0xff]   ;;  %v20464_v23 = vld [vmem:[#allocation2 + $0x418] ss:$56 sps:$4 sm:$0xff]  }
 0x1a4   : > { %3276 = vmatprep.subr.bf16.mxu0 %v20382_v20  ;;  %3501 = vmatpush1.bf16.msra.mxu1 %v20392_v21  ;;  %v20458_v20 = vld [vmem:[#allocation2 + $0x3a8] ss:$56 sps:$4 sm:$0xff]   ;;  %v20463_v21 = vld [vmem:[#allocation2 + $0x414] ss:$56 sps:$4 sm:$0xff]  }
 0x1a5   : > { %3502 = vmatprep.subr.bf16.mxu1 %v20397_v13  ;;  %v20461_v13 = vld [vmem:[#allocation2 + $0x410] ss:$56 sps:$4 sm:$0xff]  }
 0x1a7   : > { %3277 = vmatpush1.bf16.msra.mxu0 %v20380_v22  ;;  %v22223_v22 = vld [vmem:[%s22833_s27 + $0x68] ss:$12 sps:$4 sm:$0xff]  }
 0x1a8   : > { %3278 = vmatprep.subr.bf16.mxu0 %v20391_v24  ;;  %3503 = vmatpush1.bf16.msra.mxu1 %v20395_v25  ;;  %v20469_v24 = vld [vmem:[#allocation2 + $0x484] ss:$56 sps:$4 sm:$0xff]  }
 0x1a9   : > { %3216 = vmatmul.mubr.bf16.gmra.mrb[44].mxu0 %v22210_v31  ;;  %3504 = vmatprep.subr.bf16.mxu1 %v20403_v27  ;;  %v20472_v25 = vld [vmem:[#allocation2 + $0x48c] ss:$56 sps:$4 sm:$0xff]   ;;  %v20470_v27 = vld [vmem:[#allocation2 + $0x488] ss:$56 sps:$4 sm:$0xff]  }
 0x1aa   : > { %3442 = vmatmul.mubr.bf16.gmra.mrb[44].mxu1 %v22210_v31  ;;  %3225 = vmatprep.mubr.bf16.mxu0 %v22211_v33  ;;  %v20473_v31 = vld [vmem:[#allocation2 + $0x4f0] ss:$56 sps:$4 sm:$0xff]  }
 0x1ab   : > { %3451 = vmatprep.mubr.bf16.mxu1 %v22211_v33  ;;  %3279 = vmatpush1.bf16.msra.mxu0 %v20389_v26  ;;  %v20467_v26 = vld [vmem:[#allocation2 + $0x480] ss:$56 sps:$4 sm:$0xff]   ;;  %v20481_v33 = vld [vmem:[#allocation2 + $0x564] ss:$56 sps:$4 sm:$0xff]  }
 0x1ac   : > { %3280 = vmatprep.subr.bf16.mxu0 %v20400_v28  ;;  %3505 = vmatpush1.bf16.msra.mxu1 %v20401_v29  ;;  %v20475_v28 = vld [vmem:[#allocation2 + $0x4f4] ss:$56 sps:$4 sm:$0xff]  }
 0x1ad   : > { %3506 = vmatprep.subr.bf16.mxu1 %v20406_v30  ;;  %v20478_v29 = vld [vmem:[#allocation2 + $0x4fc] ss:$56 sps:$4 sm:$0xff]   ;;  %v22224_v30 = vld [vmem:[%s22833_s27 + $0x80] ss:$12 sps:$4 sm:$0xff]  }
 0x1af   : > { %3281 = vmatpush1.bf16.msra.mxu0 %v20398_v32  ;;  %v20476_v32 = vld [vmem:[#allocation2 + $0x4f8] ss:$56 sps:$4 sm:$0xff]  }
 0x1b0   : > { %3507 = vmatpush1.bf16.msra.mxu1 %v20404_v34  ;;  %3605 = vmatprep.subr.bf16.mxu0 %v20409_v35  ;;  %v20484_v34 = vld [vmem:[#allocation2 + $0x56c] ss:$56 sps:$4 sm:$0xff]   ;;  %v20479_v35 = vld [vmem:[#allocation2 + $0x560] ss:$56 sps:$4 sm:$0xff]  }
 0x1b1   : > { %3226 = vmatmul.mubr.bf16.gmra.mrb[48].mxu0 %v22212_v37  ;;  %3831 = vmatprep.subr.bf16.mxu1 %v20412_v36  ;;  %v20482_v36 = vld [vmem:[#allocation2 + $0x568] ss:$56 sps:$4 sm:$0xff]  }
 0x1b2   : > { %3452 = vmatmul.mubr.bf16.gmra.mrb[48].mxu1 %v22212_v37  ;;  %3235 = vmatprep.mubr.bf16.mxu0 %v22213_v38  ;;  %v20487_v37 = vld [vmem:[#allocation2 + $0x5d4] ss:$56 sps:$4 sm:$0xff]  }
 0x1b3   : > { %3461 = vmatprep.mubr.bf16.mxu1 %v22213_v38  ;;  %v20490_v38 = vld [vmem:[#allocation2 + $0x5dc] ss:$56 sps:$4 sm:$0xff]  }
 0x1b9   : > { %3236 = vmatmul.mubr.bf16.gmra.mrb[52].mxu0 %v22214_v39 }
 0x1ba   : > { %3462 = vmatmul.mubr.bf16.gmra.mrb[52].mxu1 %v22214_v39  ;;  %3245 = vmatprep.mubr.bf16.mxu0 %v22215_v40  ;;  %v22225_v39 = vld [vmem:[%s22833_s27 + $0x98] ss:$12 sps:$4 sm:$0xff]  }
 0x1bb   : > { %3471 = vmatprep.mubr.bf16.mxu1 %v22215_v40  ;;  %v20485_v40 = vld [vmem:[#allocation2 + $0x5d0] ss:$56 sps:$4 sm:$0xff]  }
 0x1c1   : > { %3246 = vmatmul.mubr.bf16.gmra.mrb[56].mxu0 %v22216_v41 }
 0x1c2   : > { %3472 = vmatmul.mubr.bf16.gmra.mrb[56].mxu1 %v22216_v41  ;;  %3255 = vmatprep.mubr.bf16.mxu0 %v22217_v42  ;;  %v20488_v41 = vld [vmem:[#allocation2 + $0x5d8] ss:$56 sps:$4 sm:$0xff]  }
 0x1c3   : > { %3481 = vmatprep.mubr.bf16.mxu1 %v22217_v42  ;;  %v20493_v42 = vld [vmem:[#allocation2 + $0x644] ss:$56 sps:$4 sm:$0xff]  }
 0x1c9   : > { %3256 = vmatmul.mubr.bf16.gmra.mrb[60].mxu0 %v22218_v43 }
 0x1ca   : > { %3482 = vmatmul.mubr.bf16.gmra.mrb[60].mxu1 %v22218_v43  ;;  %3298 = vmatprep.mubr.bf16.mxu0 %v24885_v50  ;;  %v20496_v43 = vld [vmem:[#allocation2 + $0x64c] ss:$56 sps:$4 sm:$0xff]  }
 0x1cb   : > { %3524 = vmatprep.mubr.bf16.mxu1 %v24885_v50 }
 0x1d1   : > { %3299 = vmatmul.mubr.bf16.vlgmr.msra.gmra.mrb[32].mxu0 %v22219_v51 }
 0x1d2   : > { %3525 = vmatmul.mubr.bf16.vlgmr.msra.gmra.mrb[32].mxu1 %v22219_v51  ;;  %3606 = vmatpush1.bf16.msra.mxu0 %v20407_v44  ;;  %v20491_v44 = vld [vmem:[#allocation2 + $0x640] ss:$56 sps:$4 sm:$0xff]   ;;  %v22226_v51 = vld [vmem:[%s22833_s27 + $0xb0] ss:$12 sps:$4 sm:$0xff]  }
 0x1d3   : > { %3832 = vmatpush1.bf16.msra.mxu1 %v20410_v45  ;;  %3607 = vmatprep.subr.bf16.mxu0 %v20415_v46  ;;  %v20494_v45 = vld [vmem:[#allocation2 + $0x648] ss:$56 sps:$4 sm:$0xff]   ;;  %v20499_v46 = vld [vmem:[#allocation2 + $0x6b4] ss:$56 sps:$4 sm:$0xff]  }
 0x1d4   : > { %3833 = vmatprep.subr.bf16.mxu1 %v20418_v47  ;;  %3308 = vmatprep.mubr.bf16.mxu0 %v24885_v50  ;;  %v20502_v47 = vld [vmem:[#allocation2 + $0x6bc] ss:$56 sps:$4 sm:$0xff]  }
 0x1d5   : > { %3534 = vmatprep.mubr.bf16.mxu1 %v24885_v50 }
 0x1d6   : > { %3608 = vmatpush1.bf16.msra.mxu0 %v20413_v48  ;;  %v20497_v48 = vld [vmem:[#allocation2 + $0x6b0] ss:$56 sps:$4 sm:$0xff]  }
 0x1d7   : > { %3834 = vmatpush1.bf16.msra.mxu1 %v20416_v49  ;;  %3609 = vmatprep.subr.bf16.mxu0 %v20421_v52  ;;  %v20500_v49 = vld [vmem:[#allocation2 + $0x6b8] ss:$56 sps:$4 sm:$0xff]   ;;  %v20505_v52 = vld [vmem:[#allocation2 + $0x724] ss:$56 sps:$4 sm:$0xff]  }
 0x1d8   : > { %3835 = vmatprep.subr.bf16.mxu1 %v20424_v53  ;;  %v20520_v53 = vld [vmem:[#allocation2 + $0x72c] ss:$56 sps:$4 sm:$0xff]  }
 0x1d9   : > { %3309 = vmatmul.mubr.bf16.gmra.mrb[36].mxu0 %v22220_v60 }
 0x1da   : > { %3535 = vmatmul.mubr.bf16.gmra.mrb[36].mxu1 %v22220_v60  ;;  %3610 = vmatpush1.bf16.msra.mxu0 %v20419_v54  ;;  %v22227_v54 = vld [vmem:[%s22833_s27 + $0x4] ss:$12 sps:$4 sm:$0xff]   ;;  %v20523_v60 = vld [vmem:[#allocation2 + $0x79c] ss:$56 sps:$4 sm:$0xff]  }
 0x1db   : > { %3836 = vmatpush1.bf16.msra.mxu1 %v20422_v55  ;;  %3611 = vmatprep.subr.bf16.mxu0 %v20427_v56  ;;  %v20503_v55 = vld [vmem:[#allocation2 + $0x720] ss:$56 sps:$4 sm:$0xff]   ;;  %v20508_v56 = vld [vmem:[#allocation2 + $0x794] ss:$56 sps:$4 sm:$0xff]  }
 0x1dc   : > { %3837 = vmatprep.subr.bf16.mxu1 %v20430_v57  ;;  %3318 = vmatprep.mubr.bf16.mxu0 %v24885_v50  ;;  %v20518_v57 = vld [vmem:[#allocation2 + $0x728] ss:$56 sps:$4 sm:$0xff]  }
 0x1dd   : > { %3544 = vmatprep.mubr.bf16.mxu1 %v24885_v50 }
 0x1de   : > { %3612 = vmatpush1.bf16.msra.mxu0 %v20425_v58  ;;  %v22228_v58 = vld [vmem:[%s22833_s27] ss:$12 sps:$4 sm:$0xff]  }
 0x1df   : > { %3838 = vmatpush1.bf16.msra.mxu1 %v20428_v59  ;;  %3613 = vmatprep.subr.bf16.mxu0 %v20433_v61  ;;  %v20506_v59 = vld [vmem:[#allocation2 + $0x790] ss:$56 sps:$4 sm:$0xff]  }
 0x1e0   : > { %3839 = vmatprep.subr.bf16.mxu1 %v20436_v62  ;;  %v22229_v61 = vld [vmem:[%s22833_s27 + $0x1c] ss:$12 sps:$4 sm:$0xff]  }
 0x1e1   : > { %3319 = vmatmul.mubr.bf16.gmra.mrb[40].mxu0 %v22221_v7  ;;  %v20511_v62 = vld [vmem:[#allocation2 + $0x804] ss:$56 sps:$4 sm:$0xff]  }
 0x1e2   : > { %3545 = vmatmul.mubr.bf16.gmra.mrb[40].mxu1 %v22221_v7  ;;  %3614 = vmatpush1.bf16.msra.mxu0 %v20431_v63  ;;  %v20521_v63 = vld [vmem:[#allocation2 + $0x798] ss:$56 sps:$4 sm:$0xff]  }
 0x1e3   : > { %3840 = vmatpush1.bf16.msra.mxu1 %v20434_v0  ;;  %3615 = vmatprep.subr.bf16.mxu0 %v20439_v1  ;;  %v20509_v0 = vld [vmem:[#allocation2 + $0x800] ss:$56 sps:$4 sm:$0xff]   ;;  %v823_v1 = vlaneseq }
 0x1e4   : > { %3841 = vmatprep.subr.bf16.mxu1 %v20442_v2  ;;  %3328 = vmatprep.mubr.bf16.mxu0 %v24885_v50  ;;  %v20529_v2 = vld [vmem:[#allocation2 + $0x80c] ss:$56 sps:$4 sm:$0xff]  }
 0x1e5   : > { %3554 = vmatprep.mubr.bf16.mxu1 %v24885_v50  ;;  %v22230_v7 = vld [vmem:[%s22833_s27 + $0x18] ss:$12 sps:$4 sm:$0xff]  }
 0x1e6   : > { %3616 = vmatpush1.bf16.msra.mxu0 %v20437_v4  ;;  %v20514_v4 = vld [vmem:[#allocation2 + $0x874] ss:$56 sps:$4 sm:$0xff]  }
 0x1e7   : > { %3842 = vmatpush1.bf16.msra.mxu1 %v20440_v6  ;;  %3617 = vmatprep.subr.bf16.mxu0 %v20445_v8  ;;  %v20527_v6 = vld [vmem:[#allocation2 + $0x808] ss:$56 sps:$4 sm:$0xff]   ;;  %v22939_v8 = vshrl.u32 %v823_v1, 7 }
 0x1e8   : > { %3843 = vmatprep.subr.bf16.mxu1 %v20448_v9  ;;  %v20512_v9 = vld [vmem:[#allocation2 + $0x870] ss:$56 sps:$4 sm:$0xff]  }
 0x1e9   : > { %3329 = vmatmul.mubr.bf16.gmra.mrb[44].mxu0 %v22222_v3  ;;  %25136 = vst [vmem:[#allocation20_spill] sm:$0xff] %v22939_v8 }
 0x1ea   : > { %3555 = vmatmul.mubr.bf16.gmra.mrb[44].mxu1 %v22222_v3  ;;  %3618 = vmatpush1.bf16.msra.mxu0 %v20443_v10  ;;  %v20532_v10 = vld [vmem:[#allocation2 + $0x87c] ss:$56 sps:$4 sm:$0xff]   ;;  %v819_v3 = vld [vmem:[#allocation4] sm:$0xff] }
 0x1eb   : > { %3844 = vmatpush1.bf16.msra.mxu1 %v20446_v11  ;;  %3619 = vmatprep.subr.bf16.mxu0 %v20451_v14  ;;  %v22231_v11 = vld [vmem:[%s22833_s27 + $0x34] ss:$12 sps:$4 sm:$0xff]   ;;  %v20517_v14 = vld [vmem:[#allocation2 + $0x8e4] ss:$56 sps:$4 sm:$0xff]  }
 0x1ec   : > { %3845 = vmatprep.subr.bf16.mxu1 %v20454_v15  ;;  %3338 = vmatprep.mubr.bf16.mxu0 %v24885_v50  ;;  %v20530_v15 = vld [vmem:[#allocation2 + $0x878] ss:$56 sps:$4 sm:$0xff]  }
 0x1ed   : > { %3564 = vmatprep.mubr.bf16.mxu1 %v24885_v50 }
 0x1ee   : > { %3620 = vmatpush1.bf16.msra.mxu0 %v20449_v16  ;;  %v22943_v16 = vsub.s32 0, %v22939_v8 }
 0x1ef   : > { %3846 = vmatpush1.bf16.msra.mxu1 %v20452_v5  ;;  %3621 = vmatprep.subr.bf16.mxu0 %v20457_v17  ;;  %v22946_v5 = vsub.s32 2, %v22939_v8  ;;  %v20515_v17 = vld [vmem:[#allocation2 + $0x8e0] ss:$56 sps:$4 sm:$0xff]  }
 0x1f0   : > { %3847 = vmatprep.subr.bf16.mxu1 %v20460_v18  ;;  %25137 = vst [vmem:[#allocation21_spill] sm:$0xff] %v22943_v16  ;;  %v20538_v18 = vld [vmem:[#allocation2 + $0x8ec] ss:$56 sps:$4 sm:$0xff]  }
 0x1f1   : > { %3339 = vmatmul.mubr.bf16.gmra.mrb[48].mxu0 %v22223_v22  ;;  %25138 = vst [vmem:[#allocation22_spill] sm:$0xff] %v22946_v5 }
 0x1f2   : > { %3565 = vmatmul.mubr.bf16.gmra.mrb[48].mxu1 %v22223_v22  ;;  %3622 = vmatpush1.bf16.msra.mxu0 %v20455_v19  ;;  %v22949_v19 = vsub.s32 1, %v22939_v8  ;;  %v22232_v22 = vld [vmem:[%s22833_s27 + $0x30] ss:$12 sps:$4 sm:$0xff]  }
 0x1f3   : > { %3848 = vmatpush1.bf16.msra.mxu1 %v20458_v20  ;;  %3623 = vmatprep.subr.bf16.mxu0 %v20463_v21  ;;  %v22952_v20 = vsub.s32 3, %v22939_v8  ;;  %v20526_v21 = vld [vmem:[#allocation2 + $0x954] ss:$56 sps:$4 sm:$0xff]  }
 0x1f4   : > { %3849 = vmatprep.subr.bf16.mxu1 %v20466_v12  ;;  %3348 = vmatprep.mubr.bf16.mxu0 %v24885_v50  ;;  %25139 = vst [vmem:[#allocation23_spill] sm:$0xff] %v22949_v19  ;;  %v20536_v12 = vld [vmem:[#allocation2 + $0x8e8] ss:$56 sps:$4 sm:$0xff]  }
 0x1f5   : > { %3574 = vmatprep.mubr.bf16.mxu1 %v24885_v50  ;;  %25140 = vst [vmem:[#allocation24_spill] sm:$0xff] %v22952_v20 }
 0x1f6   : > { %3624 = vmatpush1.bf16.msra.mxu0 %v20461_v13  ;;  %v22956_v13 = vrot.slane %v819_v3, %v22943_v16 }
 0x1f7   : > { %3850 = vmatpush1.bf16.msra.mxu1 %v20464_v23  ;;  %3625 = vmatprep.subr.bf16.mxu0 %v20469_v24  ;;  %v22959_v23 = vrot.slane %v819_v3, %v22946_v5  ;;  %v20524_v24 = vld [vmem:[#allocation2 + $0x950] ss:$56 sps:$4 sm:$0xff]  }
 0x1f8   : > { %3851 = vmatprep.subr.bf16.mxu1 %v20472_v25  ;;  %v20541_v25 = vld [vmem:[#allocation2 + $0x95c] ss:$56 sps:$4 sm:$0xff]  }
 0x1f9   : > { %3349 = vmatmul.mubr.bf16.gmra.mrb[52].mxu0 %v22224_v30 }
 0x1fa   : > { %3575 = vmatmul.mubr.bf16.gmra.mrb[52].mxu1 %v22224_v30  ;;  %3626 = vmatpush1.bf16.msra.mxu0 %v20467_v26  ;;  %v22962_v26 = vrot.slane %v819_v3, %v22949_v19 }
 0x1fb   : > { %3852 = vmatpush1.bf16.msra.mxu1 %v20470_v27  ;;  %3627 = vmatprep.subr.bf16.mxu0 %v20475_v28  ;;  %v22965_v27 = vrot.slane %v819_v3, %v22952_v20  ;;  %v22233_v28 = vld [vmem:[%s22833_s27 + $0x4c] ss:$12 sps:$4 sm:$0xff]   ;;  %v22259_v20 = vld [vmem:[%s22833_s27 + $0x48] ss:$12 sps:$4 sm:$0xff]  }
 0x1fc   : > { %3853 = vmatprep.subr.bf16.mxu1 %v20478_v29  ;;  %3358 = vmatprep.mubr.bf16.mxu0 %v24885_v50  ;;  %v20535_v29 = vld [vmem:[#allocation2 + $0x9c4] ss:$56 sps:$4 sm:$0xff]  }
 0x1fd   : > { %3584 = vmatprep.mubr.bf16.mxu1 %v24885_v50 }
 0x1fe   : > { %3628 = vmatpush1.bf16.msra.mxu0 %v20473_v31 }
 0x1ff   : > { %3854 = vmatpush1.bf16.msra.mxu1 %v20476_v32  ;;  %3629 = vmatprep.subr.bf16.mxu0 %v20481_v33  ;;  %v20539_v32 = vld [vmem:[#allocation2 + $0x958] ss:$56 sps:$4 sm:$0xff]  }
 0x200   : > { %3855 = vmatprep.subr.bf16.mxu1 %v20484_v34 }
 0x201   : > { %3359 = vmatmul.mubr.bf16.gmra.mrb[56].mxu0 %v22225_v39 }
 0x202   : > { %3585 = vmatmul.mubr.bf16.gmra.mrb[56].mxu1 %v22225_v39  ;;  %3630 = vmatpush1.bf16.msra.mxu0 %v20479_v35 }
 0x203   : > { %3856 = vmatpush1.bf16.msra.mxu1 %v20482_v36  ;;  %3631 = vmatprep.subr.bf16.mxu0 %v20487_v37  ;;  %v20533_v37 = vld [vmem:[#allocation2 + $0x9c0] ss:$56 sps:$4 sm:$0xff]  }
 0x204   : > { %3857 = vmatprep.subr.bf16.mxu1 %v20490_v38  ;;  %3368 = vmatprep.mubr.bf16.mxu0 %v24885_v50  ;;  %v20547_v38 = vld [vmem:[#allocation2 + $0x9cc] ss:$56 sps:$4 sm:$0xff]  }
 0x205   : > { %3594 = vmatprep.mubr.bf16.mxu1 %v24885_v50 }
 0x206   : > { %3632 = vmatpush1.bf16.msra.mxu0 %v20485_v40 }
 0x207   : > { %3858 = vmatpush1.bf16.msra.mxu1 %v20488_v41  ;;  %3633 = vmatprep.subr.bf16.mxu0 %v20493_v42 }
 0x208   : > { %3859 = vmatprep.subr.bf16.mxu1 %v20496_v43  ;;  %v20545_v43 = vld [vmem:[#allocation2 + $0x9c8] ss:$56 sps:$4 sm:$0xff]  }
 0x209   : > { %3369 = vmatmul.mubr.bf16.gmra.mrb[60].mxu0 %v22226_v51 }
 0x20a   : > { %3595 = vmatmul.mubr.bf16.gmra.mrb[60].mxu1 %v22226_v51  ;;  %3634 = vmatpush1.bf16.msra.mxu0 %v20491_v44 }
 0x20b   : > { %3860 = vmatpush1.bf16.msra.mxu1 %v20494_v45  ;;  %3635 = vmatprep.subr.bf16.mxu0 %v20499_v46 }
 0x20c   : > { %3861 = vmatprep.subr.bf16.mxu1 %v20502_v47  ;;  %3637 = vmatprep.mubr.bf16.mxu0 %v22227_v54 }
 0x20d   : > { %3863 = vmatprep.mubr.bf16.mxu1 %v22227_v54 }
 0x20e   : > { %3636 = vmatpush1.bf16.msra.mxu0 %v20497_v48  ;;  %v20544_v48 = vld [vmem:[#allocation2 + $0xa34] ss:$56 sps:$4 sm:$0xff]  }
 0x20f   : > { %3862 = vmatpush1.bf16.msra.mxu1 %v20500_v49  ;;  %3718 = vmatprep.subr.bf16.mxu0 %v20505_v52 }
 0x210   : > { %3944 = vmatprep.subr.bf16.mxu1 %v20520_v53  ;;  %v20550_v53 = vld [vmem:[#allocation2 + $0xa3c] ss:$56 sps:$4 sm:$0xff]  }
 0x211   : > { %3638 = vmatmul.mubr.bf16.vlgmr.msra.gmra.mrb[64].mxu0 %v22228_v58 }
 0x212   : > { %3864 = vmatmul.mubr.bf16.vlgmr.msra.gmra.mrb[64].mxu1 %v22228_v58  ;;  %3719 = vmatpush1.bf16.msra.mxu0 %v20503_v55  ;;  %v22234_v58 = vld [vmem:[%s22833_s27 + $0x48] ss:$12 sps:$4 sm:$0xff]  }
 0x213   : > { %3647 = vmatprep.mubr.bf16.mxu0 %v22229_v61  ;;  %3873 = vmatprep.mubr.bf16.mxu1 %v22229_v61 }
 0x214   : > { %3720 = vmatprep.subr.bf16.mxu0 %v20508_v56  ;;  %3945 = vmatpush1.bf16.msra.mxu1 %v20518_v57 }
 0x215   : > { %3946 = vmatprep.subr.bf16.mxu1 %v20523_v60 }
 0x216   : > { %3721 = vmatpush1.bf16.msra.mxu0 %v20506_v59  ;;  %v20542_v59 = vld [vmem:[#allocation2 + $0xa30] ss:$56 sps:$4 sm:$0xff]  }
 0x217   : > { %3722 = vmatprep.subr.bf16.mxu0 %v20511_v62 }
 0x218   : > { %3947 = vmatpush1.bf16.msra.mxu1 %v20521_v63  ;;  %v22235_v63 = vld [vmem:[%s22833_s27 + $0x64] ss:$12 sps:$4 sm:$0xff]  }
 0x219   : > { %3648 = vmatmul.mubr.bf16.gmra.mrb[68].mxu0 %v22230_v7  ;;  %3948 = vmatprep.subr.bf16.mxu1 %v20529_v2 }
 0x21a   : > { %3874 = vmatmul.mubr.bf16.gmra.mrb[68].mxu1 %v22230_v7  ;;  %3657 = vmatprep.mubr.bf16.mxu0 %v22231_v11 }
 0x21b   : > { %3883 = vmatprep.mubr.bf16.mxu1 %v22231_v11  ;;  %3723 = vmatpush1.bf16.msra.mxu0 %v20509_v0 }
 0x21c   : > { %3724 = vmatprep.subr.bf16.mxu0 %v20514_v4  ;;  %3949 = vmatpush1.bf16.msra.mxu1 %v20527_v6 }
 0x21d   : > { %3950 = vmatprep.subr.bf16.mxu1 %v20532_v10  ;;  %v20553_v10 = vld [vmem:[#allocation2 + $0x34] ss:$56 sps:$4 sm:$0xff]  }
 0x21f   : > { %3725 = vmatpush1.bf16.msra.mxu0 %v20512_v9  ;;  %v20548_v9 = vld [vmem:[#allocation2 + $0xa38] ss:$56 sps:$4 sm:$0xff]  }
 0x220   : > { %3726 = vmatprep.subr.bf16.mxu0 %v20517_v14  ;;  %3951 = vmatpush1.bf16.msra.mxu1 %v20530_v15 }
 0x221   : > { %3658 = vmatmul.mubr.bf16.gmra.mrb[72].mxu0 %v22232_v22  ;;  %3952 = vmatprep.subr.bf16.mxu1 %v20538_v18 }
 0x222   : > { %3884 = vmatmul.mubr.bf16.gmra.mrb[72].mxu1 %v22232_v22  ;;  %3667 = vmatprep.mubr.bf16.mxu0 %v22233_v28 }
 0x223   : > { %3893 = vmatprep.mubr.bf16.mxu1 %v22233_v28  ;;  %3727 = vmatpush1.bf16.msra.mxu0 %v20515_v17 }
 0x224   : > { %v2848_v30 = vpop.f32.mrb[0].mxu0  ;;  %3728 = vmatprep.subr.bf16.mxu0 %v20526_v21  ;;  %3953 = vmatpush1.bf16.msra.mxu1 %v20536_v12 }
 0x225   : > { %v3074_v31 = vpop.f32.mrb[0].mxu1  ;;  %v18547_v33 = vadd.f32 %v2848_v30, %v22956_v13  ;;  %v2850_v35 = vpop.f32.mrb[1].mxu0  ;;  %3954 = vmatprep.subr.bf16.mxu1 %v20541_v25 }
 0x226   : > { %v18579_v34 = vadd.f32 %v3074_v31, %v22959_v23  ;;  %v3076_v36 = vpop.f32.mrb[1].mxu1  ;;  %v18548_v39 = vadd.f32 %v2850_v35, %v22962_v26  ;;  %v2852_v41 = vpop.f32.mrb[2].mxu0 }
 0x227   : > { %v18580_v40 = vadd.f32 %v3076_v36, %v22965_v27  ;;  %v3078_v42 = vpop.f32.mrb[2].mxu1  ;;  %v18549_v44 = vadd.f32 %v2852_v41, %v22956_v13  ;;  %v2854_v46 = vpop.f32.mrb[3].mxu0  ;;  %3729 = vmatpush1.bf16.msra.mxu0 %v20524_v24  ;;  %v4283_v49 = vmax.f32 %v18547_v33, 0.0  ;;  %v22237_v41 = vld [vmem:[%s22833_s27 + $0x7c] ss:$12 sps:$4 sm:$0xff]  }
 0x228   : > { %v18581_v45 = vadd.f32 %v3078_v42, %v22959_v23  ;;  %v3080_v47 = vpop.f32.mrb[3].mxu1  ;;  %v18550_v51 = vadd.f32 %v2854_v46, %v22962_v26  ;;  %3730 = vmatprep.subr.bf16.mxu0 %v20535_v29  ;;  %3955 = vmatpush1.bf16.msra.mxu1 %v20539_v32  ;;  %v4285_v54 = vmax.f32 %v18579_v34, 0.0  ;;  %v4284_v55 = vmax.f32 %v18548_v39, 0.0  ;;  %v20556_v29 = vld [vmem:[#allocation6 + $0x4] ss:$28 sps:$4 sm:$0xff]  }
 0x229   : > { %v18582_v52 = vadd.f32 %v3080_v47, %v22965_v27  ;;  %v4297_v56 = vmax.f32 %v18549_v44, 0.0  ;;  %3668 = vmatmul.mubr.bf16.gmra.mrb[76].mxu0 %v22234_v58  ;;  %v4286_v60 = vmax.f32 %v18580_v40, 0.0  ;;  %3956 = vmatprep.subr.bf16.mxu1 %v20547_v38 }
 0x22a   : > { %v4299_v57 = vmax.f32 %v18581_v45, 0.0  ;;  %3894 = vmatmul.mubr.bf16.gmra.mrb[76].mxu1 %v22234_v58  ;;  %v4298_v61 = vmax.f32 %v18550_v51, 0.0  ;;  %3677 = vmatprep.mubr.bf16.mxu0 %v22235_v63 }
 0x22b   : > { %v4300_v62 = vmax.f32 %v18582_v52, 0.0  ;;  %3903 = vmatprep.mubr.bf16.mxu1 %v22235_v63  ;;  %v22978_v0 = vpack.c.bf16 %v4297_v56, %v4283_v49  ;;  %3731 = vmatpush1.bf16.msra.mxu0 %v20533_v37  ;;  %v22236_v37 = vld [vmem:[%s22833_s27 + $0x60] ss:$12 sps:$4 sm:$0xff]  }
 0x22c   : > { %v22980_v1 = vpack.c.bf16 %v4299_v57, %v4285_v54  ;;  %v22982_v2 = vpack.c.bf16 %v4298_v61, %v4284_v55  ;;  %v2858_v6 = vpop.f32.mrb[4].mxu0  ;;  %3732 = vmatprep.subr.bf16.mxu0 %v20544_v48  ;;  %3957 = vmatpush1.bf16.msra.mxu1 %v20545_v43 }
 0x22d   : > { %25141 = vst [vmem:[#allocation25_spill] sm:$0xff] %v22978_v0  ;;  %v22984_v4 = vpack.c.bf16 %v4300_v62, %v4286_v60  ;;  %v3084_v7 = vpop.f32.mrb[4].mxu1  ;;  %v18551_v11 = vadd.f32 %v2858_v6, %v22956_v13  ;;  %v2860_v15 = vpop.f32.mrb[5].mxu0  ;;  %3958 = vmatprep.subr.bf16.mxu1 %v20550_v53 }
 0x22e   : > { %25142 = vst [vmem:[#allocation26_spill] sm:$0xff] %v22980_v1  ;;  %25143 = vst [vmem:[#allocation27_spill] sm:$0xff] %v22982_v2  ;;  %v18583_v14 = vadd.f32 %v3084_v7, %v22959_v23  ;;  %v3086_v3 = vpop.f32.mrb[5].mxu1  ;;  %v18552_v17 = vadd.f32 %v2860_v15, %v22962_v26  ;;  %v2862_v21 = vpop.f32.mrb[6].mxu0 }
 0x22f   : > { %25144 = vst [vmem:[#allocation28_spill] sm:$0xff] %v22984_v4  ;;  %v18584_v18 = vadd.f32 %v3086_v3, %v22965_v27  ;;  %v3088_v12 = vpop.f32.mrb[6].mxu1  ;;  %v18553_v22 = vadd.f32 %v2862_v21, %v22956_v13  ;;  %v2864_v25 = vpop.f32.mrb[7].mxu0  ;;  %3733 = vmatpush1.bf16.msra.mxu0 %v20542_v59  ;;  %v4311_v30 = vmax.f32 %v18551_v11, 0.0  ;;  %v22238_v11 = vld [vmem:[%s22833_s27 + $0x78] ss:$12 sps:$4 sm:$0xff]  }
 0x230   : > { %v18585_v24 = vadd.f32 %v3088_v12, %v22959_v23  ;;  %v3090_v28 = vpop.f32.mrb[7].mxu1  ;;  %v18554_v31 = vadd.f32 %v2864_v25, %v22962_v26  ;;  %3959 = vmatpush1.bf16.msra.mxu1 %v20548_v9  ;;  %4057 = vmatprep.subr.bf16.mxu0 %v20553_v10  ;;  %v4313_v33 = vmax.f32 %v18583_v14, 0.0  ;;  %v4312_v34 = vmax.f32 %v18552_v17, 0.0  ;;  %v22239_v17 = vld [vmem:[%s22833_s27 + $0x94] ss:$12 sps:$4 sm:$0xff]  }
 0x231   : > { %v18586_v32 = vadd.f32 %v3090_v28, %v22965_v27  ;;  %v4325_v35 = vmax.f32 %v18553_v22, 0.0  ;;  %3678 = vmatmul.mubr.bf16.gmra.mrb[80].mxu0 %v22236_v37  ;;  %v4314_v38 = vmax.f32 %v18584_v18, 0.0  ;;  %9584 = vmatprep.subr.bf16.mxu1 %v20556_v29 }
 0x232   : > { %v4327_v36 = vmax.f32 %v18585_v24, 0.0  ;;  %3904 = vmatmul.mubr.bf16.gmra.mrb[80].mxu1 %v22236_v37  ;;  %v4326_v39 = vmax.f32 %v18554_v31, 0.0  ;;  %3687 = vmatprep.mubr.bf16.mxu0 %v22237_v41 }
 0x233   : > { %v4328_v40 = vmax.f32 %v18586_v32, 0.0  ;;  %3913 = vmatprep.mubr.bf16.mxu1 %v22237_v41  ;;  %v22996_v42 = vpack.c.bf16 %v4325_v35, %v4311_v30 }
 0x234   : > { %v22998_v43 = vpack.c.bf16 %v4327_v36, %v4313_v33  ;;  %v23000_v44 = vpack.c.bf16 %v4326_v39, %v4312_v34  ;;  %v2868_v46 = vpop.f32.mrb[8].mxu0 }
 0x235   : > { %25145 = vst [vmem:[#allocation29_spill] sm:$0xff] %v22996_v42  ;;  %v23002_v45 = vpack.c.bf16 %v4328_v40, %v4314_v38  ;;  %v3094_v47 = vpop.f32.mrb[8].mxu1  ;;  %v18555_v48 = vadd.f32 %v2868_v46, %v22956_v13  ;;  %v2870_v51 = vpop.f32.mrb[9].mxu0 }
 0x236   : > { %25146 = vst [vmem:[#allocation30_spill] sm:$0xff] %v22998_v43  ;;  %25147 = vst [vmem:[#allocation31_spill] sm:$0xff] %v23000_v44  ;;  %v18587_v49 = vadd.f32 %v3094_v47, %v22959_v23  ;;  %v3096_v52 = vpop.f32.mrb[9].mxu1  ;;  %v18556_v53 = vadd.f32 %v2870_v51, %v22962_v26  ;;  %v2872_v55 = vpop.f32.mrb[10].mxu0 }
 0x237   : > { %25148 = vst [vmem:[#allocation32_spill] sm:$0xff] %v23002_v45  ;;  %v18588_v54 = vadd.f32 %v3096_v52, %v22965_v27  ;;  %v3098_v56 = vpop.f32.mrb[10].mxu1  ;;  %v18557_v57 = vadd.f32 %v2872_v55, %v22956_v13  ;;  %v2874_v59 = vpop.f32.mrb[11].mxu0  ;;  %v4339_v61 = vmax.f32 %v18555_v48, 0.0  ;;  %v22240_v52 = vld [vmem:[%s22833_s27 + $0x90] ss:$12 sps:$4 sm:$0xff]  }
 0x238   : > { %v18589_v58 = vadd.f32 %v3098_v56, %v22959_v23  ;;  %v3100_v60 = vpop.f32.mrb[11].mxu1  ;;  %v18558_v62 = vadd.f32 %v2874_v59, %v22962_v26  ;;  %v4341_v6 = vmax.f32 %v18587_v49, 0.0  ;;  %v4340_v7 = vmax.f32 %v18556_v53, 0.0  ;;  %v22241_v56 = vld [vmem:[%s22833_s27 + $0xac] ss:$12 sps:$4 sm:$0xff]  }
 0x239   : > { %v18590_v63 = vadd.f32 %v3100_v60, %v22965_v27  ;;  %v4353_v9 = vmax.f32 %v18557_v57, 0.0  ;;  %3688 = vmatmul.mubr.bf16.gmra.mrb[84].mxu0 %v22238_v11  ;;  %v4342_v14 = vmax.f32 %v18588_v54, 0.0 }
 0x23a   : > { %v4355_v10 = vmax.f32 %v18589_v58, 0.0  ;;  %3914 = vmatmul.mubr.bf16.gmra.mrb[84].mxu1 %v22238_v11  ;;  %v4354_v15 = vmax.f32 %v18558_v62, 0.0  ;;  %3697 = vmatprep.mubr.bf16.mxu0 %v22239_v17 }
 0x23b   : > { %v4356_v3 = vmax.f32 %v18590_v63, 0.0  ;;  %3923 = vmatprep.mubr.bf16.mxu1 %v22239_v17  ;;  %v23014_v18 = vpack.c.bf16 %v4353_v9, %v4339_v61 }
 0x23c   : > { %v23016_v21 = vpack.c.bf16 %v4355_v10, %v4341_v6  ;;  %v23018_v12 = vpack.c.bf16 %v4354_v15, %v4340_v7  ;;  %v2878_v24 = vpop.f32.mrb[12].mxu0 }
 0x23d   : > { %25149 = vst [vmem:[#allocation33_spill] sm:$0xff] %v23014_v18  ;;  %v23020_v22 = vpack.c.bf16 %v4356_v3, %v4342_v14  ;;  %v3104_v25 = vpop.f32.mrb[12].mxu1  ;;  %v18559_v28 = vadd.f32 %v2878_v24, %v22956_v13  ;;  %v2880_v30 = vpop.f32.mrb[13].mxu0 }
 0x23e   : > { %25150 = vst [vmem:[#allocation34_spill] sm:$0xff] %v23016_v21  ;;  %25151 = vst [vmem:[#allocation35_spill] sm:$0xff] %v23018_v12  ;;  %v18591_v29 = vadd.f32 %v3104_v25, %v22959_v23  ;;  %v3106_v31 = vpop.f32.mrb[13].mxu1  ;;  %v18560_v32 = vadd.f32 %v2880_v30, %v22962_v26  ;;  %v2882_v34 = vpop.f32.mrb[14].mxu0 }
 0x23f   : > { %25152 = vst [vmem:[#allocation36_spill] sm:$0xff] %v23020_v22  ;;  %v18592_v33 = vadd.f32 %v3106_v31, %v22965_v27  ;;  %v3108_v35 = vpop.f32.mrb[14].mxu1  ;;  %v18561_v36 = vadd.f32 %v2882_v34, %v22956_v13  ;;  %v2884_v38 = vpop.f32.mrb[15].mxu0  ;;  %v4367_v40 = vmax.f32 %v18559_v28, 0.0 }
 0x240   : > { %v18593_v37 = vadd.f32 %v3108_v35, %v22959_v23  ;;  %v3110_v39 = vpop.f32.mrb[15].mxu1  ;;  %v18562_v41 = vadd.f32 %v2884_v38, %v22962_v26  ;;  %v4369_v47 = vmax.f32 %v18591_v29, 0.0  ;;  %v4368_v48 = vmax.f32 %v18560_v32, 0.0  ;;  %v22242_v35 = vld [vmem:[%s22833_s27 + $0xa8] ss:$12 sps:$4 sm:$0xff]  }
 0x241   : > { %v18594_v46 = vadd.f32 %v3110_v39, %v22965_v27  ;;  %v4381_v49 = vmax.f32 %v18561_v36, 0.0  ;;  %3698 = vmatmul.mubr.bf16.gmra.mrb[88].mxu0 %v22240_v52  ;;  %v4370_v53 = vmax.f32 %v18592_v33, 0.0 }
 0x242   : > { %v4383_v51 = vmax.f32 %v18593_v37, 0.0  ;;  %3924 = vmatmul.mubr.bf16.gmra.mrb[88].mxu1 %v22240_v52  ;;  %v4382_v54 = vmax.f32 %v18562_v41, 0.0  ;;  %3707 = vmatprep.mubr.bf16.mxu0 %v22241_v56 }
 0x243   : > { %v4384_v55 = vmax.f32 %v18594_v46, 0.0  ;;  %3933 = vmatprep.mubr.bf16.mxu1 %v22241_v56  ;;  %v23032_v57 = vpack.c.bf16 %v4381_v49, %v4367_v40  ;;  %v20551_v49 = vld [vmem:[#allocation2 + $0x30] ss:$56 sps:$4 sm:$0xff]   ;;  %v20559_v56 = vld [vmem:[#allocation2 + $0xa4] ss:$56 sps:$4 sm:$0xff]  }
 0x244   : > { %v23034_v58 = vpack.c.bf16 %v4383_v51, %v4369_v47  ;;  %v23036_v59 = vpack.c.bf16 %v4382_v54, %v4368_v48  ;;  %v2888_v61 = vpop.f32.mrb[16].mxu0 }
 0x245   : > { %25153 = vst [vmem:[#allocation37_spill] sm:$0xff] %v23032_v57  ;;  %v23038_v60 = vpack.c.bf16 %v4384_v55, %v4370_v53  ;;  %v3114_v62 = vpop.f32.mrb[16].mxu1  ;;  %v18563_v63 = vadd.f32 %v2888_v61, %v22956_v13  ;;  %v2890_v7 = vpop.f32.mrb[17].mxu0  ;;  %v20554_v55 = vld [vmem:[#allocation6] ss:$28 sps:$4 sm:$0xff]  }
 0x246   : > { %25154 = vst [vmem:[#allocation38_spill] sm:$0xff] %v23034_v58  ;;  %25155 = vst [vmem:[#allocation39_spill] sm:$0xff] %v23036_v59  ;;  %v18595_v6 = vadd.f32 %v3114_v62, %v22959_v23  ;;  %v3116_v9 = vpop.f32.mrb[17].mxu1  ;;  %v18564_v10 = vadd.f32 %v2890_v7, %v22962_v26  ;;  %v2892_v14 = vpop.f32.mrb[18].mxu0 }
 0x247   : > { %25156 = vst [vmem:[#allocation40_spill] sm:$0xff] %v23038_v60  ;;  %v18596_v11 = vadd.f32 %v3116_v9, %v22965_v27  ;;  %v3118_v15 = vpop.f32.mrb[18].mxu1  ;;  %v18565_v3 = vadd.f32 %v2892_v14, %v22956_v13  ;;  %v2894_v24 = vpop.f32.mrb[19].mxu0  ;;  %v4395_v28 = vmax.f32 %v18563_v63, 0.0  ;;  %v20562_v14 = vld [vmem:[#allocation6 + $0x3c] ss:$28 sps:$4 sm:$0xff]  }
 0x248   : > { %v18597_v17 = vadd.f32 %v3118_v15, %v22959_v23  ;;  %v3120_v25 = vpop.f32.mrb[19].mxu1  ;;  %v18566_v29 = vadd.f32 %v2894_v24, %v22962_v26  ;;  %v4397_v31 = vmax.f32 %v18595_v6, 0.0  ;;  %v4396_v32 = vmax.f32 %v18564_v10, 0.0  ;;  %v20557_v24 = vld [vmem:[#allocation2 + $0xa0] ss:$56 sps:$4 sm:$0xff]  }
 0x249   : > { %v18598_v30 = vadd.f32 %v3120_v25, %v22965_v27  ;;  %v4409_v33 = vmax.f32 %v18565_v3, 0.0  ;;  %3708 = vmatmul.mubr.bf16.gmra.mrb[92].mxu0 %v22242_v35  ;;  %v4398_v36 = vmax.f32 %v18596_v11, 0.0  ;;  %v20560_v25 = vld [vmem:[#allocation6 + $0x38] ss:$28 sps:$4 sm:$0xff]  }
 0x24a   : > { %v4411_v34 = vmax.f32 %v18597_v17, 0.0  ;;  %3934 = vmatmul.mubr.bf16.gmra.mrb[92].mxu1 %v22242_v35  ;;  %v4410_v37 = vmax.f32 %v18566_v29, 0.0  ;;  %3750 = vmatprep.mubr.bf16.mxu0 %v24885_v50 }
 0x24b   : > { %v4412_v38 = vmax.f32 %v18598_v30, 0.0  ;;  %3976 = vmatprep.mubr.bf16.mxu1 %v24885_v50  ;;  %v23051_v39 = vpack.c.bf16 %v4409_v33, %v4395_v28  ;;  %v20565_v33 = vld [vmem:[#allocation2 + $0x114] ss:$56 sps:$4 sm:$0xff]  }
 0x24c   : > { %v23053_v40 = vpack.c.bf16 %v4411_v34, %v4397_v31  ;;  %v23055_v41 = vpack.c.bf16 %v4410_v37, %v4396_v32  ;;  %v2898_v47 = vpop.f32.mrb[20].mxu0  ;;  %v22243_v32 = vld [vmem:[%s22833_s27 + $0x8] ss:$12 sps:$4 sm:$0xff]   ;;  %v20568_v34 = vld [vmem:[#allocation6 + $0x74] ss:$28 sps:$4 sm:$0xff]  }
 0x24d   : > { %25157 = vst [vmem:[#allocation41_spill] sm:$0xff] %v23051_v39  ;;  %v23057_v46 = vpack.c.bf16 %v4412_v38, %v4398_v36  ;;  %v3124_v48 = vpop.f32.mrb[20].mxu1  ;;  %v18567_v51 = vadd.f32 %v2898_v47, %v22956_v13  ;;  %v2900_v53 = vpop.f32.mrb[21].mxu0 }
 0x24e   : > { %25158 = vst [vmem:[#allocation42_spill] sm:$0xff] %v23053_v40  ;;  %25159 = vst [vmem:[#allocation43_spill] sm:$0xff] %v23055_v41  ;;  %v18599_v52 = vadd.f32 %v3124_v48, %v22959_v23  ;;  %v3126_v54 = vpop.f32.mrb[21].mxu1  ;;  %v18568_v61 = vadd.f32 %v2900_v53, %v22962_v26  ;;  %v2902_v63 = vpop.f32.mrb[22].mxu0 }
 0x24f   : > { %25160 = vst [vmem:[#allocation44_spill] sm:$0xff] %v23057_v46  ;;  %v18600_v62 = vadd.f32 %v3126_v54, %v22965_v27  ;;  %v3128_v6 = vpop.f32.mrb[22].mxu1  ;;  %v18569_v7 = vadd.f32 %v2902_v63, %v22956_v13  ;;  %v2904_v10 = vpop.f32.mrb[23].mxu0  ;;  %v4423_v15 = vmax.f32 %v18567_v51, 0.0  ;;  %v20563_v54 = vld [vmem:[#allocation2 + $0x110] ss:$56 sps:$4 sm:$0xff]  }
 0x250   : > { %v18601_v9 = vadd.f32 %v3128_v6, %v22959_v23  ;;  %v3130_v11 = vpop.f32.mrb[23].mxu1  ;;  %v18570_v3 = vadd.f32 %v2904_v10, %v22962_v26  ;;  %v4425_v28 = vmax.f32 %v18599_v52, 0.0  ;;  %v4424_v29 = vmax.f32 %v18568_v61, 0.0  ;;  %v20566_v63 = vld [vmem:[#allocation6 + $0x70] ss:$28 sps:$4 sm:$0xff]  }
 0x251   : > { %v18602_v17 = vadd.f32 %v3130_v11, %v22965_v27  ;;  %v4437_v30 = vmax.f32 %v18569_v7, 0.0  ;;  %3751 = vmatmul.mubr.bf16.vlgmr.msra.gmra.mrb[64].mxu0 %v22243_v32  ;;  %v4426_v35 = vmax.f32 %v18600_v62, 0.0 }
 0x252   : > { %v4439_v31 = vmax.f32 %v18601_v9, 0.0  ;;  %3977 = vmatmul.mubr.bf16.vlgmr.msra.gmra.mrb[64].mxu1 %v22243_v32  ;;  %v4438_v36 = vmax.f32 %v18570_v3, 0.0  ;;  %4058 = vmatpush1.bf16.msra.mxu0 %v20551_v49  ;;  %v20572_v32 = vld [vmem:[#allocation6 + $0xa8] ss:$28 sps:$4 sm:$0xff]  }
 0x253   : > { %v4440_v37 = vmax.f32 %v18602_v17, 0.0  ;;  %9585 = vmatpush1.bf16.msra.mxu1 %v20554_v55  ;;  %v23068_v38 = vpack.c.bf16 %v4437_v30, %v4423_v15  ;;  %4059 = vmatprep.subr.bf16.mxu0 %v20559_v56  ;;  %v20571_v56 = vld [vmem:[#allocation2 + $0x184] ss:$56 sps:$4 sm:$0xff]  }
 0x254   : > { %v23070_v47 = vpack.c.bf16 %v4439_v31, %v4425_v28  ;;  %9586 = vmatprep.subr.bf16.mxu1 %v20562_v14  ;;  %v23072_v48 = vpack.c.bf16 %v4438_v36, %v4424_v29  ;;  %v2908_v52 = vpop.f32.mrb[24].mxu0  ;;  %3760 = vmatprep.mubr.bf16.mxu0 %v24885_v50  ;;  %v20574_v17 = vld [vmem:[#allocation6 + $0xac] ss:$28 sps:$4 sm:$0xff]  }
 0x255   : > { %25161 = vst [vmem:[#allocation45_spill] sm:$0xff] %v23068_v38  ;;  %v23074_v51 = vpack.c.bf16 %v4440_v37, %v4426_v35  ;;  %v3134_v53 = vpop.f32.mrb[24].mxu1  ;;  %3986 = vmatprep.mubr.bf16.mxu1 %v24885_v50  ;;  %v18571_v49 = vadd.f32 %v2908_v52, %v22956_v13  ;;  %v2910_v61 = vpop.f32.mrb[25].mxu0  ;;  %v20569_v31 = vld [vmem:[#allocation2 + $0x180] ss:$56 sps:$4 sm:$0xff]  }
 0x256   : > { %25162 = vst [vmem:[#allocation46_spill] sm:$0xff] %v23070_v47  ;;  %25163 = vst [vmem:[#allocation47_spill] sm:$0xff] %v23072_v48  ;;  %v18603_v55 = vadd.f32 %v3134_v53, %v22959_v23  ;;  %v3136_v62 = vpop.f32.mrb[25].mxu1  ;;  %v18572_v6 = vadd.f32 %v2910_v61, %v22962_v26  ;;  %v2912_v9 = vpop.f32.mrb[26].mxu0  ;;  %4060 = vmatpush1.bf16.msra.mxu0 %v20557_v24  ;;  %v22244_v37 = vld [vmem:[%s22833_s27 + $0x20] ss:$12 sps:$4 sm:$0xff]  }
 0x257   : > { %25164 = vst [vmem:[#allocation48_spill] sm:$0xff] %v23074_v51  ;;  %v18604_v7 = vadd.f32 %v3136_v62, %v22965_v27  ;;  %v3138_v10 = vpop.f32.mrb[26].mxu1  ;;  %9587 = vmatpush1.bf16.msra.mxu1 %v20560_v25  ;;  %v18573_v11 = vadd.f32 %v2912_v9, %v22956_v13  ;;  %v2914_v15 = vpop.f32.mrb[27].mxu0  ;;  %4061 = vmatprep.subr.bf16.mxu0 %v20565_v33  ;;  %v4451_v28 = vmax.f32 %v18571_v49, 0.0  ;;  %v20577_v52 = vld [vmem:[#allocation2 + $0x1f4] ss:$56 sps:$4 sm:$0xff]  }
 0x258   : > { %v18605_v14 = vadd.f32 %v3138_v10, %v22959_v23  ;;  %v3140_v3 = vpop.f32.mrb[27].mxu1  ;;  %9588 = vmatprep.subr.bf16.mxu1 %v20568_v34  ;;  %v18574_v29 = vadd.f32 %v2914_v15, %v22962_v26  ;;  %v4453_v35 = vmax.f32 %v18603_v55, 0.0  ;;  %v4452_v24 = vmax.f32 %v18572_v6, 0.0  ;;  %v20580_v53 = vld [vmem:[#allocation6 + $0xe4] ss:$28 sps:$4 sm:$0xff]  }
 0x259   : > { %v18606_v30 = vadd.f32 %v3140_v3, %v22965_v27  ;;  %v4465_v25 = vmax.f32 %v18573_v11, 0.0  ;;  %3761 = vmatmul.mubr.bf16.gmra.mrb[68].mxu0 %v22244_v37  ;;  %v4454_v61 = vmax.f32 %v18604_v7, 0.0  ;;  %v20575_v7 = vld [vmem:[#allocation2 + $0x1f0] ss:$56 sps:$4 sm:$0xff]  }
 0x25a   : > { %v4467_v36 = vmax.f32 %v18605_v14, 0.0  ;;  %3987 = vmatmul.mubr.bf16.gmra.mrb[68].mxu1 %v22244_v37  ;;  %v4466_v33 = vmax.f32 %v18574_v29, 0.0  ;;  %4062 = vmatpush1.bf16.msra.mxu0 %v20563_v54  ;;  %v20578_v15 = vld [vmem:[#allocation6 + $0xe0] ss:$28 sps:$4 sm:$0xff]  }
 0x25b   : > { %v4468_v34 = vmax.f32 %v18606_v30, 0.0  ;;  %9589 = vmatpush1.bf16.msra.mxu1 %v20566_v63  ;;  %v23087_v49 = vpack.c.bf16 %v4465_v25, %v4451_v28  ;;  %4063 = vmatprep.subr.bf16.mxu0 %v20571_v56  ;;  %v20583_v56 = vld [vmem:[#allocation2 + $0x264] ss:$56 sps:$4 sm:$0xff]  }
 0x25c   : > { %v23089_v62 = vpack.c.bf16 %v4467_v36, %v4453_v35  ;;  %9590 = vmatprep.subr.bf16.mxu1 %v20574_v17  ;;  %v23091_v55 = vpack.c.bf16 %v4466_v33, %v4452_v24  ;;  %v2918_v9 = vpop.f32.mrb[28].mxu0  ;;  %3770 = vmatprep.mubr.bf16.mxu0 %v24885_v50  ;;  %v20586_v36 = vld [vmem:[#allocation6 + $0x11c] ss:$28 sps:$4 sm:$0xff]  }
 0x25d   : > { %25165 = vst [vmem:[#allocation49_spill] sm:$0xff] %v23087_v49  ;;  %v23093_v6 = vpack.c.bf16 %v4468_v34, %v4454_v61  ;;  %v3144_v10 = vpop.f32.mrb[28].mxu1  ;;  %3996 = vmatprep.mubr.bf16.mxu1 %v24885_v50  ;;  %v18575_v54 = vadd.f32 %v2918_v9, %v22956_v13  ;;  %v2920_v11 = vpop.f32.mrb[29].mxu0  ;;  %v20581_v34 = vld [vmem:[#allocation2 + $0x260] ss:$56 sps:$4 sm:$0xff]  }
 0x25e   : > { %25166 = vst [vmem:[#allocation50_spill] sm:$0xff] %v23089_v62  ;;  %25167 = vst [vmem:[#allocation51_spill] sm:$0xff] %v23091_v55  ;;  %v18607_v63 = vadd.f32 %v3144_v10, %v22959_v23  ;;  %v3146_v14 = vpop.f32.mrb[29].mxu1  ;;  %v18576_v3 = vadd.f32 %v2920_v11, %v22962_v26  ;;  %v2922_v28 = vpop.f32.mrb[30].mxu0  ;;  %4064 = vmatpush1.bf16.msra.mxu0 %v20569_v31  ;;  %v20584_v9 = vld [vmem:[#allocation6 + $0x118] ss:$28 sps:$4 sm:$0xff]  }
 0x25f   : > { %25168 = vst [vmem:[#allocation52_spill] sm:$0xff] %v23093_v6  ;;  %v18608_v17 = vadd.f32 %v3146_v14, %v22965_v27  ;;  %v3148_v29 = vpop.f32.mrb[30].mxu1  ;;  %9591 = vmatpush1.bf16.msra.mxu1 %v20572_v32  ;;  %v18577_v30 = vadd.f32 %v2922_v28, %v22956_v13  ;;  %v2924_v24 = vpop.f32.mrb[31].mxu0  ;;  %4065 = vmatprep.subr.bf16.mxu0 %v20577_v52  ;;  %v4479_v37 = vmax.f32 %v18575_v54, 0.0  ;;  %v22245_v13 = vld [vmem:[%s22833_s27 + $0x38] ss:$12 sps:$4 sm:$0xff]  }
 0x260   : > { %v18609_v35 = vadd.f32 %v3148_v29, %v22959_v23  ;;  %v3150_v25 = vpop.f32.mrb[31].mxu1  ;;  %9592 = vmatprep.subr.bf16.mxu1 %v20580_v53  ;;  %v18578_v61 = vadd.f32 %v2924_v24, %v22962_v26  ;;  %v4481_v10 = vmax.f32 %v18607_v63, 0.0  ;;  %v4480_v31 = vmax.f32 %v18576_v3, 0.0  ;;  %v20589_v23 = vld [vmem:[#allocation2 + $0x2d4] ss:$56 sps:$4 sm:$0xff]  }
 0x261   : > { %v18610_v33 = vadd.f32 %v3150_v25, %v22965_v27  ;;  %v4493_v32 = vmax.f32 %v18577_v30, 0.0  ;;  %3771 = vmatmul.mubr.bf16.gmra.mrb[72].mxu0 %v22245_v13  ;;  %v20592_v14 = vld [vmem:[#allocation6 + $0x154] ss:$28 sps:$4 sm:$0xff]   ;;  %v4482_v28 = vmax.f32 %v18608_v17, 0.0  ;;  %v20587_v3 = vld [vmem:[#allocation2 + $0x2d0] ss:$56 sps:$4 sm:$0xff]  }
 0x262   : > { %v4495_v11 = vmax.f32 %v18609_v35, 0.0  ;;  %3997 = vmatmul.mubr.bf16.gmra.mrb[72].mxu1 %v22245_v13  ;;  %v4494_v52 = vmax.f32 %v18578_v61, 0.0  ;;  %4066 = vmatpush1.bf16.msra.mxu0 %v20575_v7  ;;  %v20590_v17 = vld [vmem:[#allocation6 + $0x150] ss:$28 sps:$4 sm:$0xff]   ;;  %v20596_v30 = vld [vmem:[#allocation6 + $0x188] ss:$28 sps:$4 sm:$0xff]  }
 0x263   : > { %v4496_v53 = vmax.f32 %v18610_v33, 0.0  ;;  %9593 = vmatpush1.bf16.msra.mxu1 %v20578_v15  ;;  %v23106_v54 = vpack.c.bf16 %v4493_v32, %v4479_v37  ;;  %4067 = vmatprep.subr.bf16.mxu0 %v20583_v56  ;;  %v20595_v29 = vld [vmem:[#allocation2 + $0x344] ss:$56 sps:$4 sm:$0xff]   ;;  %v20593_v56 = vld [vmem:[#allocation2 + $0x340] ss:$56 sps:$4 sm:$0xff]  }
 0x264   : > { %v23108_v26 = vpack.c.bf16 %v4495_v11, %v4481_v10  ;;  %9594 = vmatprep.subr.bf16.mxu1 %v20586_v36  ;;  %v23110_v27 = vpack.c.bf16 %v4494_v52, %v4480_v31  ;;  %3780 = vmatprep.mubr.bf16.mxu0 %v24885_v50  ;;  %v20598_v7 = vld [vmem:[#allocation6 + $0x18c] ss:$28 sps:$4 sm:$0xff]   ;;  %v20604_v24 = vld [vmem:[#allocation6 + $0x1c4] ss:$28 sps:$4 sm:$0xff]   ;;  %v20610_v61 = vld [vmem:[#allocation6 + $0x1fc] ss:$28 sps:$4 sm:$0xff]  }
 0x265   : > { %25169 = vst [vmem:[#allocation53_spill] sm:$0xff] %v23106_v54  ;;  %v23112_v63 = vpack.c.bf16 %v4496_v53, %v4482_v28  ;;  %4006 = vmatprep.mubr.bf16.mxu1 %v24885_v50  ;;  %v22246_v15 = vld [vmem:[%s22833_s27 + $0x50] ss:$12 sps:$4 sm:$0xff]   ;;  %v20601_v35 = vld [vmem:[#allocation2 + $0x3b4] ss:$56 sps:$4 sm:$0xff]  }
 0x266   : > { %25170 = vst [vmem:[#allocation54_spill] sm:$0xff] %v23108_v26  ;;  %25171 = vst [vmem:[#allocation55_spill] sm:$0xff] %v23110_v27  ;;  %4068 = vmatpush1.bf16.msra.mxu0 %v20581_v34  ;;  %v20599_v25 = vld [vmem:[#allocation2 + $0x3b0] ss:$56 sps:$4 sm:$0xff]   ;;  %v20607_v37 = vld [vmem:[#allocation2 + $0x424] ss:$56 sps:$4 sm:$0xff]  }
 0x267   : > { %25172 = vst [vmem:[#allocation56_spill] sm:$0xff] %v23112_v63  ;;  %9595 = vmatpush1.bf16.msra.mxu1 %v20584_v9  ;;  %4069 = vmatprep.subr.bf16.mxu0 %v20589_v23  ;;  %v20602_v36 = vld [vmem:[#allocation6 + $0x1c0] ss:$28 sps:$4 sm:$0xff]   ;;  %v20605_v34 = vld [vmem:[#allocation2 + $0x420] ss:$56 sps:$4 sm:$0xff]  }
 0x268   : > { %9596 = vmatprep.subr.bf16.mxu1 %v20592_v14  ;;  %v22247_v33 = vld [vmem:[%s22833_s27 + $0x68] ss:$12 sps:$4 sm:$0xff]   ;;  %v20616_v31 = vld [vmem:[#allocation6 + $0x234] ss:$28 sps:$4 sm:$0xff]  }
 0x269   : > { %3781 = vmatmul.mubr.bf16.gmra.mrb[76].mxu0 %v22246_v15  ;;  %v20608_v9 = vld [vmem:[#allocation6 + $0x1f8] ss:$28 sps:$4 sm:$0xff]   ;;  %v20613_v10 = vld [vmem:[#allocation2 + $0x494] ss:$56 sps:$4 sm:$0xff]   ;;  %v20614_v11 = vld [vmem:[#allocation6 + $0x230] ss:$28 sps:$4 sm:$0xff]  }
 0x26a   : > { %4007 = vmatmul.mubr.bf16.gmra.mrb[76].mxu1 %v22246_v15  ;;  %4070 = vmatpush1.bf16.msra.mxu0 %v20587_v3  ;;  %v20611_v32 = vld [vmem:[#allocation2 + $0x490] ss:$56 sps:$4 sm:$0xff]   ;;  %v20619_v13 = vld [vmem:[#allocation2 + $0x504] ss:$56 sps:$4 sm:$0xff]   ;;  %v22248_v14 = vld [vmem:[%s22833_s27 + $0x80] ss:$12 sps:$4 sm:$0xff]  }
 0x26b   : > { %9597 = vmatpush1.bf16.msra.mxu1 %v20590_v17  ;;  %4071 = vmatprep.subr.bf16.mxu0 %v20595_v29  ;;  %v20622_v23 = vld [vmem:[#allocation6 + $0x26c] ss:$28 sps:$4 sm:$0xff]   ;;  %v20628_v3 = vld [vmem:[#allocation6 + $0x2a4] ss:$28 sps:$4 sm:$0xff]   ;;  %v20634_v15 = vld [vmem:[#allocation6 + $0x2dc] ss:$28 sps:$4 sm:$0xff]  }
 0x26c   : > { %9598 = vmatprep.subr.bf16.mxu1 %v20598_v7  ;;  %3790 = vmatprep.mubr.bf16.mxu0 %v24885_v50  ;;  %v20617_v28 = vld [vmem:[#allocation2 + $0x500] ss:$56 sps:$4 sm:$0xff]   ;;  %v20625_v53 = vld [vmem:[#allocation2 + $0x574] ss:$56 sps:$4 sm:$0xff]   ;;  %v20623_v17 = vld [vmem:[#allocation2 + $0x570] ss:$56 sps:$4 sm:$0xff]  }
 0x26d   : > { %4016 = vmatprep.mubr.bf16.mxu1 %v24885_v50  ;;  %v20620_v52 = vld [vmem:[#allocation6 + $0x268] ss:$28 sps:$4 sm:$0xff]   ;;  %v20626_v29 = vld [vmem:[#allocation6 + $0x2a0] ss:$28 sps:$4 sm:$0xff]   ;;  %v20631_v7 = vld [vmem:[#allocation2 + $0x5e4] ss:$56 sps:$4 sm:$0xff]  }
 0x26e   : > { %4072 = vmatpush1.bf16.msra.mxu0 %v20593_v56  ;;  %v22249_v56 = vld [vmem:[%s22833_s27 + $0x98] ss:$12 sps:$4 sm:$0xff]  }
 0x26f   : > { %9599 = vmatpush1.bf16.msra.mxu1 %v20596_v30  ;;  %4073 = vmatprep.subr.bf16.mxu0 %v20601_v35  ;;  %v20629_v30 = vld [vmem:[#allocation2 + $0x5e0] ss:$56 sps:$4 sm:$0xff]  }
 0x270   : > { %9600 = vmatprep.subr.bf16.mxu1 %v20604_v24  ;;  %v20632_v35 = vld [vmem:[#allocation6 + $0x2d8] ss:$28 sps:$4 sm:$0xff]   ;;  %v20637_v24 = vld [vmem:[#allocation2 + $0x654] ss:$56 sps:$4 sm:$0xff]  }
 0x271   : > { %3791 = vmatmul.mubr.bf16.gmra.mrb[80].mxu0 %v22247_v33 }
 0x272   : > { %4017 = vmatmul.mubr.bf16.gmra.mrb[80].mxu1 %v22247_v33  ;;  %4074 = vmatpush1.bf16.msra.mxu0 %v20599_v25  ;;  %v20640_v25 = vld [vmem:[#allocation6 + $0x314] ss:$28 sps:$4 sm:$0xff]  }
 0x273   : > { %9601 = vmatpush1.bf16.msra.mxu1 %v20602_v36  ;;  %4075 = vmatprep.subr.bf16.mxu0 %v20607_v37  ;;  %v20635_v36 = vld [vmem:[#allocation2 + $0x650] ss:$56 sps:$4 sm:$0xff]   ;;  %v20638_v37 = vld [vmem:[#allocation6 + $0x310] ss:$28 sps:$4 sm:$0xff]  }
 0x274   : > { %9602 = vmatprep.subr.bf16.mxu1 %v20610_v61  ;;  %3800 = vmatprep.mubr.bf16.mxu0 %v24885_v50  ;;  %v20643_v61 = vld [vmem:[#allocation2 + $0x6c4] ss:$56 sps:$4 sm:$0xff]   ;;  %v20641_v33 = vld [vmem:[#allocation2 + $0x6c0] ss:$56 sps:$4 sm:$0xff]  }
 0x275   : > { %4026 = vmatprep.mubr.bf16.mxu1 %v24885_v50 }
 0x276   : > { %4076 = vmatpush1.bf16.msra.mxu0 %v20605_v34  ;;  %v20644_v34 = vld [vmem:[#allocation6 + $0x348] ss:$28 sps:$4 sm:$0xff]  }
 0x277   : > { %9603 = vmatpush1.bf16.msra.mxu1 %v20608_v9  ;;  %4077 = vmatprep.subr.bf16.mxu0 %v20613_v10  ;;  %v20646_v9 = vld [vmem:[#allocation6 + $0x34c] ss:$28 sps:$4 sm:$0xff]  }
 0x278   : > { %9604 = vmatprep.subr.bf16.mxu1 %v20616_v31  ;;  %v22250_v10 = vld [vmem:[%s22833_s27 + $0xb0] ss:$12 sps:$4 sm:$0xff]   ;;  %v20649_v31 = vld [vmem:[#allocation2 + $0x734] ss:$56 sps:$4 sm:$0xff]  }
 0x279   : > { %3801 = vmatmul.mubr.bf16.gmra.mrb[84].mxu0 %v22248_v14 }
 0x27a   : > { %4027 = vmatmul.mubr.bf16.gmra.mrb[84].mxu1 %v22248_v14  ;;  %4078 = vmatpush1.bf16.msra.mxu0 %v20611_v32  ;;  %v20652_v32 = vld [vmem:[#allocation6 + $0x384] ss:$28 sps:$4 sm:$0xff]   ;;  %v20655_v14 = vld [vmem:[#allocation6 + $0x3bc] ss:$28 sps:$4 sm:$0xff]  }
 0x27b   : > { %9605 = vmatpush1.bf16.msra.mxu1 %v20614_v11  ;;  %4079 = vmatprep.subr.bf16.mxu0 %v20619_v13  ;;  %v22251_v11 = vld [vmem:[%s22833_s27 + $0x4] ss:$12 sps:$4 sm:$0xff]  }
 0x27c   : > { %9606 = vmatprep.subr.bf16.mxu1 %v20622_v23  ;;  %3810 = vmatprep.mubr.bf16.mxu0 %v24885_v50  ;;  %v20647_v13 = vld [vmem:[#allocation2 + $0x730] ss:$56 sps:$4 sm:$0xff]  }
 0x27d   : > { %4036 = vmatprep.mubr.bf16.mxu1 %v24885_v50  ;;  %v20650_v23 = vld [vmem:[#allocation6 + $0x380] ss:$28 sps:$4 sm:$0xff]  }
 0x27e   : > { %4080 = vmatpush1.bf16.msra.mxu0 %v20617_v28  ;;  %v20658_v28 = vld [vmem:[#allocation2 + $0x7a4] ss:$56 sps:$4 sm:$0xff]  }
 0x27f   : > { %9607 = vmatpush1.bf16.msra.mxu1 %v20620_v52  ;;  %4081 = vmatprep.subr.bf16.mxu0 %v20625_v53  ;;  %v22252_v52 = vld [vmem:[%s22833_s27] ss:$12 sps:$4 sm:$0xff]  }
 0x280   : > { %9608 = vmatprep.subr.bf16.mxu1 %v20628_v3  ;;  %v20653_v53 = vld [vmem:[#allocation6 + $0x3b8] ss:$28 sps:$4 sm:$0xff]  }
 0x281   : > { %3811 = vmatmul.mubr.bf16.gmra.mrb[88].mxu0 %v22249_v56  ;;  %v20656_v3 = vld [vmem:[#allocation2 + $0x7a0] ss:$56 sps:$4 sm:$0xff]  }
 0x282   : > { %4037 = vmatmul.mubr.bf16.gmra.mrb[88].mxu1 %v22249_v56  ;;  %4082 = vmatpush1.bf16.msra.mxu0 %v20623_v17  ;;  %v20667_v17 = vld [vmem:[#allocation2 + $0x814] ss:$56 sps:$4 sm:$0xff]   ;;  %v20665_v56 = vld [vmem:[#allocation2 + $0x810] ss:$56 sps:$4 sm:$0xff]  }
 0x283   : > { %9609 = vmatpush1.bf16.msra.mxu1 %v20626_v29  ;;  %4083 = vmatprep.subr.bf16.mxu0 %v20631_v7  ;;  %v22253_v29 = vld [vmem:[%s22833_s27 + $0x1c] ss:$12 sps:$4 sm:$0xff]  }
 0x284   : > { %9610 = vmatprep.subr.bf16.mxu1 %v20634_v15  ;;  %3820 = vmatprep.mubr.bf16.mxu0 %v24885_v50  ;;  %v20661_v7 = vld [vmem:[#allocation6 + $0x3f4] ss:$28 sps:$4 sm:$0xff]  }
 0x285   : > { %4046 = vmatprep.mubr.bf16.mxu1 %v24885_v50  ;;  %v20659_v15 = vld [vmem:[#allocation6 + $0x3f0] ss:$28 sps:$4 sm:$0xff]  }
 0x286   : > { %4084 = vmatpush1.bf16.msra.mxu0 %v20629_v30  ;;  %v20664_v30 = vld [vmem:[#allocation6 + $0x42c] ss:$28 sps:$4 sm:$0xff]  }
 0x287   : > { %9611 = vmatpush1.bf16.msra.mxu1 %v20632_v35  ;;  %4085 = vmatprep.subr.bf16.mxu0 %v20637_v24  ;;  %v20676_v35 = vld [vmem:[#allocation2 + $0x884] ss:$56 sps:$4 sm:$0xff]  }
 0x288   : > { %9612 = vmatprep.subr.bf16.mxu1 %v20640_v25  ;;  %v22254_v24 = vld [vmem:[%s22833_s27 + $0x18] ss:$12 sps:$4 sm:$0xff]  }
 0x289   : > { %3821 = vmatmul.mubr.bf16.gmra.mrb[92].mxu0 %v22250_v10  ;;  %v20662_v25 = vld [vmem:[#allocation6 + $0x428] ss:$28 sps:$4 sm:$0xff]  }
 0x28a   : > { %4047 = vmatmul.mubr.bf16.gmra.mrb[92].mxu1 %v22250_v10  ;;  %4086 = vmatpush1.bf16.msra.mxu0 %v20635_v36  ;;  %v22255_v36 = vld [vmem:[%s22833_s27 + $0x34] ss:$12 sps:$4 sm:$0xff]   ;;  %v24884_v10 = vsub.s32 6, %v22939_v8 }
 0x28b   : > { %9613 = vmatpush1.bf16.msra.mxu1 %v20638_v37  ;;  %9616 = vmatprep.mubr.bf16.mxu1 %v22982_v2  ;;  %v20674_v37 = vld [vmem:[#allocation2 + $0x880] ss:$56 sps:$4 sm:$0xff]  }
 0x28c   : > { %4087 = vmatprep.subr.bf16.mxu0 %v20643_v61  ;;  %9614 = vmatprep.subr.bf16.mxu1 %v20646_v9  ;;  %v20670_v61 = vld [vmem:[#allocation6 + $0x464] ss:$28 sps:$4 sm:$0xff]   ;;  %v23140_v9 = vsub.s32 4, %v22939_v8 }
 0x28d   : > { %4089 = vmatprep.mubr.bf16.mxu0 %v22251_v11  ;;  %v853_v11 = vsub.s32 7, %v22939_v8 }
 0x28e   : > { %4088 = vmatpush1.bf16.msra.mxu0 %v20641_v33  ;;  %v20685_v33 = vld [vmem:[#allocation2 + $0x8f4] ss:$56 sps:$4 sm:$0xff]   ;;  %25173 = vst [vmem:[#allocation57_spill] sm:$0xff] %v23140_v9 }
 0x28f   : > { %9615 = vmatpush1.bf16.msra.mxu1 %v20644_v34  ;;  %4170 = vmatprep.subr.bf16.mxu0 %v20649_v31  ;;  %v20668_v34 = vld [vmem:[#allocation6 + $0x460] ss:$28 sps:$4 sm:$0xff]  }
 0x290   : > { %9697 = vmatprep.subr.bf16.mxu1 %v20652_v32  ;;  %v20683_v31 = vld [vmem:[#allocation2 + $0x8f0] ss:$56 sps:$4 sm:$0xff]   ;;  %v23144_v32 = vsub.s32 5, %v22939_v8 }
 0x291   : > { %4090 = vmatmul.mubr.bf16.vlgmr.msra.gmra.mrb[96].mxu0 %v22252_v52 }
 0x292   : > { %9617 = vmatmul.mubr.bf16.vlgmr.msra.gmra.mrb[96].mxu1 %v22978_v0  ;;  %4171 = vmatpush1.bf16.msra.mxu0 %v20647_v13  ;;  %25174 = vst [vmem:[#allocation58_spill] sm:$0xff] %v23144_v32  ;;  %v20673_v13 = vld [vmem:[#allocation6 + $0x49c] ss:$28 sps:$4 sm:$0xff]  }
 0x293   : > { %9626 = vmatprep.mubr.bf16.mxu1 %v23000_v44  ;;  %9698 = vmatpush1.bf16.msra.mxu1 %v20650_v23  ;;  %v20694_v23 = vld [vmem:[#allocation2 + $0x964] ss:$56 sps:$4 sm:$0xff]  }
 0x294   : > { %4099 = vmatprep.mubr.bf16.mxu0 %v22253_v29  ;;  %9699 = vmatprep.subr.bf16.mxu1 %v20655_v14  ;;  %v22256_v14 = vld [vmem:[%s22833_s27 + $0x30] ss:$12 sps:$4 sm:$0xff]  }
 0x295   : > { %4172 = vmatprep.subr.bf16.mxu0 %v20658_v28  ;;  %v22257_v28 = vld [vmem:[#allocation4] sm:$0xff] }
 0x296   : > { %4173 = vmatpush1.bf16.msra.mxu0 %v20656_v3  ;;  %v23150_v52 = vrot.slane %v22257_v28, %v23140_v9  ;;  %v20671_v3 = vld [vmem:[#allocation6 + $0x498] ss:$28 sps:$4 sm:$0xff]   ;;  %v23160_v29 = vrot.slane %v22257_v28, %v853_v11 }
 0x297   : > { %9700 = vmatpush1.bf16.msra.mxu1 %v20653_v53  ;;  %4174 = vmatprep.subr.bf16.mxu0 %v20667_v17  ;;  %v23154_v53 = vrot.slane %v22257_v28, %v24884_v10  ;;  %v23158_v17 = vrot.slane %v22257_v28, %v23144_v32 }
 0x298   : > { %9701 = vmatprep.subr.bf16.mxu1 %v20661_v7  ;;  %v22258_v7 = vld [vmem:[%s22833_s27 + $0x4c] ss:$12 sps:$4 sm:$0xff]  }
 0x299   : > { %4100 = vmatmul.mubr.bf16.gmra.mrb[100].mxu0 %v22254_v24  ;;  %v20703_v24 = vld [vmem:[#allocation2 + $0x9d4] ss:$56 sps:$4 sm:$0xff]  }
 0x29a   : > { %9627 = vmatmul.mubr.bf16.gmra.mrb[100].mxu1 %v22996_v42  ;;  %4109 = vmatprep.mubr.bf16.mxu0 %v22255_v36 }
 0x29b   : > { %9636 = vmatprep.mubr.bf16.mxu1 %v23018_v12  ;;  %9702 = vmatpush1.bf16.msra.mxu1 %v20659_v15  ;;  %v20679_v15 = vld [vmem:[#allocation6 + $0x4d4] ss:$28 sps:$4 sm:$0xff]  }
 0x29c   : > { %4175 = vmatpush1.bf16.msra.mxu0 %v20665_v56  ;;  %9703 = vmatprep.subr.bf16.mxu1 %v20664_v30  ;;  %v20692_v56 = vld [vmem:[#allocation2 + $0x960] ss:$56 sps:$4 sm:$0xff]  }
 0x29d   : > { %4176 = vmatprep.subr.bf16.mxu0 %v20676_v35 }
 0x29f   : > { %9704 = vmatpush1.bf16.msra.mxu1 %v20662_v25 }
 0x2a0   : > { %4177 = vmatpush1.bf16.msra.mxu0 %v20674_v37  ;;  %9705 = vmatprep.subr.bf16.mxu1 %v20670_v61 }
 0x2a1   : > { %4178 = vmatprep.subr.bf16.mxu0 %v20685_v33  ;;  %4110 = vmatmul.mubr.bf16.gmra.mrb[104].mxu0 %v22256_v14  ;;  %v20677_v33 = vld [vmem:[#allocation6 + $0x4d0] ss:$28 sps:$4 sm:$0xff]  }
 0x2a2   : > { %9637 = vmatmul.mubr.bf16.gmra.mrb[104].mxu1 %v23014_v18  ;;  %4119 = vmatprep.mubr.bf16.mxu0 %v22258_v7 }
 0x2a3   : > { %9646 = vmatprep.mubr.bf16.mxu1 %v23036_v59  ;;  %9706 = vmatpush1.bf16.msra.mxu1 %v20668_v34  ;;  %v20682_v34 = vld [vmem:[#allocation6 + $0x50c] ss:$28 sps:$4 sm:$0xff]  }
 0x2a4   : > { %4179 = vmatpush1.bf16.msra.mxu0 %v20683_v31  ;;  %v3300_v30 = vpop.f32.mrb[32].mxu0  ;;  %9707 = vmatprep.subr.bf16.mxu1 %v20673_v13  ;;  %v20701_v31 = vld [vmem:[#allocation2 + $0x9d0] ss:$56 sps:$4 sm:$0xff]  }
 0x2a5   : > { %v3526_v35 = vpop.f32.mrb[32].mxu1  ;;  %4180 = vmatprep.subr.bf16.mxu0 %v20694_v23  ;;  %v18611_v25 = vadd.f32 %v3300_v30, %v23150_v52  ;;  %v3302_v37 = vpop.f32.mrb[33].mxu0 }
 0x2a6   : > { %v18643_v36 = vadd.f32 %v3526_v35, %v23154_v53  ;;  %v3528_v61 = vpop.f32.mrb[33].mxu1  ;;  %v18612_v11 = vadd.f32 %v3302_v37, %v23158_v17  ;;  %v3304_v28 = vpop.f32.mrb[34].mxu0  ;;  %v20712_v35 = vld [vmem:[#allocation2 + $0xa44] ss:$56 sps:$4 sm:$0xff]  }
 0x2a7   : > { %v18644_v14 = vadd.f32 %v3528_v61, %v23160_v29  ;;  %v3530_v7 = vpop.f32.mrb[34].mxu1  ;;  %v18613_v13 = vadd.f32 %v3304_v28, %v23150_v52  ;;  %9708 = vmatpush1.bf16.msra.mxu1 %v20671_v3  ;;  %v3306_v30 = vpop.f32.mrb[35].mxu0  ;;  %v4287_v61 = vmax.f32 %v18611_v25, 0.0  ;;  %v20680_v3 = vld [vmem:[#allocation6 + $0x508] ss:$28 sps:$4 sm:$0xff]  }
 0x2a8   : > { %v18645_v23 = vadd.f32 %v3530_v7, %v23154_v53  ;;  %v3532_v10 = vpop.f32.mrb[35].mxu1  ;;  %4181 = vmatpush1.bf16.msra.mxu0 %v20692_v56  ;;  %v18614_v50 = vadd.f32 %v3306_v30, %v23158_v17  ;;  %9709 = vmatprep.subr.bf16.mxu1 %v20679_v15  ;;  %v4289_v8 = vmax.f32 %v18643_v36, 0.0  ;;  %v20710_v28 = vld [vmem:[#allocation2 + $0xa40] ss:$56 sps:$4 sm:$0xff]   ;;  %v4288_v7 = vmax.f32 %v18612_v11, 0.0 }
 0x2a9   : > { %v18646_v37 = vadd.f32 %v3532_v10, %v23160_v29  ;;  %4182 = vmatprep.subr.bf16.mxu0 %v20703_v24  ;;  %v4301_v32 = vmax.f32 %v18613_v13, 0.0  ;;  %4120 = vmatmul.mubr.bf16.gmra.mrb[108].mxu0 %v22259_v20  ;;  %v4290_v56 = vmax.f32 %v18644_v14, 0.0  ;;  %v22260_v10 = vld [vmem:[%s22833_s27 + $0x64] ss:$12 sps:$4 sm:$0xff]   ;;  %v20724_v24 = vld [vmem:[#allocation6 + $0xc] ss:$28 sps:$4 sm:$0xff]  }
 0x2aa   : > { %v4303_v9 = vmax.f32 %v18645_v23, 0.0  ;;  %9647 = vmatmul.mubr.bf16.gmra.mrb[108].mxu1 %v23032_v57  ;;  %v4302_v19 = vmax.f32 %v18614_v50, 0.0  ;;  %4129 = vmatprep.mubr.bf16.mxu0 %v22260_v10  ;;  %v20688_v15 = vld [vmem:[#allocation6 + $0x544] ss:$28 sps:$4 sm:$0xff]  }
 0x2ab   : > { %v4304_v59 = vmax.f32 %v18646_v37, 0.0  ;;  %9656 = vmatprep.mubr.bf16.mxu1 %v23055_v41  ;;  %v23175_v25 = vpack.c.bf16 %v4301_v32, %v4287_v61  ;;  %9710 = vmatpush1.bf16.msra.mxu1 %v20677_v33  ;;  %v20691_v61 = vld [vmem:[#allocation6 + $0x57c] ss:$28 sps:$4 sm:$0xff]  }
 0x2ac   : > { %v23177_v36 = vpack.c.bf16 %v4303_v9, %v4289_v8  ;;  %4183 = vmatpush1.bf16.msra.mxu0 %v20701_v31  ;;  %v23179_v20 = vpack.c.bf16 %v4302_v19, %v4288_v7  ;;  %v3310_v11 = vpop.f32.mrb[36].mxu0  ;;  %9711 = vmatprep.subr.bf16.mxu1 %v20682_v34  ;;  %v20686_v19 = vld [vmem:[#allocation6 + $0x540] ss:$28 sps:$4 sm:$0xff]  }
 0x2ad   : > { %25175 = vst [vmem:[#allocation59_spill] sm:$0xff] %v23175_v25  ;;  %v23181_v13 = vpack.c.bf16 %v4304_v59, %v4290_v56  ;;  %v3536_v14 = vpop.f32.mrb[36].mxu1  ;;  %4184 = vmatprep.subr.bf16.mxu0 %v20712_v35  ;;  %v18615_v50 = vadd.f32 %v3310_v11, %v23150_v52  ;;  %v3312_v30 = vpop.f32.mrb[37].mxu0  ;;  %v20736_v41 = vld [vmem:[#allocation6 + $0x7c] ss:$28 sps:$4 sm:$0xff]  }
 0x2ae   : > { %25176 = vst [vmem:[#allocation60_spill] sm:$0xff] %v23177_v36  ;;  %25177 = vst [vmem:[#allocation61_spill] sm:$0xff] %v23179_v20  ;;  %v18647_v23 = vadd.f32 %v3536_v14, %v23154_v53  ;;  %v3538_v37 = vpop.f32.mrb[37].mxu1  ;;  %v18616_v32 = vadd.f32 %v3312_v30, %v23158_v17  ;;  %v3314_v9 = vpop.f32.mrb[38].mxu0 }
 0x2af   : > { %25178 = vst [vmem:[#allocation62_spill] sm:$0xff] %v23181_v13  ;;  %v18648_v8 = vadd.f32 %v3538_v37, %v23160_v29  ;;  %v3540_v33 = vpop.f32.mrb[38].mxu1  ;;  %v18617_v59 = vadd.f32 %v3314_v9, %v23150_v52  ;;  %9712 = vmatpush1.bf16.msra.mxu1 %v20680_v3  ;;  %v3316_v34 = vpop.f32.mrb[39].mxu0  ;;  %v4315_v10 = vmax.f32 %v18615_v50, 0.0  ;;  %v22261_v37 = vld [vmem:[%s22833_s27 + $0x60] ss:$12 sps:$4 sm:$0xff]  }
 0x2b0   : > { %v18649_v31 = vadd.f32 %v3540_v33, %v23154_v53  ;;  %v3542_v35 = vpop.f32.mrb[39].mxu1  ;;  %4185 = vmatpush1.bf16.msra.mxu0 %v20710_v28  ;;  %v18618_v7 = vadd.f32 %v3316_v34, %v23158_v17  ;;  %9713 = vmatprep.subr.bf16.mxu1 %v20688_v15  ;;  %v4317_v11 = vmax.f32 %v18647_v23, 0.0  ;;  %v20689_v3 = vld [vmem:[#allocation6 + $0x578] ss:$28 sps:$4 sm:$0xff]   ;;  %v4316_v9 = vmax.f32 %v18616_v32, 0.0 }
 0x2b1   : > { %v18650_v56 = vadd.f32 %v3542_v35, %v23160_v29  ;;  %10375 = vmatprep.subr.bf16.mxu0 %v20724_v24  ;;  %v4329_v14 = vmax.f32 %v18617_v59, 0.0  ;;  %4130 = vmatmul.mubr.bf16.gmra.mrb[112].mxu0 %v22261_v37  ;;  %v4318_v33 = vmax.f32 %v18648_v8, 0.0  ;;  %v22262_v34 = vld [vmem:[%s22833_s27 + $0x7c] ss:$12 sps:$4 sm:$0xff]  }
 0x2b2   : > { %v4331_v30 = vmax.f32 %v18649_v31, 0.0  ;;  %9657 = vmatmul.mubr.bf16.gmra.mrb[112].mxu1 %v23051_v39  ;;  %v4330_v36 = vmax.f32 %v18618_v7, 0.0  ;;  %4139 = vmatprep.mubr.bf16.mxu0 %v22262_v34  ;;  %v20697_v35 = vld [vmem:[#allocation6 + $0x5b4] ss:$28 sps:$4 sm:$0xff]  }
 0x2b3   : > { %v4332_v28 = vmax.f32 %v18650_v56, 0.0  ;;  %9666 = vmatprep.mubr.bf16.mxu1 %v23072_v48  ;;  %v23195_v15 = vpack.c.bf16 %v4329_v14, %v4315_v10  ;;  %9714 = vmatpush1.bf16.msra.mxu1 %v20686_v19  ;;  %v20706_v48 = vld [vmem:[#allocation6 + $0x624] ss:$28 sps:$4 sm:$0xff]  }
 0x2b4   : > { %v23197_v24 = vpack.c.bf16 %v4331_v30, %v4317_v11  ;;  %v23199_v50 = vpack.c.bf16 %v4330_v36, %v4316_v9  ;;  %v3320_v59 = vpop.f32.mrb[40].mxu0  ;;  %9715 = vmatprep.subr.bf16.mxu1 %v20691_v61  ;;  %v20695_v36 = vld [vmem:[#allocation6 + $0x5b0] ss:$28 sps:$4 sm:$0xff]  }
 0x2b5   : > { %25179 = vst [vmem:[#allocation63_spill] sm:$0xff] %v23195_v15  ;;  %v23201_v23 = vpack.c.bf16 %v4332_v28, %v4318_v33  ;;  %v3546_v31 = vpop.f32.mrb[40].mxu1  ;;  %v18619_v32 = vadd.f32 %v3320_v59, %v23150_v52  ;;  %v3322_v7 = vpop.f32.mrb[41].mxu0  ;;  %v20700_v33 = vld [vmem:[#allocation6 + $0x5ec] ss:$28 sps:$4 sm:$0xff]  }
 0x2b6   : > { %25180 = vst [vmem:[#allocation64_spill] sm:$0xff] %v23197_v24  ;;  %25181 = vst [vmem:[#allocation65_spill] sm:$0xff] %v23199_v50  ;;  %v18651_v8 = vadd.f32 %v3546_v31, %v23154_v53  ;;  %v3548_v56 = vpop.f32.mrb[41].mxu1  ;;  %v18620_v37 = vadd.f32 %v3322_v7, %v23158_v17  ;;  %v3324_v11 = vpop.f32.mrb[42].mxu0  ;;  %v22263_v24 = vld [vmem:[%s22833_s27 + $0x78] ss:$12 sps:$4 sm:$0xff]  }
 0x2b7   : > { %25182 = vst [vmem:[#allocation66_spill] sm:$0xff] %v23201_v23  ;;  %v18652_v10 = vadd.f32 %v3548_v56, %v23160_v29  ;;  %v3550_v19 = vpop.f32.mrb[42].mxu1  ;;  %v18621_v14 = vadd.f32 %v3324_v11, %v23150_v52  ;;  %9716 = vmatpush1.bf16.msra.mxu1 %v20689_v3  ;;  %v3326_v61 = vpop.f32.mrb[43].mxu0  ;;  %v4343_v59 = vmax.f32 %v18619_v32, 0.0  ;;  %v20698_v11 = vld [vmem:[#allocation6 + $0x5e8] ss:$28 sps:$4 sm:$0xff]  }
 0x2b8   : > { %v18653_v30 = vadd.f32 %v3550_v19, %v23154_v53  ;;  %v3552_v9 = vpop.f32.mrb[43].mxu1  ;;  %v18622_v28 = vadd.f32 %v3326_v61, %v23158_v17  ;;  %9717 = vmatprep.subr.bf16.mxu1 %v20697_v35  ;;  %v4345_v31 = vmax.f32 %v18651_v8, 0.0  ;;  %v4344_v19 = vmax.f32 %v18620_v37, 0.0  ;;  %v22264_v61 = vld [vmem:[%s22833_s27 + $0x94] ss:$12 sps:$4 sm:$0xff]  }
 0x2b9   : > { %v18654_v34 = vadd.f32 %v3552_v9, %v23160_v29  ;;  %v4357_v7 = vmax.f32 %v18621_v14, 0.0  ;;  %4140 = vmatmul.mubr.bf16.gmra.mrb[116].mxu0 %v22263_v24  ;;  %v4346_v3 = vmax.f32 %v18652_v10, 0.0 }
 0x2ba   : > { %v4359_v56 = vmax.f32 %v18653_v30, 0.0  ;;  %9667 = vmatmul.mubr.bf16.gmra.mrb[116].mxu1 %v23068_v38  ;;  %v4358_v23 = vmax.f32 %v18622_v28, 0.0  ;;  %4149 = vmatprep.mubr.bf16.mxu0 %v22264_v61  ;;  %v20709_v61 = vld [vmem:[#allocation6 + $0x65c] ss:$28 sps:$4 sm:$0xff]  }
 0x2bb   : > { %v4360_v13 = vmax.f32 %v18654_v34, 0.0  ;;  %9676 = vmatprep.mubr.bf16.mxu1 %v23091_v55  ;;  %v23215_v9 = vpack.c.bf16 %v4357_v7, %v4343_v59  ;;  %9718 = vmatpush1.bf16.msra.mxu1 %v20695_v36  ;;  %v22268_v38 = vld [vmem:[%s22833_s27 + $0x8] ss:$12 sps:$4 sm:$0xff]  }
 0x2bc   : > { %v23217_v35 = vpack.c.bf16 %v4359_v56, %v4345_v31  ;;  %v23219_v32 = vpack.c.bf16 %v4358_v23, %v4344_v19  ;;  %v3330_v8 = vpop.f32.mrb[44].mxu0  ;;  %9719 = vmatprep.subr.bf16.mxu1 %v20700_v33  ;;  %v20704_v56 = vld [vmem:[#allocation6 + $0x620] ss:$28 sps:$4 sm:$0xff]  }
 0x2bd   : > { %25183 = vst [vmem:[#allocation67_spill] sm:$0xff] %v23215_v9  ;;  %v23221_v24 = vpack.c.bf16 %v4360_v13, %v4346_v3  ;;  %v3556_v14 = vpop.f32.mrb[44].mxu1  ;;  %v18623_v37 = vadd.f32 %v3330_v8, %v23150_v52  ;;  %v3332_v30 = vpop.f32.mrb[45].mxu0 }
 0x2be   : > { %25184 = vst [vmem:[#allocation68_spill] sm:$0xff] %v23217_v35  ;;  %25185 = vst [vmem:[#allocation69_spill] sm:$0xff] %v23219_v32  ;;  %v18655_v10 = vadd.f32 %v3556_v14, %v23154_v53  ;;  %v3558_v28 = vpop.f32.mrb[45].mxu1  ;;  %v18624_v34 = vadd.f32 %v3332_v30, %v23158_v17  ;;  %v3334_v31 = vpop.f32.mrb[46].mxu0  ;;  %v22265_v35 = vld [vmem:[%s22833_s27 + $0x90] ss:$12 sps:$4 sm:$0xff]  }
 0x2bf   : > { %25186 = vst [vmem:[#allocation70_spill] sm:$0xff] %v23221_v24  ;;  %v18656_v59 = vadd.f32 %v3558_v28, %v23160_v29  ;;  %v3560_v36 = vpop.f32.mrb[46].mxu1  ;;  %v18625_v23 = vadd.f32 %v3334_v31, %v23150_v52  ;;  %9720 = vmatpush1.bf16.msra.mxu1 %v20698_v11  ;;  %v3336_v7 = vpop.f32.mrb[47].mxu0  ;;  %v4371_v8 = vmax.f32 %v18623_v37, 0.0  ;;  %v20707_v31 = vld [vmem:[#allocation6 + $0x658] ss:$28 sps:$4 sm:$0xff]  }
 0x2c0   : > { %v18657_v13 = vadd.f32 %v3560_v36, %v23154_v53  ;;  %v3562_v33 = vpop.f32.mrb[47].mxu1  ;;  %v18626_v19 = vadd.f32 %v3336_v7, %v23158_v17  ;;  %9721 = vmatprep.subr.bf16.mxu1 %v20706_v48  ;;  %v4373_v14 = vmax.f32 %v18655_v10, 0.0  ;;  %v4372_v11 = vmax.f32 %v18624_v34, 0.0  ;;  %v22266_v7 = vld [vmem:[%s22833_s27 + $0xac] ss:$12 sps:$4 sm:$0xff]  }
 0x2c1   : > { %v18658_v3 = vadd.f32 %v3562_v33, %v23160_v29  ;;  %v4385_v30 = vmax.f32 %v18625_v23, 0.0  ;;  %4150 = vmatmul.mubr.bf16.gmra.mrb[120].mxu0 %v22265_v35  ;;  %v4374_v36 = vmax.f32 %v18656_v59, 0.0  ;;  %v20715_v33 = vld [vmem:[#allocation6 + $0x694] ss:$28 sps:$4 sm:$0xff]  }
 0x2c2   : > { %v4387_v28 = vmax.f32 %v18657_v13, 0.0  ;;  %9677 = vmatmul.mubr.bf16.gmra.mrb[120].mxu1 %v23087_v49  ;;  %v4386_v24 = vmax.f32 %v18626_v19, 0.0  ;;  %4159 = vmatprep.mubr.bf16.mxu0 %v22266_v7 }
 0x2c3   : > { %v4388_v55 = vmax.f32 %v18658_v3, 0.0  ;;  %9686 = vmatprep.mubr.bf16.mxu1 %v23110_v27  ;;  %v23235_v48 = vpack.c.bf16 %v4385_v30, %v4371_v8  ;;  %9722 = vmatpush1.bf16.msra.mxu1 %v20704_v56 }
 0x2c4   : > { %v23237_v37 = vpack.c.bf16 %v4387_v28, %v4373_v14  ;;  %v23239_v10 = vpack.c.bf16 %v4386_v24, %v4372_v11  ;;  %v3340_v23 = vpop.f32.mrb[48].mxu0  ;;  %9723 = vmatprep.subr.bf16.mxu1 %v20709_v61  ;;  %v20713_v28 = vld [vmem:[#allocation6 + $0x690] ss:$28 sps:$4 sm:$0xff]  }
 0x2c5   : > { %25187 = vst [vmem:[#allocation71_spill] sm:$0xff] %v23235_v48  ;;  %v23241_v35 = vpack.c.bf16 %v4388_v55, %v4374_v36  ;;  %v3566_v13 = vpop.f32.mrb[48].mxu1  ;;  %v18627_v34 = vadd.f32 %v3340_v23, %v23150_v52  ;;  %v3342_v19 = vpop.f32.mrb[49].mxu0  ;;  %v20718_v23 = vld [vmem:[#allocation6 + $0x6cc] ss:$28 sps:$4 sm:$0xff]  }
 0x2c6   : > { %25188 = vst [vmem:[#allocation72_spill] sm:$0xff] %v23237_v37  ;;  %25189 = vst [vmem:[#allocation73_spill] sm:$0xff] %v23239_v10  ;;  %v18659_v59 = vadd.f32 %v3566_v13, %v23154_v53  ;;  %v3568_v3 = vpop.f32.mrb[49].mxu1  ;;  %v18628_v7 = vadd.f32 %v3342_v19, %v23158_v17  ;;  %v3344_v14 = vpop.f32.mrb[50].mxu0 }
 0x2c7   : > { %25190 = vst [vmem:[#allocation74_spill] sm:$0xff] %v23241_v35  ;;  %v18660_v8 = vadd.f32 %v3568_v3, %v23160_v29  ;;  %v3570_v56 = vpop.f32.mrb[50].mxu1  ;;  %v18629_v24 = vadd.f32 %v3344_v14, %v23150_v52  ;;  %9724 = vmatpush1.bf16.msra.mxu1 %v20707_v31  ;;  %v3346_v30 = vpop.f32.mrb[51].mxu0  ;;  %v4399_v13 = vmax.f32 %v18627_v34, 0.0  ;;  %v22267_v35 = vld [vmem:[%s22833_s27 + $0xa8] ss:$12 sps:$4 sm:$0xff]  }
 0x2c8   : > { %v18661_v55 = vadd.f32 %v3570_v56, %v23154_v53  ;;  %v3572_v61 = vpop.f32.mrb[51].mxu1  ;;  %v18630_v11 = vadd.f32 %v3346_v30, %v23158_v17  ;;  %9725 = vmatprep.subr.bf16.mxu1 %v20715_v33  ;;  %v4401_v19 = vmax.f32 %v18659_v59, 0.0  ;;  %v20716_v14 = vld [vmem:[#allocation6 + $0x6c8] ss:$28 sps:$4 sm:$0xff]   ;;  %v4400_v56 = vmax.f32 %v18628_v7, 0.0 }
 0x2c9   : > { %v18662_v36 = vadd.f32 %v3572_v61, %v23160_v29  ;;  %v4413_v3 = vmax.f32 %v18629_v24, 0.0  ;;  %4160 = vmatmul.mubr.bf16.gmra.mrb[124].mxu0 %v22267_v35  ;;  %v4402_v31 = vmax.f32 %v18660_v8, 0.0  ;;  %v25191_v30 = vmov 0   ;;  %v20721_v61 = vld [vmem:[#allocation6 + $0x704] ss:$28 sps:$4 sm:$0xff]  }
 0x2ca   : > { %v4415_v37 = vmax.f32 %v18661_v55, 0.0  ;;  %9687 = vmatmul.mubr.bf16.gmra.mrb[124].mxu1 %v23106_v54  ;;  %v4414_v27 = vmax.f32 %v18630_v11, 0.0  ;;  %4202 = vmatprep.mubr.bf16.mxu0 %v25191_v30 }
 0x2cb   : > { %v4416_v49 = vmax.f32 %v18662_v36, 0.0  ;;  %9729 = vmatprep.mubr.bf16.mxu1 %v22984_v4  ;;  %v23255_v33 = vpack.c.bf16 %v4413_v3, %v4399_v13  ;;  %9726 = vmatpush1.bf16.msra.mxu1 %v20713_v28  ;;  %v20719_v28 = vld [vmem:[#allocation6 + $0x700] ss:$28 sps:$4 sm:$0xff]  }
 0x2cc   : > { %v23257_v34 = vpack.c.bf16 %v4415_v37, %v4401_v19  ;;  %v23259_v59 = vpack.c.bf16 %v4414_v27, %v4400_v56  ;;  %v3350_v24 = vpop.f32.mrb[52].mxu0  ;;  %9727 = vmatprep.subr.bf16.mxu1 %v20718_v23  ;;  %v20722_v27 = vld [vmem:[#allocation6 + $0x8] ss:$28 sps:$4 sm:$0xff]  }
 0x2cd   : > { %25192 = vst [vmem:[#allocation75_spill] sm:$0xff] %v23255_v33  ;;  %v23261_v35 = vpack.c.bf16 %v4416_v49, %v4402_v31  ;;  %v3576_v55 = vpop.f32.mrb[52].mxu1  ;;  %v18631_v7 = vadd.f32 %v3350_v24, %v23150_v52  ;;  %v3352_v11 = vpop.f32.mrb[53].mxu0  ;;  %v20727_v31 = vld [vmem:[#allocation6 + $0x73c] ss:$28 sps:$4 sm:$0xff]  }
 0x2ce   : > { %25193 = vst [vmem:[#allocation76_spill] sm:$0xff] %v23257_v34  ;;  %25194 = vst [vmem:[#allocation77_spill] sm:$0xff] %v23259_v59  ;;  %v18663_v8 = vadd.f32 %v3576_v55, %v23154_v53  ;;  %v3578_v36 = vpop.f32.mrb[53].mxu1  ;;  %v18632_v4 = vadd.f32 %v3352_v11, %v23158_v17  ;;  %v3354_v37 = vpop.f32.mrb[54].mxu0  ;;  %v20730_v11 = vld [vmem:[#allocation6 + $0x44] ss:$28 sps:$4 sm:$0xff]  }
 0x2cf   : > { %25195 = vst [vmem:[#allocation78_spill] sm:$0xff] %v23261_v35  ;;  %v18664_v13 = vadd.f32 %v3578_v36, %v23160_v29  ;;  %v3580_v19 = vpop.f32.mrb[54].mxu1  ;;  %v18633_v49 = vadd.f32 %v3354_v37, %v23150_v52  ;;  %9728 = vmatpush1.bf16.msra.mxu1 %v20716_v14  ;;  %v3356_v23 = vpop.f32.mrb[55].mxu0  ;;  %v4427_v36 = vmax.f32 %v18631_v7, 0.0  ;;  %v20725_v33 = vld [vmem:[#allocation6 + $0x738] ss:$28 sps:$4 sm:$0xff]  }
 0x2d0   : > { %v18665_v3 = vadd.f32 %v3580_v19, %v23154_v53  ;;  %v3582_v56 = vpop.f32.mrb[55].mxu1  ;;  %v18634_v24 = vadd.f32 %v3356_v23, %v23158_v17  ;;  %9810 = vmatprep.subr.bf16.mxu1 %v20721_v61  ;;  %v4429_v34 = vmax.f32 %v18663_v8, 0.0  ;;  %v20728_v37 = vld [vmem:[#allocation6 + $0x40] ss:$28 sps:$4 sm:$0xff]   ;;  %v4428_v39 = vmax.f32 %v18632_v4, 0.0 }
 0x2d1   : > { %v18666_v55 = vadd.f32 %v3582_v56, %v23160_v29  ;;  %v4441_v35 = vmax.f32 %v18633_v49, 0.0  ;;  %4203 = vmatmul.mubr.bf16.vlgmr.msra.gmra.mrb[96].mxu0 %v22268_v38  ;;  %v4430_v19 = vmax.f32 %v18664_v13, 0.0  ;;  %v20733_v23 = vld [vmem:[#allocation6 + $0x774] ss:$28 sps:$4 sm:$0xff]  }
 0x2d2   : > { %v4443_v54 = vmax.f32 %v18665_v3, 0.0  ;;  %v4442_v14 = vmax.f32 %v18634_v24, 0.0  ;;  %9730 = vmatmul.mubr.bf16.vlgmr.msra.gmra.mrb[96].mxu1 %v22980_v1  ;;  %10376 = vmatpush1.bf16.msra.mxu0 %v20722_v27 }
 0x2d3   : > { %v4444_v59 = vmax.f32 %v18666_v55, 0.0  ;;  %v23273_v56 = vpack.c.bf16 %v4441_v35, %v4427_v36  ;;  %9739 = vmatprep.mubr.bf16.mxu1 %v23002_v45  ;;  %9811 = vmatpush1.bf16.msra.mxu1 %v20719_v28  ;;  %v20739_v36 = vld [vmem:[#allocation6 + $0x7ac] ss:$28 sps:$4 sm:$0xff]  }
 0x2d4   : > { %v23275_v61 = vpack.c.bf16 %v4443_v54, %v4429_v34  ;;  %v23278_v7 = vpack.c.bf16 %v4442_v14, %v4428_v39  ;;  %v3360_v4 = vpop.f32.mrb[56].mxu0  ;;  %9812 = vmatprep.subr.bf16.mxu1 %v20727_v31  ;;  %10377 = vmatprep.subr.bf16.mxu0 %v20730_v11  ;;  %v20731_v11 = vld [vmem:[#allocation6 + $0x770] ss:$28 sps:$4 sm:$0xff]  }
 0x2d5   : > { %25196 = vst [vmem:[#allocation79_spill] sm:$0xff] %v23273_v56  ;;  %v23280_v38 = vpack.c.bf16 %v4444_v59, %v4430_v19  ;;  %v3586_v8 = vpop.f32.mrb[56].mxu1  ;;  %v18635_v13 = vadd.f32 %v3360_v4, %v23150_v52  ;;  %v3362_v49 = vpop.f32.mrb[57].mxu0  ;;  %4212 = vmatprep.mubr.bf16.mxu0 %v25191_v30  ;;  %v20734_v59 = vld [vmem:[#allocation6 + $0x78] ss:$28 sps:$4 sm:$0xff]  }
 0x2d6   : > { %25197 = vst [vmem:[#allocation80_spill] sm:$0xff] %v23275_v61  ;;  %25198 = vst [vmem:[#allocation81_spill] sm:$0xff] %v23278_v7  ;;  %v18667_v27 = vadd.f32 %v3586_v8, %v23154_v53  ;;  %v3588_v35 = vpop.f32.mrb[57].mxu1  ;;  %v18636_v54 = vadd.f32 %v3362_v49, %v23158_v17  ;;  %v3364_v39 = vpop.f32.mrb[58].mxu0  ;;  %10378 = vmatpush1.bf16.msra.mxu0 %v20728_v37  ;;  %v20742_v37 = vld [vmem:[#allocation6 + $0xb4] ss:$28 sps:$4 sm:$0xff]  }
 0x2d7   : > { %25199 = vst [vmem:[#allocation82_spill] sm:$0xff] %v23280_v38  ;;  %v18668_v34 = vadd.f32 %v3588_v35, %v23160_v29  ;;  %v3590_v28 = vpop.f32.mrb[58].mxu1  ;;  %v18637_v3 = vadd.f32 %v3364_v39, %v23150_v52  ;;  %9813 = vmatpush1.bf16.msra.mxu1 %v20725_v33  ;;  %v3366_v24 = vpop.f32.mrb[59].mxu0  ;;  %10379 = vmatprep.subr.bf16.mxu0 %v20736_v41  ;;  %v4455_v19 = vmax.f32 %v18635_v13, 0.0  ;;  %v22269_v39 = vld [vmem:[%s22833_s27 + $0x20] ss:$12 sps:$4 sm:$0xff]  }
 0x2d8   : > { %v18669_v31 = vadd.f32 %v3590_v28, %v23154_v53  ;;  %v3592_v55 = vpop.f32.mrb[59].mxu1  ;;  %v4457_v14 = vmax.f32 %v18667_v27, 0.0  ;;  %v18638_v4 = vadd.f32 %v3366_v24, %v23158_v17  ;;  %9814 = vmatprep.subr.bf16.mxu1 %v20733_v23  ;;  %v20737_v61 = vld [vmem:[#allocation6 + $0x7a8] ss:$28 sps:$4 sm:$0xff]   ;;  %v4456_v28 = vmax.f32 %v18636_v54, 0.0 }
 0x2d9   : > { %v18670_v8 = vadd.f32 %v3592_v55, %v23160_v29  ;;  %v4469_v49 = vmax.f32 %v18637_v3, 0.0  ;;  %4213 = vmatmul.mubr.bf16.gmra.mrb[100].mxu0 %v22269_v39  ;;  %v4458_v33 = vmax.f32 %v18668_v34, 0.0  ;;  %v20740_v41 = vld [vmem:[#allocation6 + $0xb0] ss:$28 sps:$4 sm:$0xff]   ;;  %v20745_v23 = vld [vmem:[#allocation6 + $0x7e4] ss:$28 sps:$4 sm:$0xff]  }
 0x2da   : > { %v4471_v35 = vmax.f32 %v18669_v31, 0.0  ;;  %v4470_v38 = vmax.f32 %v18638_v4, 0.0  ;;  %9740 = vmatmul.mubr.bf16.gmra.mrb[100].mxu1 %v22998_v43  ;;  %10380 = vmatpush1.bf16.msra.mxu0 %v20734_v59  ;;  %v20748_v3 = vld [vmem:[#allocation6 + $0xec] ss:$28 sps:$4 sm:$0xff]   ;;  %v20743_v39 = vld [vmem:[#allocation6 + $0x7e0] ss:$28 sps:$4 sm:$0xff]  }
 0x2db   : > { %v4472_v45 = vmax.f32 %v18670_v8, 0.0  ;;  %v23293_v13 = vpack.c.bf16 %v4469_v49, %v4455_v19  ;;  %9749 = vmatprep.mubr.bf16.mxu1 %v23020_v22  ;;  %9815 = vmatpush1.bf16.msra.mxu1 %v20731_v11 }
 0x2dc   : > { %v23295_v27 = vpack.c.bf16 %v4471_v35, %v4457_v14  ;;  %v23298_v31 = vpack.c.bf16 %v4470_v38, %v4456_v28  ;;  %v3370_v54 = vpop.f32.mrb[60].mxu0  ;;  %9816 = vmatprep.subr.bf16.mxu1 %v20739_v36  ;;  %10381 = vmatprep.subr.bf16.mxu0 %v20742_v37  ;;  %v20751_v28 = vld [vmem:[#allocation6 + $0x81c] ss:$28 sps:$4 sm:$0xff]  }
 0x2dd   : > { %25200 = vst [vmem:[#allocation83_spill] sm:$0xff] %v23293_v13  ;;  %v23300_v24 = vpack.c.bf16 %v4472_v45, %v4458_v33  ;;  %v3596_v34 = vpop.f32.mrb[60].mxu1  ;;  %v18639_v59 = vadd.f32 %v3370_v54, %v23150_v52  ;;  %v3372_v19 = vpop.f32.mrb[61].mxu0  ;;  %4222 = vmatprep.mubr.bf16.mxu0 %v25191_v30  ;;  %v20746_v45 = vld [vmem:[#allocation6 + $0xe8] ss:$28 sps:$4 sm:$0xff]  }
 0x2de   : > { %25201 = vst [vmem:[#allocation84_spill] sm:$0xff] %v23295_v27  ;;  %25202 = vst [vmem:[#allocation85_spill] sm:$0xff] %v23298_v31  ;;  %v18671_v55 = vadd.f32 %v3596_v34, %v23154_v53  ;;  %v3598_v14 = vpop.f32.mrb[61].mxu1  ;;  %v18640_v11 = vadd.f32 %v3372_v19, %v23158_v17  ;;  %v3374_v38 = vpop.f32.mrb[62].mxu0  ;;  %10382 = vmatpush1.bf16.msra.mxu0 %v20740_v41  ;;  %v20754_v41 = vld [vmem:[#allocation6 + $0x124] ss:$28 sps:$4 sm:$0xff]  }
 0x2df   : > { %25203 = vst [vmem:[#allocation86_spill] sm:$0xff] %v23300_v24  ;;  %v18672_v4 = vadd.f32 %v3598_v14, %v23160_v29  ;;  %v3600_v8 = vpop.f32.mrb[62].mxu1  ;;  %v18641_v49 = vadd.f32 %v3374_v38, %v23150_v52  ;;  %9817 = vmatpush1.bf16.msra.mxu1 %v20737_v61  ;;  %v3376_v37 = vpop.f32.mrb[63].mxu0  ;;  %10383 = vmatprep.subr.bf16.mxu0 %v20748_v3  ;;  %v4483_v33 = vmax.f32 %v18639_v59, 0.0  ;;  %v22270_v52 = vld [vmem:[%s22833_s27 + $0x38] ss:$12 sps:$4 sm:$0xff]  }
 0x2e0   : > { %v18673_v36 = vadd.f32 %v3600_v8, %v23154_v53  ;;  %v3602_v35 = vpop.f32.mrb[63].mxu1  ;;  %v4485_v54 = vmax.f32 %v18671_v55, 0.0  ;;  %v18642_v34 = vadd.f32 %v3376_v37, %v23158_v17  ;;  %9818 = vmatprep.subr.bf16.mxu1 %v20745_v23  ;;  %v20749_v38 = vld [vmem:[#allocation6 + $0x818] ss:$28 sps:$4 sm:$0xff]   ;;  %v4484_v53 = vmax.f32 %v18640_v11, 0.0 }
 0x2e1   : > { %v18674_v19 = vadd.f32 %v3602_v35, %v23160_v29  ;;  %v4497_v14 = vmax.f32 %v18641_v49, 0.0  ;;  %4223 = vmatmul.mubr.bf16.gmra.mrb[104].mxu0 %v22270_v52  ;;  %v4486_v61 = vmax.f32 %v18672_v4, 0.0  ;;  %v20752_v3 = vld [vmem:[#allocation6 + $0x120] ss:$28 sps:$4 sm:$0xff]   ;;  %v20757_v29 = vld [vmem:[#allocation6 + $0x854] ss:$28 sps:$4 sm:$0xff]  }
 0x2e2   : > { %v4499_v27 = vmax.f32 %v18673_v36, 0.0  ;;  %v4498_v8 = vmax.f32 %v18642_v34, 0.0  ;;  %9750 = vmatmul.mubr.bf16.gmra.mrb[104].mxu1 %v23016_v21  ;;  %10384 = vmatpush1.bf16.msra.mxu0 %v20746_v45  ;;  %v20760_v23 = vld [vmem:[#allocation6 + $0x15c] ss:$28 sps:$4 sm:$0xff]   ;;  %v20755_v4 = vld [vmem:[#allocation6 + $0x850] ss:$28 sps:$4 sm:$0xff]  }
 0x2e3   : > { %v4500_v24 = vmax.f32 %v18674_v19, 0.0  ;;  %v23313_v59 = vpack.c.bf16 %v4497_v14, %v4483_v33  ;;  %9759 = vmatprep.mubr.bf16.mxu1 %v23038_v60  ;;  %9819 = vmatpush1.bf16.msra.mxu1 %v20743_v39  ;;  %v20758_v45 = vld [vmem:[#allocation6 + $0x158] ss:$28 sps:$4 sm:$0xff]   ;;  %v20763_v49 = vld [vmem:[#allocation6 + $0x88c] ss:$28 sps:$4 sm:$0xff]  }
 0x2e4   : > { %v23315_v17 = vpack.c.bf16 %v4499_v27, %v4485_v54  ;;  %v23318_v55 = vpack.c.bf16 %v4498_v8, %v4484_v53  ;;  %9820 = vmatprep.subr.bf16.mxu1 %v20751_v28  ;;  %10385 = vmatprep.subr.bf16.mxu0 %v20754_v41  ;;  %v20766_v27 = vld [vmem:[#allocation6 + $0x194] ss:$28 sps:$4 sm:$0xff]   ;;  %v20761_v37 = vld [vmem:[#allocation6 + $0x888] ss:$28 sps:$4 sm:$0xff]   ;;  %v20767_v28 = vld [vmem:[#allocation6 + $0x8c0] ss:$28 sps:$4 sm:$0xff]  }
 0x2e5   : > { %25204 = vst [vmem:[#allocation87_spill] sm:$0xff] %v23313_v59  ;;  %v23320_v11 = vpack.c.bf16 %v4500_v24, %v4486_v61  ;;  %4232 = vmatprep.mubr.bf16.mxu0 %v25191_v30  ;;  %v22271_v36 = vld [vmem:[%s22833_s27 + $0x50] ss:$12 sps:$4 sm:$0xff]   ;;  %v20775_v54 = vld [vmem:[#allocation6 + $0x8fc] ss:$28 sps:$4 sm:$0xff]  }
 0x2e6   : > { %25205 = vst [vmem:[#allocation88_spill] sm:$0xff] %v23318_v55  ;;  %10386 = vmatpush1.bf16.msra.mxu0 %v20752_v3  ;;  %v20764_v24 = vld [vmem:[#allocation6 + $0x190] ss:$28 sps:$4 sm:$0xff]   ;;  %v20769_v35 = vld [vmem:[#allocation6 + $0x8c4] ss:$28 sps:$4 sm:$0xff]  }
 0x2e7   : > { %9821 = vmatpush1.bf16.msra.mxu1 %v20749_v38  ;;  %10387 = vmatprep.subr.bf16.mxu0 %v20760_v23  ;;  %v20772_v39 = vld [vmem:[#allocation6 + $0x1cc] ss:$28 sps:$4 sm:$0xff]   ;;  %v20778_v34 = vld [vmem:[#allocation6 + $0x204] ss:$28 sps:$4 sm:$0xff]   ;;  %v20773_v41 = vld [vmem:[#allocation6 + $0x8f8] ss:$28 sps:$4 sm:$0xff]  }
 0x2e8   : > { %9822 = vmatprep.subr.bf16.mxu1 %v20757_v29  ;;  %v20770_v33 = vld [vmem:[#allocation6 + $0x1c8] ss:$28 sps:$4 sm:$0xff]   ;;  %v20776_v14 = vld [vmem:[#allocation6 + $0x200] ss:$28 sps:$4 sm:$0xff]   ;;  %v20781_v52 = vld [vmem:[#allocation6 + $0x934] ss:$28 sps:$4 sm:$0xff]  }
 0x2e9   : > { %4233 = vmatmul.mubr.bf16.gmra.mrb[108].mxu0 %v22271_v36  ;;  %v22272_v19 = vld [vmem:[%s22833_s27 + $0x68] ss:$12 sps:$4 sm:$0xff]   ;;  %v20779_v53 = vld [vmem:[#allocation6 + $0x930] ss:$28 sps:$4 sm:$0xff]  }
 0x2ea   : > { %9760 = vmatmul.mubr.bf16.gmra.mrb[108].mxu1 %v23034_v58  ;;  %10388 = vmatpush1.bf16.msra.mxu0 %v20758_v45  ;;  %v20784_v38 = vld [vmem:[#allocation6 + $0x23c] ss:$28 sps:$4 sm:$0xff]   ;;  %v20787_v8 = vld [vmem:[#allocation6 + $0x96c] ss:$28 sps:$4 sm:$0xff]   ;;  %v20790_v3 = vld [vmem:[#allocation6 + $0x274] ss:$28 sps:$4 sm:$0xff]  }
 0x2eb   : > { %9769 = vmatprep.mubr.bf16.mxu1 %v23057_v46  ;;  %9823 = vmatpush1.bf16.msra.mxu1 %v20755_v4  ;;  %v20782_v61 = vld [vmem:[#allocation6 + $0x238] ss:$28 sps:$4 sm:$0xff]   ;;  %v20785_v23 = vld [vmem:[#allocation6 + $0x968] ss:$28 sps:$4 sm:$0xff]   ;;  %v20788_v4 = vld [vmem:[#allocation6 + $0x270] ss:$28 sps:$4 sm:$0xff]  }
 0x2ec   : > { %9824 = vmatprep.subr.bf16.mxu1 %v20763_v49  ;;  %10389 = vmatprep.subr.bf16.mxu0 %v20766_v27  ;;  %v22273_v29 = vld [vmem:[%s22833_s27 + $0x80] ss:$12 sps:$4 sm:$0xff]   ;;  %v20796_v49 = vld [vmem:[#allocation6 + $0x2ac] ss:$28 sps:$4 sm:$0xff]  }
 0x2ed   : > { %4242 = vmatprep.mubr.bf16.mxu0 %v25191_v30  ;;  %v20793_v45 = vld [vmem:[#allocation6 + $0x9a4] ss:$28 sps:$4 sm:$0xff]  }
 0x2ee   : > { %10390 = vmatpush1.bf16.msra.mxu0 %v20764_v24  ;;  %v20791_v27 = vld [vmem:[#allocation6 + $0x9a0] ss:$28 sps:$4 sm:$0xff]   ;;  %v20794_v36 = vld [vmem:[#allocation6 + $0x2a8] ss:$28 sps:$4 sm:$0xff]  }
 0x2ef   : > { %9825 = vmatpush1.bf16.msra.mxu1 %v20761_v37  ;;  %10391 = vmatprep.subr.bf16.mxu0 %v20772_v39  ;;  %v20799_v37 = vld [vmem:[#allocation6 + $0x9dc] ss:$28 sps:$4 sm:$0xff]   ;;  %v20802_v24 = vld [vmem:[#allocation6 + $0x2e4] ss:$28 sps:$4 sm:$0xff]  }
 0x2f0   : > { %9826 = vmatprep.subr.bf16.mxu1 %v20769_v35  ;;  %v22274_v35 = vld [vmem:[%s22833_s27 + $0x98] ss:$12 sps:$4 sm:$0xff]  }
 0x2f1   : > { %4243 = vmatmul.mubr.bf16.gmra.mrb[112].mxu0 %v22272_v19  ;;  %v20797_v39 = vld [vmem:[#allocation6 + $0x9d8] ss:$28 sps:$4 sm:$0xff]  }
 0x2f2   : > { %9770 = vmatmul.mubr.bf16.gmra.mrb[112].mxu1 %v23053_v40  ;;  %10392 = vmatpush1.bf16.msra.mxu0 %v20770_v33  ;;  %v20805_v33 = vld [vmem:[#allocation6 + $0xa14] ss:$28 sps:$4 sm:$0xff]  }
 0x2f3   : > { %9779 = vmatprep.mubr.bf16.mxu1 %v23074_v51  ;;  %9827 = vmatpush1.bf16.msra.mxu1 %v20767_v28  ;;  %v20800_v28 = vld [vmem:[#allocation6 + $0x2e0] ss:$28 sps:$4 sm:$0xff]   ;;  %v20806_v19 = vld [vmem:[#allocation6 + $0x318] ss:$28 sps:$4 sm:$0xff]  }
 0x2f4   : > { %9828 = vmatprep.subr.bf16.mxu1 %v20775_v54  ;;  %10393 = vmatprep.subr.bf16.mxu0 %v20778_v34  ;;  %v20808_v54 = vld [vmem:[#allocation6 + $0x31c] ss:$28 sps:$4 sm:$0xff]   ;;  %v20803_v34 = vld [vmem:[#allocation6 + $0xa10] ss:$28 sps:$4 sm:$0xff]  }
 0x2f5   : > { %4252 = vmatprep.mubr.bf16.mxu0 %v25191_v30 }
 0x2f6   : > { %10394 = vmatpush1.bf16.msra.mxu0 %v20776_v14  ;;  %v20814_v14 = vld [vmem:[#allocation6 + $0x354] ss:$28 sps:$4 sm:$0xff]  }
 0x2f7   : > { %9829 = vmatpush1.bf16.msra.mxu1 %v20773_v41  ;;  %10395 = vmatprep.subr.bf16.mxu0 %v20784_v38  ;;  %v20811_v41 = vld [vmem:[#allocation6 + $0xa4c] ss:$28 sps:$4 sm:$0xff]  }
 0x2f8   : > { %9830 = vmatprep.subr.bf16.mxu1 %v20781_v52  ;;  %v22275_v52 = vld [vmem:[%s22833_s27 + $0xb0] ss:$12 sps:$4 sm:$0xff]  }
 0x2f9   : > { %4253 = vmatmul.mubr.bf16.gmra.mrb[116].mxu0 %v22273_v29  ;;  %v20809_v38 = vld [vmem:[#allocation6 + $0xa48] ss:$28 sps:$4 sm:$0xff]  }
 0x2fa   : > { %9780 = vmatmul.mubr.bf16.gmra.mrb[116].mxu1 %v23070_v47  ;;  %10396 = vmatpush1.bf16.msra.mxu0 %v20782_v61  ;;  %v20817_v61 = vld [vmem:[#allocation6 + $0xa84] ss:$28 sps:$4 sm:$0xff]  }
 0x2fb   : > { %9789 = vmatprep.mubr.bf16.mxu1 %v23093_v6  ;;  %9831 = vmatpush1.bf16.msra.mxu1 %v20779_v53  ;;  %v20812_v53 = vld [vmem:[#allocation6 + $0x350] ss:$28 sps:$4 sm:$0xff]   ;;  %v20818_v29 = vld [vmem:[#allocation6 + $0x388] ss:$28 sps:$4 sm:$0xff]  }
 0x2fc   : > { %9832 = vmatprep.subr.bf16.mxu1 %v20787_v8  ;;  %10397 = vmatprep.subr.bf16.mxu0 %v20790_v3  ;;  %v20820_v8 = vld [vmem:[#allocation6 + $0x38c] ss:$28 sps:$4 sm:$0xff]   ;;  %v20815_v3 = vld [vmem:[#allocation6 + $0xa80] ss:$28 sps:$4 sm:$0xff]  }
 0x2fd   : > { %4262 = vmatprep.mubr.bf16.mxu0 %v25191_v30 }
 0x2fe   : > { %10398 = vmatpush1.bf16.msra.mxu0 %v20788_v4  ;;  %v20826_v4 = vld [vmem:[#allocation6 + $0x3c4] ss:$28 sps:$4 sm:$0xff]  }
 0x2ff   : > { %9833 = vmatpush1.bf16.msra.mxu1 %v20785_v23  ;;  %10399 = vmatprep.subr.bf16.mxu0 %v20796_v49  ;;  %v20823_v23 = vld [vmem:[#allocation6 + $0xabc] ss:$28 sps:$4 sm:$0xff]  }
 0x300   : > { %9834 = vmatprep.subr.bf16.mxu1 %v20793_v45  ;;  %v20821_v45 = vld [vmem:[#allocation6 + $0xab8] ss:$28 sps:$4 sm:$0xff]   ;;  %v20824_v49 = vld [vmem:[#allocation6 + $0x3c0] ss:$28 sps:$4 sm:$0xff]  }
 0x301   : > { %4263 = vmatmul.mubr.bf16.gmra.mrb[120].mxu0 %v22274_v35  ;;  %v20835_v35 = vld [vmem:[#allocation6 + $0xb2c] ss:$28 sps:$4 sm:$0xff]  }
 0x302   : > { %9790 = vmatmul.mubr.bf16.gmra.mrb[120].mxu1 %v23089_v62  ;;  %10400 = vmatpush1.bf16.msra.mxu0 %v20794_v36  ;;  %v20832_v36 = vld [vmem:[#allocation6 + $0x3fc] ss:$28 sps:$4 sm:$0xff]  }
 0x303   : > { %9799 = vmatprep.mubr.bf16.mxu1 %v23112_v63  ;;  %9835 = vmatpush1.bf16.msra.mxu1 %v20791_v27  ;;  %v20829_v27 = vld [vmem:[#allocation6 + $0xaf4] ss:$28 sps:$4 sm:$0xff]  }
 0x304   : > { %9836 = vmatprep.subr.bf16.mxu1 %v20799_v37  ;;  %10401 = vmatprep.subr.bf16.mxu0 %v20802_v24  ;;  %v20827_v37 = vld [vmem:[#allocation6 + $0xaf0] ss:$28 sps:$4 sm:$0xff]   ;;  %v20830_v24 = vld [vmem:[#allocation6 + $0x3f8] ss:$28 sps:$4 sm:$0xff]  }
 0x305   : > { %4272 = vmatprep.mubr.bf16.mxu0 %v25191_v30 }
 0x306   : > { %10402 = vmatpush1.bf16.msra.mxu0 %v20800_v28  ;;  %v20833_v28 = vld [vmem:[#allocation6 + $0xb28] ss:$28 sps:$4 sm:$0xff]  }
 0x307   : > { %9837 = vmatpush1.bf16.msra.mxu1 %v20797_v39  ;;  %10403 = vmatprep.subr.bf16.mxu0 %v20808_v54  ;;  %v20838_v39 = vld [vmem:[#allocation6 + $0x434] ss:$28 sps:$4 sm:$0xff]   ;;  %v20841_v54 = vld [vmem:[#allocation6 + $0xb64] ss:$28 sps:$4 sm:$0xff]  }
 0x308   : > { %9838 = vmatprep.subr.bf16.mxu1 %v20805_v33  ;;  %v20836_v33 = vld [vmem:[#allocation6 + $0x430] ss:$28 sps:$4 sm:$0xff]  }
 0x309   : > { %4273 = vmatmul.mubr.bf16.gmra.mrb[124].mxu0 %v22275_v52  ;;  %v20847_v52 = vld [vmem:[#allocation6 + $0xb9c] ss:$28 sps:$4 sm:$0xff]  }
 0x30a   : > { %9800 = vmatmul.mubr.bf16.gmra.mrb[124].mxu1 %v23108_v26  ;;  %10404 = vmatpush1.bf16.msra.mxu0 %v20806_v19  ;;  %v20839_v19 = vld [vmem:[#allocation6 + $0xb60] ss:$28 sps:$4 sm:$0xff]  }
 0x30b   : > { %9839 = vmatpush1.bf16.msra.mxu1 %v20803_v34  ;;  %9842 = vmatprep.mubr.bf16.mxu1 %v23179_v20  ;;  %v20844_v34 = vld [vmem:[#allocation6 + $0x46c] ss:$28 sps:$4 sm:$0xff]  }
 0x30c   : > { %10407 = vmatprep.mubr.bf16.mxu0 %v22982_v2  ;;  %9840 = vmatprep.subr.bf16.mxu1 %v20811_v41  ;;  %v20842_v41 = vld [vmem:[#allocation6 + $0x468] ss:$28 sps:$4 sm:$0xff]  }
 0x30d   : > { %10405 = vmatprep.subr.bf16.mxu0 %v20814_v14  ;;  %v820_v14 = vld [vmem:[#allocation4 + $0x8] sm:$0x3f] }
 0x30e   : > { %10406 = vmatpush1.bf16.msra.mxu0 %v20812_v53  ;;  %v23353_v53 = vrot.slane %v820_v14, %v22943_v16 }
 0x30f   : > { %9841 = vmatpush1.bf16.msra.mxu1 %v20809_v38  ;;  %10488 = vmatprep.subr.bf16.mxu0 %v20820_v8  ;;  %v20850_v38 = vld [vmem:[#allocation6 + $0x4a4] ss:$28 sps:$4 sm:$0xff]   ;;  %v25206_v8 = vld [vmem:[#allocation39_spill] sm:$0xff] }
 0x310   : > { %9923 = vmatprep.subr.bf16.mxu1 %v20817_v61  ;;  %v23356_v61 = vrot.slane %v820_v14, %v22946_v5  ;;  %v20851_v5 = vld [vmem:[#allocation6 + $0xbd0] ss:$28 sps:$4 sm:$0xff]  }
 0x311   : > { %10408 = vmatmul.mubr.bf16.vlgmr.msra.gmra.mrb[128].mxu0 %v22978_v0 }
 0x312   : > { %9843 = vmatmul.mubr.bf16.vlgmr.msra.gmra.mrb[96].mxu1 %v23175_v25  ;;  %10417 = vmatprep.mubr.bf16.mxu0 %v23000_v44 }
 0x313   : > { %9852 = vmatprep.mubr.bf16.mxu1 %v23199_v50  ;;  %9924 = vmatpush1.bf16.msra.mxu1 %v20815_v3  ;;  %v25207_v3 = vld [vmem:[#allocation23_spill] sm:$0xff] }
 0x314   : > { %10489 = vmatpush1.bf16.msra.mxu0 %v20818_v29  ;;  %9925 = vmatprep.subr.bf16.mxu1 %v20823_v23  ;;  %v23361_v29 = vrot.slane %v820_v14, %v25207_v3  ;;  %v25208_v23 = vld [vmem:[#allocation24_spill] sm:$0xff] }
 0x315   : > { %10490 = vmatprep.subr.bf16.mxu0 %v20826_v4  ;;  %v23364_v4 = vrot.slane %v820_v14, %v25208_v23 }
 0x317   : > { %9926 = vmatpush1.bf16.msra.mxu1 %v20821_v45  ;;  %v20845_v45 = vld [vmem:[#allocation6 + $0xb98] ss:$28 sps:$4 sm:$0xff]  }
 0x318   : > { %10491 = vmatpush1.bf16.msra.mxu0 %v20824_v49  ;;  %9927 = vmatprep.subr.bf16.mxu1 %v20829_v27  ;;  %v20848_v49 = vld [vmem:[#allocation6 + $0x4a0] ss:$28 sps:$4 sm:$0xff]   ;;  %v20853_v27 = vld [vmem:[#allocation6 + $0xbd4] ss:$28 sps:$4 sm:$0xff]  }
 0x319   : > { %10418 = vmatmul.mubr.bf16.gmra.mrb[132].mxu0 %v22996_v42  ;;  %10492 = vmatprep.subr.bf16.mxu0 %v20832_v36 }
 0x31a   : > { %9853 = vmatmul.mubr.bf16.gmra.mrb[100].mxu1 %v23195_v15  ;;  %10427 = vmatprep.mubr.bf16.mxu0 %v23018_v12 }
 0x31b   : > { %9862 = vmatprep.mubr.bf16.mxu1 %v23219_v32  ;;  %9928 = vmatpush1.bf16.msra.mxu1 %v20827_v37 }
 0x31c   : > { %10493 = vmatpush1.bf16.msra.mxu0 %v20830_v24  ;;  %9929 = vmatprep.subr.bf16.mxu1 %v20835_v35  ;;  %v20856_v24 = vld [vmem:[#allocation6 + $0x4dc] ss:$28 sps:$4 sm:$0xff]  }
 0x31d   : > { %10494 = vmatprep.subr.bf16.mxu0 %v20838_v39 }
 0x31f   : > { %9930 = vmatpush1.bf16.msra.mxu1 %v20833_v28 }
 0x320   : > { %10495 = vmatpush1.bf16.msra.mxu0 %v20836_v33  ;;  %9931 = vmatprep.subr.bf16.mxu1 %v20841_v54 }
 0x321   : > { %10428 = vmatmul.mubr.bf16.gmra.mrb[136].mxu0 %v23014_v18  ;;  %10496 = vmatprep.subr.bf16.mxu0 %v20844_v34 }
 0x322   : > { %9863 = vmatmul.mubr.bf16.gmra.mrb[104].mxu1 %v23215_v9  ;;  %10437 = vmatprep.mubr.bf16.mxu0 %v25206_v8 }
 0x323   : > { %9872 = vmatprep.mubr.bf16.mxu1 %v23239_v10  ;;  %9932 = vmatpush1.bf16.msra.mxu1 %v20839_v19 }
 0x324   : > { %10497 = vmatpush1.bf16.msra.mxu0 %v20842_v41  ;;  %v3752_v36 = vpop.f32.mrb[64].mxu0  ;;  %9933 = vmatprep.subr.bf16.mxu1 %v20847_v52 }
 0x325   : > { %v3978_v37 = vpop.f32.mrb[64].mxu1  ;;  %v18675_v35 = vadd.f32 %v3752_v36, %v23353_v53  ;;  %v3754_v28 = vpop.f32.mrb[65].mxu0  ;;  %10498 = vmatprep.subr.bf16.mxu0 %v20850_v38  ;;  %v20854_v36 = vld [vmem:[#allocation6 + $0x4d8] ss:$28 sps:$4 sm:$0xff]  }
 0x326   : > { %v18707_v39 = vadd.f32 %v3978_v37, %v23356_v61  ;;  %v3980_v33 = vpop.f32.mrb[65].mxu1  ;;  %v18676_v54 = vadd.f32 %v3754_v28, %v23361_v29  ;;  %v3756_v19 = vpop.f32.mrb[66].mxu0  ;;  %v20859_v28 = vld [vmem:[#allocation6 + $0xc0c] ss:$28 sps:$4 sm:$0xff]  }
 0x327   : > { %v18708_v34 = vadd.f32 %v3980_v33, %v23364_v4  ;;  %v3982_v14 = vpop.f32.mrb[66].mxu1  ;;  %v18677_v30 = vadd.f32 %v3756_v19, %v23353_v53  ;;  %9934 = vmatpush1.bf16.msra.mxu1 %v20845_v45  ;;  %v3758_v52 = vpop.f32.mrb[67].mxu0  ;;  %v4291_v3 = vmax.f32 %v18675_v35, 0.0  ;;  %v20862_v33 = vld [vmem:[#allocation6 + $0x514] ss:$28 sps:$4 sm:$0xff]  }
 0x328   : > { %v18709_v41 = vadd.f32 %v3982_v14, %v23356_v61  ;;  %v3984_v23 = vpop.f32.mrb[67].mxu1  ;;  %10499 = vmatpush1.bf16.msra.mxu0 %v20848_v49  ;;  %v18678_v37 = vadd.f32 %v3758_v52, %v23361_v29  ;;  %9935 = vmatprep.subr.bf16.mxu1 %v20853_v27  ;;  %v4293_v16 = vmax.f32 %v18707_v39, 0.0  ;;  %v4292_v8 = vmax.f32 %v18676_v54, 0.0  ;;  %v25209_v49 = vld [vmem:[#allocation43_spill] sm:$0xff]  ;;  %v25211_v27 = vld [vmem:[#allocation77_spill] sm:$0xff] }
 0x329   : > { %v18710_v38 = vadd.f32 %v3984_v23, %v23364_v4  ;;  %v4305_v18 = vmax.f32 %v18677_v30, 0.0  ;;  %10438 = vmatmul.mubr.bf16.gmra.mrb[140].mxu0 %v23032_v57  ;;  %10500 = vmatprep.subr.bf16.mxu0 %v20856_v24  ;;  %v4294_v45 = vmax.f32 %v18708_v34, 0.0  ;;  %v20857_v39 = vld [vmem:[#allocation6 + $0xc08] ss:$28 sps:$4 sm:$0xff]   ;;  %v20860_v30 = vld [vmem:[#allocation6 + $0x510] ss:$28 sps:$4 sm:$0xff]  }
 0x32a   : > { %v4307_v19 = vmax.f32 %v18709_v41, 0.0  ;;  %v4306_v14 = vmax.f32 %v18678_v37, 0.0  ;;  %9873 = vmatmul.mubr.bf16.gmra.mrb[108].mxu1 %v23235_v48  ;;  %10447 = vmatprep.mubr.bf16.mxu0 %v25209_v49  ;;  %v20865_v54 = vld [vmem:[#allocation6 + $0xc44] ss:$28 sps:$4 sm:$0xff]   ;;  %v20868_v37 = vld [vmem:[#allocation6 + $0x54c] ss:$28 sps:$4 sm:$0xff]  }
 0x32b   : > { %v4308_v12 = vmax.f32 %v18710_v38, 0.0  ;;  %v23378_v35 = vpack.c.bf16 %v4305_v18, %v4291_v3  ;;  %9882 = vmatprep.mubr.bf16.mxu1 %v25211_v27  ;;  %9936 = vmatpush1.bf16.msra.mxu1 %v20851_v5 }
 0x32c   : > { %v23380_v23 = vpack.c.bf16 %v4307_v19, %v4293_v16  ;;  %v23383_v41 = vpack.c.bf16 %v4306_v14, %v4292_v8  ;;  %10501 = vmatpush1.bf16.msra.mxu0 %v20854_v36  ;;  %v3762_v34 = vpop.f32.mrb[68].mxu0  ;;  %9937 = vmatprep.subr.bf16.mxu1 %v20859_v28 }
 0x32d   : > { %v23385_v24 = vpack.c.bf16 %v4308_v12, %v4294_v45  ;;  %v3988_v52 = vpop.f32.mrb[68].mxu1  ;;  %v18679_v18 = vadd.f32 %v3762_v34, %v23353_v53  ;;  %v3764_v3 = vpop.f32.mrb[69].mxu0  ;;  %10502 = vmatprep.subr.bf16.mxu0 %v20862_v33  ;;  %v20863_v12 = vld [vmem:[#allocation6 + $0xc40] ss:$28 sps:$4 sm:$0xff]   ;;  %v20866_v45 = vld [vmem:[#allocation6 + $0x548] ss:$28 sps:$4 sm:$0xff]  }
 0x32e   : > { %25210 = vst [vmem:[#allocation89_spill] sm:$0xff] %v23380_v23  ;;  %v18711_v16 = vadd.f32 %v3988_v52, %v23356_v61  ;;  %v3990_v38 = vpop.f32.mrb[69].mxu1  ;;  %v18680_v5 = vadd.f32 %v3764_v3, %v23361_v29  ;;  %v3766_v8 = vpop.f32.mrb[70].mxu0  ;;  %v20871_v52 = vld [vmem:[#allocation6 + $0xc7c] ss:$28 sps:$4 sm:$0xff]  }
 0x32f   : > { %25212 = vst [vmem:[#allocation90_spill] sm:$0xff] %v23385_v24  ;;  %v18712_v19 = vadd.f32 %v3990_v38, %v23364_v4  ;;  %v3992_v14 = vpop.f32.mrb[70].mxu1  ;;  %v4319_v36 = vmax.f32 %v18679_v18, 0.0  ;;  %v18681_v49 = vadd.f32 %v3766_v8, %v23353_v53  ;;  %9938 = vmatpush1.bf16.msra.mxu1 %v20857_v39  ;;  %v3768_v34 = vpop.f32.mrb[71].mxu0  ;;  %v20874_v38 = vld [vmem:[#allocation6 + $0x584] ss:$28 sps:$4 sm:$0xff]  }
 0x330   : > { %v18713_v28 = vadd.f32 %v3992_v14, %v23356_v61  ;;  %v3994_v57 = vpop.f32.mrb[71].mxu1  ;;  %v4321_v42 = vmax.f32 %v18711_v16, 0.0  ;;  %v4320_v44 = vmax.f32 %v18680_v5, 0.0  ;;  %10503 = vmatpush1.bf16.msra.mxu0 %v20860_v30  ;;  %v18682_v33 = vadd.f32 %v3768_v34, %v23361_v29  ;;  %9939 = vmatprep.subr.bf16.mxu1 %v20865_v54  ;;  %v25213_v23 = vld [vmem:[#allocation41_spill] sm:$0xff]  ;;  %v25214_v14 = vld [vmem:[#allocation75_spill] sm:$0xff] }
 0x331   : > { %v18714_v3 = vadd.f32 %v3994_v57, %v23364_v4  ;;  %v4322_v0 = vmax.f32 %v18712_v19, 0.0  ;;  %v4333_v2 = vmax.f32 %v18681_v49, 0.0  ;;  %10448 = vmatmul.mubr.bf16.gmra.mrb[144].mxu0 %v25213_v23  ;;  %10504 = vmatprep.subr.bf16.mxu0 %v20868_v37  ;;  %v25215_v24 = vld [vmem:[#allocation47_spill] sm:$0xff]  ;;  %v20869_v57 = vld [vmem:[#allocation6 + $0xc78] ss:$28 sps:$4 sm:$0xff]  }
 0x332   : > { %v4335_v18 = vmax.f32 %v18713_v28, 0.0  ;;  %v4334_v8 = vmax.f32 %v18682_v33, 0.0  ;;  %9883 = vmatmul.mubr.bf16.gmra.mrb[112].mxu1 %v25214_v14  ;;  %10457 = vmatprep.mubr.bf16.mxu0 %v25215_v24  ;;  %v20872_v54 = vld [vmem:[#allocation6 + $0x580] ss:$28 sps:$4 sm:$0xff]   ;;  %v20877_v49 = vld [vmem:[#allocation6 + $0xcb4] ss:$28 sps:$4 sm:$0xff]  }
 0x333   : > { %v4336_v39 = vmax.f32 %v18714_v3, 0.0  ;;  %v23398_v16 = vpack.c.bf16 %v4333_v2, %v4319_v36  ;;  %9892 = vmatprep.mubr.bf16.mxu1 %v23278_v7  ;;  %9940 = vmatpush1.bf16.msra.mxu1 %v20863_v12  ;;  %v20880_v34 = vld [vmem:[#allocation6 + $0x5bc] ss:$28 sps:$4 sm:$0xff]   ;;  %v20883_v23 = vld [vmem:[#allocation6 + $0xcec] ss:$28 sps:$4 sm:$0xff]  }
 0x334   : > { %v23400_v30 = vpack.c.bf16 %v4335_v18, %v4321_v42  ;;  %v23403_v5 = vpack.c.bf16 %v4334_v8, %v4320_v44  ;;  %10505 = vmatpush1.bf16.msra.mxu0 %v20866_v45  ;;  %v3772_v37 = vpop.f32.mrb[72].mxu0  ;;  %9941 = vmatprep.subr.bf16.mxu1 %v20871_v52  ;;  %v20878_v8 = vld [vmem:[#allocation6 + $0x5b8] ss:$28 sps:$4 sm:$0xff]  }
 0x335   : > { %25216 = vst [vmem:[#allocation91_spill] sm:$0xff] %v23398_v16  ;;  %v23405_v19 = vpack.c.bf16 %v4336_v39, %v4322_v0  ;;  %v3998_v28 = vpop.f32.mrb[72].mxu1  ;;  %v18683_v2 = vadd.f32 %v3772_v37, %v23353_v53  ;;  %v3774_v36 = vpop.f32.mrb[73].mxu0  ;;  %10506 = vmatprep.subr.bf16.mxu0 %v20874_v38  ;;  %v20875_v0 = vld [vmem:[#allocation6 + $0xcb0] ss:$28 sps:$4 sm:$0xff]  }
 0x336   : > { %25217 = vst [vmem:[#allocation92_spill] sm:$0xff] %v23400_v30  ;;  %v18715_v42 = vadd.f32 %v3998_v28, %v23356_v61  ;;  %v4000_v33 = vpop.f32.mrb[73].mxu1  ;;  %v18684_v12 = vadd.f32 %v3774_v36, %v23361_v29  ;;  %v3776_v44 = vpop.f32.mrb[74].mxu0 }
 0x337   : > { %25218 = vst [vmem:[#allocation93_spill] sm:$0xff] %v23405_v19  ;;  %v18716_v3 = vadd.f32 %v4000_v33, %v23364_v4  ;;  %v4002_v18 = vpop.f32.mrb[74].mxu1  ;;  %v4347_v45 = vmax.f32 %v18683_v2, 0.0  ;;  %v18685_v52 = vadd.f32 %v3776_v44, %v23353_v53  ;;  %9942 = vmatpush1.bf16.msra.mxu1 %v20869_v57  ;;  %v3778_v37 = vpop.f32.mrb[75].mxu0  ;;  %v20886_v19 = vld [vmem:[#allocation6 + $0x5f4] ss:$28 sps:$4 sm:$0xff]  }
 0x338   : > { %v4349_v39 = vmax.f32 %v18715_v42, 0.0  ;;  %v18717_v24 = vadd.f32 %v4002_v18, %v23356_v61  ;;  %v4004_v28 = vpop.f32.mrb[75].mxu1  ;;  %v4348_v30 = vmax.f32 %v18684_v12, 0.0  ;;  %10507 = vmatpush1.bf16.msra.mxu0 %v20872_v54  ;;  %v18686_v36 = vadd.f32 %v3778_v37, %v23361_v29  ;;  %9943 = vmatprep.subr.bf16.mxu1 %v20877_v49  ;;  %v25219_v42 = vld [vmem:[#allocation45_spill] sm:$0xff]  ;;  %v25220_v57 = vld [vmem:[#allocation51_spill] sm:$0xff] }
 0x339   : > { %v4350_v38 = vmax.f32 %v18716_v3, 0.0  ;;  %v18718_v33 = vadd.f32 %v4004_v28, %v23364_v4  ;;  %v4361_v7 = vmax.f32 %v18685_v52, 0.0  ;;  %10458 = vmatmul.mubr.bf16.gmra.mrb[148].mxu0 %v25219_v42  ;;  %10508 = vmatprep.subr.bf16.mxu0 %v20880_v34  ;;  %v20881_v49 = vld [vmem:[#allocation6 + $0xce8] ss:$28 sps:$4 sm:$0xff]   ;;  %v20884_v3 = vld [vmem:[#allocation6 + $0x5f0] ss:$28 sps:$4 sm:$0xff]  }
 0x33a   : > { %v4363_v2 = vmax.f32 %v18717_v24, 0.0  ;;  %v4362_v44 = vmax.f32 %v18686_v36, 0.0  ;;  %9893 = vmatmul.mubr.bf16.gmra.mrb[116].mxu1 %v23273_v56  ;;  %10467 = vmatprep.mubr.bf16.mxu0 %v25220_v57  ;;  %v20889_v52 = vld [vmem:[#allocation6 + $0xd24] ss:$28 sps:$4 sm:$0xff]   ;;  %v20892_v36 = vld [vmem:[#allocation6 + $0x62c] ss:$28 sps:$4 sm:$0xff]  }
 0x33b   : > { %v4364_v18 = vmax.f32 %v18718_v33, 0.0  ;;  %v23418_v12 = vpack.c.bf16 %v4361_v7, %v4347_v45  ;;  %9902 = vmatprep.mubr.bf16.mxu1 %v23298_v31  ;;  %9944 = vmatpush1.bf16.msra.mxu1 %v20875_v0  ;;  %v20898_v31 = vld [vmem:[#allocation6 + $0x664] ss:$28 sps:$4 sm:$0xff]  }
 0x33c   : > { %v23420_v54 = vpack.c.bf16 %v4363_v2, %v4349_v39  ;;  %v23423_v24 = vpack.c.bf16 %v4362_v44, %v4348_v30  ;;  %10509 = vmatpush1.bf16.msra.mxu0 %v20878_v8  ;;  %v3782_v34 = vpop.f32.mrb[76].mxu0  ;;  %9945 = vmatprep.subr.bf16.mxu1 %v20883_v23 }
 0x33d   : > { %25221 = vst [vmem:[#allocation94_spill] sm:$0xff] %v23418_v12  ;;  %v23425_v37 = vpack.c.bf16 %v4364_v18, %v4350_v38  ;;  %v4008_v28 = vpop.f32.mrb[76].mxu1  ;;  %v18687_v7 = vadd.f32 %v3782_v34, %v23353_v53  ;;  %v3784_v39 = vpop.f32.mrb[77].mxu0  ;;  %10510 = vmatprep.subr.bf16.mxu0 %v20886_v19  ;;  %v20887_v38 = vld [vmem:[#allocation6 + $0xd20] ss:$28 sps:$4 sm:$0xff]  }
 0x33e   : > { %25222 = vst [vmem:[#allocation95_spill] sm:$0xff] %v23420_v54  ;;  %25223 = vst [vmem:[#allocation96_spill] sm:$0xff] %v23423_v24  ;;  %v18719_v45 = vadd.f32 %v4008_v28, %v23356_v61  ;;  %v4010_v33 = vpop.f32.mrb[77].mxu1  ;;  %v18688_v0 = vadd.f32 %v3784_v39, %v23361_v29  ;;  %v3786_v30 = vpop.f32.mrb[78].mxu0  ;;  %v20890_v18 = vld [vmem:[#allocation6 + $0x628] ss:$28 sps:$4 sm:$0xff]  }
 0x33f   : > { %25224 = vst [vmem:[#allocation97_spill] sm:$0xff] %v23425_v37  ;;  %v18720_v2 = vadd.f32 %v4010_v33, %v23364_v4  ;;  %v4012_v44 = vpop.f32.mrb[78].mxu1  ;;  %v4375_v8 = vmax.f32 %v18687_v7, 0.0  ;;  %v18689_v23 = vadd.f32 %v3786_v30, %v23353_v53  ;;  %9946 = vmatpush1.bf16.msra.mxu1 %v20881_v49  ;;  %v3788_v34 = vpop.f32.mrb[79].mxu0  ;;  %v20895_v54 = vld [vmem:[#allocation6 + $0xd5c] ss:$28 sps:$4 sm:$0xff]  }
 0x340   : > { %v4377_v57 = vmax.f32 %v18719_v45, 0.0  ;;  %v18721_v42 = vadd.f32 %v4012_v44, %v23356_v61  ;;  %v4014_v28 = vpop.f32.mrb[79].mxu1  ;;  %v4376_v37 = vmax.f32 %v18688_v0, 0.0  ;;  %10511 = vmatpush1.bf16.msra.mxu0 %v20884_v3  ;;  %v18690_v39 = vadd.f32 %v3788_v34, %v23361_v29  ;;  %9947 = vmatprep.subr.bf16.mxu1 %v20889_v52  ;;  %v25225_v45 = vld [vmem:[#allocation49_spill] sm:$0xff]  ;;  %v25226_v49 = vld [vmem:[#allocation55_spill] sm:$0xff] }
 0x341   : > { %v4378_v19 = vmax.f32 %v18720_v2, 0.0  ;;  %v18722_v33 = vadd.f32 %v4014_v28, %v23364_v4  ;;  %v4389_v56 = vmax.f32 %v18689_v23, 0.0  ;;  %10468 = vmatmul.mubr.bf16.gmra.mrb[152].mxu0 %v25225_v45  ;;  %10512 = vmatprep.subr.bf16.mxu0 %v20892_v36  ;;  %v20893_v52 = vld [vmem:[#allocation6 + $0xd58] ss:$28 sps:$4 sm:$0xff]   ;;  %v20896_v2 = vld [vmem:[#allocation6 + $0x660] ss:$28 sps:$4 sm:$0xff]  }
 0x342   : > { %v4391_v7 = vmax.f32 %v18721_v42, 0.0  ;;  %v4390_v30 = vmax.f32 %v18690_v39, 0.0  ;;  %9903 = vmatmul.mubr.bf16.gmra.mrb[120].mxu1 %v23293_v13  ;;  %10477 = vmatprep.mubr.bf16.mxu0 %v25226_v49  ;;  %v20901_v23 = vld [vmem:[#allocation6 + $0xd94] ss:$28 sps:$4 sm:$0xff]   ;;  %v20904_v39 = vld [vmem:[#allocation6 + $0x69c] ss:$28 sps:$4 sm:$0xff]  }
 0x343   : > { %v4392_v44 = vmax.f32 %v18722_v33, 0.0  ;;  %v23438_v0 = vpack.c.bf16 %v4389_v56, %v4375_v8  ;;  %9912 = vmatprep.mubr.bf16.mxu1 %v23318_v55  ;;  %9948 = vmatpush1.bf16.msra.mxu1 %v20887_v38  ;;  %v20910_v55 = vld [vmem:[#allocation6 + $0x6d4] ss:$28 sps:$4 sm:$0xff]  }
 0x344   : > { %v23440_v3 = vpack.c.bf16 %v4391_v7, %v4377_v57  ;;  %v23443_v42 = vpack.c.bf16 %v4390_v30, %v4376_v37  ;;  %10513 = vmatpush1.bf16.msra.mxu0 %v20890_v18  ;;  %v3792_v36 = vpop.f32.mrb[80].mxu0  ;;  %9949 = vmatprep.subr.bf16.mxu1 %v20895_v54 }
 0x345   : > { %25227 = vst [vmem:[#allocation98_spill] sm:$0xff] %v23438_v0  ;;  %v23445_v34 = vpack.c.bf16 %v4392_v44, %v4378_v19  ;;  %v4018_v28 = vpop.f32.mrb[80].mxu1  ;;  %v18691_v56 = vadd.f32 %v3792_v36, %v23353_v53  ;;  %v3794_v8 = vpop.f32.mrb[81].mxu0  ;;  %10514 = vmatprep.subr.bf16.mxu0 %v20898_v31  ;;  %v20899_v19 = vld [vmem:[#allocation6 + $0xd90] ss:$28 sps:$4 sm:$0xff]  }
 0x346   : > { %25228 = vst [vmem:[#allocation99_spill] sm:$0xff] %v23440_v3  ;;  %25229 = vst [vmem:[#allocation100_spill] sm:$0xff] %v23443_v42  ;;  %v18723_v57 = vadd.f32 %v4018_v28, %v23356_v61  ;;  %v4020_v33 = vpop.f32.mrb[81].mxu1  ;;  %v18692_v38 = vadd.f32 %v3794_v8, %v23361_v29  ;;  %v3796_v37 = vpop.f32.mrb[82].mxu0  ;;  %v20902_v44 = vld [vmem:[#allocation6 + $0x698] ss:$28 sps:$4 sm:$0xff]  }
 0x347   : > { %25230 = vst [vmem:[#allocation101_spill] sm:$0xff] %v23445_v34  ;;  %v18724_v7 = vadd.f32 %v4020_v33, %v23364_v4  ;;  %v4022_v30 = vpop.f32.mrb[82].mxu1  ;;  %v4403_v18 = vmax.f32 %v18691_v56, 0.0  ;;  %v18693_v54 = vadd.f32 %v3796_v37, %v23353_v53  ;;  %9950 = vmatpush1.bf16.msra.mxu1 %v20893_v52  ;;  %v3798_v36 = vpop.f32.mrb[83].mxu0  ;;  %v20907_v3 = vld [vmem:[#allocation6 + $0xdcc] ss:$28 sps:$4 sm:$0xff]  }
 0x348   : > { %v4405_v49 = vmax.f32 %v18723_v57, 0.0  ;;  %v18725_v45 = vadd.f32 %v4022_v30, %v23356_v61  ;;  %v4024_v28 = vpop.f32.mrb[83].mxu1  ;;  %v4404_v34 = vmax.f32 %v18692_v38, 0.0  ;;  %10515 = vmatpush1.bf16.msra.mxu0 %v20896_v2  ;;  %v18694_v8 = vadd.f32 %v3798_v36, %v23361_v29  ;;  %9951 = vmatprep.subr.bf16.mxu1 %v20901_v23  ;;  %v25231_v57 = vld [vmem:[#allocation53_spill] sm:$0xff]  ;;  %v25232_v52 = vld [vmem:[#allocation28_spill] sm:$0xff] }
 0x349   : > { %v4406_v31 = vmax.f32 %v18724_v7, 0.0  ;;  %v18726_v33 = vadd.f32 %v4024_v28, %v23364_v4  ;;  %v4417_v13 = vmax.f32 %v18693_v54, 0.0  ;;  %10478 = vmatmul.mubr.bf16.gmra.mrb[156].mxu0 %v25231_v57  ;;  %10516 = vmatprep.subr.bf16.mxu0 %v20904_v39  ;;  %v25235_v7 = vld [vmem:[#allocation62_spill] sm:$0xff]  ;;  %v20908_v36 = vld [vmem:[#allocation6 + $0x6d0] ss:$28 sps:$4 sm:$0xff]  }
 0x34a   : > { %v4419_v56 = vmax.f32 %v18725_v45, 0.0  ;;  %v4418_v37 = vmax.f32 %v18694_v8, 0.0  ;;  %9913 = vmatmul.mubr.bf16.gmra.mrb[124].mxu1 %v23313_v59  ;;  %10520 = vmatprep.mubr.bf16.mxu0 %v25232_v52  ;;  %v20905_v23 = vld [vmem:[#allocation6 + $0xdc8] ss:$28 sps:$4 sm:$0xff]  }
 0x34b   : > { %v4420_v30 = vmax.f32 %v18726_v33, 0.0  ;;  %v23458_v38 = vpack.c.bf16 %v4417_v13, %v4403_v18  ;;  %9952 = vmatpush1.bf16.msra.mxu1 %v20899_v19  ;;  %9955 = vmatprep.mubr.bf16.mxu1 %v25235_v7  ;;  %v20913_v54 = vld [vmem:[#allocation6 + $0xe04] ss:$28 sps:$4 sm:$0xff]   ;;  %v20916_v33 = vld [vmem:[#allocation6 + $0x70c] ss:$28 sps:$4 sm:$0xff]  }
 0x34c   : > { %v23460_v2 = vpack.c.bf16 %v4419_v56, %v4405_v49  ;;  %v23463_v45 = vpack.c.bf16 %v4418_v37, %v4404_v34  ;;  %10517 = vmatpush1.bf16.msra.mxu0 %v20902_v44  ;;  %v3802_v39 = vpop.f32.mrb[84].mxu0  ;;  %9953 = vmatprep.subr.bf16.mxu1 %v20907_v3  ;;  %v20922_v59 = vld [vmem:[#allocation6 + $0x744] ss:$28 sps:$4 sm:$0xff]  }
 0x34d   : > { %25233 = vst [vmem:[#allocation102_spill] sm:$0xff] %v23458_v38  ;;  %v23465_v28 = vpack.c.bf16 %v4420_v30, %v4406_v31  ;;  %v4028_v8 = vpop.f32.mrb[84].mxu1  ;;  %v18695_v13 = vadd.f32 %v3802_v39, %v23353_v53  ;;  %v3804_v18 = vpop.f32.mrb[85].mxu0  ;;  %10518 = vmatprep.subr.bf16.mxu0 %v20910_v55  ;;  %v20911_v31 = vld [vmem:[#allocation6 + $0xe00] ss:$28 sps:$4 sm:$0xff]  }
 0x34e   : > { %25234 = vst [vmem:[#allocation103_spill] sm:$0xff] %v23460_v2  ;;  %25236 = vst [vmem:[#allocation104_spill] sm:$0xff] %v23463_v45  ;;  %v18727_v49 = vadd.f32 %v4028_v8, %v23356_v61  ;;  %v4030_v19 = vpop.f32.mrb[85].mxu1  ;;  %v18696_v56 = vadd.f32 %v3804_v18, %v23361_v29  ;;  %v3806_v34 = vpop.f32.mrb[86].mxu0  ;;  %v20914_v8 = vld [vmem:[#allocation6 + $0x708] ss:$28 sps:$4 sm:$0xff]  }
 0x34f   : > { %25237 = vst [vmem:[#allocation105_spill] sm:$0xff] %v23465_v28  ;;  %v18728_v52 = vadd.f32 %v4030_v19, %v23364_v4  ;;  %v4032_v37 = vpop.f32.mrb[86].mxu1  ;;  %v4431_v30 = vmax.f32 %v18695_v13, 0.0  ;;  %v18697_v57 = vadd.f32 %v3806_v34, %v23353_v53  ;;  %9954 = vmatpush1.bf16.msra.mxu1 %v20905_v23  ;;  %v3808_v39 = vpop.f32.mrb[87].mxu0  ;;  %v20919_v28 = vld [vmem:[#allocation6 + $0xe3c] ss:$28 sps:$4 sm:$0xff]  }
 0x350   : > { %v4433_v44 = vmax.f32 %v18727_v49, 0.0  ;;  %v18729_v3 = vadd.f32 %v4032_v37, %v23356_v61  ;;  %v4034_v2 = vpop.f32.mrb[87].mxu1  ;;  %v4432_v7 = vmax.f32 %v18696_v56, 0.0  ;;  %10519 = vmatpush1.bf16.msra.mxu0 %v20908_v36  ;;  %v18698_v18 = vadd.f32 %v3808_v39, %v23361_v29  ;;  %10036 = vmatprep.subr.bf16.mxu1 %v20913_v54  ;;  %v25238_v37 = vld [vmem:[#allocation60_spill] sm:$0xff]  ;;  %v20920_v56 = vld [vmem:[#allocation6 + $0x740] ss:$28 sps:$4 sm:$0xff]  }
 0x351   : > { %v4434_v55 = vmax.f32 %v18728_v52, 0.0  ;;  %v18730_v19 = vadd.f32 %v4034_v2, %v23364_v4  ;;  %v4445_v13 = vmax.f32 %v18697_v57, 0.0  ;;  %10601 = vmatprep.subr.bf16.mxu0 %v20916_v33  ;;  %v25241_v52 = vld [vmem:[#allocation66_spill] sm:$0xff]  ;;  %v20917_v36 = vld [vmem:[#allocation6 + $0xe38] ss:$28 sps:$4 sm:$0xff]  }
 0x352   : > { %v4447_v49 = vmax.f32 %v18729_v3, 0.0  ;;  %v4446_v34 = vmax.f32 %v18698_v18, 0.0  ;;  %9956 = vmatmul.mubr.bf16.vlgmr.msra.gmra.mrb[96].mxu1 %v25238_v37  ;;  %v25244_v57 = vld [vmem:[#allocation32_spill] sm:$0xff] }
 0x353   : > { %v4448_v14 = vmax.f32 %v18730_v19, 0.0  ;;  %v23476_v23 = vpack.c.bf16 %v4445_v13, %v4431_v30  ;;  %10521 = vmatmul.mubr.bf16.vlgmr.msra.gmra.mrb[128].mxu0 %v22980_v1  ;;  %9965 = vmatprep.mubr.bf16.mxu1 %v25241_v52  ;;  %v20925_v39 = vld [vmem:[#allocation6 + $0xe74] ss:$28 sps:$4 sm:$0xff]   ;;  %v20928_v30 = vld [vmem:[#allocation6 + $0x77c] ss:$28 sps:$4 sm:$0xff]  }
 0x354   : > { %v23478_v38 = vpack.c.bf16 %v4447_v49, %v4433_v44  ;;  %v23482_v2 = vpack.c.bf16 %v4446_v34, %v4432_v7  ;;  %10037 = vmatpush1.bf16.msra.mxu1 %v20911_v31  ;;  %10530 = vmatprep.mubr.bf16.mxu0 %v25244_v57  ;;  %v3812_v33 = vpop.f32.mrb[88].mxu0  ;;  %v20923_v1 = vld [vmem:[#allocation6 + $0xe70] ss:$28 sps:$4 sm:$0xff]  }
 0x355   : > { %25239 = vst [vmem:[#allocation106_spill] sm:$0xff] %v23476_v23  ;;  %v23484_v54 = vpack.c.bf16 %v4448_v14, %v4434_v55  ;;  %v4038_v3 = vpop.f32.mrb[88].mxu1  ;;  %10602 = vmatpush1.bf16.msra.mxu0 %v20914_v8  ;;  %v18699_v44 = vadd.f32 %v3812_v33, %v23353_v53  ;;  %v3814_v19 = vpop.f32.mrb[89].mxu0  ;;  %10038 = vmatprep.subr.bf16.mxu1 %v20919_v28  ;;  %v20926_v33 = vld [vmem:[#allocation6 + $0x778] ss:$28 sps:$4 sm:$0xff]  }
 0x356   : > { %25240 = vst [vmem:[#allocation107_spill] sm:$0xff] %v23478_v38  ;;  %25242 = vst [vmem:[#allocation108_spill] sm:$0xff] %v23482_v2  ;;  %v18731_v18 = vadd.f32 %v4038_v3, %v23356_v61  ;;  %v4040_v13 = vpop.f32.mrb[89].mxu1  ;;  %v18700_v7 = vadd.f32 %v3814_v19, %v23361_v29  ;;  %10603 = vmatprep.subr.bf16.mxu0 %v20922_v59  ;;  %v3816_v31 = vpop.f32.mrb[90].mxu0  ;;  %v25245_v2 = vld [vmem:[#allocation64_spill] sm:$0xff] }
 0x357   : > { %25243 = vst [vmem:[#allocation109_spill] sm:$0xff] %v23484_v54  ;;  %v18732_v14 = vadd.f32 %v4040_v13, %v23364_v4  ;;  %v4042_v55 = vpop.f32.mrb[90].mxu1  ;;  %v18701_v49 = vadd.f32 %v3816_v31, %v23353_v53  ;;  %v3818_v57 = vpop.f32.mrb[91].mxu0  ;;  %v4459_v38 = vmax.f32 %v18699_v44, 0.0  ;;  %v20931_v54 = vld [vmem:[#allocation6 + $0xeac] ss:$28 sps:$4 sm:$0xff]  }
 0x358   : > { %v18733_v34 = vadd.f32 %v4042_v55, %v23356_v61  ;;  %v4044_v8 = vpop.f32.mrb[91].mxu1  ;;  %v4461_v3 = vmax.f32 %v18731_v18, 0.0  ;;  %10039 = vmatpush1.bf16.msra.mxu1 %v20917_v36  ;;  %v18702_v28 = vadd.f32 %v3818_v57, %v23361_v29  ;;  %v20934_v13 = vld [vmem:[#allocation6 + $0x7b4] ss:$28 sps:$4 sm:$0xff]   ;;  %v4460_v59 = vmax.f32 %v18700_v7, 0.0  ;;  %v25248_v57 = vld [vmem:[#allocation70_spill] sm:$0xff] }
 0x359   : > { %v18734_v19 = vadd.f32 %v4044_v8, %v23364_v4  ;;  %v4462_v52 = vmax.f32 %v18732_v14, 0.0  ;;  %v4473_v37 = vmax.f32 %v18701_v49, 0.0  ;;  %10604 = vmatpush1.bf16.msra.mxu0 %v20920_v56  ;;  %10040 = vmatprep.subr.bf16.mxu1 %v20925_v39  ;;  %v20929_v14 = vld [vmem:[#allocation6 + $0xea8] ss:$28 sps:$4 sm:$0xff]   ;;  %v20932_v49 = vld [vmem:[#allocation6 + $0x7b0] ss:$28 sps:$4 sm:$0xff]  }
 0x35a   : > { %v4475_v23 = vmax.f32 %v18733_v34, 0.0  ;;  %v4474_v31 = vmax.f32 %v18702_v28, 0.0  ;;  %9966 = vmatmul.mubr.bf16.gmra.mrb[100].mxu1 %v25245_v2  ;;  %10605 = vmatprep.subr.bf16.mxu0 %v20928_v30  ;;  %v20937_v34 = vld [vmem:[#allocation6 + $0xee4] ss:$28 sps:$4 sm:$0xff]   ;;  %v20940_v8 = vld [vmem:[#allocation6 + $0x7ec] ss:$28 sps:$4 sm:$0xff]  }
 0x35b   : > { %v4476_v55 = vmax.f32 %v18734_v19, 0.0  ;;  %v23496_v44 = vpack.c.bf16 %v4473_v37, %v4459_v38  ;;  %10531 = vmatmul.mubr.bf16.gmra.mrb[132].mxu0 %v22998_v43  ;;  %9975 = vmatprep.mubr.bf16.mxu1 %v25248_v57  ;;  %v20943_v43 = vld [vmem:[#allocation6 + $0xf1c] ss:$28 sps:$4 sm:$0xff]  }
 0x35c   : > { %v23498_v36 = vpack.c.bf16 %v4475_v23, %v4461_v3  ;;  %v23502_v18 = vpack.c.bf16 %v4474_v31, %v4460_v59  ;;  %10041 = vmatpush1.bf16.msra.mxu1 %v20923_v1  ;;  %10540 = vmatprep.mubr.bf16.mxu0 %v23020_v22  ;;  %v3822_v56 = vpop.f32.mrb[92].mxu0 }
 0x35d   : > { %25246 = vst [vmem:[#allocation110_spill] sm:$0xff] %v23496_v44  ;;  %v23504_v7 = vpack.c.bf16 %v4476_v55, %v4462_v52  ;;  %v4048_v39 = vpop.f32.mrb[92].mxu1  ;;  %10606 = vmatpush1.bf16.msra.mxu0 %v20926_v33  ;;  %v18703_v38 = vadd.f32 %v3822_v56, %v23353_v53  ;;  %v3824_v23 = vpop.f32.mrb[93].mxu0  ;;  %10042 = vmatprep.subr.bf16.mxu1 %v20931_v54  ;;  %v20935_v55 = vld [vmem:[#allocation6 + $0xee0] ss:$28 sps:$4 sm:$0xff]  }
 0x35e   : > { %25247 = vst [vmem:[#allocation111_spill] sm:$0xff] %v23498_v36  ;;  %25249 = vst [vmem:[#allocation112_spill] sm:$0xff] %v23502_v18  ;;  %v18735_v37 = vadd.f32 %v4048_v39, %v23356_v61  ;;  %v4050_v30 = vpop.f32.mrb[93].mxu1  ;;  %v18704_v52 = vadd.f32 %v3824_v23, %v23361_v29  ;;  %10607 = vmatprep.subr.bf16.mxu0 %v20934_v13  ;;  %v3826_v3 = vpop.f32.mrb[94].mxu0  ;;  %v20938_v56 = vld [vmem:[#allocation6 + $0x7e8] ss:$28 sps:$4 sm:$0xff]  }
 0x35f   : > { %25250 = vst [vmem:[#allocation113_spill] sm:$0xff] %v23504_v7  ;;  %v18736_v1 = vadd.f32 %v4050_v30, %v23364_v4  ;;  %v4052_v28 = vpop.f32.mrb[94].mxu1  ;;  %v18705_v19 = vadd.f32 %v3826_v3, %v23353_v53  ;;  %v3828_v59 = vpop.f32.mrb[95].mxu0  ;;  %v4487_v39 = vmax.f32 %v18703_v38, 0.0  ;;  %v20946_v30 = vld [vmem:[#allocation6 + $0x824] ss:$28 sps:$4 sm:$0xff]  }
 0x360   : > { %v18737_v33 = vadd.f32 %v4052_v28, %v23356_v61  ;;  %v4054_v31 = vpop.f32.mrb[95].mxu1  ;;  %v4489_v22 = vmax.f32 %v18735_v37, 0.0  ;;  %10043 = vmatpush1.bf16.msra.mxu1 %v20929_v14  ;;  %v18706_v54 = vadd.f32 %v3828_v59, %v23361_v29  ;;  %v4488_v13 = vmax.f32 %v18704_v52, 0.0  ;;  %v25251_v3 = vld [vmem:[#allocation68_spill] sm:$0xff]  ;;  %v25254_v29 = vld [vmem:[#allocation74_spill] sm:$0xff] }
 0x361   : > { %v18738_v23 = vadd.f32 %v4054_v31, %v23364_v4  ;;  %v4490_v36 = vmax.f32 %v18736_v1, 0.0  ;;  %v4501_v7 = vmax.f32 %v18705_v19, 0.0  ;;  %10608 = vmatpush1.bf16.msra.mxu0 %v20932_v49  ;;  %10044 = vmatprep.subr.bf16.mxu1 %v20937_v34  ;;  %v20941_v49 = vld [vmem:[#allocation6 + $0xf18] ss:$28 sps:$4 sm:$0xff]   ;;  %v20944_v34 = vld [vmem:[#allocation6 + $0x820] ss:$28 sps:$4 sm:$0xff]  }
 0x362   : > { %v4503_v57 = vmax.f32 %v18737_v33, 0.0  ;;  %v4502_v53 = vmax.f32 %v18706_v54, 0.0  ;;  %9976 = vmatmul.mubr.bf16.gmra.mrb[104].mxu1 %v25251_v3  ;;  %10609 = vmatprep.subr.bf16.mxu0 %v20940_v8  ;;  %v20949_v52 = vld [vmem:[#allocation6 + $0xf54] ss:$28 sps:$4 sm:$0xff]   ;;  %v20955_v8 = vld [vmem:[#allocation6 + $0xf8c] ss:$28 sps:$4 sm:$0xff]  }
 0x363   : > { %v4504_v61 = vmax.f32 %v18738_v23, 0.0  ;;  %v23516_v38 = vpack.c.bf16 %v4501_v7, %v4487_v39  ;;  %10541 = vmatmul.mubr.bf16.gmra.mrb[136].mxu0 %v23016_v21  ;;  %9985 = vmatprep.mubr.bf16.mxu1 %v25254_v29  ;;  %v20952_v7 = vld [vmem:[#allocation6 + $0x85c] ss:$28 sps:$4 sm:$0xff]   ;;  %v20958_v1 = vld [vmem:[#allocation6 + $0x894] ss:$28 sps:$4 sm:$0xff]   ;;  %v25260_v23 = vld [vmem:[#allocation82_spill] sm:$0xff] }
 0x364   : > { %v23518_v14 = vpack.c.bf16 %v4503_v57, %v4489_v22  ;;  %v23522_v4 = vpack.c.bf16 %v4502_v53, %v4488_v13  ;;  %10045 = vmatpush1.bf16.msra.mxu1 %v20935_v55  ;;  %10550 = vmatprep.mubr.bf16.mxu0 %v23038_v60  ;;  %v20947_v22 = vld [vmem:[#allocation6 + $0xf50] ss:$28 sps:$4 sm:$0xff]   ;;  %v20950_v57 = vld [vmem:[#allocation6 + $0x858] ss:$28 sps:$4 sm:$0xff]   ;;  %v20961_v33 = vld [vmem:[#allocation6 + $0xfc4] ss:$28 sps:$4 sm:$0xff]  }
 0x365   : > { %25252 = vst [vmem:[#allocation68_spill] sm:$0xff] %v23516_v38  ;;  %v23524_v37 = vpack.c.bf16 %v4504_v61, %v4490_v36  ;;  %10610 = vmatpush1.bf16.msra.mxu0 %v20938_v56  ;;  %10046 = vmatprep.subr.bf16.mxu1 %v20943_v43  ;;  %v25257_v28 = vld [vmem:[#allocation72_spill] sm:$0xff]  ;;  %v25258_v36 = vld [vmem:[#allocation78_spill] sm:$0xff]  ;;  %v20964_v59 = vld [vmem:[#allocation6 + $0x8cc] ss:$28 sps:$4 sm:$0xff]  }
 0x366   : > { %25253 = vst [vmem:[#allocation114_spill] sm:$0xff] %v23518_v14  ;;  %25255 = vst [vmem:[#allocation74_spill] sm:$0xff] %v23522_v4  ;;  %10611 = vmatprep.subr.bf16.mxu0 %v20946_v30  ;;  %v20953_v43 = vld [vmem:[#allocation6 + $0xf88] ss:$28 sps:$4 sm:$0xff]   ;;  %v20956_v19 = vld [vmem:[#allocation6 + $0x890] ss:$28 sps:$4 sm:$0xff]  }
 0x367   : > { %25256 = vst [vmem:[#allocation115_spill] sm:$0xff] %v23524_v37  ;;  %v20959_v31 = vld [vmem:[#allocation6 + $0xfc0] ss:$28 sps:$4 sm:$0xff]   ;;  %v20962_v55 = vld [vmem:[#allocation6 + $0x8c8] ss:$28 sps:$4 sm:$0xff]   ;;  %v25259_v54 = vld [vmem:[#allocation76_spill] sm:$0xff] }
 0x368   : > { %10047 = vmatpush1.bf16.msra.mxu1 %v20941_v49  ;;  %v20967_v56 = vld [vmem:[#allocation6 + $0xffc] ss:$28 sps:$4 sm:$0xff]   ;;  %v20970_v39 = vld [vmem:[#allocation6 + $0x904] ss:$28 sps:$4 sm:$0xff]   ;;  %v20973_v53 = vld [vmem:[#allocation6 + $0x1034] ss:$28 sps:$4 sm:$0xff]  }
 0x369   : > { %10612 = vmatpush1.bf16.msra.mxu0 %v20944_v34  ;;  %10048 = vmatprep.subr.bf16.mxu1 %v20949_v52  ;;  %v20965_v30 = vld [vmem:[#allocation6 + $0xff8] ss:$28 sps:$4 sm:$0xff]   ;;  %v20968_v13 = vld [vmem:[#allocation6 + $0x900] ss:$28 sps:$4 sm:$0xff]   ;;  %v20971_v49 = vld [vmem:[#allocation6 + $0x1030] ss:$28 sps:$4 sm:$0xff]  }
 0x36a   : > { %9986 = vmatmul.mubr.bf16.gmra.mrb[108].mxu1 %v25257_v28  ;;  %10613 = vmatprep.subr.bf16.mxu0 %v20952_v7  ;;  %v20976_v61 = vld [vmem:[#allocation6 + $0x93c] ss:$28 sps:$4 sm:$0xff]   ;;  %v20979_v52 = vld [vmem:[#allocation6 + $0x106c] ss:$28 sps:$4 sm:$0xff]   ;;  %v20982_v7 = vld [vmem:[#allocation6 + $0x974] ss:$28 sps:$4 sm:$0xff]  }
 0x36b   : > { %10551 = vmatmul.mubr.bf16.gmra.mrb[140].mxu0 %v23034_v58  ;;  %9995 = vmatprep.mubr.bf16.mxu1 %v25258_v36  ;;  %v20974_v34 = vld [vmem:[#allocation6 + $0x938] ss:$28 sps:$4 sm:$0xff]  }
 0x36c   : > { %10049 = vmatpush1.bf16.msra.mxu1 %v20947_v22  ;;  %10560 = vmatprep.mubr.bf16.mxu0 %v23057_v46  ;;  %v25261_v22 = vld [vmem:[#allocation80_spill] sm:$0xff] }
 0x36d   : > { %10614 = vmatpush1.bf16.msra.mxu0 %v20950_v57  ;;  %10050 = vmatprep.subr.bf16.mxu1 %v20955_v8  ;;  %v25262_v57 = vld [vmem:[#allocation86_spill] sm:$0xff] }
 0x36e   : > { %10615 = vmatprep.subr.bf16.mxu0 %v20958_v1  ;;  %v20977_v8 = vld [vmem:[#allocation6 + $0x1068] ss:$28 sps:$4 sm:$0xff]   ;;  %v20980_v1 = vld [vmem:[#allocation6 + $0x970] ss:$28 sps:$4 sm:$0xff]  }
 0x370   : > { %10051 = vmatpush1.bf16.msra.mxu1 %v20953_v43  ;;  %v20985_v43 = vld [vmem:[#allocation6 + $0x10a4] ss:$28 sps:$4 sm:$0xff]  }
 0x371   : > { %10616 = vmatpush1.bf16.msra.mxu0 %v20956_v19  ;;  %10052 = vmatprep.subr.bf16.mxu1 %v20961_v33  ;;  %v20988_v19 = vld [vmem:[#allocation6 + $0x9ac] ss:$28 sps:$4 sm:$0xff]   ;;  %v20983_v33 = vld [vmem:[#allocation6 + $0x10a0] ss:$28 sps:$4 sm:$0xff]  }
 0x372   : > { %9996 = vmatmul.mubr.bf16.gmra.mrb[112].mxu1 %v25259_v54  ;;  %10617 = vmatprep.subr.bf16.mxu0 %v20964_v59  ;;  %v20986_v59 = vld [vmem:[#allocation6 + $0x9a8] ss:$28 sps:$4 sm:$0xff]  }
 0x373   : > { %10561 = vmatmul.mubr.bf16.gmra.mrb[144].mxu0 %v23053_v40  ;;  %10005 = vmatprep.mubr.bf16.mxu1 %v25260_v23 }
 0x374   : > { %10053 = vmatpush1.bf16.msra.mxu1 %v20959_v31  ;;  %10570 = vmatprep.mubr.bf16.mxu0 %v23074_v51  ;;  %v20991_v31 = vld [vmem:[#allocation6 + $0x10dc] ss:$28 sps:$4 sm:$0xff]  }
 0x375   : > { %10618 = vmatpush1.bf16.msra.mxu0 %v20962_v55  ;;  %10054 = vmatprep.subr.bf16.mxu1 %v20967_v56  ;;  %v20994_v55 = vld [vmem:[#allocation6 + $0x9e4] ss:$28 sps:$4 sm:$0xff]   ;;  %v25263_v56 = vld [vmem:[#allocation84_spill] sm:$0xff] }
 0x376   : > { %10619 = vmatprep.subr.bf16.mxu0 %v20970_v39  ;;  %v20989_v39 = vld [vmem:[#allocation6 + $0x10d8] ss:$28 sps:$4 sm:$0xff]  }
 0x378   : > { %10055 = vmatpush1.bf16.msra.mxu1 %v20965_v30  ;;  %v20992_v30 = vld [vmem:[#allocation6 + $0x9e0] ss:$28 sps:$4 sm:$0xff]  }
 0x379   : > { %10620 = vmatpush1.bf16.msra.mxu0 %v20968_v13  ;;  %10056 = vmatprep.subr.bf16.mxu1 %v20973_v53  ;;  %v20997_v13 = vld [vmem:[#allocation6 + $0x1114] ss:$28 sps:$4 sm:$0xff]   ;;  %v21000_v53 = vld [vmem:[#allocation6 + $0xa1c] ss:$28 sps:$4 sm:$0xff]  }
 0x37a   : > { %10006 = vmatmul.mubr.bf16.gmra.mrb[116].mxu1 %v25261_v22  ;;  %10621 = vmatprep.subr.bf16.mxu0 %v20976_v61  ;;  %v20995_v61 = vld [vmem:[#allocation6 + $0x1110] ss:$28 sps:$4 sm:$0xff]  }
 0x37b   : > { %10571 = vmatmul.mubr.bf16.gmra.mrb[148].mxu0 %v23070_v47  ;;  %10015 = vmatprep.mubr.bf16.mxu1 %v25262_v57 }
 0x37c   : > { %10057 = vmatpush1.bf16.msra.mxu1 %v20971_v49  ;;  %10580 = vmatprep.mubr.bf16.mxu0 %v23093_v6  ;;  %v20998_v49 = vld [vmem:[#allocation6 + $0xa18] ss:$28 sps:$4 sm:$0xff]  }
 0x37d   : > { %10622 = vmatpush1.bf16.msra.mxu0 %v20974_v34  ;;  %10058 = vmatprep.subr.bf16.mxu1 %v20979_v52  ;;  %v21003_v34 = vld [vmem:[#allocation6 + $0x114c] ss:$28 sps:$4 sm:$0xff]   ;;  %v21006_v52 = vld [vmem:[#allocation6 + $0xa54] ss:$28 sps:$4 sm:$0xff]  }
 0x37e   : > { %10623 = vmatprep.subr.bf16.mxu0 %v20982_v7  ;;  %v21001_v7 = vld [vmem:[#allocation6 + $0x1148] ss:$28 sps:$4 sm:$0xff]  }
 0x380   : > { %10059 = vmatpush1.bf16.msra.mxu1 %v20977_v8  ;;  %v21004_v8 = vld [vmem:[#allocation6 + $0xa50] ss:$28 sps:$4 sm:$0xff]  }
 0x381   : > { %10624 = vmatpush1.bf16.msra.mxu0 %v20980_v1  ;;  %10060 = vmatprep.subr.bf16.mxu1 %v20985_v43  ;;  %v21009_v1 = vld [vmem:[#allocation6 + $0x1184] ss:$28 sps:$4 sm:$0xff]   ;;  %v21012_v43 = vld [vmem:[#allocation6 + $0xa8c] ss:$28 sps:$4 sm:$0xff]  }
 0x382   : > { %10016 = vmatmul.mubr.bf16.gmra.mrb[120].mxu1 %v25263_v56  ;;  %10625 = vmatprep.subr.bf16.mxu0 %v20988_v19  ;;  %v21007_v19 = vld [vmem:[#allocation6 + $0x1180] ss:$28 sps:$4 sm:$0xff]  }
 0x383   : > { %10581 = vmatmul.mubr.bf16.gmra.mrb[152].mxu0 %v23089_v62  ;;  %10025 = vmatprep.mubr.bf16.mxu1 %v23320_v11  ;;  %v25274_v62 = vld [vmem:[#allocation106_spill] sm:$0xff] }
 0x384   : > { %10061 = vmatpush1.bf16.msra.mxu1 %v20983_v33  ;;  %10590 = vmatprep.mubr.bf16.mxu0 %v23112_v63  ;;  %v21010_v33 = vld [vmem:[#allocation6 + $0xa88] ss:$28 sps:$4 sm:$0xff]  }
 0x385   : > { %10626 = vmatpush1.bf16.msra.mxu0 %v20986_v59  ;;  %10062 = vmatprep.subr.bf16.mxu1 %v20991_v31  ;;  %v21015_v59 = vld [vmem:[#allocation6 + $0x11bc] ss:$28 sps:$4 sm:$0xff]   ;;  %v21018_v31 = vld [vmem:[#allocation6 + $0xac4] ss:$28 sps:$4 sm:$0xff]  }
 0x386   : > { %10627 = vmatprep.subr.bf16.mxu0 %v20994_v55  ;;  %v21013_v55 = vld [vmem:[#allocation6 + $0x11b8] ss:$28 sps:$4 sm:$0xff]  }
 0x388   : > { %10063 = vmatpush1.bf16.msra.mxu1 %v20989_v39  ;;  %v21016_v39 = vld [vmem:[#allocation6 + $0xac0] ss:$28 sps:$4 sm:$0xff]  }
 0x389   : > { %10628 = vmatpush1.bf16.msra.mxu0 %v20992_v30  ;;  %10064 = vmatprep.subr.bf16.mxu1 %v20997_v13  ;;  %v21021_v30 = vld [vmem:[#allocation6 + $0x11f4] ss:$28 sps:$4 sm:$0xff]   ;;  %v21024_v13 = vld [vmem:[#allocation6 + $0xafc] ss:$28 sps:$4 sm:$0xff]  }
 0x38a   : > { %10026 = vmatmul.mubr.bf16.gmra.mrb[124].mxu1 %v23315_v17  ;;  %10629 = vmatprep.subr.bf16.mxu0 %v21000_v53  ;;  %v21019_v53 = vld [vmem:[#allocation6 + $0x11f0] ss:$28 sps:$4 sm:$0xff]  }
 0x38b   : > { %10591 = vmatmul.mubr.bf16.gmra.mrb[156].mxu0 %v23108_v26  ;;  %10068 = vmatprep.mubr.bf16.mxu1 %v23383_v41 }
 0x38c   : > { %10065 = vmatpush1.bf16.msra.mxu1 %v20995_v61  ;;  %10633 = vmatprep.mubr.bf16.mxu0 %v23179_v20  ;;  %v21022_v61 = vld [vmem:[#allocation6 + $0xaf8] ss:$28 sps:$4 sm:$0xff]  }
 0x38d   : > { %10630 = vmatpush1.bf16.msra.mxu0 %v20998_v49  ;;  %10066 = vmatprep.subr.bf16.mxu1 %v21003_v34  ;;  %v21027_v49 = vld [vmem:[#allocation6 + $0x122c] ss:$28 sps:$4 sm:$0xff]   ;;  %v21030_v34 = vld [vmem:[#allocation6 + $0xb34] ss:$28 sps:$4 sm:$0xff]  }
 0x38e   : > { %10631 = vmatprep.subr.bf16.mxu0 %v21006_v52  ;;  %v21025_v52 = vld [vmem:[#allocation6 + $0x1228] ss:$28 sps:$4 sm:$0xff]  }
 0x390   : > { %10067 = vmatpush1.bf16.msra.mxu1 %v21001_v7  ;;  %v21028_v7 = vld [vmem:[#allocation6 + $0xb30] ss:$28 sps:$4 sm:$0xff]  }
 0x391   : > { %10632 = vmatpush1.bf16.msra.mxu0 %v21004_v8  ;;  %10149 = vmatprep.subr.bf16.mxu1 %v21009_v1  ;;  %v21033_v8 = vld [vmem:[#allocation6 + $0x1264] ss:$28 sps:$4 sm:$0xff]   ;;  %v21036_v1 = vld [vmem:[#allocation6 + $0xb6c] ss:$28 sps:$4 sm:$0xff]  }
 0x392   : > { %10714 = vmatprep.subr.bf16.mxu0 %v21012_v43  ;;  %v21031_v43 = vld [vmem:[#allocation6 + $0x1260] ss:$28 sps:$4 sm:$0xff]  }
 0x393   : > { %10069 = vmatmul.mubr.bf16.vlgmr.msra.gmra.mrb[96].mxu1 %v23378_v35 }
 0x394   : > { %10634 = vmatmul.mubr.bf16.vlgmr.msra.gmra.mrb[128].mxu0 %v23175_v25  ;;  %10078 = vmatprep.mubr.bf16.mxu1 %v23403_v5  ;;  %v25268_v25 = vld [vmem:[#allocation102_spill] sm:$0xff] }
 0x395   : > { %10150 = vmatpush1.bf16.msra.mxu1 %v21007_v19  ;;  %10643 = vmatprep.mubr.bf16.mxu0 %v23199_v50  ;;  %v21034_v19 = vld [vmem:[#allocation6 + $0xb68] ss:$28 sps:$4 sm:$0xff]   ;;  %v21054_v50 = vld [vmem:[#allocation6 + $0xc14] ss:$28 sps:$4 sm:$0xff]  }
 0x396   : > { %10715 = vmatpush1.bf16.msra.mxu0 %v21010_v33  ;;  %10151 = vmatprep.subr.bf16.mxu1 %v21015_v59  ;;  %v21039_v33 = vld [vmem:[#allocation6 + $0x129c] ss:$28 sps:$4 sm:$0xff]  }
 0x397   : > { %10716 = vmatprep.subr.bf16.mxu0 %v21018_v31  ;;  %v22276_v59 = vld [vmem:[#allocation4 + $0x8] sm:$0x3f] }
 0x398   : > { %v25264_v31 = vld [vmem:[#allocation57_spill] sm:$0xff] }
 0x399   : > { %10152 = vmatpush1.bf16.msra.mxu1 %v21013_v55  ;;  %v23556_v55 = vrot.slane %v22276_v59, %v25264_v31 }
 0x39a   : > { %10717 = vmatpush1.bf16.msra.mxu0 %v21016_v39  ;;  %10153 = vmatprep.subr.bf16.mxu1 %v21021_v30  ;;  %v21042_v39 = vld [vmem:[#allocation6 + $0xba4] ss:$28 sps:$4 sm:$0xff]  }
 0x39b   : > { %10079 = vmatmul.mubr.bf16.gmra.mrb[100].mxu1 %v23398_v16  ;;  %10718 = vmatprep.subr.bf16.mxu0 %v21024_v13  ;;  %v25265_v30 = vld [vmem:[#allocation58_spill] sm:$0xff] }
 0x39c   : > { %10644 = vmatmul.mubr.bf16.gmra.mrb[132].mxu0 %v23195_v15  ;;  %10088 = vmatprep.mubr.bf16.mxu1 %v23423_v24  ;;  %v23559_v13 = vrot.slane %v22276_v59, %v25265_v30  ;;  %v21048_v59 = vld [vmem:[#allocation6 + $0xbdc] ss:$28 sps:$4 sm:$0xff]  }
 0x39d   : > { %10154 = vmatpush1.bf16.msra.mxu1 %v21019_v53  ;;  %10653 = vmatprep.mubr.bf16.mxu0 %v23219_v32  ;;  %v21051_v32 = vld [vmem:[#allocation6 + $0x130c] ss:$28 sps:$4 sm:$0xff]  }
 0x39e   : > { %10719 = vmatpush1.bf16.msra.mxu0 %v21022_v61  ;;  %10155 = vmatprep.subr.bf16.mxu1 %v21027_v49 }
 0x39f   : > { %10720 = vmatprep.subr.bf16.mxu0 %v21030_v34  ;;  %v21037_v34 = vld [vmem:[#allocation6 + $0x1298] ss:$28 sps:$4 sm:$0xff]  }
 0x3a1   : > { %10156 = vmatpush1.bf16.msra.mxu1 %v21025_v52  ;;  %v21040_v52 = vld [vmem:[#allocation6 + $0xba0] ss:$28 sps:$4 sm:$0xff]  }
 0x3a2   : > { %10721 = vmatpush1.bf16.msra.mxu0 %v21028_v7  ;;  %10157 = vmatprep.subr.bf16.mxu1 %v21033_v8  ;;  %v21045_v8 = vld [vmem:[#allocation6 + $0x12d4] ss:$28 sps:$4 sm:$0xff]  }
 0x3a3   : > { %10089 = vmatmul.mubr.bf16.gmra.mrb[104].mxu1 %v23418_v12  ;;  %10722 = vmatprep.subr.bf16.mxu0 %v21036_v1 }
 0x3a4   : > { %10654 = vmatmul.mubr.bf16.gmra.mrb[136].mxu0 %v23215_v9  ;;  %10098 = vmatprep.mubr.bf16.mxu1 %v23443_v42  ;;  %v4204_v53 = vpop.f32.mrb[96].mxu0  ;;  %v21043_v9 = vld [vmem:[#allocation6 + $0x12d0] ss:$28 sps:$4 sm:$0xff]  }
 0x3a5   : > { %10158 = vmatpush1.bf16.msra.mxu1 %v21031_v43  ;;  %10663 = vmatprep.mubr.bf16.mxu0 %v23239_v10  ;;  %v18739_v61 = vadd.f32 %v4204_v53, %v23556_v55  ;;  %v4206_v49 = vpop.f32.mrb[97].mxu0  ;;  %v21046_v43 = vld [vmem:[#allocation6 + $0xbd8] ss:$28 sps:$4 sm:$0xff]  }
 0x3a6   : > { %10723 = vmatpush1.bf16.msra.mxu0 %v21034_v19  ;;  %10159 = vmatprep.subr.bf16.mxu1 %v21039_v33  ;;  %v4208_v7 = vpop.f32.mrb[98].mxu0  ;;  %v18740_v1 = vadd.f32 %v4206_v49, %v23559_v13 }
 0x3a7   : > { %10724 = vmatprep.subr.bf16.mxu0 %v21042_v39  ;;  %v18741_v30 = vadd.f32 %v4208_v7, %v23556_v55  ;;  %v4210_v31 = vpop.f32.mrb[99].mxu0  ;;  %v4295_v53 = vmax.f32 %v18739_v61, 0.0  ;;  %v21052_v61 = vld [vmem:[#allocation6 + $0xc10] ss:$28 sps:$4 sm:$0xff]  }
 0x3a8   : > { %v18742_v10 = vadd.f32 %v4210_v31, %v23559_v13  ;;  %v4296_v19 = vmax.f32 %v18740_v1, 0.0  ;;  %v21055_v1 = vld [vmem:[#allocation6 + $0x1340] ss:$28 sps:$4 sm:$0xff]  }
 0x3a9   : > { %v4309_v15 = vmax.f32 %v18741_v30, 0.0  ;;  %10160 = vmatpush1.bf16.msra.mxu1 %v21037_v34  ;;  %v21049_v30 = vld [vmem:[#allocation6 + $0x1308] ss:$28 sps:$4 sm:$0xff]  }
 0x3aa   : > { %10725 = vmatpush1.bf16.msra.mxu0 %v21040_v52  ;;  %10161 = vmatprep.subr.bf16.mxu1 %v21045_v8  ;;  %v4310_v33 = vmax.f32 %v18742_v10, 0.0  ;;  %v21060_v52 = vld [vmem:[#allocation6 + $0xc4c] ss:$28 sps:$4 sm:$0xff]  }
 0x3ab   : > { %10099 = vmatmul.mubr.bf16.gmra.mrb[108].mxu1 %v23438_v0  ;;  %10726 = vmatprep.subr.bf16.mxu0 %v21048_v59  ;;  %v23570_v39 = vpack.c.bf16 %v4309_v15, %v4295_v53  ;;  %v21057_v15 = vld [vmem:[#allocation6 + $0x1344] ss:$28 sps:$4 sm:$0xff]  }
 0x3ac   : > { %10664 = vmatmul.mubr.bf16.gmra.mrb[140].mxu0 %v23235_v48  ;;  %10108 = vmatprep.mubr.bf16.mxu1 %v23463_v45  ;;  %v4214_v49 = vpop.f32.mrb[100].mxu0  ;;  %v23574_v7 = vpack.c.bf16 %v4310_v33, %v4296_v19  ;;  %v21063_v19 = vld [vmem:[#allocation6 + $0x137c] ss:$28 sps:$4 sm:$0xff]  }
 0x3ad   : > { %25266 = vst [vmem:[#allocation72_spill] sm:$0xff] %v23570_v39  ;;  %10162 = vmatpush1.bf16.msra.mxu1 %v21043_v9  ;;  %10673 = vmatprep.mubr.bf16.mxu0 %v25211_v27  ;;  %v4216_v31 = vpop.f32.mrb[101].mxu0  ;;  %v18743_v10 = vadd.f32 %v4214_v49, %v23556_v55  ;;  %v21058_v9 = vld [vmem:[#allocation6 + $0xc48] ss:$28 sps:$4 sm:$0xff]  }
 0x3ae   : > { %25267 = vst [vmem:[#allocation78_spill] sm:$0xff] %v23574_v7  ;;  %10727 = vmatpush1.bf16.msra.mxu0 %v21046_v43  ;;  %10163 = vmatprep.subr.bf16.mxu1 %v21051_v32  ;;  %v4218_v34 = vpop.f32.mrb[102].mxu0  ;;  %v18744_v8 = vadd.f32 %v4216_v31, %v23559_v13  ;;  %v21066_v27 = vld [vmem:[#allocation6 + $0xc84] ss:$28 sps:$4 sm:$0xff]   ;;  %v25270_v31 = vld [vmem:[#allocation75_spill] sm:$0xff] }
 0x3af   : > { %10728 = vmatprep.subr.bf16.mxu0 %v21054_v50  ;;  %v4220_v59 = vpop.f32.mrb[103].mxu0  ;;  %v18745_v53 = vadd.f32 %v4218_v34, %v23556_v55  ;;  %v4323_v48 = vmax.f32 %v18743_v10, 0.0  ;;  %v25271_v34 = vld [vmem:[#allocation108_spill] sm:$0xff] }
 0x3b0   : > { %v18746_v33 = vadd.f32 %v4220_v59, %v23559_v13  ;;  %v4324_v32 = vmax.f32 %v18744_v8, 0.0  ;;  %v21072_v59 = vld [vmem:[#allocation6 + $0xcbc] ss:$28 sps:$4 sm:$0xff]  }
 0x3b1   : > { %10164 = vmatpush1.bf16.msra.mxu1 %v21049_v30  ;;  %v4337_v49 = vmax.f32 %v18745_v53, 0.0  ;;  %v25273_v30 = vld [vmem:[#allocation81_spill] sm:$0xff] }
 0x3b2   : > { %10729 = vmatpush1.bf16.msra.mxu0 %v21052_v61  ;;  %10165 = vmatprep.subr.bf16.mxu1 %v21057_v15  ;;  %v4338_v43 = vmax.f32 %v18746_v33, 0.0  ;;  %v21061_v61 = vld [vmem:[#allocation6 + $0x1378] ss:$28 sps:$4 sm:$0xff]   ;;  %v21064_v15 = vld [vmem:[#allocation6 + $0xc80] ss:$28 sps:$4 sm:$0xff]  }
 0x3b3   : > { %10109 = vmatmul.mubr.bf16.gmra.mrb[112].mxu1 %v25268_v25  ;;  %10730 = vmatprep.subr.bf16.mxu0 %v21060_v52  ;;  %v23582_v50 = vpack.c.bf16 %v4337_v49, %v4323_v48  ;;  %v21069_v48 = vld [vmem:[#allocation6 + $0x13b4] ss:$28 sps:$4 sm:$0xff]  }
 0x3b4   : > { %10674 = vmatmul.mubr.bf16.gmra.mrb[144].mxu0 %v25270_v31  ;;  %10118 = vmatprep.mubr.bf16.mxu1 %v25271_v34  ;;  %v4224_v20 = vpop.f32.mrb[104].mxu0  ;;  %v23586_v26 = vpack.c.bf16 %v4338_v43, %v4324_v32  ;;  %v21067_v49 = vld [vmem:[#allocation6 + $0x13b0] ss:$28 sps:$4 sm:$0xff]  }
 0x3b5   : > { %25269 = vst [vmem:[#allocation76_spill] sm:$0xff] %v23582_v50  ;;  %10166 = vmatpush1.bf16.msra.mxu1 %v21055_v1  ;;  %10683 = vmatprep.mubr.bf16.mxu0 %v25273_v30  ;;  %v4226_v10 = vpop.f32.mrb[105].mxu0  ;;  %v18747_v8 = vadd.f32 %v4224_v20, %v23556_v55  ;;  %v21070_v1 = vld [vmem:[#allocation6 + $0xcb8] ss:$28 sps:$4 sm:$0xff]   ;;  %v21075_v43 = vld [vmem:[#allocation6 + $0x13ec] ss:$28 sps:$4 sm:$0xff]  }
 0x3b6   : > { %25272 = vst [vmem:[#allocation82_spill] sm:$0xff] %v23586_v26  ;;  %10731 = vmatpush1.bf16.msra.mxu0 %v21058_v9  ;;  %10167 = vmatprep.subr.bf16.mxu1 %v21063_v19  ;;  %v4228_v52 = vpop.f32.mrb[106].mxu0  ;;  %v18748_v53 = vadd.f32 %v4226_v10, %v23559_v13  ;;  %v21078_v31 = vld [vmem:[#allocation6 + $0xcf4] ss:$28 sps:$4 sm:$0xff]   ;;  %v25276_v10 = vld [vmem:[#allocation79_spill] sm:$0xff] }
 0x3b7   : > { %10732 = vmatprep.subr.bf16.mxu0 %v21066_v27  ;;  %v4230_v33 = vpop.f32.mrb[107].mxu0  ;;  %v18749_v32 = vadd.f32 %v4228_v52, %v23556_v55  ;;  %v4351_v63 = vmax.f32 %v18747_v8, 0.0 }
 0x3b8   : > { %v18750_v30 = vadd.f32 %v4230_v33, %v23559_v13  ;;  %v4352_v9 = vmax.f32 %v18748_v53, 0.0  ;;  %v21084_v53 = vld [vmem:[#allocation6 + $0xd2c] ss:$28 sps:$4 sm:$0xff]  }
 0x3b9   : > { %10168 = vmatpush1.bf16.msra.mxu1 %v21061_v61  ;;  %v4365_v20 = vmax.f32 %v18749_v32, 0.0  ;;  %v25278_v61 = vld [vmem:[#allocation85_spill] sm:$0xff] }
 0x3ba   : > { %10733 = vmatpush1.bf16.msra.mxu0 %v21064_v15  ;;  %10169 = vmatprep.subr.bf16.mxu1 %v21069_v48  ;;  %v4366_v19 = vmax.f32 %v18750_v30, 0.0  ;;  %v21073_v15 = vld [vmem:[#allocation6 + $0x13e8] ss:$28 sps:$4 sm:$0xff]   ;;  %v21076_v48 = vld [vmem:[#allocation6 + $0xcf0] ss:$28 sps:$4 sm:$0xff]  }
 0x3bb   : > { %10119 = vmatmul.mubr.bf16.gmra.mrb[116].mxu1 %v25274_v62  ;;  %10734 = vmatprep.subr.bf16.mxu0 %v21072_v59  ;;  %v23594_v27 = vpack.c.bf16 %v4365_v20, %v4351_v63  ;;  %v21081_v63 = vld [vmem:[#allocation6 + $0x1424] ss:$28 sps:$4 sm:$0xff]  }
 0x3bc   : > { %10684 = vmatmul.mubr.bf16.gmra.mrb[148].mxu0 %v25276_v10  ;;  %10128 = vmatprep.mubr.bf16.mxu1 %v23502_v18  ;;  %v4234_v52 = vpop.f32.mrb[108].mxu0  ;;  %v23598_v6 = vpack.c.bf16 %v4366_v19, %v4352_v9  ;;  %v21079_v20 = vld [vmem:[#allocation6 + $0x1420] ss:$28 sps:$4 sm:$0xff]  }
 0x3bd   : > { %25275 = vst [vmem:[#allocation80_spill] sm:$0xff] %v23594_v27  ;;  %10170 = vmatpush1.bf16.msra.mxu1 %v21067_v49  ;;  %10693 = vmatprep.mubr.bf16.mxu0 %v25278_v61  ;;  %v4236_v8 = vpop.f32.mrb[109].mxu0  ;;  %v18751_v30 = vadd.f32 %v4234_v52, %v23556_v55  ;;  %v21082_v49 = vld [vmem:[#allocation6 + $0xd28] ss:$28 sps:$4 sm:$0xff]   ;;  %v21087_v19 = vld [vmem:[#allocation6 + $0x145c] ss:$28 sps:$4 sm:$0xff]  }
 0x3be   : > { %25277 = vst [vmem:[#allocation86_spill] sm:$0xff] %v23598_v6  ;;  %10735 = vmatpush1.bf16.msra.mxu0 %v21070_v1  ;;  %10171 = vmatprep.subr.bf16.mxu1 %v21075_v43  ;;  %v4238_v59 = vpop.f32.mrb[110].mxu0  ;;  %v18752_v33 = vadd.f32 %v4236_v8, %v23559_v13  ;;  %v21090_v10 = vld [vmem:[#allocation6 + $0xd64] ss:$28 sps:$4 sm:$0xff]   ;;  %v25280_v8 = vld [vmem:[#allocation83_spill] sm:$0xff] }
 0x3bf   : > { %10736 = vmatprep.subr.bf16.mxu0 %v21078_v31  ;;  %v4240_v32 = vpop.f32.mrb[111].mxu0  ;;  %v18753_v9 = vadd.f32 %v4238_v59, %v23556_v55  ;;  %v4379_v47 = vmax.f32 %v18751_v30, 0.0 }
 0x3c0   : > { %v18754_v61 = vadd.f32 %v4240_v32, %v23559_v13  ;;  %v4380_v1 = vmax.f32 %v18752_v33, 0.0  ;;  %v21096_v33 = vld [vmem:[#allocation6 + $0xd9c] ss:$28 sps:$4 sm:$0xff]  }
 0x3c1   : > { %10172 = vmatpush1.bf16.msra.mxu1 %v21073_v15  ;;  %v4393_v52 = vmax.f32 %v18753_v9, 0.0  ;;  %v25282_v15 = vld [vmem:[#allocation88_spill] sm:$0xff] }
 0x3c2   : > { %10737 = vmatpush1.bf16.msra.mxu0 %v21076_v48  ;;  %10173 = vmatprep.subr.bf16.mxu1 %v21081_v63  ;;  %v4394_v43 = vmax.f32 %v18754_v61, 0.0  ;;  %v21085_v48 = vld [vmem:[#allocation6 + $0x1458] ss:$28 sps:$4 sm:$0xff]   ;;  %v21088_v63 = vld [vmem:[#allocation6 + $0xd60] ss:$28 sps:$4 sm:$0xff]  }
 0x3c3   : > { %10129 = vmatmul.mubr.bf16.gmra.mrb[120].mxu1 %v23496_v44  ;;  %10738 = vmatprep.subr.bf16.mxu0 %v21084_v53  ;;  %v23606_v31 = vpack.c.bf16 %v4393_v52, %v4379_v47  ;;  %v21093_v47 = vld [vmem:[#allocation6 + $0x1494] ss:$28 sps:$4 sm:$0xff]  }
 0x3c4   : > { %10694 = vmatmul.mubr.bf16.gmra.mrb[152].mxu0 %v25280_v8  ;;  %10138 = vmatprep.mubr.bf16.mxu1 %v23522_v4  ;;  %v4244_v59 = vpop.f32.mrb[112].mxu0  ;;  %v23610_v51 = vpack.c.bf16 %v4394_v43, %v4380_v1  ;;  %v21091_v52 = vld [vmem:[#allocation6 + $0x1490] ss:$28 sps:$4 sm:$0xff]  }
 0x3c5   : > { %25279 = vst [vmem:[#allocation84_spill] sm:$0xff] %v23606_v31  ;;  %10174 = vmatpush1.bf16.msra.mxu1 %v21079_v20  ;;  %10703 = vmatprep.mubr.bf16.mxu0 %v25282_v15  ;;  %v4246_v30 = vpop.f32.mrb[113].mxu0  ;;  %v18755_v61 = vadd.f32 %v4244_v59, %v23556_v55  ;;  %v21094_v20 = vld [vmem:[#allocation6 + $0xd98] ss:$28 sps:$4 sm:$0xff]   ;;  %v21099_v43 = vld [vmem:[#allocation6 + $0x14cc] ss:$28 sps:$4 sm:$0xff]  }
 0x3c6   : > { %25281 = vst [vmem:[#allocation116_spill] sm:$0xff] %v23610_v51  ;;  %10739 = vmatpush1.bf16.msra.mxu0 %v21082_v49  ;;  %10175 = vmatprep.subr.bf16.mxu1 %v21087_v19  ;;  %v4248_v53 = vpop.f32.mrb[114].mxu0  ;;  %v18756_v32 = vadd.f32 %v4246_v30, %v23559_v13  ;;  %v21102_v8 = vld [vmem:[#allocation6 + $0xdd4] ss:$28 sps:$4 sm:$0xff]   ;;  %v25284_v30 = vld [vmem:[#allocation87_spill] sm:$0xff] }
 0x3c7   : > { %10740 = vmatprep.subr.bf16.mxu0 %v21090_v10  ;;  %v4250_v9 = vpop.f32.mrb[115].mxu0  ;;  %v18757_v1 = vadd.f32 %v4248_v53, %v23556_v55  ;;  %v4407_v40 = vmax.f32 %v18755_v61, 0.0  ;;  %v25285_v53 = vld [vmem:[#allocation90_spill] sm:$0xff] }
 0x3c8   : > { %v18758_v15 = vadd.f32 %v4250_v9, %v23559_v13  ;;  %v4408_v49 = vmax.f32 %v18756_v32, 0.0  ;;  %v21108_v32 = vld [vmem:[#allocation6 + $0xe0c] ss:$28 sps:$4 sm:$0xff]  }
 0x3c9   : > { %10176 = vmatpush1.bf16.msra.mxu1 %v21085_v48  ;;  %v4421_v59 = vmax.f32 %v18757_v1, 0.0  ;;  %v25287_v48 = vld [vmem:[#allocation62_spill] sm:$0xff] }
 0x3ca   : > { %10741 = vmatpush1.bf16.msra.mxu0 %v21088_v63  ;;  %10177 = vmatprep.subr.bf16.mxu1 %v21093_v47  ;;  %v4422_v19 = vmax.f32 %v18758_v15, 0.0  ;;  %v21097_v63 = vld [vmem:[#allocation6 + $0x14c8] ss:$28 sps:$4 sm:$0xff]   ;;  %v21100_v47 = vld [vmem:[#allocation6 + $0xdd0] ss:$28 sps:$4 sm:$0xff]  }
 0x3cb   : > { %10139 = vmatmul.mubr.bf16.gmra.mrb[124].mxu1 %v23516_v38  ;;  %10742 = vmatprep.subr.bf16.mxu0 %v21096_v33  ;;  %v23618_v10 = vpack.c.bf16 %v4421_v59, %v4407_v40  ;;  %v21105_v40 = vld [vmem:[#allocation6 + $0x1504] ss:$28 sps:$4 sm:$0xff]  }
 0x3cc   : > { %10704 = vmatmul.mubr.bf16.gmra.mrb[156].mxu0 %v25284_v30  ;;  %10181 = vmatprep.mubr.bf16.mxu1 %v25285_v53  ;;  %v4254_v46 = vpop.f32.mrb[116].mxu0  ;;  %v23622_v58 = vpack.c.bf16 %v4422_v19, %v4408_v49  ;;  %v21103_v49 = vld [vmem:[#allocation6 + $0x1500] ss:$28 sps:$4 sm:$0xff]   ;;  %v21106_v19 = vld [vmem:[#allocation6 + $0xe08] ss:$28 sps:$4 sm:$0xff]   ;;  %v25291_v53 = vld [vmem:[#allocation60_spill] sm:$0xff] }
 0x3cd   : > { %25283 = vst [vmem:[#allocation117_spill] sm:$0xff] %v23618_v10  ;;  %10178 = vmatpush1.bf16.msra.mxu1 %v21091_v52  ;;  %10746 = vmatprep.mubr.bf16.mxu0 %v25287_v48  ;;  %v4256_v61 = vpop.f32.mrb[117].mxu0  ;;  %v18759_v15 = vadd.f32 %v4254_v46, %v23556_v55  ;;  %v21111_v48 = vld [vmem:[#allocation6 + $0x153c] ss:$28 sps:$4 sm:$0xff]   ;;  %v21114_v46 = vld [vmem:[#allocation6 + $0xe44] ss:$28 sps:$4 sm:$0xff]  }
 0x3ce   : > { %25286 = vst [vmem:[#allocation118_spill] sm:$0xff] %v23622_v58  ;;  %10743 = vmatpush1.bf16.msra.mxu0 %v21094_v20  ;;  %10179 = vmatprep.subr.bf16.mxu1 %v21099_v43  ;;  %v4258_v33 = vpop.f32.mrb[118].mxu0  ;;  %v18760_v9 = vadd.f32 %v4256_v61, %v23559_v13 }
 0x3cf   : > { %10744 = vmatprep.subr.bf16.mxu0 %v21102_v8  ;;  %v4260_v1 = vpop.f32.mrb[119].mxu0  ;;  %v18761_v59 = vadd.f32 %v4258_v33, %v23556_v55  ;;  %v4435_v30 = vmax.f32 %v18759_v15, 0.0  ;;  %v25289_v8 = vld [vmem:[#allocation89_spill] sm:$0xff] }
 0x3d0   : > { %v18762_v52 = vadd.f32 %v4260_v1, %v23559_v13  ;;  %v4436_v20 = vmax.f32 %v18760_v9, 0.0  ;;  %v21109_v15 = vld [vmem:[#allocation6 + $0x1538] ss:$28 sps:$4 sm:$0xff]  }
 0x3d1   : > { %10180 = vmatpush1.bf16.msra.mxu1 %v21097_v63  ;;  %v4449_v60 = vmax.f32 %v18761_v59, 0.0  ;;  %v25292_v63 = vld [vmem:[#allocation93_spill] sm:$0xff] }
 0x3d2   : > { %10745 = vmatpush1.bf16.msra.mxu0 %v21100_v47  ;;  %10262 = vmatprep.subr.bf16.mxu1 %v21105_v40  ;;  %v4450_v43 = vmax.f32 %v18762_v52, 0.0  ;;  %v21112_v59 = vld [vmem:[#allocation6 + $0xe40] ss:$28 sps:$4 sm:$0xff]  }
 0x3d3   : > { %10827 = vmatprep.subr.bf16.mxu0 %v21108_v32  ;;  %v23629_v21 = vpack.c.bf16 %v4449_v60, %v4435_v30  ;;  %v25293_v40 = vld [vmem:[#allocation66_spill] sm:$0xff]  ;;  %v21117_v60 = vld [vmem:[#allocation6 + $0x1574] ss:$28 sps:$4 sm:$0xff]   ;;  %v21120_v30 = vld [vmem:[#allocation6 + $0xe7c] ss:$28 sps:$4 sm:$0xff]  }
 0x3d4   : > { %10182 = vmatmul.mubr.bf16.vlgmr.msra.gmra.mrb[96].mxu1 %v25289_v8  ;;  %v4264_v61 = vpop.f32.mrb[120].mxu0  ;;  %v23632_v33 = vpack.c.bf16 %v4450_v43, %v4436_v20  ;;  %v21115_v43 = vld [vmem:[#allocation6 + $0x1570] ss:$28 sps:$4 sm:$0xff]  }
 0x3d5   : > { %25288 = vst [vmem:[#allocation119_spill] sm:$0xff] %v23629_v21  ;;  %10747 = vmatmul.mubr.bf16.vlgmr.msra.gmra.mrb[128].mxu0 %v25291_v53  ;;  %10191 = vmatprep.mubr.bf16.mxu1 %v25292_v63  ;;  %v4266_v1 = vpop.f32.mrb[121].mxu0  ;;  %v18763_v47 = vadd.f32 %v4264_v61, %v23556_v55  ;;  %v21118_v63 = vld [vmem:[#allocation6 + $0xe78] ss:$28 sps:$4 sm:$0xff]   ;;  %v21123_v8 = vld [vmem:[#allocation6 + $0x15ac] ss:$28 sps:$4 sm:$0xff]  }
 0x3d6   : > { %25290 = vst [vmem:[#allocation120_spill] sm:$0xff] %v23632_v33  ;;  %10263 = vmatpush1.bf16.msra.mxu1 %v21103_v49  ;;  %10756 = vmatprep.mubr.bf16.mxu0 %v25293_v40  ;;  %v4268_v32 = vpop.f32.mrb[122].mxu0  ;;  %v18764_v9 = vadd.f32 %v4266_v1, %v23559_v13  ;;  %v21126_v40 = vld [vmem:[#allocation6 + $0xeb4] ss:$28 sps:$4 sm:$0xff]  }
 0x3d7   : > { %10828 = vmatpush1.bf16.msra.mxu0 %v21106_v19  ;;  %10264 = vmatprep.subr.bf16.mxu1 %v21111_v48  ;;  %v4270_v52 = vpop.f32.mrb[123].mxu0  ;;  %v18765_v20 = vadd.f32 %v4268_v32, %v23556_v55  ;;  %v4463_v61 = vmax.f32 %v18763_v47, 0.0  ;;  %v25295_v48 = vld [vmem:[#allocation92_spill] sm:$0xff]  ;;  %v25297_v32 = vld [vmem:[#allocation97_spill] sm:$0xff] }
 0x3d8   : > { %10829 = vmatprep.subr.bf16.mxu0 %v21114_v46  ;;  %v18766_v53 = vadd.f32 %v4270_v52, %v23559_v13  ;;  %v4464_v38 = vmax.f32 %v18764_v9, 0.0  ;;  %v25298_v9 = vld [vmem:[#allocation70_spill] sm:$0xff] }
 0x3d9   : > { %v4477_v49 = vmax.f32 %v18765_v20, 0.0 }
 0x3da   : > { %10265 = vmatpush1.bf16.msra.mxu1 %v21109_v15  ;;  %v4478_v4 = vmax.f32 %v18766_v53, 0.0  ;;  %v21121_v53 = vld [vmem:[#allocation6 + $0x15a8] ss:$28 sps:$4 sm:$0xff]  }
 0x3db   : > { %10830 = vmatpush1.bf16.msra.mxu0 %v21112_v59  ;;  %10266 = vmatprep.subr.bf16.mxu1 %v21117_v60  ;;  %v23641_v1 = vpack.c.bf16 %v4477_v49, %v4463_v61  ;;  %v21124_v59 = vld [vmem:[#allocation6 + $0xeb0] ss:$28 sps:$4 sm:$0xff]   ;;  %v21127_v61 = vld [vmem:[#allocation6 + $0x15e0] ss:$28 sps:$4 sm:$0xff]  }
 0x3dc   : > { %10192 = vmatmul.mubr.bf16.gmra.mrb[100].mxu1 %v25295_v48  ;;  %10831 = vmatprep.subr.bf16.mxu0 %v21120_v30  ;;  %v4274_v19 = vpop.f32.mrb[124].mxu0  ;;  %v23644_v46 = vpack.c.bf16 %v4478_v4, %v4464_v38  ;;  %v21129_v38 = vld [vmem:[#allocation6 + $0x15e4] ss:$28 sps:$4 sm:$0xff]   ;;  %v21132_v4 = vld [vmem:[#allocation6 + $0xeec] ss:$28 sps:$4 sm:$0xff]  }
 0x3dd   : > { %25294 = vst [vmem:[#allocation121_spill] sm:$0xff] %v23641_v1  ;;  %10757 = vmatmul.mubr.bf16.gmra.mrb[132].mxu0 %v25245_v2  ;;  %10201 = vmatprep.mubr.bf16.mxu1 %v25297_v32  ;;  %v4276_v47 = vpop.f32.mrb[125].mxu0  ;;  %v18767_v15 = vadd.f32 %v4274_v19, %v23556_v55  ;;  %v21130_v19 = vld [vmem:[#allocation6 + $0xee8] ss:$28 sps:$4 sm:$0xff]  }
 0x3de   : > { %25296 = vst [vmem:[#allocation122_spill] sm:$0xff] %v23644_v46  ;;  %10267 = vmatpush1.bf16.msra.mxu1 %v21115_v43  ;;  %10766 = vmatprep.mubr.bf16.mxu0 %v25298_v9  ;;  %v4278_v60 = vpop.f32.mrb[126].mxu0  ;;  %v18768_v52 = vadd.f32 %v4276_v47, %v23559_v13  ;;  %v21135_v43 = vld [vmem:[#allocation6 + $0x161c] ss:$28 sps:$4 sm:$0xff]   ;;  %v21138_v32 = vld [vmem:[#allocation6 + $0xf24] ss:$28 sps:$4 sm:$0xff]  }
 0x3df   : > { %10832 = vmatpush1.bf16.msra.mxu0 %v21118_v63  ;;  %10268 = vmatprep.subr.bf16.mxu1 %v21123_v8  ;;  %v4280_v30 = vpop.f32.mrb[127].mxu0  ;;  %v18769_v20 = vadd.f32 %v4278_v60, %v23556_v55  ;;  %v4491_v2 = vmax.f32 %v18767_v15, 0.0  ;;  %v25300_v63 = vld [vmem:[#allocation95_spill] sm:$0xff]  ;;  %v21136_v47 = vld [vmem:[#allocation6 + $0xf20] ss:$28 sps:$4 sm:$0xff]  }
 0x3e0   : > { %10833 = vmatprep.subr.bf16.mxu0 %v21126_v40  ;;  %v18770_v49 = vadd.f32 %v4280_v30, %v23559_v13  ;;  %v4492_v48 = vmax.f32 %v18768_v52, 0.0  ;;  %v25302_v13 = vld [vmem:[#allocation101_spill] sm:$0xff]  ;;  %v21141_v15 = vld [vmem:[#allocation6 + $0x1654] ss:$28 sps:$4 sm:$0xff]   ;;  %v21145_v52 = vld [vmem:[#allocation6 + $0x1688] ss:$28 sps:$4 sm:$0xff]  }
 0x3e1   : > { %v4505_v9 = vmax.f32 %v18769_v20, 0.0  ;;  %v21133_v40 = vld [vmem:[#allocation6 + $0x1618] ss:$28 sps:$4 sm:$0xff]   ;;  %v21148_v30 = vld [vmem:[#allocation6 + $0xf90] ss:$28 sps:$4 sm:$0xff]  }
 0x3e2   : > { %10269 = vmatpush1.bf16.msra.mxu1 %v21121_v53  ;;  %v4506_v44 = vmax.f32 %v18770_v49, 0.0  ;;  %v21144_v53 = vld [vmem:[#allocation6 + $0xf5c] ss:$28 sps:$4 sm:$0xff]   ;;  %v21154_v20 = vld [vmem:[#allocation6 + $0xfc8] ss:$28 sps:$4 sm:$0xff]  }
 0x3e3   : > { %10834 = vmatpush1.bf16.msra.mxu0 %v21124_v59  ;;  %10270 = vmatprep.subr.bf16.mxu1 %v21129_v38  ;;  %v23653_v8 = vpack.c.bf16 %v4505_v9, %v4491_v2  ;;  %v21139_v2 = vld [vmem:[#allocation6 + $0x1650] ss:$28 sps:$4 sm:$0xff]   ;;  %v21142_v9 = vld [vmem:[#allocation6 + $0xf58] ss:$28 sps:$4 sm:$0xff]   ;;  %v21162_v49 = vld [vmem:[#allocation6 + $0x1004] ss:$28 sps:$4 sm:$0xff]  }
 0x3e4   : > { %10202 = vmatmul.mubr.bf16.gmra.mrb[104].mxu1 %v25300_v63  ;;  %10835 = vmatprep.subr.bf16.mxu0 %v21132_v4  ;;  %v23656_v55 = vpack.c.bf16 %v4506_v44, %v4492_v48  ;;  %v21147_v59 = vld [vmem:[#allocation6 + $0x168c] ss:$28 sps:$4 sm:$0xff]   ;;  %v21150_v44 = vld [vmem:[#allocation6 + $0xf94] ss:$28 sps:$4 sm:$0xff]   ;;  %v25304_v60 = vld [vmem:[#allocation105_spill] sm:$0xff] }
 0x3e5   : > { %25299 = vst [vmem:[#allocation123_spill] sm:$0xff] %v23653_v8  ;;  %10767 = vmatmul.mubr.bf16.gmra.mrb[136].mxu0 %v25251_v3  ;;  %10211 = vmatprep.mubr.bf16.mxu1 %v25302_v13  ;;  %v25303_v48 = vld [vmem:[#allocation99_spill] sm:$0xff]  ;;  %v21151_v4 = vld [vmem:[#allocation6 + $0x16c0] ss:$28 sps:$4 sm:$0xff]  }
 0x3e6   : > { %25301 = vst [vmem:[#allocation124_spill] sm:$0xff] %v23656_v55  ;;  %10271 = vmatpush1.bf16.msra.mxu1 %v21127_v61  ;;  %10776 = vmatprep.mubr.bf16.mxu0 %v25254_v29  ;;  %v21156_v38 = vld [vmem:[#allocation6 + $0xfcc] ss:$28 sps:$4 sm:$0xff]   ;;  %v21159_v61 = vld [vmem:[#allocation6 + $0x16fc] ss:$28 sps:$4 sm:$0xff]  }
 0x3e7   : > { %10836 = vmatpush1.bf16.msra.mxu0 %v21130_v19  ;;  %10272 = vmatprep.subr.bf16.mxu1 %v21135_v43  ;;  %v25305_v19 = vld [vmem:[#allocation103_spill] sm:$0xff]  ;;  %v25306_v43 = vld [vmem:[#allocation109_spill] sm:$0xff] }
 0x3e8   : > { %10837 = vmatprep.subr.bf16.mxu0 %v21138_v32  ;;  %v21153_v32 = vld [vmem:[#allocation6 + $0x16c4] ss:$28 sps:$4 sm:$0xff]  }
 0x3ea   : > { %10273 = vmatpush1.bf16.msra.mxu1 %v21133_v40  ;;  %v21157_v40 = vld [vmem:[#allocation6 + $0x16f8] ss:$28 sps:$4 sm:$0xff]  }
 0x3eb   : > { %10838 = vmatpush1.bf16.msra.mxu0 %v21136_v47  ;;  %10274 = vmatprep.subr.bf16.mxu1 %v21141_v15  ;;  %v21160_v47 = vld [vmem:[#allocation6 + $0x1000] ss:$28 sps:$4 sm:$0xff]   ;;  %v21165_v15 = vld [vmem:[#allocation6 + $0x1734] ss:$28 sps:$4 sm:$0xff]  }
 0x3ec   : > { %10212 = vmatmul.mubr.bf16.gmra.mrb[108].mxu1 %v25303_v48  ;;  %10839 = vmatprep.subr.bf16.mxu0 %v21144_v53  ;;  %v21168_v53 = vld [vmem:[#allocation6 + $0x103c] ss:$28 sps:$4 sm:$0xff]  }
 0x3ed   : > { %10777 = vmatmul.mubr.bf16.gmra.mrb[140].mxu0 %v25257_v28  ;;  %10221 = vmatprep.mubr.bf16.mxu1 %v25304_v60 }
 0x3ee   : > { %10275 = vmatpush1.bf16.msra.mxu1 %v21139_v2  ;;  %10786 = vmatprep.mubr.bf16.mxu0 %v25258_v36  ;;  %v21163_v2 = vld [vmem:[#allocation6 + $0x1730] ss:$28 sps:$4 sm:$0xff]  }
 0x3ef   : > { %10840 = vmatpush1.bf16.msra.mxu0 %v21142_v9  ;;  %10276 = vmatprep.subr.bf16.mxu1 %v21147_v59  ;;  %v21166_v9 = vld [vmem:[#allocation6 + $0x1038] ss:$28 sps:$4 sm:$0xff]   ;;  %v21171_v59 = vld [vmem:[#allocation6 + $0x176c] ss:$28 sps:$4 sm:$0xff]  }
 0x3f0   : > { %10841 = vmatprep.subr.bf16.mxu0 %v21150_v44  ;;  %v21174_v44 = vld [vmem:[#allocation6 + $0x1074] ss:$28 sps:$4 sm:$0xff]  }
 0x3f2   : > { %10277 = vmatpush1.bf16.msra.mxu1 %v21145_v52  ;;  %v25307_v52 = vld [vmem:[#allocation107_spill] sm:$0xff] }
 0x3f3   : > { %10842 = vmatpush1.bf16.msra.mxu0 %v21148_v30  ;;  %10278 = vmatprep.subr.bf16.mxu1 %v21153_v32  ;;  %v25308_v30 = vld [vmem:[#allocation113_spill] sm:$0xff]  ;;  %v21169_v32 = vld [vmem:[#allocation6 + $0x1768] ss:$28 sps:$4 sm:$0xff]  }
 0x3f4   : > { %10222 = vmatmul.mubr.bf16.gmra.mrb[112].mxu1 %v25305_v19  ;;  %10843 = vmatprep.subr.bf16.mxu0 %v21156_v38  ;;  %v21172_v38 = vld [vmem:[#allocation6 + $0x1070] ss:$28 sps:$4 sm:$0xff]  }
 0x3f5   : > { %10787 = vmatmul.mubr.bf16.gmra.mrb[144].mxu0 %v25259_v54  ;;  %10231 = vmatprep.mubr.bf16.mxu1 %v25306_v43 }
 0x3f6   : > { %10279 = vmatpush1.bf16.msra.mxu1 %v21151_v4  ;;  %10796 = vmatprep.mubr.bf16.mxu0 %v25260_v23  ;;  %v21177_v4 = vld [vmem:[#allocation6 + $0x17a4] ss:$28 sps:$4 sm:$0xff]  }
 0x3f7   : > { %10844 = vmatpush1.bf16.msra.mxu0 %v21154_v20  ;;  %10280 = vmatprep.subr.bf16.mxu1 %v21159_v61  ;;  %v21180_v20 = vld [vmem:[#allocation6 + $0x10ac] ss:$28 sps:$4 sm:$0xff]   ;;  %v21175_v61 = vld [vmem:[#allocation6 + $0x17a0] ss:$28 sps:$4 sm:$0xff]  }
 0x3f8   : > { %10845 = vmatprep.subr.bf16.mxu0 %v21162_v49  ;;  %v21178_v49 = vld [vmem:[#allocation6 + $0x10a8] ss:$28 sps:$4 sm:$0xff]  }
 0x3fa   : > { %10281 = vmatpush1.bf16.msra.mxu1 %v21157_v40  ;;  %v21183_v40 = vld [vmem:[#allocation6 + $0x17dc] ss:$28 sps:$4 sm:$0xff]  }
 0x3fb   : > { %10846 = vmatpush1.bf16.msra.mxu0 %v21160_v47  ;;  %10282 = vmatprep.subr.bf16.mxu1 %v21165_v15  ;;  %v21186_v47 = vld [vmem:[#allocation6 + $0x10e4] ss:$28 sps:$4 sm:$0xff]   ;;  %v25309_v15 = vld [vmem:[#allocation111_spill] sm:$0xff] }
 0x3fc   : > { %10232 = vmatmul.mubr.bf16.gmra.mrb[116].mxu1 %v25307_v52  ;;  %10847 = vmatprep.subr.bf16.mxu0 %v21168_v53  ;;  %v21181_v53 = vld [vmem:[#allocation6 + $0x17d8] ss:$28 sps:$4 sm:$0xff]  }
 0x3fd   : > { %10797 = vmatmul.mubr.bf16.gmra.mrb[148].mxu0 %v25261_v22  ;;  %10241 = vmatprep.mubr.bf16.mxu1 %v25308_v30 }
 0x3fe   : > { %10283 = vmatpush1.bf16.msra.mxu1 %v21163_v2  ;;  %10806 = vmatprep.mubr.bf16.mxu0 %v25262_v57  ;;  %v21184_v2 = vld [vmem:[#allocation6 + $0x10e0] ss:$28 sps:$4 sm:$0xff]  }
 0x3ff   : > { %10848 = vmatpush1.bf16.msra.mxu0 %v21166_v9  ;;  %10284 = vmatprep.subr.bf16.mxu1 %v21171_v59  ;;  %v21189_v9 = vld [vmem:[#allocation6 + $0x1814] ss:$28 sps:$4 sm:$0xff]   ;;  %v21192_v59 = vld [vmem:[#allocation6 + $0x111c] ss:$28 sps:$4 sm:$0xff]  }
 0x400   : > { %10849 = vmatprep.subr.bf16.mxu0 %v21174_v44  ;;  %v21187_v44 = vld [vmem:[#allocation6 + $0x1810] ss:$28 sps:$4 sm:$0xff]  }
 0x402   : > { %10285 = vmatpush1.bf16.msra.mxu1 %v21169_v32  ;;  %v21190_v32 = vld [vmem:[#allocation6 + $0x1118] ss:$28 sps:$4 sm:$0xff]  }
 0x403   : > { %10850 = vmatpush1.bf16.msra.mxu0 %v21172_v38  ;;  %10286 = vmatprep.subr.bf16.mxu1 %v21177_v4  ;;  %v21195_v38 = vld [vmem:[#allocation6 + $0x184c] ss:$28 sps:$4 sm:$0xff]   ;;  %v21198_v4 = vld [vmem:[#allocation6 + $0x1154] ss:$28 sps:$4 sm:$0xff]  }
 0x404   : > { %10242 = vmatmul.mubr.bf16.gmra.mrb[120].mxu1 %v25309_v15  ;;  %10851 = vmatprep.subr.bf16.mxu0 %v21180_v20  ;;  %v21193_v20 = vld [vmem:[#allocation6 + $0x1848] ss:$28 sps:$4 sm:$0xff]  }
 0x405   : > { %10807 = vmatmul.mubr.bf16.gmra.mrb[152].mxu0 %v25263_v56  ;;  %10251 = vmatprep.mubr.bf16.mxu1 %v23524_v37 }
 0x406   : > { %10287 = vmatpush1.bf16.msra.mxu1 %v21175_v61  ;;  %10816 = vmatprep.mubr.bf16.mxu0 %v23320_v11  ;;  %v21196_v61 = vld [vmem:[#allocation6 + $0x1150] ss:$28 sps:$4 sm:$0xff]  }
 0x407   : > { %10852 = vmatpush1.bf16.msra.mxu0 %v21178_v49  ;;  %10288 = vmatprep.subr.bf16.mxu1 %v21183_v40  ;;  %v21201_v49 = vld [vmem:[#allocation6 + $0x118c] ss:$28 sps:$4 sm:$0xff]   ;;  %v21204_v40 = vld [vmem:[#allocation6 + $0x14] ss:$28 sps:$4 sm:$0xff]  }
 0x408   : > { %10853 = vmatprep.subr.bf16.mxu0 %v21186_v47  ;;  %v21199_v47 = vld [vmem:[#allocation6 + $0x1188] ss:$28 sps:$4 sm:$0xff]  }
 0x40a   : > { %10289 = vmatpush1.bf16.msra.mxu1 %v21181_v53  ;;  %v21202_v53 = vld [vmem:[#allocation6 + $0x10] ss:$28 sps:$4 sm:$0xff]  }
 0x40b   : > { %10854 = vmatpush1.bf16.msra.mxu0 %v21184_v2  ;;  %10290 = vmatprep.subr.bf16.mxu1 %v21189_v9  ;;  %v21207_v2 = vld [vmem:[#allocation6 + $0x11c4] ss:$28 sps:$4 sm:$0xff]   ;;  %v21210_v9 = vld [vmem:[#allocation6 + $0x4c] ss:$28 sps:$4 sm:$0xff]  }
 0x40c   : > { %10252 = vmatmul.mubr.bf16.gmra.mrb[124].mxu1 %v23518_v14  ;;  %10855 = vmatprep.subr.bf16.mxu0 %v21192_v59  ;;  %v21205_v59 = vld [vmem:[#allocation6 + $0x11c0] ss:$28 sps:$4 sm:$0xff]  }
 0x40d   : > { %10817 = vmatmul.mubr.bf16.gmra.mrb[156].mxu0 %v23315_v17  ;;  %10294 = vmatprep.mubr.bf16.mxu1 %v23574_v7 }
 0x40e   : > { %10291 = vmatpush1.bf16.msra.mxu1 %v21187_v44  ;;  %10859 = vmatprep.mubr.bf16.mxu0 %v23383_v41  ;;  %v21208_v44 = vld [vmem:[#allocation6 + $0x48] ss:$28 sps:$4 sm:$0xff]  }
 0x40f   : > { %10856 = vmatpush1.bf16.msra.mxu0 %v21190_v32  ;;  %10292 = vmatprep.subr.bf16.mxu1 %v21195_v38  ;;  %v21213_v32 = vld [vmem:[#allocation6 + $0x11fc] ss:$28 sps:$4 sm:$0xff]   ;;  %v21216_v38 = vld [vmem:[#allocation6 + $0x84] ss:$28 sps:$4 sm:$0xff]  }
 0x410   : > { %10857 = vmatprep.subr.bf16.mxu0 %v21198_v4  ;;  %v21211_v4 = vld [vmem:[#allocation6 + $0x11f8] ss:$28 sps:$4 sm:$0xff]  }
 0x412   : > { %10293 = vmatpush1.bf16.msra.mxu1 %v21193_v20  ;;  %v21214_v20 = vld [vmem:[#allocation6 + $0x80] ss:$28 sps:$4 sm:$0xff]  }
 0x413   : > { %10858 = vmatpush1.bf16.msra.mxu0 %v21196_v61  ;;  %11166 = vmatprep.subr.bf16.mxu1 %v21204_v40  ;;  %v21219_v61 = vld [vmem:[#allocation6 + $0x1234] ss:$28 sps:$4 sm:$0xff]  }
 0x414   : > { %10940 = vmatprep.subr.bf16.mxu0 %v21201_v49  ;;  %v21222_v49 = vld [vmem:[#allocation6 + $0xbc] ss:$28 sps:$4 sm:$0xff]   ;;  %v21217_v40 = vld [vmem:[#allocation6 + $0x1230] ss:$28 sps:$4 sm:$0xff]  }
 0x415   : > { %10295 = vmatmul.mubr.bf16.vlgmr.msra.gmra.mrb[96].mxu1 %v23570_v39 }
 0x416   : > { %10860 = vmatmul.mubr.bf16.vlgmr.msra.gmra.mrb[128].mxu0 %v23378_v35  ;;  %10304 = vmatprep.mubr.bf16.mxu1 %v23586_v26 }
 0x417   : > { %10869 = vmatprep.mubr.bf16.mxu0 %v23403_v5  ;;  %10941 = vmatpush1.bf16.msra.mxu0 %v21199_v47  ;;  %v21220_v47 = vld [vmem:[#allocation6 + $0xb8] ss:$28 sps:$4 sm:$0xff]  }
 0x418   : > { %11167 = vmatpush1.bf16.msra.mxu1 %v21202_v53  ;;  %10942 = vmatprep.subr.bf16.mxu0 %v21207_v2  ;;  %v21225_v53 = vld [vmem:[#allocation6 + $0x126c] ss:$28 sps:$4 sm:$0xff]  }
 0x419   : > { %11168 = vmatprep.subr.bf16.mxu1 %v21210_v9  ;;  %v21223_v2 = vld [vmem:[#allocation6 + $0x1268] ss:$28 sps:$4 sm:$0xff]   ;;  %v21228_v9 = vld [vmem:[#allocation6 + $0xf4] ss:$28 sps:$4 sm:$0xff]  }
 0x41b   : > { %10943 = vmatpush1.bf16.msra.mxu0 %v21205_v59  ;;  %v21226_v59 = vld [vmem:[#allocation6 + $0xf0] ss:$28 sps:$4 sm:$0xff]  }
 0x41c   : > { %11169 = vmatpush1.bf16.msra.mxu1 %v21208_v44  ;;  %10944 = vmatprep.subr.bf16.mxu0 %v21213_v32  ;;  %v21231_v44 = vld [vmem:[#allocation6 + $0x12a4] ss:$28 sps:$4 sm:$0xff]   ;;  %v21234_v32 = vld [vmem:[#allocation6 + $0x12c] ss:$28 sps:$4 sm:$0xff]  }
 0x41d   : > { %10305 = vmatmul.mubr.bf16.gmra.mrb[100].mxu1 %v23582_v50  ;;  %11170 = vmatprep.subr.bf16.mxu1 %v21216_v38  ;;  %v21229_v38 = vld [vmem:[#allocation6 + $0x12a0] ss:$28 sps:$4 sm:$0xff]  }
 0x41e   : > { %10870 = vmatmul.mubr.bf16.gmra.mrb[132].mxu0 %v23398_v16  ;;  %10314 = vmatprep.mubr.bf16.mxu1 %v23598_v6 }
 0x41f   : > { %10879 = vmatprep.mubr.bf16.mxu0 %v23423_v24  ;;  %10945 = vmatpush1.bf16.msra.mxu0 %v21211_v4  ;;  %v21232_v4 = vld [vmem:[#allocation6 + $0x128] ss:$28 sps:$4 sm:$0xff]  }
 0x420   : > { %11171 = vmatpush1.bf16.msra.mxu1 %v21214_v20  ;;  %10946 = vmatprep.subr.bf16.mxu0 %v21219_v61  ;;  %v21237_v20 = vld [vmem:[#allocation6 + $0x12dc] ss:$28 sps:$4 sm:$0xff]  }
 0x421   : > { %11172 = vmatprep.subr.bf16.mxu1 %v21222_v49  ;;  %v21235_v61 = vld [vmem:[#allocation6 + $0x12d8] ss:$28 sps:$4 sm:$0xff]   ;;  %v21240_v49 = vld [vmem:[#allocation6 + $0x164] ss:$28 sps:$4 sm:$0xff]  }
 0x423   : > { %10947 = vmatpush1.bf16.msra.mxu0 %v21217_v40  ;;  %v21238_v40 = vld [vmem:[#allocation6 + $0x160] ss:$28 sps:$4 sm:$0xff]  }
 0x424   : > { %11173 = vmatpush1.bf16.msra.mxu1 %v21220_v47  ;;  %10948 = vmatprep.subr.bf16.mxu0 %v21225_v53  ;;  %v21243_v47 = vld [vmem:[#allocation6 + $0x1314] ss:$28 sps:$4 sm:$0xff]   ;;  %v21246_v53 = vld [vmem:[#allocation6 + $0x19c] ss:$28 sps:$4 sm:$0xff]  }
 0x425   : > { %10315 = vmatmul.mubr.bf16.gmra.mrb[104].mxu1 %v23594_v27  ;;  %11174 = vmatprep.subr.bf16.mxu1 %v21228_v9  ;;  %v21244_v9 = vld [vmem:[#allocation6 + $0x198] ss:$28 sps:$4 sm:$0xff]  }
 0x426   : > { %10880 = vmatmul.mubr.bf16.gmra.mrb[136].mxu0 %v23418_v12  ;;  %10324 = vmatprep.mubr.bf16.mxu1 %v23610_v51 }
 0x427   : > { %10889 = vmatprep.mubr.bf16.mxu0 %v23443_v42  ;;  %10949 = vmatpush1.bf16.msra.mxu0 %v21223_v2  ;;  %v21241_v2 = vld [vmem:[#allocation6 + $0x1310] ss:$28 sps:$4 sm:$0xff]   ;;  %v25359_v42 = vld [vmem:[#allocation73_spill] sm:$0xff] }
 0x428   : > { %11175 = vmatpush1.bf16.msra.mxu1 %v21226_v59  ;;  %10950 = vmatprep.subr.bf16.mxu0 %v21231_v44  ;;  %v21249_v59 = vld [vmem:[#allocation6 + $0x134c] ss:$28 sps:$4 sm:$0xff]  }
 0x429   : > { %11176 = vmatprep.subr.bf16.mxu1 %v21234_v32  ;;  %v21247_v44 = vld [vmem:[#allocation6 + $0x1348] ss:$28 sps:$4 sm:$0xff]   ;;  %v21252_v32 = vld [vmem:[#allocation6 + $0x1d4] ss:$28 sps:$4 sm:$0xff]  }
 0x42b   : > { %10951 = vmatpush1.bf16.msra.mxu0 %v21229_v38  ;;  %v21250_v38 = vld [vmem:[#allocation6 + $0x1d0] ss:$28 sps:$4 sm:$0xff]  }
 0x42c   : > { %11177 = vmatpush1.bf16.msra.mxu1 %v21232_v4  ;;  %10952 = vmatprep.subr.bf16.mxu0 %v21237_v20  ;;  %v21255_v4 = vld [vmem:[#allocation6 + $0x1384] ss:$28 sps:$4 sm:$0xff]   ;;  %v21258_v20 = vld [vmem:[#allocation6 + $0x20c] ss:$28 sps:$4 sm:$0xff]  }
 0x42d   : > { %10325 = vmatmul.mubr.bf16.gmra.mrb[108].mxu1 %v23606_v31  ;;  %11178 = vmatprep.subr.bf16.mxu1 %v21240_v49  ;;  %v21256_v49 = vld [vmem:[#allocation6 + $0x208] ss:$28 sps:$4 sm:$0xff]  }
 0x42e   : > { %10890 = vmatmul.mubr.bf16.gmra.mrb[140].mxu0 %v23438_v0  ;;  %10334 = vmatprep.mubr.bf16.mxu1 %v23622_v58 }
 0x42f   : > { %10899 = vmatprep.mubr.bf16.mxu0 %v23463_v45  ;;  %10953 = vmatpush1.bf16.msra.mxu0 %v21235_v61  ;;  %v21253_v61 = vld [vmem:[#allocation6 + $0x1380] ss:$28 sps:$4 sm:$0xff]  }
 0x430   : > { %11179 = vmatpush1.bf16.msra.mxu1 %v21238_v40  ;;  %10954 = vmatprep.subr.bf16.mxu0 %v21243_v47  ;;  %v21261_v40 = vld [vmem:[#allocation6 + $0x13bc] ss:$28 sps:$4 sm:$0xff]   ;;  %v25337_v45 = vld [vmem:[#allocation30_spill] sm:$0xff] }
 0x431   : > { %11180 = vmatprep.subr.bf16.mxu1 %v21246_v53  ;;  %v21259_v47 = vld [vmem:[#allocation6 + $0x13b8] ss:$28 sps:$4 sm:$0xff]   ;;  %v21264_v53 = vld [vmem:[#allocation6 + $0x244] ss:$28 sps:$4 sm:$0xff]  }
 0x433   : > { %10955 = vmatpush1.bf16.msra.mxu0 %v21241_v2  ;;  %v21262_v2 = vld [vmem:[#allocation6 + $0x240] ss:$28 sps:$4 sm:$0xff]  }
 0x434   : > { %11181 = vmatpush1.bf16.msra.mxu1 %v21244_v9  ;;  %10956 = vmatprep.subr.bf16.mxu0 %v21249_v59  ;;  %v21267_v9 = vld [vmem:[#allocation6 + $0x13f4] ss:$28 sps:$4 sm:$0xff]   ;;  %v21270_v59 = vld [vmem:[#allocation6 + $0x27c] ss:$28 sps:$4 sm:$0xff]  }
 0x435   : > { %10335 = vmatmul.mubr.bf16.gmra.mrb[112].mxu1 %v23618_v10  ;;  %11182 = vmatprep.subr.bf16.mxu1 %v21252_v32  ;;  %v21268_v32 = vld [vmem:[#allocation6 + $0x278] ss:$28 sps:$4 sm:$0xff]  }
 0x436   : > { %10900 = vmatmul.mubr.bf16.gmra.mrb[144].mxu0 %v25268_v25  ;;  %10344 = vmatprep.mubr.bf16.mxu1 %v23632_v33  ;;  %v25321_v25 = vld [vmem:[#allocation97_spill] sm:$0xff] }
 0x437   : > { %10909 = vmatprep.mubr.bf16.mxu0 %v25271_v34  ;;  %10957 = vmatpush1.bf16.msra.mxu0 %v21247_v44  ;;  %v21265_v44 = vld [vmem:[#allocation6 + $0x13f0] ss:$28 sps:$4 sm:$0xff]  }
 0x438   : > { %11183 = vmatpush1.bf16.msra.mxu1 %v21250_v38  ;;  %10958 = vmatprep.subr.bf16.mxu0 %v21255_v4  ;;  %v21273_v38 = vld [vmem:[#allocation6 + $0x142c] ss:$28 sps:$4 sm:$0xff]   ;;  %v21276_v4 = vld [vmem:[#allocation6 + $0x2b4] ss:$28 sps:$4 sm:$0xff]  }
 0x439   : > { %11184 = vmatprep.subr.bf16.mxu1 %v21258_v20  ;;  %v21271_v20 = vld [vmem:[#allocation6 + $0x1428] ss:$28 sps:$4 sm:$0xff]   ;;  %v25319_v34 = vld [vmem:[#allocation92_spill] sm:$0xff] }
 0x43b   : > { %10959 = vmatpush1.bf16.msra.mxu0 %v21253_v61  ;;  %v21274_v61 = vld [vmem:[#allocation6 + $0x2b0] ss:$28 sps:$4 sm:$0xff]  }
 0x43c   : > { %11185 = vmatpush1.bf16.msra.mxu1 %v21256_v49  ;;  %10960 = vmatprep.subr.bf16.mxu0 %v21261_v40  ;;  %v21279_v49 = vld [vmem:[#allocation6 + $0x1464] ss:$28 sps:$4 sm:$0xff]   ;;  %v21282_v40 = vld [vmem:[#allocation6 + $0x2ec] ss:$28 sps:$4 sm:$0xff]  }
 0x43d   : > { %10345 = vmatmul.mubr.bf16.gmra.mrb[116].mxu1 %v23629_v21  ;;  %11186 = vmatprep.subr.bf16.mxu1 %v21264_v53  ;;  %v25310_v53 = vld [vmem:[#allocation110_spill] sm:$0xff] }
 0x43e   : > { %10910 = vmatmul.mubr.bf16.gmra.mrb[148].mxu0 %v25274_v62  ;;  %10354 = vmatprep.mubr.bf16.mxu1 %v23644_v46  ;;  %v21306_v62 = vld [vmem:[#allocation6 + $0x3cc] ss:$28 sps:$4 sm:$0xff]  }
 0x43f   : > { %10919 = vmatprep.mubr.bf16.mxu0 %v23502_v18  ;;  %10961 = vmatpush1.bf16.msra.mxu0 %v21259_v47  ;;  %v25311_v47 = vld [vmem:[#allocation74_spill] sm:$0xff]  ;;  %v25312_v18 = vld [vmem:[#allocation68_spill] sm:$0xff] }
 0x440   : > { %11187 = vmatpush1.bf16.msra.mxu1 %v21262_v2  ;;  %10962 = vmatprep.subr.bf16.mxu0 %v21267_v9  ;;  %v21277_v2 = vld [vmem:[#allocation6 + $0x1460] ss:$28 sps:$4 sm:$0xff]   ;;  %v21280_v9 = vld [vmem:[#allocation6 + $0x2e8] ss:$28 sps:$4 sm:$0xff]  }
 0x441   : > { %11188 = vmatprep.subr.bf16.mxu1 %v21270_v59  ;;  %v21285_v59 = vld [vmem:[#allocation6 + $0x149c] ss:$28 sps:$4 sm:$0xff]  }
 0x443   : > { %10963 = vmatpush1.bf16.msra.mxu0 %v21265_v44  ;;  %v21288_v44 = vld [vmem:[#allocation6 + $0x324] ss:$28 sps:$4 sm:$0xff]  }
 0x444   : > { %11189 = vmatpush1.bf16.msra.mxu1 %v21268_v32  ;;  %10964 = vmatprep.subr.bf16.mxu0 %v21273_v38  ;;  %v21283_v32 = vld [vmem:[#allocation6 + $0x1498] ss:$28 sps:$4 sm:$0xff]   ;;  %v21286_v38 = vld [vmem:[#allocation6 + $0x320] ss:$28 sps:$4 sm:$0xff]  }
 0x445   : > { %10355 = vmatmul.mubr.bf16.gmra.mrb[120].mxu1 %v23641_v1  ;;  %11190 = vmatprep.subr.bf16.mxu1 %v21276_v4  ;;  %v21291_v4 = vld [vmem:[#allocation6 + $0x14d4] ss:$28 sps:$4 sm:$0xff]  }
 0x446   : > { %10920 = vmatmul.mubr.bf16.gmra.mrb[152].mxu0 %v25310_v53  ;;  %10364 = vmatprep.mubr.bf16.mxu1 %v23656_v55  ;;  %v21294_v53 = vld [vmem:[#allocation6 + $0x35c] ss:$28 sps:$4 sm:$0xff]  }
 0x447   : > { %10929 = vmatprep.mubr.bf16.mxu0 %v25311_v47  ;;  %10965 = vmatpush1.bf16.msra.mxu0 %v21271_v20  ;;  %v25313_v20 = vld [vmem:[#allocation27_spill] sm:$0xff]  ;;  %v21303_v47 = vld [vmem:[#allocation6 + $0x1544] ss:$28 sps:$4 sm:$0xff]  }
 0x448   : > { %11191 = vmatpush1.bf16.msra.mxu1 %v21274_v61  ;;  %10966 = vmatprep.subr.bf16.mxu0 %v21279_v49  ;;  %v25314_v61 = vld [vmem:[#allocation90_spill] sm:$0xff]  ;;  %v21289_v49 = vld [vmem:[#allocation6 + $0x14d0] ss:$28 sps:$4 sm:$0xff]  }
 0x449   : > { %11192 = vmatprep.subr.bf16.mxu1 %v21282_v40  ;;  %v21292_v40 = vld [vmem:[#allocation6 + $0x358] ss:$28 sps:$4 sm:$0xff]  }
 0x44b   : > { %10967 = vmatpush1.bf16.msra.mxu0 %v21277_v2  ;;  %v21297_v2 = vld [vmem:[#allocation6 + $0x150c] ss:$28 sps:$4 sm:$0xff]  }
 0x44c   : > { %11193 = vmatpush1.bf16.msra.mxu1 %v21280_v9  ;;  %10968 = vmatprep.subr.bf16.mxu0 %v21285_v59  ;;  %v21300_v9 = vld [vmem:[#allocation6 + $0x394] ss:$28 sps:$4 sm:$0xff]   ;;  %v21295_v59 = vld [vmem:[#allocation6 + $0x1508] ss:$28 sps:$4 sm:$0xff]  }
 0x44d   : > { %10365 = vmatmul.mubr.bf16.gmra.mrb[124].mxu1 %v23653_v8  ;;  %11194 = vmatprep.subr.bf16.mxu1 %v21288_v44  ;;  %v21298_v44 = vld [vmem:[#allocation6 + $0x390] ss:$28 sps:$4 sm:$0xff]  }
 0x44e   : > { %10930 = vmatmul.mubr.bf16.gmra.mrb[156].mxu0 %v25312_v18  ;;  %11198 = vmatprep.mubr.bf16.mxu1 %v25313_v20  ;;  %v25315_v18 = vld [vmem:[#allocation89_spill] sm:$0xff] }
 0x44f   : > { %10969 = vmatpush1.bf16.msra.mxu0 %v21283_v32  ;;  %10972 = vmatprep.mubr.bf16.mxu0 %v25314_v61  ;;  %v25316_v32 = vld [vmem:[#allocation25_spill] sm:$0xff] }
 0x450   : > { %11195 = vmatpush1.bf16.msra.mxu1 %v21286_v38  ;;  %10970 = vmatprep.subr.bf16.mxu0 %v21291_v4  ;;  %v25317_v61 = vld [vmem:[#allocation93_spill] sm:$0xff]  ;;  %v25318_v38 = vld [vmem:[#allocation31_spill] sm:$0xff] }
 0x451   : > { %11196 = vmatprep.subr.bf16.mxu1 %v21294_v53  ;;  %v21301_v4 = vld [vmem:[#allocation6 + $0x1540] ss:$28 sps:$4 sm:$0xff]   ;;  %v21304_v53 = vld [vmem:[#allocation6 + $0x3c8] ss:$28 sps:$4 sm:$0xff]  }
 0x453   : > { %10971 = vmatpush1.bf16.msra.mxu0 %v21289_v49  ;;  %v21309_v49 = vld [vmem:[#allocation6 + $0x157c] ss:$28 sps:$4 sm:$0xff]  }
 0x454   : > { %11197 = vmatpush1.bf16.msra.mxu1 %v21292_v40  ;;  %11053 = vmatprep.subr.bf16.mxu0 %v21297_v2  ;;  %v21312_v40 = vld [vmem:[#allocation6 + $0x404] ss:$28 sps:$4 sm:$0xff]   ;;  %v21307_v2 = vld [vmem:[#allocation6 + $0x1578] ss:$28 sps:$4 sm:$0xff]  }
 0x455   : > { %11279 = vmatprep.subr.bf16.mxu1 %v21300_v9  ;;  %v21310_v9 = vld [vmem:[#allocation6 + $0x400] ss:$28 sps:$4 sm:$0xff]  }
 0x456   : > { %10973 = vmatmul.mubr.bf16.vlgmr.msra.gmra.mrb[128].mxu0 %v25315_v18  ;;  %v21315_v18 = vld [vmem:[#allocation6 + $0x15b4] ss:$28 sps:$4 sm:$0xff]  }
 0x457   : > { %11199 = vmatmul.mubr.bf16.vlgmr.msra.gmra.mrb[128].mxu1 %v25316_v32  ;;  %10982 = vmatprep.mubr.bf16.mxu0 %v25317_v61  ;;  %v21318_v61 = vld [vmem:[#allocation6 + $0x43c] ss:$28 sps:$4 sm:$0xff]  }
 0x458   : > { %11054 = vmatpush1.bf16.msra.mxu0 %v21295_v59  ;;  %11208 = vmatprep.mubr.bf16.mxu1 %v25318_v38  ;;  %v25320_v59 = vld [vmem:[#allocation29_spill] sm:$0xff] }
 0x459   : > { %11280 = vmatpush1.bf16.msra.mxu1 %v21298_v44  ;;  %11055 = vmatprep.subr.bf16.mxu0 %v21303_v47  ;;  %v25322_v47 = vld [vmem:[#allocation35_spill] sm:$0xff] }
 0x45a   : > { %11281 = vmatprep.subr.bf16.mxu1 %v21306_v62  ;;  %v21313_v44 = vld [vmem:[#allocation6 + $0x15b0] ss:$28 sps:$4 sm:$0xff]   ;;  %v21316_v62 = vld [vmem:[#allocation6 + $0x438] ss:$28 sps:$4 sm:$0xff]  }
 0x45c   : > { %11056 = vmatpush1.bf16.msra.mxu0 %v21301_v4  ;;  %v21321_v4 = vld [vmem:[#allocation6 + $0x15ec] ss:$28 sps:$4 sm:$0xff]  }
 0x45d   : > { %11282 = vmatpush1.bf16.msra.mxu1 %v21304_v53  ;;  %11057 = vmatprep.subr.bf16.mxu0 %v21309_v49  ;;  %v21324_v53 = vld [vmem:[#allocation6 + $0x474] ss:$28 sps:$4 sm:$0xff]   ;;  %v21319_v49 = vld [vmem:[#allocation6 + $0x15e8] ss:$28 sps:$4 sm:$0xff]  }
 0x45e   : > { %10983 = vmatmul.mubr.bf16.gmra.mrb[132].mxu0 %v25319_v34  ;;  %11283 = vmatprep.subr.bf16.mxu1 %v21312_v40  ;;  %v21322_v40 = vld [vmem:[#allocation6 + $0x470] ss:$28 sps:$4 sm:$0xff]   ;;  %v21327_v34 = vld [vmem:[#allocation6 + $0x1624] ss:$28 sps:$4 sm:$0xff]  }
 0x45f   : > { %11209 = vmatmul.mubr.bf16.gmra.mrb[132].mxu1 %v25320_v59  ;;  %10992 = vmatprep.mubr.bf16.mxu0 %v25321_v25  ;;  %v21330_v25 = vld [vmem:[#allocation6 + $0x4ac] ss:$28 sps:$4 sm:$0xff]  }
 0x460   : > { %11058 = vmatpush1.bf16.msra.mxu0 %v21307_v2  ;;  %11218 = vmatprep.mubr.bf16.mxu1 %v25322_v47  ;;  %v25323_v2 = vld [vmem:[#allocation33_spill] sm:$0xff] }
 0x461   : > { %11284 = vmatpush1.bf16.msra.mxu1 %v21310_v9  ;;  %11059 = vmatprep.subr.bf16.mxu0 %v21315_v18  ;;  %v25324_v18 = vld [vmem:[#allocation39_spill] sm:$0xff]  ;;  %v21325_v9 = vld [vmem:[#allocation6 + $0x1620] ss:$28 sps:$4 sm:$0xff]  }
 0x462   : > { %11285 = vmatprep.subr.bf16.mxu1 %v21318_v61  ;;  %v21328_v61 = vld [vmem:[#allocation6 + $0x4a8] ss:$28 sps:$4 sm:$0xff]  }
 0x464   : > { %11060 = vmatpush1.bf16.msra.mxu0 %v21313_v44  ;;  %v21333_v44 = vld [vmem:[#allocation6 + $0x165c] ss:$28 sps:$4 sm:$0xff]  }
 0x465   : > { %11286 = vmatpush1.bf16.msra.mxu1 %v21316_v62  ;;  %11061 = vmatprep.subr.bf16.mxu0 %v21321_v4  ;;  %v21336_v62 = vld [vmem:[#allocation6 + $0x4e4] ss:$28 sps:$4 sm:$0xff]   ;;  %v21331_v4 = vld [vmem:[#allocation6 + $0x1658] ss:$28 sps:$4 sm:$0xff]  }
 0x466   : > { %10993 = vmatmul.mubr.bf16.gmra.mrb[136].mxu0 %v25300_v63  ;;  %11287 = vmatprep.subr.bf16.mxu1 %v21324_v53  ;;  %v21334_v53 = vld [vmem:[#allocation6 + $0x4e0] ss:$28 sps:$4 sm:$0xff]   ;;  %v21339_v63 = vld [vmem:[#allocation6 + $0x1694] ss:$28 sps:$4 sm:$0xff]  }
 0x467   : > { %11219 = vmatmul.mubr.bf16.gmra.mrb[136].mxu1 %v25323_v2  ;;  %11002 = vmatprep.mubr.bf16.mxu0 %v25302_v13  ;;  %v21342_v13 = vld [vmem:[#allocation6 + $0x51c] ss:$28 sps:$4 sm:$0xff]  }
 0x468   : > { %11062 = vmatpush1.bf16.msra.mxu0 %v21319_v49  ;;  %11228 = vmatprep.mubr.bf16.mxu1 %v25324_v18  ;;  %v25325_v49 = vld [vmem:[#allocation37_spill] sm:$0xff] }
 0x469   : > { %11288 = vmatpush1.bf16.msra.mxu1 %v21322_v40  ;;  %11063 = vmatprep.subr.bf16.mxu0 %v21327_v34  ;;  %v25326_v34 = vld [vmem:[#allocation43_spill] sm:$0xff] }
 0x46a   : > { %11289 = vmatprep.subr.bf16.mxu1 %v21330_v25  ;;  %v21337_v40 = vld [vmem:[#allocation6 + $0x1690] ss:$28 sps:$4 sm:$0xff]   ;;  %v21340_v25 = vld [vmem:[#allocation6 + $0x518] ss:$28 sps:$4 sm:$0xff]  }
 0x46c   : > { %11064 = vmatpush1.bf16.msra.mxu0 %v21325_v9  ;;  %v21345_v9 = vld [vmem:[#allocation6 + $0x16cc] ss:$28 sps:$4 sm:$0xff]  }
 0x46d   : > { %11290 = vmatpush1.bf16.msra.mxu1 %v21328_v61  ;;  %11065 = vmatprep.subr.bf16.mxu0 %v21333_v44  ;;  %v21348_v61 = vld [vmem:[#allocation6 + $0x554] ss:$28 sps:$4 sm:$0xff]   ;;  %v21343_v44 = vld [vmem:[#allocation6 + $0x16c8] ss:$28 sps:$4 sm:$0xff]  }
 0x46e   : > { %11003 = vmatmul.mubr.bf16.gmra.mrb[140].mxu0 %v25303_v48  ;;  %11291 = vmatprep.subr.bf16.mxu1 %v21336_v62  ;;  %v21346_v62 = vld [vmem:[#allocation6 + $0x550] ss:$28 sps:$4 sm:$0xff]   ;;  %v21351_v48 = vld [vmem:[#allocation6 + $0x1704] ss:$28 sps:$4 sm:$0xff]  }
 0x46f   : > { %11229 = vmatmul.mubr.bf16.gmra.mrb[140].mxu1 %v25325_v49  ;;  %11012 = vmatprep.mubr.bf16.mxu0 %v25304_v60  ;;  %v21354_v60 = vld [vmem:[#allocation6 + $0x58c] ss:$28 sps:$4 sm:$0xff]  }
 0x470   : > { %11066 = vmatpush1.bf16.msra.mxu0 %v21331_v4  ;;  %11238 = vmatprep.mubr.bf16.mxu1 %v25326_v34  ;;  %v25327_v4 = vld [vmem:[#allocation41_spill] sm:$0xff] }
 0x471   : > { %11292 = vmatpush1.bf16.msra.mxu1 %v21334_v53  ;;  %11067 = vmatprep.subr.bf16.mxu0 %v21339_v63  ;;  %v25328_v63 = vld [vmem:[#allocation47_spill] sm:$0xff]  ;;  %v21349_v53 = vld [vmem:[#allocation6 + $0x1700] ss:$28 sps:$4 sm:$0xff]  }
 0x472   : > { %11293 = vmatprep.subr.bf16.mxu1 %v21342_v13  ;;  %v21352_v13 = vld [vmem:[#allocation6 + $0x588] ss:$28 sps:$4 sm:$0xff]  }
 0x474   : > { %11068 = vmatpush1.bf16.msra.mxu0 %v21337_v40  ;;  %v21357_v40 = vld [vmem:[#allocation6 + $0x173c] ss:$28 sps:$4 sm:$0xff]  }
 0x475   : > { %11294 = vmatpush1.bf16.msra.mxu1 %v21340_v25  ;;  %11069 = vmatprep.subr.bf16.mxu0 %v21345_v9  ;;  %v21360_v25 = vld [vmem:[#allocation6 + $0x5c4] ss:$28 sps:$4 sm:$0xff]   ;;  %v21355_v9 = vld [vmem:[#allocation6 + $0x1738] ss:$28 sps:$4 sm:$0xff]  }
 0x476   : > { %11013 = vmatmul.mubr.bf16.gmra.mrb[144].mxu0 %v25305_v19  ;;  %11295 = vmatprep.subr.bf16.mxu1 %v21348_v61  ;;  %v21358_v61 = vld [vmem:[#allocation6 + $0x5c0] ss:$28 sps:$4 sm:$0xff]   ;;  %v21363_v19 = vld [vmem:[#allocation6 + $0x1774] ss:$28 sps:$4 sm:$0xff]  }
 0x477   : > { %11239 = vmatmul.mubr.bf16.gmra.mrb[144].mxu1 %v25327_v4  ;;  %11022 = vmatprep.mubr.bf16.mxu0 %v25306_v43  ;;  %v21366_v43 = vld [vmem:[#allocation6 + $0x5fc] ss:$28 sps:$4 sm:$0xff]  }
 0x478   : > { %11070 = vmatpush1.bf16.msra.mxu0 %v21343_v44  ;;  %11248 = vmatprep.mubr.bf16.mxu1 %v25328_v63  ;;  %v25329_v44 = vld [vmem:[#allocation45_spill] sm:$0xff] }
 0x479   : > { %11296 = vmatpush1.bf16.msra.mxu1 %v21346_v62  ;;  %11071 = vmatprep.subr.bf16.mxu0 %v21351_v48  ;;  %v25330_v48 = vld [vmem:[#allocation51_spill] sm:$0xff] }
 0x47a   : > { %11297 = vmatprep.subr.bf16.mxu1 %v21354_v60  ;;  %v21361_v62 = vld [vmem:[#allocation6 + $0x1770] ss:$28 sps:$4 sm:$0xff]   ;;  %v21364_v60 = vld [vmem:[#allocation6 + $0x5f8] ss:$28 sps:$4 sm:$0xff]  }
 0x47c   : > { %11072 = vmatpush1.bf16.msra.mxu0 %v21349_v53  ;;  %v21369_v53 = vld [vmem:[#allocation6 + $0x17ac] ss:$28 sps:$4 sm:$0xff]  }
 0x47d   : > { %11298 = vmatpush1.bf16.msra.mxu1 %v21352_v13  ;;  %11073 = vmatprep.subr.bf16.mxu0 %v21357_v40  ;;  %v21372_v13 = vld [vmem:[#allocation6 + $0x634] ss:$28 sps:$4 sm:$0xff]   ;;  %v21367_v40 = vld [vmem:[#allocation6 + $0x17a8] ss:$28 sps:$4 sm:$0xff]  }
 0x47e   : > { %11023 = vmatmul.mubr.bf16.gmra.mrb[148].mxu0 %v25307_v52  ;;  %11299 = vmatprep.subr.bf16.mxu1 %v21360_v25  ;;  %v21370_v25 = vld [vmem:[#allocation6 + $0x630] ss:$28 sps:$4 sm:$0xff]   ;;  %v21375_v52 = vld [vmem:[#allocation6 + $0x17e4] ss:$28 sps:$4 sm:$0xff]  }
 0x47f   : > { %11249 = vmatmul.mubr.bf16.gmra.mrb[148].mxu1 %v25329_v44  ;;  %11032 = vmatprep.mubr.bf16.mxu0 %v25308_v30  ;;  %v21378_v30 = vld [vmem:[#allocation6 + $0x66c] ss:$28 sps:$4 sm:$0xff]  }
 0x480   : > { %11074 = vmatpush1.bf16.msra.mxu0 %v21355_v9  ;;  %11258 = vmatprep.mubr.bf16.mxu1 %v25330_v48  ;;  %v25331_v9 = vld [vmem:[#allocation49_spill] sm:$0xff] }
 0x481   : > { %11300 = vmatpush1.bf16.msra.mxu1 %v21358_v61  ;;  %11075 = vmatprep.subr.bf16.mxu0 %v21363_v19  ;;  %v25332_v19 = vld [vmem:[#allocation55_spill] sm:$0xff]  ;;  %v21373_v61 = vld [vmem:[#allocation6 + $0x17e0] ss:$28 sps:$4 sm:$0xff]  }
 0x482   : > { %11301 = vmatprep.subr.bf16.mxu1 %v21366_v43  ;;  %v21376_v43 = vld [vmem:[#allocation6 + $0x668] ss:$28 sps:$4 sm:$0xff]  }
 0x484   : > { %11076 = vmatpush1.bf16.msra.mxu0 %v21361_v62  ;;  %v21381_v62 = vld [vmem:[#allocation6 + $0x181c] ss:$28 sps:$4 sm:$0xff]  }
 0x485   : > { %11302 = vmatpush1.bf16.msra.mxu1 %v21364_v60  ;;  %11077 = vmatprep.subr.bf16.mxu0 %v21369_v53  ;;  %v21384_v60 = vld [vmem:[#allocation6 + $0x6a4] ss:$28 sps:$4 sm:$0xff]   ;;  %v21379_v53 = vld [vmem:[#allocation6 + $0x1818] ss:$28 sps:$4 sm:$0xff]  }
 0x486   : > { %11033 = vmatmul.mubr.bf16.gmra.mrb[152].mxu0 %v25309_v15  ;;  %11303 = vmatprep.subr.bf16.mxu1 %v21372_v13  ;;  %v21382_v13 = vld [vmem:[#allocation6 + $0x6a0] ss:$28 sps:$4 sm:$0xff]   ;;  %v21387_v15 = vld [vmem:[#allocation6 + $0x1854] ss:$28 sps:$4 sm:$0xff]  }
 0x487   : > { %11259 = vmatmul.mubr.bf16.gmra.mrb[152].mxu1 %v25331_v9  ;;  %11042 = vmatprep.mubr.bf16.mxu0 %v23524_v37  ;;  %v21390_v37 = vld [vmem:[#allocation6 + $0x6dc] ss:$28 sps:$4 sm:$0xff]  }
 0x488   : > { %11078 = vmatpush1.bf16.msra.mxu0 %v21367_v40  ;;  %11268 = vmatprep.mubr.bf16.mxu1 %v25332_v19  ;;  %v25333_v40 = vld [vmem:[#allocation53_spill] sm:$0xff] }
 0x489   : > { %11304 = vmatpush1.bf16.msra.mxu1 %v21370_v25  ;;  %11079 = vmatprep.subr.bf16.mxu0 %v21375_v52  ;;  %v25334_v52 = vld [vmem:[#allocation28_spill] sm:$0xff] }
 0x48a   : > { %11305 = vmatprep.subr.bf16.mxu1 %v21378_v30  ;;  %v21385_v25 = vld [vmem:[#allocation6 + $0x1850] ss:$28 sps:$4 sm:$0xff]   ;;  %v21388_v30 = vld [vmem:[#allocation6 + $0x6d8] ss:$28 sps:$4 sm:$0xff]  }
 0x48c   : > { %11080 = vmatpush1.bf16.msra.mxu0 %v21373_v61  ;;  %v21394_v61 = vld [vmem:[#allocation6 + $0x1d8] ss:$28 sps:$4 sm:$0xff]  }
 0x48d   : > { %11306 = vmatpush1.bf16.msra.mxu1 %v21376_v43  ;;  %11081 = vmatprep.subr.bf16.mxu0 %v21381_v62  ;;  %v21393_v43 = vld [vmem:[#allocation6 + $0x714] ss:$28 sps:$4 sm:$0xff]  }
 0x48e   : > { %11043 = vmatmul.mubr.bf16.gmra.mrb[156].mxu0 %v23518_v14  ;;  %11307 = vmatprep.subr.bf16.mxu1 %v21384_v60  ;;  %v21391_v62 = vld [vmem:[#allocation6 + $0x710] ss:$28 sps:$4 sm:$0xff]   ;;  %v21395_v60 = vld [vmem:[#allocation6 + $0x18] ss:$28 sps:$4 sm:$0xff]  }
 0x48f   : > { %11269 = vmatmul.mubr.bf16.gmra.mrb[156].mxu1 %v25333_v40  ;;  %11085 = vmatprep.mubr.bf16.mxu0 %v23574_v7  ;;  %v21398_v14 = vld [vmem:[#allocation6 + $0x74c] ss:$28 sps:$4 sm:$0xff]  }
 0x490   : > { %11082 = vmatpush1.bf16.msra.mxu0 %v21379_v53  ;;  %11311 = vmatprep.mubr.bf16.mxu1 %v25334_v52  ;;  %v21402_v7 = vld [vmem:[#allocation6 + $0x210] ss:$28 sps:$4 sm:$0xff]   ;;  %v25335_v53 = vld [vmem:[#allocation26_spill] sm:$0xff] }
 0x491   : > { %11308 = vmatpush1.bf16.msra.mxu1 %v21382_v13  ;;  %11083 = vmatprep.subr.bf16.mxu0 %v21387_v15  ;;  %v25336_v13 = vld [vmem:[#allocation32_spill] sm:$0xff]  ;;  %v21396_v15 = vld [vmem:[#allocation6 + $0x748] ss:$28 sps:$4 sm:$0xff]  }
 0x492   : > { %11309 = vmatprep.subr.bf16.mxu1 %v21390_v37  ;;  %v21401_v37 = vld [vmem:[#allocation6 + $0x784] ss:$28 sps:$4 sm:$0xff]  }
 0x494   : > { %11084 = vmatpush1.bf16.msra.mxu0 %v21385_v25  ;;  %v21403_v25 = vld [vmem:[#allocation6 + $0x50] ss:$28 sps:$4 sm:$0xff]  }
 0x495   : > { %11310 = vmatpush1.bf16.msra.mxu1 %v21388_v30  ;;  %17971 = vmatprep.subr.bf16.mxu0 %v21394_v61  ;;  %v21410_v30 = vld [vmem:[#allocation6 + $0x248] ss:$28 sps:$4 sm:$0xff]   ;;  %v21399_v61 = vld [vmem:[#allocation6 + $0x780] ss:$28 sps:$4 sm:$0xff]  }
 0x496   : > { %11392 = vmatprep.subr.bf16.mxu1 %v21393_v43  ;;  %v21406_v43 = vld [vmem:[#allocation6 + $0x7bc] ss:$28 sps:$4 sm:$0xff]  }
 0x497   : > { %11086 = vmatmul.mubr.bf16.vlgmr.msra.gmra.mrb[128].mxu0 %v23570_v39  ;;  %v21411_v39 = vld [vmem:[#allocation6 + $0x88] ss:$28 sps:$4 sm:$0xff]  }
 0x498   : > { %11312 = vmatmul.mubr.bf16.vlgmr.msra.gmra.mrb[128].mxu1 %v25335_v53  ;;  %11095 = vmatprep.mubr.bf16.mxu0 %v23586_v26  ;;  %v21418_v26 = vld [vmem:[#allocation6 + $0x280] ss:$28 sps:$4 sm:$0xff]  }
 0x499   : > { %11321 = vmatprep.mubr.bf16.mxu1 %v25336_v13  ;;  %11393 = vmatpush1.bf16.msra.mxu1 %v21391_v62  ;;  %v25338_v62 = vld [vmem:[#allocation36_spill] sm:$0xff] }
 0x49a   : > { %17972 = vmatpush3.bf16.msra.mxu0 %v21395_v60  ;;  %11394 = vmatprep.subr.bf16.mxu1 %v21398_v14  ;;  %v21404_v14 = vld [vmem:[#allocation6 + $0x7b8] ss:$28 sps:$4 sm:$0xff]   ;;  %v21419_v60 = vld [vmem:[#allocation6 + $0xc0] ss:$28 sps:$4 sm:$0xff]  }
 0x49b   : > { %17973 = vmatprep.subr.bf16.mxu0 %v21402_v7  ;;  %v21409_v7 = vld [vmem:[#allocation6 + $0x7f4] ss:$28 sps:$4 sm:$0xff]  }
 0x49d   : > { %11395 = vmatpush1.bf16.msra.mxu1 %v21396_v15  ;;  %v21426_v15 = vld [vmem:[#allocation6 + $0x2b8] ss:$28 sps:$4 sm:$0xff]  }
 0x49e   : > { %11396 = vmatprep.subr.bf16.mxu1 %v21401_v37  ;;  %17974 = vmatpush3.bf16.msra.mxu0 %v21403_v25  ;;  %v21407_v37 = vld [vmem:[#allocation6 + $0x7f0] ss:$28 sps:$4 sm:$0xff]  }
 0x49f   : > { %11096 = vmatmul.mubr.bf16.gmra.mrb[132].mxu0 %v23582_v50  ;;  %17975 = vmatprep.subr.bf16.mxu0 %v21410_v30  ;;  %v21414_v25 = vld [vmem:[#allocation6 + $0x82c] ss:$28 sps:$4 sm:$0xff]   ;;  %v21427_v30 = vld [vmem:[#allocation6 + $0xf8] ss:$28 sps:$4 sm:$0xff]   ;;  %v25339_v50 = vld [vmem:[#allocation34_spill] sm:$0xff] }
 0x4a0   : > { %11322 = vmatmul.mubr.bf16.gmra.mrb[132].mxu1 %v25337_v45  ;;  %11105 = vmatprep.mubr.bf16.mxu0 %v23598_v6  ;;  %v21434_v6 = vld [vmem:[#allocation6 + $0x2f0] ss:$28 sps:$4 sm:$0xff]  }
 0x4a1   : > { %11331 = vmatprep.mubr.bf16.mxu1 %v25338_v62  ;;  %11397 = vmatpush1.bf16.msra.mxu1 %v21399_v61  ;;  %v25340_v61 = vld [vmem:[#allocation40_spill] sm:$0xff] }
 0x4a2   : > { %11398 = vmatprep.subr.bf16.mxu1 %v21406_v43  ;;  %17976 = vmatpush3.bf16.msra.mxu0 %v21411_v39  ;;  %v21412_v39 = vld [vmem:[#allocation6 + $0x828] ss:$28 sps:$4 sm:$0xff]   ;;  %v21435_v43 = vld [vmem:[#allocation6 + $0x130] ss:$28 sps:$4 sm:$0xff]  }
 0x4a3   : > { %17977 = vmatprep.subr.bf16.mxu0 %v21418_v26  ;;  %v21417_v26 = vld [vmem:[#allocation6 + $0x864] ss:$28 sps:$4 sm:$0xff]  }
 0x4a5   : > { %11399 = vmatpush1.bf16.msra.mxu1 %v21404_v14  ;;  %v21442_v14 = vld [vmem:[#allocation6 + $0x328] ss:$28 sps:$4 sm:$0xff]  }
 0x4a6   : > { %11400 = vmatprep.subr.bf16.mxu1 %v21409_v7  ;;  %17978 = vmatpush3.bf16.msra.mxu0 %v21419_v60  ;;  %v21415_v7 = vld [vmem:[#allocation6 + $0x860] ss:$28 sps:$4 sm:$0xff]  }
 0x4a7   : > { %11106 = vmatmul.mubr.bf16.gmra.mrb[136].mxu0 %v23594_v27  ;;  %17979 = vmatprep.subr.bf16.mxu0 %v21426_v15  ;;  %v21422_v60 = vld [vmem:[#allocation6 + $0x89c] ss:$28 sps:$4 sm:$0xff]   ;;  %v21443_v15 = vld [vmem:[#allocation6 + $0x168] ss:$28 sps:$4 sm:$0xff]  }
 0x4a8   : > { %11332 = vmatmul.mubr.bf16.gmra.mrb[136].mxu1 %v25339_v50  ;;  %11115 = vmatprep.mubr.bf16.mxu0 %v23610_v51  ;;  %v21450_v51 = vld [vmem:[#allocation6 + $0x360] ss:$28 sps:$4 sm:$0xff]  }
 0x4a9   : > { %11341 = vmatprep.mubr.bf16.mxu1 %v25340_v61  ;;  %11401 = vmatpush1.bf16.msra.mxu1 %v21407_v37  ;;  %v25341_v27 = vld [vmem:[#allocation38_spill] sm:$0xff]  ;;  %v25342_v37 = vld [vmem:[#allocation44_spill] sm:$0xff] }
 0x4aa   : > { %11402 = vmatprep.subr.bf16.mxu1 %v21414_v25  ;;  %17980 = vmatpush3.bf16.msra.mxu0 %v21427_v30  ;;  %v21420_v25 = vld [vmem:[#allocation6 + $0x898] ss:$28 sps:$4 sm:$0xff]   ;;  %v21451_v30 = vld [vmem:[#allocation6 + $0x1a0] ss:$28 sps:$4 sm:$0xff]  }
 0x4ab   : > { %17981 = vmatprep.subr.bf16.mxu0 %v21434_v6  ;;  %v21425_v6 = vld [vmem:[#allocation6 + $0x8d4] ss:$28 sps:$4 sm:$0xff]  }
 0x4ad   : > { %11403 = vmatpush1.bf16.msra.mxu1 %v21412_v39  ;;  %v21458_v39 = vld [vmem:[#allocation6 + $0x558] ss:$28 sps:$4 sm:$0xff]  }
 0x4ae   : > { %11404 = vmatprep.subr.bf16.mxu1 %v21417_v26  ;;  %17982 = vmatpush3.bf16.msra.mxu0 %v21435_v43  ;;  %v21423_v26 = vld [vmem:[#allocation6 + $0x8d0] ss:$28 sps:$4 sm:$0xff]  }
 0x4af   : > { %11116 = vmatmul.mubr.bf16.gmra.mrb[140].mxu0 %v23606_v31  ;;  %17983 = vmatprep.subr.bf16.mxu0 %v21442_v14  ;;  %v21430_v43 = vld [vmem:[#allocation6 + $0x90c] ss:$28 sps:$4 sm:$0xff]   ;;  %v25343_v14 = vld [vmem:[#allocation42_spill] sm:$0xff] }
 0x4b0   : > { %11342 = vmatmul.mubr.bf16.gmra.mrb[140].mxu1 %v25341_v27  ;;  %11125 = vmatprep.mubr.bf16.mxu0 %v23622_v58  ;;  %v21475_v58 = vld [vmem:[#allocation6 + $0x408] ss:$28 sps:$4 sm:$0xff]  }
 0x4b1   : > { %11351 = vmatprep.mubr.bf16.mxu1 %v25342_v37  ;;  %11405 = vmatpush1.bf16.msra.mxu1 %v21415_v7  ;;  %v25344_v7 = vld [vmem:[#allocation48_spill] sm:$0xff]  ;;  %v25353_v31 = vld [vmem:[#allocation63_spill] sm:$0xff] }
 0x4b2   : > { %11406 = vmatprep.subr.bf16.mxu1 %v21422_v60  ;;  %17984 = vmatpush3.bf16.msra.mxu0 %v21443_v15  ;;  %v21428_v60 = vld [vmem:[#allocation6 + $0x908] ss:$28 sps:$4 sm:$0xff]  }
 0x4b3   : > { %17985 = vmatprep.subr.bf16.mxu0 %v21450_v51  ;;  %v21433_v15 = vld [vmem:[#allocation6 + $0x944] ss:$28 sps:$4 sm:$0xff]  }
 0x4b4   : > { %v21431_v51 = vld [vmem:[#allocation6 + $0x940] ss:$28 sps:$4 sm:$0xff]  }
 0x4b5   : > { %11407 = vmatpush1.bf16.msra.mxu1 %v21420_v25  ;;  %v21438_v25 = vld [vmem:[#allocation6 + $0x97c] ss:$28 sps:$4 sm:$0xff]  }
 0x4b6   : > { %11408 = vmatprep.subr.bf16.mxu1 %v21425_v6  ;;  %17986 = vmatpush3.bf16.msra.mxu0 %v21451_v30  ;;  %v25345_v6 = vld [vmem:[#allocation46_spill] sm:$0xff]  ;;  %v25346_v30 = vld [vmem:[#allocation52_spill] sm:$0xff] }
 0x4b7   : > { %11126 = vmatmul.mubr.bf16.gmra.mrb[144].mxu0 %v23618_v10  ;;  %18035 = vmatprep.subr.bf16.mxu0 %v21458_v39  ;;  %v21436_v39 = vld [vmem:[#allocation6 + $0x978] ss:$28 sps:$4 sm:$0xff]   ;;  %v25351_v10 = vld [vmem:[#allocation59_spill] sm:$0xff] }
 0x4b8   : > { %11352 = vmatmul.mubr.bf16.gmra.mrb[144].mxu1 %v25343_v14  ;;  %11135 = vmatprep.mubr.bf16.mxu0 %v23632_v33  ;;  %v21441_v33 = vld [vmem:[#allocation6 + $0x9b4] ss:$28 sps:$4 sm:$0xff]  }
 0x4b9   : > { %11361 = vmatprep.mubr.bf16.mxu1 %v25344_v7  ;;  %11409 = vmatpush1.bf16.msra.mxu1 %v21423_v26  ;;  %v21439_v26 = vld [vmem:[#allocation6 + $0x9b0] ss:$28 sps:$4 sm:$0xff]  }
 0x4ba   : > { %11410 = vmatprep.subr.bf16.mxu1 %v21430_v43  ;;  %v21446_v43 = vld [vmem:[#allocation6 + $0x9ec] ss:$28 sps:$4 sm:$0xff]  }
 0x4bd   : > { %11411 = vmatpush1.bf16.msra.mxu1 %v21428_v60  ;;  %v25347_v60 = vld [vmem:[#allocation50_spill] sm:$0xff] }
 0x4be   : > { %11412 = vmatprep.subr.bf16.mxu1 %v21433_v15  ;;  %v25348_v15 = vld [vmem:[#allocation56_spill] sm:$0xff] }
 0x4bf   : > { %11136 = vmatmul.mubr.bf16.gmra.mrb[148].mxu0 %v23629_v21  ;;  %v21449_v21 = vld [vmem:[#allocation6 + $0xa24] ss:$28 sps:$4 sm:$0xff]  }
 0x4c0   : > { %11362 = vmatmul.mubr.bf16.gmra.mrb[148].mxu1 %v25345_v6  ;;  %11145 = vmatprep.mubr.bf16.mxu0 %v23644_v46  ;;  %v21444_v46 = vld [vmem:[#allocation6 + $0x9e8] ss:$28 sps:$4 sm:$0xff]  }
 0x4c1   : > { %11371 = vmatprep.mubr.bf16.mxu1 %v25346_v30  ;;  %11413 = vmatpush1.bf16.msra.mxu1 %v21431_v51  ;;  %v21447_v51 = vld [vmem:[#allocation6 + $0xa20] ss:$28 sps:$4 sm:$0xff]  }
 0x4c2   : > { %11414 = vmatprep.subr.bf16.mxu1 %v21438_v25  ;;  %v21454_v25 = vld [vmem:[#allocation6 + $0xa5c] ss:$28 sps:$4 sm:$0xff]  }
 0x4c5   : > { %11415 = vmatpush1.bf16.msra.mxu1 %v21436_v39  ;;  %v25350_v39 = vld [vmem:[#allocation61_spill] sm:$0xff] }
 0x4c6   : > { %11416 = vmatprep.subr.bf16.mxu1 %v21441_v33  ;;  %v25349_v33 = vld [vmem:[#allocation54_spill] sm:$0xff] }
 0x4c7   : > { %11146 = vmatmul.mubr.bf16.gmra.mrb[152].mxu0 %v23641_v1  ;;  %v21457_v1 = vld [vmem:[#allocation6 + $0xa94] ss:$28 sps:$4 sm:$0xff]  }
 0x4c8   : > { %11372 = vmatmul.mubr.bf16.gmra.mrb[152].mxu1 %v25347_v60  ;;  %11155 = vmatprep.mubr.bf16.mxu0 %v23656_v55  ;;  %v21452_v55 = vld [vmem:[#allocation6 + $0xa58] ss:$28 sps:$4 sm:$0xff]  }
 0x4c9   : > { %11381 = vmatprep.mubr.bf16.mxu1 %v25348_v15  ;;  %11417 = vmatpush1.bf16.msra.mxu1 %v21439_v26  ;;  %v21455_v26 = vld [vmem:[#allocation6 + $0xa90] ss:$28 sps:$4 sm:$0xff]  }
 0x4ca   : > { %11418 = vmatprep.subr.bf16.mxu1 %v21446_v43  ;;  %v21459_v43 = vld [vmem:[#allocation6 + $0x398] ss:$28 sps:$4 sm:$0xff]  }
 0x4cd   : > { %11419 = vmatpush1.bf16.msra.mxu1 %v21444_v46  ;;  %v21462_v46 = vld [vmem:[#allocation6 + $0xacc] ss:$28 sps:$4 sm:$0xff]  }
 0x4ce   : > { %11420 = vmatprep.subr.bf16.mxu1 %v21449_v21  ;;  %v21466_v21 = vld [vmem:[#allocation6 + $0x590] ss:$28 sps:$4 sm:$0xff]  }
 0x4cf   : > { %11156 = vmatmul.mubr.bf16.gmra.mrb[156].mxu0 %v23653_v8  ;;  %v25352_v8 = vld [vmem:[#allocation65_spill] sm:$0xff] }
 0x4d0   : > { %11382 = vmatmul.mubr.bf16.gmra.mrb[156].mxu1 %v25349_v33  ;;  %11989 = vmatprep.mubr.bf16.mxu0 %v25313_v20  ;;  %v21460_v20 = vld [vmem:[#allocation6 + $0xac8] ss:$28 sps:$4 sm:$0xff]  }
 0x4d1   : > { %11421 = vmatpush1.bf16.msra.mxu1 %v21447_v51  ;;  %11424 = vmatprep.mubr.bf16.mxu1 %v25350_v39  ;;  %v21465_v51 = vld [vmem:[#allocation6 + $0xb04] ss:$28 sps:$4 sm:$0xff]  }
 0x4d2   : > { %11422 = vmatprep.subr.bf16.mxu1 %v21454_v25  ;;  %v21467_v25 = vld [vmem:[#allocation6 + $0x3d0] ss:$28 sps:$4 sm:$0xff]  }
 0x4d5   : > { %11423 = vmatpush1.bf16.msra.mxu1 %v21452_v55  ;;  %v21474_v55 = vld [vmem:[#allocation6 + $0x5c8] ss:$28 sps:$4 sm:$0xff]  }
 0x4d6   : > { %11505 = vmatprep.subr.bf16.mxu1 %v21457_v1  ;;  %v21463_v1 = vld [vmem:[#allocation6 + $0xb00] ss:$28 sps:$4 sm:$0xff]  }
 0x4d7   : > { %11990 = vmatmul.mubr.bf16.vlgmr.msra.gmra.mrb[160].mxu0 %v25316_v32  ;;  %v21470_v32 = vld [vmem:[#allocation6 + $0xb3c] ss:$28 sps:$4 sm:$0xff]  }
 0x4d8   : > { %11425 = vmatmul.mubr.bf16.vlgmr.msra.gmra.mrb[128].mxu1 %v25351_v10  ;;  %11997 = vmatprep.mubr.bf16.mxu0 %v25318_v38  ;;  %v21482_v38 = vld [vmem:[#allocation6 + $0x600] ss:$28 sps:$4 sm:$0xff]  }
 0x4d9   : > { %11434 = vmatprep.mubr.bf16.mxu1 %v25352_v8  ;;  %11506 = vmatpush1.bf16.msra.mxu1 %v21455_v26  ;;  %v25354_v26 = vld [vmem:[#allocation69_spill] sm:$0xff] }
 0x4da   : > { %18036 = vmatpush3.bf16.msra.mxu0 %v21459_v43  ;;  %11507 = vmatprep.subr.bf16.mxu1 %v21462_v46  ;;  %v21468_v43 = vld [vmem:[#allocation6 + $0xb38] ss:$28 sps:$4 sm:$0xff]  }
 0x4db   : > { %18037 = vmatprep.subr.bf16.mxu0 %v21466_v21  ;;  %v21473_v46 = vld [vmem:[#allocation6 + $0xb74] ss:$28 sps:$4 sm:$0xff]   ;;  %v23785_v21 = vld [vmem:[#allocation7] sm:$0xff] }
 0x4dc   : > { %25355 = vst [vmem:[#allocation27_spill] sm:$0xff] %v23785_v21 }
 0x4dd   : > { %11508 = vmatpush1.bf16.msra.mxu1 %v21460_v20  ;;  %v21483_v20 = vld [vmem:[#allocation6 + $0x440] ss:$28 sps:$4 sm:$0xff]  }
 0x4de   : > { %11509 = vmatprep.subr.bf16.mxu1 %v21465_v51  ;;  %18038 = vmatpush3.bf16.msra.mxu0 %v21467_v25  ;;  %v21490_v51 = vld [vmem:[#allocation6 + $0x638] ss:$28 sps:$4 sm:$0xff]  }
 0x4df   : > { %11998 = vmatmul.mubr.bf16.gmra.mrb[164].mxu0 %v25320_v59  ;;  %18039 = vmatprep.subr.bf16.mxu0 %v21474_v55  ;;  %v21471_v59 = vld [vmem:[#allocation6 + $0xb70] ss:$28 sps:$4 sm:$0xff]   ;;  %v25356_v25 = vld [vmem:[#allocation21_spill] sm:$0xff] }
 0x4e0   : > { %11435 = vmatmul.mubr.bf16.gmra.mrb[132].mxu1 %v25353_v31  ;;  %12005 = vmatprep.mubr.bf16.mxu0 %v25322_v47  ;;  %v23789_v55 = vrot.slane %v23785_v21, %v25356_v25  ;;  %v25357_v47 = vld [vmem:[#allocation23_spill] sm:$0xff] }
 0x4e1   : > { %11444 = vmatprep.mubr.bf16.mxu1 %v25354_v26  ;;  %11510 = vmatpush1.bf16.msra.mxu1 %v21463_v1  ;;  %v23793_v0 = vrot.slane %v23785_v21, %v25357_v47  ;;  %v21478_v1 = vld [vmem:[#allocation6 + $0xbac] ss:$28 sps:$4 sm:$0xff]   ;;  %v21481_v21 = vld [vmem:[#allocation6 + $0xbe4] ss:$28 sps:$4 sm:$0xff]  }
 0x4e2   : > { %11511 = vmatprep.subr.bf16.mxu1 %v21470_v32  ;;  %18040 = vmatpush3.bf16.msra.mxu0 %v21475_v58  ;;  %v21491_v32 = vld [vmem:[#allocation6 + $0x478] ss:$28 sps:$4 sm:$0xff]   ;;  %v21498_v58 = vld [vmem:[#allocation6 + $0x670] ss:$28 sps:$4 sm:$0xff]   ;;  %v21476_v47 = vld [vmem:[#allocation6 + $0xba8] ss:$28 sps:$4 sm:$0xff]  }
 0x4e3   : > { %18041 = vmatprep.subr.bf16.mxu0 %v21482_v38  ;;  %v25358_v38 = vld [vmem:[#allocation67_spill] sm:$0xff] }
 0x4e5   : > { %11512 = vmatpush1.bf16.msra.mxu1 %v21468_v43 }
 0x4e6   : > { %11513 = vmatprep.subr.bf16.mxu1 %v21473_v46  ;;  %18042 = vmatpush3.bf16.msra.mxu0 %v21483_v20 }
 0x4e7   : > { %12006 = vmatmul.mubr.bf16.gmra.mrb[168].mxu0 %v25323_v2  ;;  %18043 = vmatprep.subr.bf16.mxu0 %v21490_v51  ;;  %v21499_v2 = vld [vmem:[#allocation6 + $0x4b0] ss:$28 sps:$4 sm:$0xff]  }
 0x4e8   : > { %11445 = vmatmul.mubr.bf16.gmra.mrb[136].mxu1 %v25358_v38  ;;  %12013 = vmatprep.mubr.bf16.mxu0 %v25324_v18  ;;  %v10296_v43 = vpop.f32.mrb[96].mxu1  ;;  %v21506_v18 = vld [vmem:[#allocation6 + $0x6a8] ss:$28 sps:$4 sm:$0xff]  }
 0x4e9   : > { %11454 = vmatprep.mubr.bf16.mxu1 %v25359_v42  ;;  %11514 = vmatpush1.bf16.msra.mxu1 %v21471_v59  ;;  %v18771_v46 = vadd.f32 %v10296_v43, %v23789_v55  ;;  %v10298_v25 = vpop.f32.mrb[97].mxu1  ;;  %v21479_v43 = vld [vmem:[#allocation6 + $0xbe0] ss:$28 sps:$4 sm:$0xff]  }
 0x4ea   : > { %v18772_v12 = vadd.f32 %v10298_v25, %v23793_v0  ;;  %11515 = vmatprep.subr.bf16.mxu1 %v21478_v1  ;;  %v10300_v20 = vpop.f32.mrb[98].mxu1  ;;  %18044 = vmatpush3.bf16.msra.mxu0 %v21491_v32  ;;  %v21486_v25 = vld [vmem:[#allocation6 + $0xc1c] ss:$28 sps:$4 sm:$0xff]   ;;  %v21507_v1 = vld [vmem:[#allocation6 + $0x4e8] ss:$28 sps:$4 sm:$0xff]  }
 0x4eb   : > { %v18773_v51 = vadd.f32 %v10300_v20, %v23789_v55  ;;  %v10302_v38 = vpop.f32.mrb[99].mxu1  ;;  %18045 = vmatprep.subr.bf16.mxu0 %v21498_v58  ;;  %v12636_v42 = vmax.f32 %v18771_v46, 0.0  ;;  %v21514_v32 = vld [vmem:[#allocation6 + $0x6e0] ss:$28 sps:$4 sm:$0xff]   ;;  %v25362_v20 = vld [vmem:[#allocation71_spill] sm:$0xff] }
 0x4ec   : > { %v18774_v24 = vadd.f32 %v10302_v38, %v23793_v0  ;;  %v12637_v26 = vmax.f32 %v18772_v12, 0.0  ;;  %v25363_v38 = vld [vmem:[#allocation77_spill] sm:$0xff]  ;;  %v21489_v46 = vld [vmem:[#allocation6 + $0xc54] ss:$28 sps:$4 sm:$0xff]  }
 0x4ed   : > { %v12643_v59 = vmax.f32 %v18773_v51, 0.0  ;;  %11516 = vmatpush1.bf16.msra.mxu1 %v21476_v47 }
 0x4ee   : > { %v12644_v16 = vmax.f32 %v18774_v24, 0.0  ;;  %11517 = vmatprep.subr.bf16.mxu1 %v21481_v21  ;;  %18046 = vmatpush3.bf16.msra.mxu0 %v21499_v2  ;;  %v21484_v21 = vld [vmem:[#allocation6 + $0xc18] ss:$28 sps:$4 sm:$0xff]  }
 0x4ef   : > { %v23803_v31 = vpack.c.bf16 %v12643_v59, %v12636_v42  ;;  %12014 = vmatmul.mubr.bf16.gmra.mrb[172].mxu0 %v25325_v49  ;;  %18047 = vmatprep.subr.bf16.mxu0 %v21506_v18 }
 0x4f0   : > { %v23806_v58 = vpack.c.bf16 %v12644_v16, %v12637_v26  ;;  %11455 = vmatmul.mubr.bf16.gmra.mrb[140].mxu1 %v25362_v20  ;;  %12021 = vmatprep.mubr.bf16.mxu0 %v25326_v34  ;;  %v10306_v47 = vpop.f32.mrb[100].mxu1  ;;  %v21515_v16 = vld [vmem:[#allocation6 + $0x520] ss:$28 sps:$4 sm:$0xff]   ;;  %v21522_v34 = vld [vmem:[#allocation6 + $0x8d8] ss:$28 sps:$4 sm:$0xff]  }
 0x4f1   : > { %25360 = vst [vmem:[#allocation25_spill] sm:$0xff] %v23803_v31  ;;  %11464 = vmatprep.mubr.bf16.mxu1 %v25363_v38  ;;  %11518 = vmatpush1.bf16.msra.mxu1 %v21479_v43  ;;  %v18775_v12 = vadd.f32 %v10306_v47, %v23789_v55  ;;  %v10308_v24 = vpop.f32.mrb[101].mxu1  ;;  %v21487_v43 = vld [vmem:[#allocation6 + $0xc50] ss:$28 sps:$4 sm:$0xff]  }
 0x4f2   : > { %25361 = vst [vmem:[#allocation31_spill] sm:$0xff] %v23806_v58  ;;  %v18776_v42 = vadd.f32 %v10308_v24, %v23793_v0  ;;  %11519 = vmatprep.subr.bf16.mxu1 %v21486_v25  ;;  %v10310_v49 = vpop.f32.mrb[102].mxu1  ;;  %18048 = vmatpush3.bf16.msra.mxu0 %v21507_v1  ;;  %v21494_v24 = vld [vmem:[#allocation6 + $0xc8c] ss:$28 sps:$4 sm:$0xff]   ;;  %v25386_v58 = vld [vmem:[#allocation64_spill] sm:$0xff] }
 0x4f3   : > { %v18777_v26 = vadd.f32 %v10310_v49, %v23789_v55  ;;  %v10312_v2 = vpop.f32.mrb[103].mxu1  ;;  %18049 = vmatprep.subr.bf16.mxu0 %v21514_v32  ;;  %v12650_v18 = vmax.f32 %v18775_v12, 0.0  ;;  %v25366_v32 = vld [vmem:[#allocation75_spill] sm:$0xff]  ;;  %v25367_v49 = vld [vmem:[#allocation81_spill] sm:$0xff] }
 0x4f4   : > { %v18778_v51 = vadd.f32 %v10312_v2, %v23793_v0  ;;  %v12651_v47 = vmax.f32 %v18776_v42, 0.0 }
 0x4f5   : > { %v12657_v59 = vmax.f32 %v18777_v26, 0.0  ;;  %11520 = vmatpush1.bf16.msra.mxu1 %v21484_v21 }
 0x4f6   : > { %v12658_v31 = vmax.f32 %v18778_v51, 0.0  ;;  %11521 = vmatprep.subr.bf16.mxu1 %v21489_v46  ;;  %18050 = vmatpush3.bf16.msra.mxu0 %v21515_v16  ;;  %v21492_v46 = vld [vmem:[#allocation6 + $0xc88] ss:$28 sps:$4 sm:$0xff]  }
 0x4f7   : > { %v23815_v25 = vpack.c.bf16 %v12657_v59, %v12650_v18  ;;  %12022 = vmatmul.mubr.bf16.gmra.mrb[176].mxu0 %v25327_v4  ;;  %18099 = vmatprep.subr.bf16.mxu0 %v21522_v34  ;;  %v21497_v4 = vld [vmem:[#allocation6 + $0xcc4] ss:$28 sps:$4 sm:$0xff]  }
 0x4f8   : > { %v23818_v1 = vpack.c.bf16 %v12658_v31, %v12651_v47  ;;  %11465 = vmatmul.mubr.bf16.gmra.mrb[144].mxu1 %v25366_v32  ;;  %12029 = vmatprep.mubr.bf16.mxu0 %v25328_v63  ;;  %v10316_v12 = vpop.f32.mrb[104].mxu1  ;;  %v21495_v18 = vld [vmem:[#allocation6 + $0xcc0] ss:$28 sps:$4 sm:$0xff]  }
 0x4f9   : > { %25364 = vst [vmem:[#allocation29_spill] sm:$0xff] %v23815_v25  ;;  %11474 = vmatprep.mubr.bf16.mxu1 %v25367_v49  ;;  %11522 = vmatpush1.bf16.msra.mxu1 %v21487_v43  ;;  %v18779_v21 = vadd.f32 %v10316_v12, %v23789_v55  ;;  %v10318_v42 = vpop.f32.mrb[105].mxu1  ;;  %v21502_v47 = vld [vmem:[#allocation6 + $0xcfc] ss:$28 sps:$4 sm:$0xff]  }
 0x4fa   : > { %25365 = vst [vmem:[#allocation35_spill] sm:$0xff] %v23818_v1  ;;  %v18780_v16 = vadd.f32 %v10318_v42, %v23793_v0  ;;  %11523 = vmatprep.subr.bf16.mxu1 %v21494_v24  ;;  %v10320_v26 = vpop.f32.mrb[106].mxu1  ;;  %v25370_v42 = vld [vmem:[#allocation79_spill] sm:$0xff] }
 0x4fb   : > { %v18781_v31 = vadd.f32 %v10320_v26, %v23789_v55  ;;  %v10322_v2 = vpop.f32.mrb[107].mxu1  ;;  %v12664_v51 = vmax.f32 %v18779_v21, 0.0 }
 0x4fc   : > { %v18782_v34 = vadd.f32 %v10322_v2, %v23793_v0  ;;  %v12665_v59 = vmax.f32 %v18780_v16, 0.0  ;;  %v25371_v2 = vld [vmem:[#allocation85_spill] sm:$0xff] }
 0x4fd   : > { %v12671_v63 = vmax.f32 %v18781_v31, 0.0  ;;  %11524 = vmatpush1.bf16.msra.mxu1 %v21492_v46  ;;  %v21500_v16 = vld [vmem:[#allocation6 + $0xcf8] ss:$28 sps:$4 sm:$0xff]  }
 0x4fe   : > { %v12672_v43 = vmax.f32 %v18782_v34, 0.0  ;;  %11525 = vmatprep.subr.bf16.mxu1 %v21497_v4  ;;  %v21505_v34 = vld [vmem:[#allocation6 + $0xd34] ss:$28 sps:$4 sm:$0xff]  }
 0x4ff   : > { %v23827_v12 = vpack.c.bf16 %v12671_v63, %v12664_v51  ;;  %12030 = vmatmul.mubr.bf16.gmra.mrb[180].mxu0 %v25329_v44 }
 0x500   : > { %v23830_v24 = vpack.c.bf16 %v12672_v43, %v12665_v59  ;;  %11475 = vmatmul.mubr.bf16.gmra.mrb[148].mxu1 %v25370_v42  ;;  %12037 = vmatprep.mubr.bf16.mxu0 %v25330_v48  ;;  %v10326_v26 = vpop.f32.mrb[108].mxu1  ;;  %v21503_v43 = vld [vmem:[#allocation6 + $0xd30] ss:$28 sps:$4 sm:$0xff]  }
 0x501   : > { %25368 = vst [vmem:[#allocation33_spill] sm:$0xff] %v23827_v12  ;;  %11484 = vmatprep.mubr.bf16.mxu1 %v25371_v2  ;;  %11526 = vmatpush1.bf16.msra.mxu1 %v21495_v18  ;;  %v18783_v21 = vadd.f32 %v10326_v26, %v23789_v55  ;;  %v10328_v46 = vpop.f32.mrb[109].mxu1  ;;  %v21510_v26 = vld [vmem:[#allocation6 + $0xd6c] ss:$28 sps:$4 sm:$0xff]  }
 0x502   : > { %25369 = vst [vmem:[#allocation39_spill] sm:$0xff] %v23830_v24  ;;  %v18784_v4 = vadd.f32 %v10328_v46, %v23793_v0  ;;  %11527 = vmatprep.subr.bf16.mxu1 %v21502_v47  ;;  %v10330_v31 = vpop.f32.mrb[110].mxu1  ;;  %v25374_v46 = vld [vmem:[#allocation83_spill] sm:$0xff] }
 0x503   : > { %v18785_v44 = vadd.f32 %v10330_v31, %v23789_v55  ;;  %v10332_v51 = vpop.f32.mrb[111].mxu1  ;;  %v12678_v59 = vmax.f32 %v18783_v21, 0.0 }
 0x504   : > { %v18786_v63 = vadd.f32 %v10332_v51, %v23793_v0  ;;  %v12679_v12 = vmax.f32 %v18784_v4, 0.0  ;;  %v25375_v51 = vld [vmem:[#allocation88_spill] sm:$0xff]  ;;  %v21508_v4 = vld [vmem:[#allocation6 + $0xd68] ss:$28 sps:$4 sm:$0xff]  }
 0x505   : > { %v12685_v48 = vmax.f32 %v18785_v44, 0.0  ;;  %11528 = vmatpush1.bf16.msra.mxu1 %v21500_v16 }
 0x506   : > { %v12686_v18 = vmax.f32 %v18786_v63, 0.0  ;;  %11529 = vmatprep.subr.bf16.mxu1 %v21505_v34  ;;  %v21513_v63 = vld [vmem:[#allocation6 + $0xda4] ss:$28 sps:$4 sm:$0xff]  }
 0x507   : > { %v23839_v24 = vpack.c.bf16 %v12685_v48, %v12678_v59  ;;  %12038 = vmatmul.mubr.bf16.gmra.mrb[184].mxu0 %v25331_v9 }
 0x508   : > { %v23842_v47 = vpack.c.bf16 %v12686_v18, %v12679_v12  ;;  %11485 = vmatmul.mubr.bf16.gmra.mrb[152].mxu1 %v25374_v46  ;;  %12045 = vmatprep.mubr.bf16.mxu0 %v25332_v19  ;;  %v10336_v31 = vpop.f32.mrb[112].mxu1  ;;  %v21511_v18 = vld [vmem:[#allocation6 + $0xda0] ss:$28 sps:$4 sm:$0xff]  }
 0x509   : > { %25372 = vst [vmem:[#allocation37_spill] sm:$0xff] %v23839_v24  ;;  %11494 = vmatprep.mubr.bf16.mxu1 %v25375_v51  ;;  %11530 = vmatpush1.bf16.msra.mxu1 %v21503_v43  ;;  %v18787_v21 = vadd.f32 %v10336_v31, %v23789_v55  ;;  %v10338_v16 = vpop.f32.mrb[113].mxu1  ;;  %v21518_v31 = vld [vmem:[#allocation6 + $0xddc] ss:$28 sps:$4 sm:$0xff]  }
 0x50a   : > { %25373 = vst [vmem:[#allocation43_spill] sm:$0xff] %v23842_v47  ;;  %v18788_v34 = vadd.f32 %v10338_v16, %v23793_v0  ;;  %11531 = vmatprep.subr.bf16.mxu1 %v21510_v26  ;;  %v10340_v44 = vpop.f32.mrb[114].mxu1  ;;  %v25378_v16 = vld [vmem:[#allocation87_spill] sm:$0xff] }
 0x50b   : > { %v18789_v9 = vadd.f32 %v10340_v44, %v23789_v55  ;;  %v10342_v12 = vpop.f32.mrb[115].mxu1  ;;  %v12692_v48 = vmax.f32 %v18787_v21, 0.0  ;;  %v25379_v21 = vld [vmem:[#allocation62_spill] sm:$0xff] }
 0x50c   : > { %v18790_v59 = vadd.f32 %v10342_v12, %v23793_v0  ;;  %v12693_v24 = vmax.f32 %v18788_v34, 0.0 }
 0x50d   : > { %v12699_v19 = vmax.f32 %v18789_v9, 0.0  ;;  %11532 = vmatpush1.bf16.msra.mxu1 %v21508_v4  ;;  %v21516_v9 = vld [vmem:[#allocation6 + $0xdd8] ss:$28 sps:$4 sm:$0xff]  }
 0x50e   : > { %v12700_v43 = vmax.f32 %v18790_v59, 0.0  ;;  %11533 = vmatprep.subr.bf16.mxu1 %v21513_v63  ;;  %v21521_v59 = vld [vmem:[#allocation6 + $0xe14] ss:$28 sps:$4 sm:$0xff]  }
 0x50f   : > { %v23851_v47 = vpack.c.bf16 %v12699_v19, %v12692_v48  ;;  %12046 = vmatmul.mubr.bf16.gmra.mrb[188].mxu0 %v25333_v40 }
 0x510   : > { %v23854_v26 = vpack.c.bf16 %v12700_v43, %v12693_v24  ;;  %11495 = vmatmul.mubr.bf16.gmra.mrb[156].mxu1 %v25378_v16  ;;  %12086 = vmatprep.mubr.bf16.mxu0 %v25334_v52  ;;  %v10346_v44 = vpop.f32.mrb[116].mxu1 }
 0x511   : > { %25376 = vst [vmem:[#allocation41_spill] sm:$0xff] %v23851_v47  ;;  %11534 = vmatpush1.bf16.msra.mxu1 %v21511_v18  ;;  %11537 = vmatprep.mubr.bf16.mxu1 %v25379_v21  ;;  %v18791_v4 = vadd.f32 %v10346_v44, %v23789_v55  ;;  %v10348_v34 = vpop.f32.mrb[117].mxu1  ;;  %v21519_v18 = vld [vmem:[#allocation6 + $0xe10] ss:$28 sps:$4 sm:$0xff]   ;;  %v21523_v44 = vld [vmem:[#allocation6 + $0x718] ss:$28 sps:$4 sm:$0xff]  }
 0x512   : > { %25377 = vst [vmem:[#allocation47_spill] sm:$0xff] %v23854_v26  ;;  %v18792_v63 = vadd.f32 %v10348_v34, %v23793_v0  ;;  %11535 = vmatprep.subr.bf16.mxu1 %v21518_v31  ;;  %v10350_v12 = vpop.f32.mrb[118].mxu1  ;;  %v21526_v26 = vld [vmem:[#allocation6 + $0xe4c] ss:$28 sps:$4 sm:$0xff]  }
 0x513   : > { %v18793_v40 = vadd.f32 %v10350_v12, %v23789_v55  ;;  %v10352_v24 = vpop.f32.mrb[119].mxu1  ;;  %v12706_v19 = vmax.f32 %v18791_v4, 0.0  ;;  %v21530_v31 = vld [vmem:[#allocation6 + $0x910] ss:$28 sps:$4 sm:$0xff]  }
 0x514   : > { %v18794_v48 = vadd.f32 %v10352_v24, %v23793_v0  ;;  %v12707_v43 = vmax.f32 %v18792_v63, 0.0  ;;  %v25382_v12 = vld [vmem:[#allocation60_spill] sm:$0xff] }
 0x515   : > { %v12713_v52 = vmax.f32 %v18793_v40, 0.0  ;;  %11536 = vmatpush1.bf16.msra.mxu1 %v21516_v9  ;;  %v25383_v40 = vld [vmem:[#allocation66_spill] sm:$0xff] }
 0x516   : > { %v12714_v47 = vmax.f32 %v18794_v48, 0.0  ;;  %11618 = vmatprep.subr.bf16.mxu1 %v21521_v59  ;;  %v21524_v59 = vld [vmem:[#allocation6 + $0xe48] ss:$28 sps:$4 sm:$0xff]  }
 0x517   : > { %v23863_v25 = vpack.c.bf16 %v12713_v52, %v12706_v19  ;;  %12087 = vmatmul.mubr.bf16.vlgmr.msra.gmra.mrb[192].mxu0 %v25335_v53  ;;  %v21529_v48 = vld [vmem:[#allocation6 + $0xe84] ss:$28 sps:$4 sm:$0xff]  }
 0x518   : > { %v23866_v34 = vpack.c.bf16 %v12714_v47, %v12707_v43  ;;  %11538 = vmatmul.mubr.bf16.vlgmr.msra.gmra.mrb[128].mxu1 %v25382_v12  ;;  %12094 = vmatprep.mubr.bf16.mxu0 %v25336_v13  ;;  %v10356_v4 = vpop.f32.mrb[120].mxu1  ;;  %v21531_v47 = vld [vmem:[#allocation6 + $0x750] ss:$28 sps:$4 sm:$0xff]   ;;  %v21538_v13 = vld [vmem:[#allocation6 + $0x948] ss:$28 sps:$4 sm:$0xff]  }
 0x519   : > { %25380 = vst [vmem:[#allocation45_spill] sm:$0xff] %v23863_v25  ;;  %11547 = vmatprep.mubr.bf16.mxu1 %v25383_v40  ;;  %11619 = vmatpush1.bf16.msra.mxu1 %v21519_v18  ;;  %v18795_v9 = vadd.f32 %v10356_v4, %v23789_v55  ;;  %v10358_v63 = vpop.f32.mrb[121].mxu1  ;;  %v21527_v4 = vld [vmem:[#allocation6 + $0xe80] ss:$28 sps:$4 sm:$0xff]  }
 0x51a   : > { %25381 = vst [vmem:[#allocation51_spill] sm:$0xff] %v23866_v34  ;;  %18100 = vmatpush3.bf16.msra.mxu0 %v21523_v44  ;;  %v18796_v24 = vadd.f32 %v10358_v63, %v23793_v0  ;;  %11620 = vmatprep.subr.bf16.mxu1 %v21526_v26  ;;  %v10360_v53 = vpop.f32.mrb[122].mxu1  ;;  %v21534_v44 = vld [vmem:[#allocation6 + $0xebc] ss:$28 sps:$4 sm:$0xff]   ;;  %v21539_v26 = vld [vmem:[#allocation6 + $0x788] ss:$28 sps:$4 sm:$0xff]  }
 0x51b   : > { %v18797_v19 = vadd.f32 %v10360_v53, %v23789_v55  ;;  %v10362_v52 = vpop.f32.mrb[123].mxu1  ;;  %18101 = vmatprep.subr.bf16.mxu0 %v21530_v31  ;;  %v12720_v25 = vmax.f32 %v18795_v9, 0.0  ;;  %v21546_v53 = vld [vmem:[#allocation6 + $0x980] ss:$28 sps:$4 sm:$0xff]  }
 0x51c   : > { %v18798_v43 = vadd.f32 %v10362_v52, %v23793_v0  ;;  %v12721_v34 = vmax.f32 %v18796_v24, 0.0 }
 0x51d   : > { %v12727_v18 = vmax.f32 %v18797_v19, 0.0  ;;  %11621 = vmatpush1.bf16.msra.mxu1 %v21524_v59  ;;  %v25387_v59 = vld [vmem:[#allocation70_spill] sm:$0xff]  ;;  %v21537_v19 = vld [vmem:[#allocation6 + $0xef4] ss:$28 sps:$4 sm:$0xff]  }
 0x51e   : > { %v12728_v1 = vmax.f32 %v18798_v43, 0.0  ;;  %11622 = vmatprep.subr.bf16.mxu1 %v21529_v48  ;;  %18102 = vmatpush3.bf16.msra.mxu0 %v21531_v47  ;;  %v21532_v47 = vld [vmem:[#allocation6 + $0xeb8] ss:$28 sps:$4 sm:$0xff]  }
 0x51f   : > { %v23875_v63 = vpack.c.bf16 %v12727_v18, %v12720_v25  ;;  %12095 = vmatmul.mubr.bf16.gmra.mrb[196].mxu0 %v25337_v45  ;;  %18103 = vmatprep.subr.bf16.mxu0 %v21538_v13 }
 0x520   : > { %v23878_v31 = vpack.c.bf16 %v12728_v1, %v12721_v34  ;;  %11548 = vmatmul.mubr.bf16.gmra.mrb[132].mxu1 %v25386_v58  ;;  %12102 = vmatprep.mubr.bf16.mxu0 %v25338_v62  ;;  %v10366_v9 = vpop.f32.mrb[124].mxu1  ;;  %v21547_v1 = vld [vmem:[#allocation6 + $0x7c0] ss:$28 sps:$4 sm:$0xff]   ;;  %v21554_v62 = vld [vmem:[#allocation6 + $0x9b8] ss:$28 sps:$4 sm:$0xff]  }
 0x521   : > { %25384 = vst [vmem:[#allocation49_spill] sm:$0xff] %v23875_v63  ;;  %11557 = vmatprep.mubr.bf16.mxu1 %v25387_v59  ;;  %11623 = vmatpush1.bf16.msra.mxu1 %v21527_v4  ;;  %v18799_v24 = vadd.f32 %v10366_v9, %v23789_v55  ;;  %v10368_v48 = vpop.f32.mrb[125].mxu1  ;;  %v21535_v4 = vld [vmem:[#allocation6 + $0xef0] ss:$28 sps:$4 sm:$0xff]  }
 0x522   : > { %25385 = vst [vmem:[#allocation55_spill] sm:$0xff] %v23878_v31  ;;  %v18800_v25 = vadd.f32 %v10368_v48, %v23793_v0  ;;  %11624 = vmatprep.subr.bf16.mxu1 %v21534_v44  ;;  %v10370_v45 = vpop.f32.mrb[126].mxu1  ;;  %18104 = vmatpush3.bf16.msra.mxu0 %v21539_v26  ;;  %v21542_v48 = vld [vmem:[#allocation6 + $0xf2c] ss:$28 sps:$4 sm:$0xff]   ;;  %v21555_v44 = vld [vmem:[#allocation6 + $0x7f8] ss:$28 sps:$4 sm:$0xff]  }
 0x523   : > { %v18801_v34 = vadd.f32 %v10370_v45, %v23789_v55  ;;  %v10372_v52 = vpop.f32.mrb[127].mxu1  ;;  %18105 = vmatprep.subr.bf16.mxu0 %v21546_v53  ;;  %v12734_v43 = vmax.f32 %v18799_v24, 0.0  ;;  %v21562_v55 = vld [vmem:[#allocation6 + $0x9f0] ss:$28 sps:$4 sm:$0xff]   ;;  %v21545_v53 = vld [vmem:[#allocation6 + $0xf64] ss:$28 sps:$4 sm:$0xff]  }
 0x524   : > { %v18802_v13 = vadd.f32 %v10372_v52, %v23793_v0  ;;  %v12735_v9 = vmax.f32 %v18800_v25, 0.0  ;;  %v21540_v0 = vld [vmem:[#allocation6 + $0xf28] ss:$28 sps:$4 sm:$0xff]   ;;  %v21563_v24 = vld [vmem:[#allocation6 + $0x830] ss:$28 sps:$4 sm:$0xff]  }
 0x525   : > { %v12741_v18 = vmax.f32 %v18801_v34, 0.0  ;;  %11625 = vmatpush1.bf16.msra.mxu1 %v21532_v47  ;;  %v21570_v47 = vld [vmem:[#allocation6 + $0xa28] ss:$28 sps:$4 sm:$0xff]   ;;  %v21550_v25 = vld [vmem:[#allocation6 + $0xf9c] ss:$28 sps:$4 sm:$0xff]  }
 0x526   : > { %v12742_v63 = vmax.f32 %v18802_v13, 0.0  ;;  %11626 = vmatprep.subr.bf16.mxu1 %v21537_v19  ;;  %18106 = vmatpush3.bf16.msra.mxu0 %v21547_v1  ;;  %v21548_v45 = vld [vmem:[#allocation6 + $0xf98] ss:$28 sps:$4 sm:$0xff]   ;;  %v21579_v1 = vld [vmem:[#allocation6 + $0x8a0] ss:$28 sps:$4 sm:$0xff]  }
 0x527   : > { %v23887_v31 = vpack.c.bf16 %v12741_v18, %v12734_v43  ;;  %12103 = vmatmul.mubr.bf16.gmra.mrb[200].mxu0 %v25339_v50  ;;  %18107 = vmatprep.subr.bf16.mxu0 %v21554_v62  ;;  %v21543_v50 = vld [vmem:[#allocation6 + $0xf60] ss:$28 sps:$4 sm:$0xff]   ;;  %v21553_v19 = vld [vmem:[#allocation6 + $0xfd4] ss:$28 sps:$4 sm:$0xff]  }
 0x528   : > { %v23890_v26 = vpack.c.bf16 %v12742_v63, %v12735_v9  ;;  %11558 = vmatmul.mubr.bf16.gmra.mrb[136].mxu1 %v25251_v3  ;;  %12110 = vmatprep.mubr.bf16.mxu0 %v25340_v61  ;;  %v21571_v63 = vld [vmem:[#allocation6 + $0x868] ss:$28 sps:$4 sm:$0xff]   ;;  %v21578_v61 = vld [vmem:[#allocation6 + $0xa60] ss:$28 sps:$4 sm:$0xff]   ;;  %v21586_v34 = vld [vmem:[#allocation6 + $0xc58] ss:$28 sps:$4 sm:$0xff]  }
 0x529   : > { %25388 = vst [vmem:[#allocation53_spill] sm:$0xff] %v23887_v31  ;;  %11567 = vmatprep.mubr.bf16.mxu1 %v25254_v29  ;;  %11627 = vmatpush1.bf16.msra.mxu1 %v21535_v4  ;;  %v21551_v52 = vld [vmem:[#allocation6 + $0xfd0] ss:$28 sps:$4 sm:$0xff]   ;;  %v21561_v62 = vld [vmem:[#allocation6 + $0x1044] ss:$28 sps:$4 sm:$0xff]  }
 0x52a   : > { %25389 = vst [vmem:[#allocation28_spill] sm:$0xff] %v23890_v26  ;;  %11628 = vmatprep.subr.bf16.mxu1 %v21542_v48  ;;  %18108 = vmatpush3.bf16.msra.mxu0 %v21555_v44  ;;  %v21559_v13 = vld [vmem:[#allocation6 + $0x1040] ss:$28 sps:$4 sm:$0xff]   ;;  %v21567_v18 = vld [vmem:[#allocation6 + $0x10b0] ss:$28 sps:$4 sm:$0xff]  }
 0x52b   : > { %18109 = vmatprep.subr.bf16.mxu0 %v21562_v55  ;;  %v21566_v43 = vld [vmem:[#allocation6 + $0x107c] ss:$28 sps:$4 sm:$0xff]   ;;  %v21574_v4 = vld [vmem:[#allocation6 + $0x10ec] ss:$28 sps:$4 sm:$0xff]   ;;  %v25447_v31 = vld [vmem:[#allocation20_spill] sm:$0xff] }
 0x52c   : > { %v21575_v9 = vld [vmem:[#allocation6 + $0x1120] ss:$28 sps:$4 sm:$0xff]   ;;  %v21583_v44 = vld [vmem:[#allocation6 + $0x1190] ss:$28 sps:$4 sm:$0xff]   ;;  %v21587_v55 = vld [vmem:[#allocation6 + $0xa98] ss:$28 sps:$4 sm:$0xff]  }
 0x52d   : > { %11629 = vmatpush1.bf16.msra.mxu1 %v21540_v0  ;;  %v21582_v48 = vld [vmem:[#allocation6 + $0x115c] ss:$28 sps:$4 sm:$0xff]   ;;  %v21590_v0 = vld [vmem:[#allocation6 + $0x11cc] ss:$28 sps:$4 sm:$0xff]  }
 0x52e   : > { %11630 = vmatprep.subr.bf16.mxu1 %v21545_v53  ;;  %18110 = vmatpush3.bf16.msra.mxu0 %v21563_v24  ;;  %v21594_v53 = vld [vmem:[#allocation6 + $0xc90] ss:$28 sps:$4 sm:$0xff]  }
 0x52f   : > { %12111 = vmatmul.mubr.bf16.gmra.mrb[204].mxu0 %v25341_v27  ;;  %18111 = vmatprep.subr.bf16.mxu0 %v21570_v47  ;;  %v21558_v27 = vld [vmem:[#allocation6 + $0x100c] ss:$28 sps:$4 sm:$0xff]  }
 0x530   : > { %11568 = vmatmul.mubr.bf16.gmra.mrb[140].mxu1 %v25257_v28  ;;  %12118 = vmatprep.mubr.bf16.mxu0 %v25342_v37  ;;  %v21556_v37 = vld [vmem:[#allocation6 + $0x1008] ss:$28 sps:$4 sm:$0xff]   ;;  %v21595_v24 = vld [vmem:[#allocation6 + $0xad0] ss:$28 sps:$4 sm:$0xff]  }
 0x531   : > { %11577 = vmatprep.mubr.bf16.mxu1 %v25258_v36  ;;  %11631 = vmatpush1.bf16.msra.mxu1 %v21543_v50  ;;  %v21602_v47 = vld [vmem:[#allocation6 + $0xcc8] ss:$28 sps:$4 sm:$0xff]   ;;  %v21591_v50 = vld [vmem:[#allocation6 + $0x1200] ss:$28 sps:$4 sm:$0xff]  }
 0x532   : > { %11632 = vmatprep.subr.bf16.mxu1 %v21550_v25  ;;  %18112 = vmatpush3.bf16.msra.mxu0 %v21571_v63  ;;  %v21603_v25 = vld [vmem:[#allocation6 + $0xb08] ss:$28 sps:$4 sm:$0xff]  }
 0x533   : > { %18113 = vmatprep.subr.bf16.mxu0 %v21578_v61  ;;  %v25390_v63 = vld [vmem:[#allocation63_spill] sm:$0xff] }
 0x534   : > { %v25391_v61 = vld [vmem:[#allocation91_spill] sm:$0xff] }
 0x535   : > { %11633 = vmatpush1.bf16.msra.mxu1 %v21548_v45  ;;  %v25392_v45 = vld [vmem:[#allocation69_spill] sm:$0xff] }
 0x536   : > { %11634 = vmatprep.subr.bf16.mxu1 %v21553_v19  ;;  %18114 = vmatpush3.bf16.msra.mxu0 %v21579_v1  ;;  %v25393_v19 = vld [vmem:[#allocation96_spill] sm:$0xff] }
 0x537   : > { %12119 = vmatmul.mubr.bf16.gmra.mrb[208].mxu0 %v25343_v14  ;;  %18163 = vmatprep.subr.bf16.mxu0 %v21586_v34  ;;  %v21564_v14 = vld [vmem:[#allocation6 + $0x1078] ss:$28 sps:$4 sm:$0xff]  }
 0x538   : > { %11578 = vmatmul.mubr.bf16.gmra.mrb[144].mxu1 %v25259_v54  ;;  %12126 = vmatprep.mubr.bf16.mxu0 %v25344_v7  ;;  %v21569_v7 = vld [vmem:[#allocation6 + $0x10b4] ss:$28 sps:$4 sm:$0xff]  }
 0x539   : > { %11587 = vmatprep.mubr.bf16.mxu1 %v25260_v23  ;;  %11635 = vmatpush1.bf16.msra.mxu1 %v21551_v52  ;;  %v21596_v1 = vld [vmem:[#allocation6 + $0x1238] ss:$28 sps:$4 sm:$0xff]   ;;  %v21611_v52 = vld [vmem:[#allocation6 + $0xb40] ss:$28 sps:$4 sm:$0xff]  }
 0x53a   : > { %11636 = vmatprep.subr.bf16.mxu1 %v21558_v27  ;;  %v21601_v34 = vld [vmem:[#allocation6 + $0x1274] ss:$28 sps:$4 sm:$0xff]  }
 0x53b   : > { %v21618_v27 = vld [vmem:[#allocation6 + $0xd38] ss:$28 sps:$4 sm:$0xff]  }
 0x53d   : > { %11637 = vmatpush1.bf16.msra.mxu1 %v21556_v37  ;;  %v21599_v37 = vld [vmem:[#allocation6 + $0x1270] ss:$28 sps:$4 sm:$0xff]  }
 0x53e   : > { %11638 = vmatprep.subr.bf16.mxu1 %v21561_v62  ;;  %v21606_v62 = vld [vmem:[#allocation6 + $0x12ac] ss:$28 sps:$4 sm:$0xff]  }
 0x53f   : > { %12127 = vmatmul.mubr.bf16.gmra.mrb[212].mxu0 %v25345_v6  ;;  %v21572_v6 = vld [vmem:[#allocation6 + $0x10e8] ss:$28 sps:$4 sm:$0xff]  }
 0x540   : > { %11588 = vmatmul.mubr.bf16.gmra.mrb[148].mxu1 %v25261_v22  ;;  %12134 = vmatprep.mubr.bf16.mxu0 %v25346_v30  ;;  %v21577_v30 = vld [vmem:[#allocation6 + $0x1124] ss:$28 sps:$4 sm:$0xff]  }
 0x541   : > { %11597 = vmatprep.mubr.bf16.mxu1 %v25262_v57  ;;  %11639 = vmatpush1.bf16.msra.mxu1 %v21559_v13  ;;  %v21619_v13 = vld [vmem:[#allocation6 + $0xb78] ss:$28 sps:$4 sm:$0xff]  }
 0x542   : > { %11640 = vmatprep.subr.bf16.mxu1 %v21566_v43  ;;  %v25394_v43 = vld [vmem:[#allocation67_spill] sm:$0xff] }
 0x545   : > { %11641 = vmatpush1.bf16.msra.mxu1 %v21564_v14  ;;  %v25395_v14 = vld [vmem:[#allocation22_spill] sm:$0xff] }
 0x546   : > { %11642 = vmatprep.subr.bf16.mxu1 %v21569_v7  ;;  %v25396_v7 = vld [vmem:[#allocation27_spill] sm:$0xff] }
 0x547   : > { %12135 = vmatmul.mubr.bf16.gmra.mrb[216].mxu0 %v25347_v60  ;;  %v21580_v60 = vld [vmem:[#allocation6 + $0x1158] ss:$28 sps:$4 sm:$0xff]  }
 0x548   : > { %11598 = vmatmul.mubr.bf16.gmra.mrb[152].mxu1 %v25263_v56  ;;  %12142 = vmatprep.mubr.bf16.mxu0 %v25348_v15  ;;  %v21585_v15 = vld [vmem:[#allocation6 + $0x1194] ss:$28 sps:$4 sm:$0xff]  }
 0x549   : > { %11607 = vmatprep.mubr.bf16.mxu1 %v23320_v11  ;;  %11643 = vmatpush1.bf16.msra.mxu1 %v21567_v18  ;;  %v23926_v18 = vrot.slane %v25396_v7, %v25395_v14 }
 0x54a   : > { %11644 = vmatprep.subr.bf16.mxu1 %v21574_v4  ;;  %v21626_v4 = vld [vmem:[#allocation6 + $0xd70] ss:$28 sps:$4 sm:$0xff]  }
 0x54d   : > { %11645 = vmatpush1.bf16.msra.mxu1 %v21572_v6  ;;  %v25397_v6 = vld [vmem:[#allocation94_spill] sm:$0xff] }
 0x54e   : > { %11646 = vmatprep.subr.bf16.mxu1 %v21577_v30  ;;  %v25398_v30 = vld [vmem:[#allocation73_spill] sm:$0xff] }
 0x54f   : > { %12143 = vmatmul.mubr.bf16.gmra.mrb[220].mxu0 %v25349_v33  ;;  %v21588_v33 = vld [vmem:[#allocation6 + $0x11c8] ss:$28 sps:$4 sm:$0xff]  }
 0x550   : > { %11608 = vmatmul.mubr.bf16.gmra.mrb[156].mxu1 %v23315_v17  ;;  %12183 = vmatprep.mubr.bf16.mxu0 %v25350_v39  ;;  %v21593_v39 = vld [vmem:[#allocation6 + $0x1204] ss:$28 sps:$4 sm:$0xff]  }
 0x551   : > { %11647 = vmatpush1.bf16.msra.mxu1 %v21575_v9  ;;  %11650 = vmatprep.mubr.bf16.mxu1 %v23383_v41  ;;  %v25399_v9 = vld [vmem:[#allocation24_spill] sm:$0xff] }
 0x552   : > { %11648 = vmatprep.subr.bf16.mxu1 %v21582_v48  ;;  %v23932_v48 = vrot.slane %v25396_v7, %v25399_v9  ;;  %v21612_v7 = vld [vmem:[#allocation6 + $0x1318] ss:$28 sps:$4 sm:$0xff]  }
 0x555   : > { %11649 = vmatpush1.bf16.msra.mxu1 %v21580_v60  ;;  %v25400_v60 = vld [vmem:[#allocation100_spill] sm:$0xff] }
 0x556   : > { %11731 = vmatprep.subr.bf16.mxu1 %v21585_v15  ;;  %v21604_v15 = vld [vmem:[#allocation6 + $0x12a8] ss:$28 sps:$4 sm:$0xff]  }
 0x557   : > { %12184 = vmatmul.mubr.bf16.vlgmr.msra.gmra.mrb[224].mxu0 %v25351_v10  ;;  %v21598_v10 = vld [vmem:[#allocation6 + $0x123c] ss:$28 sps:$4 sm:$0xff]  }
 0x558   : > { %11651 = vmatmul.mubr.bf16.vlgmr.msra.gmra.mrb[128].mxu1 %v23378_v35  ;;  %12191 = vmatprep.mubr.bf16.mxu0 %v25352_v8  ;;  %v21610_v8 = vld [vmem:[#allocation6 + $0xd00] ss:$28 sps:$4 sm:$0xff]  }
 0x559   : > { %11660 = vmatprep.mubr.bf16.mxu1 %v23403_v5  ;;  %11732 = vmatpush1.bf16.msra.mxu1 %v21583_v44 }
 0x55a   : > { %18164 = vmatpush3.bf16.msra.mxu0 %v21587_v55  ;;  %11733 = vmatprep.subr.bf16.mxu1 %v21590_v0  ;;  %v21609_v55 = vld [vmem:[#allocation6 + $0x12e4] ss:$28 sps:$4 sm:$0xff]   ;;  %v21627_v0 = vld [vmem:[#allocation6 + $0xbb0] ss:$28 sps:$4 sm:$0xff]  }
 0x55b   : > { %18165 = vmatprep.subr.bf16.mxu0 %v21594_v53 }
 0x55d   : > { %11734 = vmatpush1.bf16.msra.mxu1 %v21588_v33 }
 0x55e   : > { %11735 = vmatprep.subr.bf16.mxu1 %v21593_v39  ;;  %18166 = vmatpush3.bf16.msra.mxu0 %v21595_v24  ;;  %v21634_v39 = vld [vmem:[#allocation6 + $0xda8] ss:$28 sps:$4 sm:$0xff]  }
 0x55f   : > { %12192 = vmatmul.mubr.bf16.gmra.mrb[228].mxu0 %v25390_v63  ;;  %18167 = vmatprep.subr.bf16.mxu0 %v21602_v47 }
 0x560   : > { %11661 = vmatmul.mubr.bf16.gmra.mrb[132].mxu1 %v25391_v61  ;;  %12199 = vmatprep.mubr.bf16.mxu0 %v25392_v45  ;;  %v21635_v45 = vld [vmem:[#allocation6 + $0xbe8] ss:$28 sps:$4 sm:$0xff]  }
 0x561   : > { %11670 = vmatprep.mubr.bf16.mxu1 %v25393_v19  ;;  %11736 = vmatpush1.bf16.msra.mxu1 %v21591_v50 }
 0x562   : > { %11737 = vmatprep.subr.bf16.mxu1 %v21598_v10  ;;  %18168 = vmatpush3.bf16.msra.mxu0 %v21603_v25  ;;  %v21607_v25 = vld [vmem:[#allocation6 + $0x12e0] ss:$28 sps:$4 sm:$0xff]  }
 0x563   : > { %18169 = vmatprep.subr.bf16.mxu0 %v21610_v8  ;;  %v21614_v8 = vld [vmem:[#allocation6 + $0x131c] ss:$28 sps:$4 sm:$0xff]  }
 0x565   : > { %11738 = vmatpush1.bf16.msra.mxu1 %v21596_v1 }
 0x566   : > { %11739 = vmatprep.subr.bf16.mxu1 %v21601_v34  ;;  %18170 = vmatpush3.bf16.msra.mxu0 %v21611_v52  ;;  %v21642_v52 = vld [vmem:[#allocation6 + $0xde0] ss:$28 sps:$4 sm:$0xff]  }
 0x567   : > { %12200 = vmatmul.mubr.bf16.gmra.mrb[232].mxu0 %v25394_v43  ;;  %18171 = vmatprep.subr.bf16.mxu0 %v21618_v27  ;;  %v25401_v27 = vld [vmem:[#allocation98_spill] sm:$0xff]  ;;  %v25403_v43 = vld [vmem:[#allocation104_spill] sm:$0xff] }
 0x568   : > { %11671 = vmatmul.mubr.bf16.gmra.mrb[136].mxu1 %v25397_v6  ;;  %12207 = vmatprep.mubr.bf16.mxu0 %v25398_v30  ;;  %v21617_v30 = vld [vmem:[#allocation6 + $0x1354] ss:$28 sps:$4 sm:$0xff]  }
 0x569   : > { %11680 = vmatprep.mubr.bf16.mxu1 %v25400_v60  ;;  %11740 = vmatpush1.bf16.msra.mxu1 %v21599_v37 }
 0x56a   : > { %v11087_v44 = vpop.f32.mrb[128].mxu0  ;;  %11741 = vmatprep.subr.bf16.mxu1 %v21606_v62  ;;  %18172 = vmatpush3.bf16.msra.mxu0 %v21619_v13 }
 0x56b   : > { %v18803_v53 = vadd.f32 %v11087_v44, %v23926_v18  ;;  %v11089_v33 = vpop.f32.mrb[129].mxu0  ;;  %18173 = vmatprep.subr.bf16.mxu0 %v21626_v4 }
 0x56c   : > { %v18804_v24 = vadd.f32 %v11089_v33, %v23932_v48  ;;  %v11091_v47 = vpop.f32.mrb[130].mxu0 }
 0x56d   : > { %v18805_v50 = vadd.f32 %v11091_v47, %v23926_v18  ;;  %11742 = vmatpush1.bf16.msra.mxu1 %v21604_v15  ;;  %v11093_v10 = vpop.f32.mrb[131].mxu0  ;;  %v12638_v1 = vmax.f32 %v18803_v53, 0.0  ;;  %v21643_v15 = vld [vmem:[#allocation6 + $0xc20] ss:$28 sps:$4 sm:$0xff]  }
 0x56e   : > { %v18806_v63 = vadd.f32 %v11093_v10, %v23932_v48  ;;  %11743 = vmatprep.subr.bf16.mxu1 %v21609_v55  ;;  %18174 = vmatpush3.bf16.msra.mxu0 %v21627_v0  ;;  %v12639_v37 = vmax.f32 %v18804_v24, 0.0  ;;  %v21615_v24 = vld [vmem:[#allocation6 + $0x1350] ss:$28 sps:$4 sm:$0xff]  }
 0x56f   : > { %v12645_v34 = vmax.f32 %v18805_v50, 0.0  ;;  %12208 = vmatmul.mubr.bf16.gmra.mrb[236].mxu0 %v25362_v20  ;;  %18175 = vmatprep.subr.bf16.mxu0 %v21634_v39  ;;  %v21622_v50 = vld [vmem:[#allocation6 + $0x138c] ss:$28 sps:$4 sm:$0xff]  }
 0x570   : > { %11681 = vmatmul.mubr.bf16.gmra.mrb[140].mxu1 %v25401_v27  ;;  %12215 = vmatprep.mubr.bf16.mxu0 %v25363_v38  ;;  %v12646_v62 = vmax.f32 %v18806_v63, 0.0  ;;  %v21650_v38 = vld [vmem:[#allocation6 + $0xfd8] ss:$28 sps:$4 sm:$0xff]   ;;  %v25405_v63 = vld [vmem:[#allocation102_spill] sm:$0xff] }
 0x571   : > { %v23942_v13 = vpack.c.bf16 %v12645_v34, %v12638_v1  ;;  %11690 = vmatprep.mubr.bf16.mxu1 %v25403_v43  ;;  %11744 = vmatpush1.bf16.msra.mxu1 %v21607_v25  ;;  %v25407_v34 = vld [vmem:[#allocation108_spill] sm:$0xff] }
 0x572   : > { %v11097_v4 = vpop.f32.mrb[132].mxu0  ;;  %11745 = vmatprep.subr.bf16.mxu1 %v21614_v8  ;;  %18176 = vmatpush3.bf16.msra.mxu0 %v21635_v45  ;;  %v23945_v20 = vpack.c.bf16 %v12646_v62, %v12639_v37  ;;  %v21625_v62 = vld [vmem:[#allocation6 + $0x13c4] ss:$28 sps:$4 sm:$0xff]  }
 0x573   : > { %25402 = vst [vmem:[#allocation26_spill] sm:$0xff] %v23942_v13  ;;  %v18807_v44 = vadd.f32 %v11097_v4, %v23926_v18  ;;  %v11099_v55 = vpop.f32.mrb[133].mxu0  ;;  %18177 = vmatprep.subr.bf16.mxu0 %v21642_v52  ;;  %v21620_v52 = vld [vmem:[#allocation6 + $0x1388] ss:$28 sps:$4 sm:$0xff]   ;;  %v21721_v13 = vld [vmem:[#allocation6 + $0x1278] ss:$28 sps:$4 sm:$0xff]  }
 0x574   : > { %25404 = vst [vmem:[#allocation32_spill] sm:$0xff] %v23945_v20  ;;  %v18808_v0 = vadd.f32 %v11099_v55, %v23932_v48  ;;  %v11101_v53 = vpop.f32.mrb[134].mxu0  ;;  %v21623_v55 = vld [vmem:[#allocation6 + $0x13c0] ss:$28 sps:$4 sm:$0xff]  }
 0x575   : > { %v18809_v33 = vadd.f32 %v11101_v53, %v23926_v18  ;;  %11746 = vmatpush1.bf16.msra.mxu1 %v21612_v7  ;;  %v11103_v39 = vpop.f32.mrb[135].mxu0  ;;  %v12652_v10 = vmax.f32 %v18807_v44, 0.0 }
 0x576   : > { %v18810_v47 = vadd.f32 %v11103_v39, %v23932_v48  ;;  %11747 = vmatprep.subr.bf16.mxu1 %v21617_v30  ;;  %18178 = vmatpush3.bf16.msra.mxu0 %v21643_v15  ;;  %v12653_v8 = vmax.f32 %v18808_v0, 0.0  ;;  %v21630_v0 = vld [vmem:[#allocation6 + $0x13fc] ss:$28 sps:$4 sm:$0xff]   ;;  %v25409_v39 = vld [vmem:[#allocation106_spill] sm:$0xff] }
 0x577   : > { %v12659_v25 = vmax.f32 %v18809_v33, 0.0  ;;  %12216 = vmatmul.mubr.bf16.gmra.mrb[240].mxu0 %v25366_v32  ;;  %18227 = vmatprep.subr.bf16.mxu0 %v21650_v38 }
 0x578   : > { %11691 = vmatmul.mubr.bf16.gmra.mrb[144].mxu1 %v25405_v63  ;;  %12223 = vmatprep.mubr.bf16.mxu0 %v25367_v49  ;;  %v12660_v45 = vmax.f32 %v18810_v47, 0.0 }
 0x579   : > { %v23954_v1 = vpack.c.bf16 %v12659_v25, %v12652_v10  ;;  %11700 = vmatprep.mubr.bf16.mxu1 %v25407_v34  ;;  %11748 = vmatpush1.bf16.msra.mxu1 %v21615_v24  ;;  %v25411_v10 = vld [vmem:[#allocation112_spill] sm:$0xff] }
 0x57a   : > { %v11107_v37 = vpop.f32.mrb[136].mxu0  ;;  %11749 = vmatprep.subr.bf16.mxu1 %v21622_v50  ;;  %v23957_v7 = vpack.c.bf16 %v12660_v45, %v12653_v8  ;;  %v21628_v25 = vld [vmem:[#allocation6 + $0x13f8] ss:$28 sps:$4 sm:$0xff]  }
 0x57b   : > { %25406 = vst [vmem:[#allocation30_spill] sm:$0xff] %v23954_v1  ;;  %v18811_v32 = vadd.f32 %v11107_v37, %v23926_v18  ;;  %v11109_v4 = vpop.f32.mrb[137].mxu0  ;;  %v21633_v45 = vld [vmem:[#allocation6 + $0x1434] ss:$28 sps:$4 sm:$0xff]   ;;  %v21716_v1 = vld [vmem:[#allocation6 + $0x1208] ss:$28 sps:$4 sm:$0xff]  }
 0x57c   : > { %25408 = vst [vmem:[#allocation36_spill] sm:$0xff] %v23957_v7  ;;  %v18812_v30 = vadd.f32 %v11109_v4, %v23932_v48  ;;  %v11111_v15 = vpop.f32.mrb[138].mxu0 }
 0x57d   : > { %v18813_v49 = vadd.f32 %v11111_v15, %v23926_v18  ;;  %11750 = vmatpush1.bf16.msra.mxu1 %v21620_v52  ;;  %v11113_v44 = vpop.f32.mrb[139].mxu0  ;;  %v12666_v53 = vmax.f32 %v18811_v32, 0.0 }
 0x57e   : > { %v18814_v38 = vadd.f32 %v11113_v44, %v23932_v48  ;;  %11751 = vmatprep.subr.bf16.mxu1 %v21625_v62  ;;  %v12667_v24 = vmax.f32 %v18812_v30, 0.0  ;;  %v21631_v30 = vld [vmem:[#allocation6 + $0x1430] ss:$28 sps:$4 sm:$0xff]  }
 0x57f   : > { %v12673_v33 = vmax.f32 %v18813_v49, 0.0  ;;  %12224 = vmatmul.mubr.bf16.gmra.mrb[244].mxu0 %v25370_v42  ;;  %v21638_v49 = vld [vmem:[#allocation6 + $0x146c] ss:$28 sps:$4 sm:$0xff]  }
 0x580   : > { %11701 = vmatmul.mubr.bf16.gmra.mrb[148].mxu1 %v25409_v39  ;;  %12231 = vmatprep.mubr.bf16.mxu0 %v25371_v2  ;;  %v12674_v47 = vmax.f32 %v18814_v38, 0.0  ;;  %v25413_v38 = vld [vmem:[#allocation110_spill] sm:$0xff] }
 0x581   : > { %v23966_v50 = vpack.c.bf16 %v12673_v33, %v12666_v53  ;;  %11710 = vmatprep.mubr.bf16.mxu1 %v25411_v10  ;;  %11752 = vmatpush1.bf16.msra.mxu1 %v21623_v55 }
 0x582   : > { %v11117_v8 = vpop.f32.mrb[140].mxu0  ;;  %11753 = vmatprep.subr.bf16.mxu1 %v21630_v0  ;;  %v23969_v52 = vpack.c.bf16 %v12674_v47, %v12667_v24  ;;  %v25415_v24 = vld [vmem:[#allocation74_spill] sm:$0xff] }
 0x583   : > { %25410 = vst [vmem:[#allocation34_spill] sm:$0xff] %v23966_v50  ;;  %v18815_v37 = vadd.f32 %v11117_v8, %v23926_v18  ;;  %v11119_v42 = vpop.f32.mrb[141].mxu0  ;;  %v21636_v47 = vld [vmem:[#allocation6 + $0x1468] ss:$28 sps:$4 sm:$0xff]  }
 0x584   : > { %25412 = vst [vmem:[#allocation40_spill] sm:$0xff] %v23969_v52  ;;  %v18816_v62 = vadd.f32 %v11119_v42, %v23932_v48  ;;  %v11121_v32 = vpop.f32.mrb[142].mxu0  ;;  %v21641_v8 = vld [vmem:[#allocation6 + $0x14a4] ss:$28 sps:$4 sm:$0xff]  }
 0x585   : > { %v18817_v2 = vadd.f32 %v11121_v32, %v23926_v18  ;;  %11754 = vmatpush1.bf16.msra.mxu1 %v21628_v25  ;;  %v11123_v4 = vpop.f32.mrb[143].mxu0  ;;  %v12680_v44 = vmax.f32 %v18815_v37, 0.0 }
 0x586   : > { %v18818_v15 = vadd.f32 %v11123_v4, %v23932_v48  ;;  %11755 = vmatprep.subr.bf16.mxu1 %v21633_v45  ;;  %v12681_v0 = vmax.f32 %v18816_v62, 0.0 }
 0x587   : > { %v12687_v55 = vmax.f32 %v18817_v2, 0.0  ;;  %12232 = vmatmul.mubr.bf16.gmra.mrb[248].mxu0 %v25374_v46  ;;  %v21639_v2 = vld [vmem:[#allocation6 + $0x14a0] ss:$28 sps:$4 sm:$0xff]  }
 0x588   : > { %11711 = vmatmul.mubr.bf16.gmra.mrb[152].mxu1 %v25413_v38  ;;  %12239 = vmatprep.mubr.bf16.mxu0 %v25375_v51  ;;  %v12688_v53 = vmax.f32 %v18818_v15, 0.0 }
 0x589   : > { %v23978_v33 = vpack.c.bf16 %v12687_v55, %v12680_v44  ;;  %11720 = vmatprep.mubr.bf16.mxu1 %v25415_v24  ;;  %11756 = vmatpush1.bf16.msra.mxu1 %v21631_v30  ;;  %v21646_v30 = vld [vmem:[#allocation6 + $0x14dc] ss:$28 sps:$4 sm:$0xff]   ;;  %v25417_v44 = vld [vmem:[#allocation68_spill] sm:$0xff] }
 0x58a   : > { %v11127_v25 = vpop.f32.mrb[144].mxu0  ;;  %11757 = vmatprep.subr.bf16.mxu1 %v21638_v49  ;;  %v23981_v45 = vpack.c.bf16 %v12688_v53, %v12681_v0 }
 0x58b   : > { %25414 = vst [vmem:[#allocation38_spill] sm:$0xff] %v23978_v33  ;;  %v18819_v37 = vadd.f32 %v11127_v25, %v23926_v18  ;;  %v11129_v46 = vpop.f32.mrb[145].mxu0  ;;  %v21644_v25 = vld [vmem:[#allocation6 + $0x14d8] ss:$28 sps:$4 sm:$0xff]  }
 0x58c   : > { %25416 = vst [vmem:[#allocation44_spill] sm:$0xff] %v23981_v45  ;;  %v18820_v42 = vadd.f32 %v11129_v46, %v23932_v48  ;;  %v11131_v32 = vpop.f32.mrb[146].mxu0  ;;  %v21722_v45 = vld [vmem:[#allocation6 + $0x1518] ss:$28 sps:$4 sm:$0xff]  }
 0x58d   : > { %v18821_v51 = vadd.f32 %v11131_v32, %v23926_v18  ;;  %11758 = vmatpush1.bf16.msra.mxu1 %v21636_v47  ;;  %v11133_v62 = vpop.f32.mrb[147].mxu0  ;;  %v12694_v15 = vmax.f32 %v18819_v37, 0.0  ;;  %v25419_v47 = vld [vmem:[#allocation90_spill] sm:$0xff] }
 0x58e   : > { %v18822_v4 = vadd.f32 %v11133_v62, %v23932_v48  ;;  %11759 = vmatprep.subr.bf16.mxu1 %v21641_v8  ;;  %v12695_v55 = vmax.f32 %v18820_v42, 0.0  ;;  %v21649_v8 = vld [vmem:[#allocation6 + $0x1514] ss:$28 sps:$4 sm:$0xff]  }
 0x58f   : > { %v12701_v49 = vmax.f32 %v18821_v51, 0.0  ;;  %12240 = vmatmul.mubr.bf16.gmra.mrb[252].mxu0 %v25378_v16 }
 0x590   : > { %11721 = vmatmul.mubr.bf16.gmra.mrb[156].mxu1 %v25417_v44  ;;  %12280 = vmatprep.mubr.bf16.mxu0 %v25379_v21  ;;  %v12702_v0 = vmax.f32 %v18822_v4, 0.0  ;;  %v21647_v4 = vld [vmem:[#allocation6 + $0x1510] ss:$28 sps:$4 sm:$0xff]  }
 0x591   : > { %v23990_v53 = vpack.c.bf16 %v12701_v49, %v12694_v15  ;;  %11760 = vmatpush1.bf16.msra.mxu1 %v21639_v2  ;;  %11763 = vmatprep.mubr.bf16.mxu1 %v25419_v47  ;;  %v21651_v15 = vld [vmem:[#allocation6 + $0xe18] ss:$28 sps:$4 sm:$0xff]   ;;  %v21654_v49 = vld [vmem:[#allocation6 + $0x154c] ss:$28 sps:$4 sm:$0xff]  }
 0x592   : > { %v11137_v46 = vpop.f32.mrb[148].mxu0  ;;  %11761 = vmatprep.subr.bf16.mxu1 %v21646_v30  ;;  %v23993_v32 = vpack.c.bf16 %v12702_v0, %v12695_v55  ;;  %v21658_v55 = vld [vmem:[#allocation6 + $0x1010] ss:$28 sps:$4 sm:$0xff]   ;;  %v25421_v0 = vld [vmem:[#allocation89_spill] sm:$0xff] }
 0x593   : > { %25418 = vst [vmem:[#allocation42_spill] sm:$0xff] %v23990_v53  ;;  %v18823_v37 = vadd.f32 %v11137_v46, %v23926_v18  ;;  %v11139_v16 = vpop.f32.mrb[149].mxu0 }
 0x594   : > { %25420 = vst [vmem:[#allocation48_spill] sm:$0xff] %v23993_v32  ;;  %v18824_v51 = vadd.f32 %v11139_v16, %v23932_v48  ;;  %v11141_v62 = vpop.f32.mrb[150].mxu0 }
 0x595   : > { %v18825_v21 = vadd.f32 %v11141_v62, %v23926_v18  ;;  %11762 = vmatpush1.bf16.msra.mxu1 %v21644_v25  ;;  %v11143_v42 = vpop.f32.mrb[151].mxu0  ;;  %v12708_v30 = vmax.f32 %v18823_v37, 0.0  ;;  %v25423_v25 = vld [vmem:[#allocation93_spill] sm:$0xff]  ;;  %v21657_v37 = vld [vmem:[#allocation6 + $0x1584] ss:$28 sps:$4 sm:$0xff]  }
 0x596   : > { %v18826_v2 = vadd.f32 %v11143_v42, %v23932_v48  ;;  %11844 = vmatprep.subr.bf16.mxu1 %v21649_v8  ;;  %v12709_v46 = vmax.f32 %v18824_v51, 0.0  ;;  %v21652_v42 = vld [vmem:[#allocation6 + $0x1548] ss:$28 sps:$4 sm:$0xff]  }
 0x597   : > { %v12715_v9 = vmax.f32 %v18825_v21, 0.0  ;;  %12281 = vmatmul.mubr.bf16.vlgmr.msra.gmra.mrb[0].mxu0 %v25382_v12  ;;  %v21659_v21 = vld [vmem:[#allocation6 + $0xe50] ss:$28 sps:$4 sm:$0xff]  }
 0x598   : > { %11764 = vmatmul.mubr.bf16.vlgmr.msra.gmra.mrb[128].mxu1 %v25421_v0  ;;  %12288 = vmatprep.mubr.bf16.mxu0 %v25383_v40  ;;  %v12716_v16 = vmax.f32 %v18826_v2, 0.0  ;;  %v21666_v40 = vld [vmem:[#allocation6 + $0x1048] ss:$28 sps:$4 sm:$0xff]  }
 0x599   : > { %v24002_v62 = vpack.c.bf16 %v12715_v9, %v12708_v30  ;;  %11773 = vmatprep.mubr.bf16.mxu1 %v25423_v25  ;;  %11845 = vmatpush1.bf16.msra.mxu1 %v21647_v4  ;;  %v21655_v30 = vld [vmem:[#allocation6 + $0x1580] ss:$28 sps:$4 sm:$0xff]  }
 0x59a   : > { %18228 = vmatpush3.bf16.msra.mxu0 %v21651_v15  ;;  %v11147_v8 = vpop.f32.mrb[152].mxu0  ;;  %11846 = vmatprep.subr.bf16.mxu1 %v21654_v49  ;;  %v24005_v14 = vpack.c.bf16 %v12716_v16, %v12709_v46  ;;  %v21662_v49 = vld [vmem:[#allocation6 + $0x15bc] ss:$28 sps:$4 sm:$0xff]   ;;  %v21667_v46 = vld [vmem:[#allocation6 + $0xe88] ss:$28 sps:$4 sm:$0xff]  }
 0x59b   : > { %25422 = vst [vmem:[#allocation46_spill] sm:$0xff] %v24002_v62  ;;  %v18827_v12 = vadd.f32 %v11147_v8, %v23926_v18  ;;  %v11149_v53 = vpop.f32.mrb[153].mxu0  ;;  %18229 = vmatprep.subr.bf16.mxu0 %v21658_v55  ;;  %v21674_v55 = vld [vmem:[#allocation6 + $0x1080] ss:$28 sps:$4 sm:$0xff]   ;;  %v25425_v8 = vld [vmem:[#allocation92_spill] sm:$0xff] }
 0x59c   : > { %25424 = vst [vmem:[#allocation52_spill] sm:$0xff] %v24005_v14  ;;  %v18828_v51 = vadd.f32 %v11149_v53, %v23932_v48  ;;  %v11151_v9 = vpop.f32.mrb[154].mxu0  ;;  %v25427_v14 = vld [vmem:[#allocation97_spill] sm:$0xff] }
 0x59d   : > { %v18829_v2 = vadd.f32 %v11151_v9, %v23926_v18  ;;  %11847 = vmatpush1.bf16.msra.mxu1 %v21652_v42  ;;  %v11153_v4 = vpop.f32.mrb[155].mxu0  ;;  %v12722_v16 = vmax.f32 %v18827_v12, 0.0  ;;  %v21665_v12 = vld [vmem:[#allocation6 + $0x15f4] ss:$28 sps:$4 sm:$0xff]  }
 0x59e   : > { %v18830_v15 = vadd.f32 %v11153_v4, %v23932_v48  ;;  %11848 = vmatprep.subr.bf16.mxu1 %v21657_v37  ;;  %18230 = vmatpush3.bf16.msra.mxu0 %v21659_v21  ;;  %v12723_v53 = vmax.f32 %v18828_v51, 0.0  ;;  %v21660_v37 = vld [vmem:[#allocation6 + $0x15b8] ss:$28 sps:$4 sm:$0xff]  }
 0x59f   : > { %v12729_v62 = vmax.f32 %v18829_v2, 0.0  ;;  %12289 = vmatmul.mubr.bf16.gmra.mrb[4].mxu0 %v25386_v58  ;;  %18231 = vmatprep.subr.bf16.mxu0 %v21666_v40  ;;  %v21675_v2 = vld [vmem:[#allocation6 + $0xec0] ss:$28 sps:$4 sm:$0xff]  }
 0x5a0   : > { %11774 = vmatmul.mubr.bf16.gmra.mrb[132].mxu1 %v25425_v8  ;;  %12296 = vmatprep.mubr.bf16.mxu0 %v25387_v59  ;;  %v12730_v42 = vmax.f32 %v18830_v15, 0.0  ;;  %v21682_v59 = vld [vmem:[#allocation6 + $0x10b8] ss:$28 sps:$4 sm:$0xff]  }
 0x5a1   : > { %v24014_v9 = vpack.c.bf16 %v12729_v62, %v12722_v16  ;;  %11783 = vmatprep.mubr.bf16.mxu1 %v25427_v14  ;;  %11849 = vmatpush1.bf16.msra.mxu1 %v21655_v30  ;;  %v21663_v16 = vld [vmem:[#allocation6 + $0x15f0] ss:$28 sps:$4 sm:$0xff]  }
 0x5a2   : > { %v11157_v21 = vpop.f32.mrb[156].mxu0  ;;  %11850 = vmatprep.subr.bf16.mxu1 %v21662_v49  ;;  %18232 = vmatpush3.bf16.msra.mxu0 %v21667_v46  ;;  %v24017_v58 = vpack.c.bf16 %v12730_v42, %v12723_v53  ;;  %v21670_v46 = vld [vmem:[#allocation6 + $0x162c] ss:$28 sps:$4 sm:$0xff]   ;;  %v21683_v53 = vld [vmem:[#allocation6 + $0xef8] ss:$28 sps:$4 sm:$0xff]  }
 0x5a3   : > { %25426 = vst [vmem:[#allocation50_spill] sm:$0xff] %v24014_v9  ;;  %v18831_v40 = vadd.f32 %v11157_v21, %v23926_v18  ;;  %v11159_v4 = vpop.f32.mrb[157].mxu0  ;;  %18233 = vmatprep.subr.bf16.mxu0 %v21674_v55  ;;  %v21690_v55 = vld [vmem:[#allocation6 + $0x10f0] ss:$28 sps:$4 sm:$0xff]  }
 0x5a4   : > { %25428 = vst [vmem:[#allocation56_spill] sm:$0xff] %v24017_v58  ;;  %v18832_v51 = vadd.f32 %v11159_v4, %v23932_v48  ;;  %v11161_v62 = vpop.f32.mrb[158].mxu0  ;;  %v25429_v21 = vld [vmem:[#allocation95_spill] sm:$0xff] }
 0x5a5   : > { %v18833_v15 = vadd.f32 %v11161_v62, %v23926_v18  ;;  %11851 = vmatpush1.bf16.msra.mxu1 %v21660_v37  ;;  %v11163_v30 = vpop.f32.mrb[159].mxu0  ;;  %v12736_v42 = vmax.f32 %v18831_v40, 0.0  ;;  %v25431_v62 = vld [vmem:[#allocation101_spill] sm:$0xff]  ;;  %v21691_v40 = vld [vmem:[#allocation6 + $0xf30] ss:$28 sps:$4 sm:$0xff]  }
 0x5a6   : > { %v18834_v49 = vadd.f32 %v11163_v30, %v23932_v48  ;;  %11852 = vmatprep.subr.bf16.mxu1 %v21665_v12  ;;  %18234 = vmatpush3.bf16.msra.mxu0 %v21675_v2  ;;  %v12737_v18 = vmax.f32 %v18832_v51, 0.0  ;;  %v21668_v48 = vld [vmem:[#allocation6 + $0x1628] ss:$28 sps:$4 sm:$0xff]   ;;  %v21671_v51 = vld [vmem:[#allocation6 + $0x1660] ss:$28 sps:$4 sm:$0xff]  }
 0x5a7   : > { %v12743_v9 = vmax.f32 %v18833_v15, 0.0  ;;  %12297 = vmatmul.mubr.bf16.gmra.mrb[8].mxu0 %v25251_v3  ;;  %18235 = vmatprep.subr.bf16.mxu0 %v21682_v59  ;;  %v21673_v2 = vld [vmem:[#allocation6 + $0x1664] ss:$28 sps:$4 sm:$0xff]  }
 0x5a8   : > { %11784 = vmatmul.mubr.bf16.gmra.mrb[136].mxu1 %v25429_v21  ;;  %12304 = vmatprep.mubr.bf16.mxu0 %v25254_v29  ;;  %v12744_v37 = vmax.f32 %v18834_v49, 0.0  ;;  %v21698_v15 = vld [vmem:[#allocation6 + $0x1128] ss:$28 sps:$4 sm:$0xff]  }
 0x5a9   : > { %v24026_v4 = vpack.c.bf16 %v12743_v9, %v12736_v42  ;;  %11793 = vmatprep.mubr.bf16.mxu1 %v25431_v62  ;;  %11853 = vmatpush1.bf16.msra.mxu1 %v21663_v16  ;;  %v21678_v16 = vld [vmem:[#allocation6 + $0x169c] ss:$28 sps:$4 sm:$0xff]   ;;  %v25433_v42 = vld [vmem:[#allocation99_spill] sm:$0xff] }
 0x5aa   : > { %v17987_v12 = vpop.f32.mrb[160].mxu0  ;;  %11854 = vmatprep.subr.bf16.mxu1 %v21670_v46  ;;  %18236 = vmatpush3.bf16.msra.mxu0 %v21683_v53  ;;  %v24029_v3 = vpack.c.bf16 %v12744_v37, %v12737_v18  ;;  %v21699_v46 = vld [vmem:[#allocation6 + $0xf68] ss:$28 sps:$4 sm:$0xff]   ;;  %v21706_v53 = vld [vmem:[#allocation6 + $0x1160] ss:$28 sps:$4 sm:$0xff]  }
 0x5ab   : > { %25430 = vst [vmem:[#allocation54_spill] sm:$0xff] %v24026_v4  ;;  %v17988_v59 = vpop.f32.mrb[161].mxu0  ;;  %18237 = vmatprep.subr.bf16.mxu0 %v21690_v55  ;;  %v25434_v55 = vld [vmem:[#allocation105_spill] sm:$0xff] }
 0x5ac   : > { %25432 = vst [vmem:[#allocation61_spill] sm:$0xff] %v24029_v3  ;;  %v24031_v30 = vadd.f32 %v17988_v59, %v17987_v12  ;;  %v17990_v29 = vpop.f32.mrb[162].mxu0  ;;  %v21676_v18 = vld [vmem:[#allocation6 + $0x1698] ss:$28 sps:$4 sm:$0xff]   ;;  %v21707_v12 = vld [vmem:[#allocation6 + $0xfa0] ss:$28 sps:$4 sm:$0xff]  }
 0x5ad   : > { %11855 = vmatpush1.bf16.msra.mxu1 %v21668_v48  ;;  %v17991_v9 = vpop.f32.mrb[163].mxu0  ;;  %v21681_v48 = vld [vmem:[#allocation6 + $0x16d4] ss:$28 sps:$4 sm:$0xff]  }
 0x5ae   : > { %v24033_v49 = vadd.f32 %v17991_v9, %v17990_v29  ;;  %11856 = vmatprep.subr.bf16.mxu1 %v21673_v2  ;;  %18238 = vmatpush3.bf16.msra.mxu0 %v21691_v40  ;;  %v21711_v40 = vld [vmem:[#allocation6 + $0x1358] ss:$28 sps:$4 sm:$0xff]   ;;  %v21679_v29 = vld [vmem:[#allocation6 + $0x16d0] ss:$28 sps:$4 sm:$0xff]  }
 0x5af   : > { %12305 = vmatmul.mubr.bf16.gmra.mrb[12].mxu0 %v25257_v28  ;;  %18239 = vmatprep.subr.bf16.mxu0 %v21698_v15 }
 0x5b0   : > { %11794 = vmatmul.mubr.bf16.gmra.mrb[140].mxu1 %v25433_v42  ;;  %12312 = vmatprep.mubr.bf16.mxu0 %v25258_v36  ;;  %v21686_v36 = vld [vmem:[#allocation6 + $0x170c] ss:$28 sps:$4 sm:$0xff]  }
 0x5b1   : > { %11803 = vmatprep.mubr.bf16.mxu1 %v25434_v55  ;;  %11857 = vmatpush1.bf16.msra.mxu1 %v21671_v51  ;;  %v25435_v51 = vld [vmem:[#allocation103_spill] sm:$0xff] }
 0x5b2   : > { %v17993_v37 = vpop.f32.mrb[164].mxu0  ;;  %11858 = vmatprep.subr.bf16.mxu1 %v21678_v16  ;;  %18240 = vmatpush3.bf16.msra.mxu0 %v21699_v46  ;;  %v25436_v16 = vld [vmem:[#allocation109_spill] sm:$0xff]  ;;  %v21684_v46 = vld [vmem:[#allocation6 + $0x1708] ss:$28 sps:$4 sm:$0xff]  }
 0x5b3   : > { %v17994_v2 = vpop.f32.mrb[165].mxu0  ;;  %18241 = vmatprep.subr.bf16.mxu0 %v21706_v53 }
 0x5b4   : > { %v24039_v59 = vadd.f32 %v17994_v2, %v17993_v37  ;;  %v17996_v28 = vpop.f32.mrb[166].mxu0 }
 0x5b5   : > { %11859 = vmatpush1.bf16.msra.mxu1 %v21676_v18  ;;  %v17997_v15 = vpop.f32.mrb[167].mxu0  ;;  %v21689_v18 = vld [vmem:[#allocation6 + $0x1744] ss:$28 sps:$4 sm:$0xff]  }
 0x5b6   : > { %v24041_v9 = vadd.f32 %v17997_v15, %v17996_v28  ;;  %11860 = vmatprep.subr.bf16.mxu1 %v21681_v48  ;;  %18242 = vmatpush3.bf16.msra.mxu0 %v21707_v12  ;;  %v21687_v28 = vld [vmem:[#allocation6 + $0x1740] ss:$28 sps:$4 sm:$0xff]  }
 0x5b7   : > { %12313 = vmatmul.mubr.bf16.gmra.mrb[16].mxu0 %v25259_v54  ;;  %18291 = vmatprep.subr.bf16.mxu0 %v21711_v40  ;;  %v21694_v40 = vld [vmem:[#allocation6 + $0x177c] ss:$28 sps:$4 sm:$0xff]  }
 0x5b8   : > { %11804 = vmatmul.mubr.bf16.gmra.mrb[144].mxu1 %v25435_v51  ;;  %12320 = vmatprep.mubr.bf16.mxu0 %v25260_v23  ;;  %v25437_v23 = vld [vmem:[#allocation107_spill] sm:$0xff]  ;;  %v25438_v15 = vld [vmem:[#allocation113_spill] sm:$0xff] }
 0x5b9   : > { %11813 = vmatprep.mubr.bf16.mxu1 %v25436_v16  ;;  %11861 = vmatpush1.bf16.msra.mxu1 %v21679_v29  ;;  %v21692_v29 = vld [vmem:[#allocation6 + $0x1778] ss:$28 sps:$4 sm:$0xff]  }
 0x5ba   : > { %v17999_v53 = vpop.f32.mrb[168].mxu0  ;;  %11862 = vmatprep.subr.bf16.mxu1 %v21686_v36 }
 0x5bb   : > { %v18000_v37 = vpop.f32.mrb[169].mxu0 }
 0x5bc   : > { %v24047_v2 = vadd.f32 %v18000_v37, %v17999_v53  ;;  %v18002_v48 = vpop.f32.mrb[170].mxu0  ;;  %v21697_v53 = vld [vmem:[#allocation6 + $0x17b4] ss:$28 sps:$4 sm:$0xff]  }
 0x5bd   : > { %11863 = vmatpush1.bf16.msra.mxu1 %v21684_v46  ;;  %v18003_v12 = vpop.f32.mrb[171].mxu0 }
 0x5be   : > { %v24049_v54 = vadd.f32 %v18003_v12, %v18002_v48  ;;  %11864 = vmatprep.subr.bf16.mxu1 %v21689_v18  ;;  %v21695_v12 = vld [vmem:[#allocation6 + $0x17b0] ss:$28 sps:$4 sm:$0xff]  }
 0x5bf   : > { %12321 = vmatmul.mubr.bf16.gmra.mrb[20].mxu0 %v25261_v22  ;;  %v21702_v22 = vld [vmem:[#allocation6 + $0x17ec] ss:$28 sps:$4 sm:$0xff]  }
 0x5c0   : > { %11814 = vmatmul.mubr.bf16.gmra.mrb[148].mxu1 %v25437_v23  ;;  %12328 = vmatprep.mubr.bf16.mxu0 %v25262_v57  ;;  %v25439_v57 = vld [vmem:[#allocation111_spill] sm:$0xff] }
 0x5c1   : > { %11823 = vmatprep.mubr.bf16.mxu1 %v25438_v15  ;;  %11865 = vmatpush1.bf16.msra.mxu1 %v21687_v28  ;;  %v25440_v28 = vld [vmem:[#allocation115_spill] sm:$0xff] }
 0x5c2   : > { %v18005_v36 = vpop.f32.mrb[172].mxu0  ;;  %11866 = vmatprep.subr.bf16.mxu1 %v21694_v40  ;;  %v21700_v40 = vld [vmem:[#allocation6 + $0x17e8] ss:$28 sps:$4 sm:$0xff]  }
 0x5c3   : > { %v18006_v46 = vpop.f32.mrb[173].mxu0 }
 0x5c4   : > { %v24055_v37 = vadd.f32 %v18006_v46, %v18005_v36  ;;  %v18008_v48 = vpop.f32.mrb[174].mxu0  ;;  %v21705_v46 = vld [vmem:[#allocation6 + $0x1824] ss:$28 sps:$4 sm:$0xff]  }
 0x5c5   : > { %11867 = vmatpush1.bf16.msra.mxu1 %v21692_v29  ;;  %v18009_v18 = vpop.f32.mrb[175].mxu0 }
 0x5c6   : > { %v24057_v4 = vadd.f32 %v18009_v18, %v18008_v48  ;;  %11868 = vmatprep.subr.bf16.mxu1 %v21697_v53  ;;  %v21703_v18 = vld [vmem:[#allocation6 + $0x1820] ss:$28 sps:$4 sm:$0xff]  }
 0x5c7   : > { %12329 = vmatmul.mubr.bf16.gmra.mrb[24].mxu0 %v25263_v56  ;;  %v21710_v56 = vld [vmem:[#allocation6 + $0x185c] ss:$28 sps:$4 sm:$0xff]  }
 0x5c8   : > { %11824 = vmatmul.mubr.bf16.gmra.mrb[152].mxu1 %v25439_v57  ;;  %12336 = vmatprep.mubr.bf16.mxu0 %v23320_v11  ;;  %v25441_v11 = vld [vmem:[#allocation114_spill] sm:$0xff] }
 0x5c9   : > { %11833 = vmatprep.mubr.bf16.mxu1 %v25440_v28  ;;  %11869 = vmatpush1.bf16.msra.mxu1 %v21695_v12  ;;  %v25442_v12 = vld [vmem:[#allocation78_spill] sm:$0xff] }
 0x5ca   : > { %v18011_v36 = vpop.f32.mrb[176].mxu0  ;;  %11870 = vmatprep.subr.bf16.mxu1 %v21702_v22  ;;  %v21708_v22 = vld [vmem:[#allocation6 + $0x1858] ss:$28 sps:$4 sm:$0xff]   ;;  %v21740_v28 = vld [vmem:[#allocation6 + $0x1668] ss:$28 sps:$4 sm:$0xff]  }
 0x5cb   : > { %v18012_v29 = vpop.f32.mrb[177].mxu0 }
 0x5cc   : > { %v24063_v3 = vadd.f32 %v18012_v29, %v18011_v36  ;;  %v18014_v48 = vpop.f32.mrb[178].mxu0  ;;  %v21720_v29 = vld [vmem:[#allocation6 + $0x16d8] ss:$28 sps:$4 sm:$0xff]  }
 0x5cd   : > { %11871 = vmatpush1.bf16.msra.mxu1 %v21700_v40  ;;  %v18015_v53 = vpop.f32.mrb[179].mxu0 }
 0x5ce   : > { %v24065_v58 = vadd.f32 %v18015_v53, %v18014_v48  ;;  %11872 = vmatprep.subr.bf16.mxu1 %v21705_v46  ;;  %v21712_v53 = vld [vmem:[#allocation6 + $0x1198] ss:$28 sps:$4 sm:$0xff]  }
 0x5cf   : > { %12337 = vmatmul.mubr.bf16.gmra.mrb[28].mxu0 %v23315_v17  ;;  %v21713_v17 = vld [vmem:[#allocation6 + $0x1390] ss:$28 sps:$4 sm:$0xff]  }
 0x5d0   : > { %11834 = vmatmul.mubr.bf16.gmra.mrb[156].mxu1 %v25441_v11  ;;  %12377 = vmatprep.mubr.bf16.mxu0 %v23383_v41  ;;  %v21723_v41 = vld [vmem:[#allocation6 + $0x1710] ss:$28 sps:$4 sm:$0xff]  }
 0x5d1   : > { %11873 = vmatpush1.bf16.msra.mxu1 %v21703_v18  ;;  %11876 = vmatprep.mubr.bf16.mxu1 %v25442_v12  ;;  %v25443_v18 = vld [vmem:[#allocation72_spill] sm:$0xff] }
 0x5d2   : > { %v18017_v36 = vpop.f32.mrb[180].mxu0  ;;  %11874 = vmatprep.subr.bf16.mxu1 %v21710_v56  ;;  %v25444_v56 = vld [vmem:[#allocation82_spill] sm:$0xff] }
 0x5d3   : > { %v18018_v40 = vpop.f32.mrb[181].mxu0 }
 0x5d4   : > { %v24071_v32 = vadd.f32 %v18018_v40, %v18017_v36  ;;  %v18020_v48 = vpop.f32.mrb[182].mxu0  ;;  %v21714_v36 = vld [vmem:[#allocation6 + $0x11d0] ss:$28 sps:$4 sm:$0xff]  }
 0x5d5   : > { %11875 = vmatpush1.bf16.msra.mxu1 %v21708_v22  ;;  %v18021_v46 = vpop.f32.mrb[183].mxu0  ;;  %v21715_v22 = vld [vmem:[#allocation6 + $0x13c8] ss:$28 sps:$4 sm:$0xff]  }
 0x5d6   : > { %v24073_v33 = vadd.f32 %v18021_v46, %v18020_v48  ;;  %18355 = vmatprep.subr.bf16.mxu1 %v21720_v29  ;;  %v21724_v48 = vld [vmem:[#allocation6 + $0x1550] ss:$28 sps:$4 sm:$0xff]   ;;  %v21726_v29 = vld [vmem:[#allocation6 + $0x1748] ss:$28 sps:$4 sm:$0xff]  }
 0x5d7   : > { %12378 = vmatmul.mubr.bf16.vlgmr.msra.gmra.mrb[32].mxu0 %v23378_v35 }
 0x5d8   : > { %11877 = vmatmul.mubr.bf16.vlgmr.msra.gmra.mrb[128].mxu1 %v25443_v18  ;;  %12385 = vmatprep.mubr.bf16.mxu0 %v23403_v5  ;;  %v21717_v5 = vld [vmem:[#allocation6 + $0x1400] ss:$28 sps:$4 sm:$0xff]  }
 0x5d9   : > { %11886 = vmatprep.mubr.bf16.mxu1 %v25444_v56  ;;  %18292 = vmatpush3.bf16.msra.mxu0 %v21712_v53  ;;  %v21728_v53 = vld [vmem:[#allocation6 + $0x1588] ss:$28 sps:$4 sm:$0xff]  }
 0x5da   : > { %v18023_v40 = vpop.f32.mrb[184].mxu0  ;;  %18293 = vmatprep.subr.bf16.mxu0 %v21713_v17  ;;  %18356 = vmatpush3.bf16.msra.mxu1 %v21722_v45  ;;  %v21729_v45 = vld [vmem:[#allocation6 + $0x1780] ss:$28 sps:$4 sm:$0xff]   ;;  %v25445_v17 = vld [vmem:[#allocation76_spill] sm:$0xff] }
 0x5db   : > { %v18024_v46 = vpop.f32.mrb[185].mxu0  ;;  %18357 = vmatprep.subr.bf16.mxu1 %v21723_v41  ;;  %v25446_v41 = vld [vmem:[#allocation86_spill] sm:$0xff] }
 0x5dc   : > { %v24079_v50 = vadd.f32 %v18024_v46, %v18023_v40  ;;  %v18026_v35 = vpop.f32.mrb[186].mxu0  ;;  %v21718_v40 = vld [vmem:[#allocation6 + $0x1240] ss:$28 sps:$4 sm:$0xff]  }
 0x5dd   : > { %v18027_v52 = vpop.f32.mrb[187].mxu0  ;;  %18294 = vmatpush3.bf16.msra.mxu0 %v21714_v36 }
 0x5de   : > { %v24081_v7 = vadd.f32 %v18027_v52, %v18026_v35  ;;  %18295 = vmatprep.subr.bf16.mxu0 %v21715_v22  ;;  %18358 = vmatpush3.bf16.msra.mxu1 %v21724_v48  ;;  %v21719_v52 = vld [vmem:[#allocation6 + $0x1438] ss:$28 sps:$4 sm:$0xff]   ;;  %v21730_v22 = vld [vmem:[#allocation6 + $0x15c0] ss:$28 sps:$4 sm:$0xff]  }
 0x5df   : > { %12386 = vmatmul.mubr.bf16.gmra.mrb[36].mxu0 %v25391_v61  ;;  %18359 = vmatprep.subr.bf16.mxu1 %v21726_v29  ;;  %v21732_v48 = vld [vmem:[#allocation6 + $0x17b8] ss:$28 sps:$4 sm:$0xff]  }
 0x5e0   : > { %11887 = vmatmul.mubr.bf16.gmra.mrb[132].mxu1 %v25445_v17  ;;  %12393 = vmatprep.mubr.bf16.mxu0 %v25393_v19  ;;  %v21725_v19 = vld [vmem:[#allocation6 + $0x1470] ss:$28 sps:$4 sm:$0xff]  }
 0x5e1   : > { %11896 = vmatprep.mubr.bf16.mxu1 %v25446_v41  ;;  %18296 = vmatpush3.bf16.msra.mxu0 %v21716_v1  ;;  %v21734_v1 = vld [vmem:[#allocation6 + $0x15f8] ss:$28 sps:$4 sm:$0xff]  }
 0x5e2   : > { %v18029_v36 = vpop.f32.mrb[188].mxu0  ;;  %18297 = vmatprep.subr.bf16.mxu0 %v21717_v5  ;;  %18360 = vmatpush3.bf16.msra.mxu1 %v21728_v53  ;;  %v21735_v5 = vld [vmem:[#allocation6 + $0x17f0] ss:$28 sps:$4 sm:$0xff]   ;;  %v22277_v53 = vld [vmem:[#allocation7] sm:$0xff] }
 0x5e3   : > { %v18030_v46 = vpop.f32.mrb[189].mxu0  ;;  %18361 = vmatprep.subr.bf16.mxu1 %v21729_v45  ;;  %v25448_v45 = vsub.s32 6, %v25447_v31 }
 0x5e4   : > { %v24087_v35 = vadd.f32 %v18030_v46, %v18029_v36  ;;  %v18032_v61 = vpop.f32.mrb[190].mxu0  ;;  %v25449_v36 = vld [vmem:[#allocation80_spill] sm:$0xff] }
 0x5e5   : > { %v18033_v29 = vpop.f32.mrb[191].mxu0  ;;  %18298 = vmatpush3.bf16.msra.mxu0 %v21718_v40  ;;  %v24094_v26 = vrot.slane %v22277_v53, %v25448_v45  ;;  %v25450_v40 = vld [vmem:[#allocation116_spill] sm:$0xff] }
 0x5e6   : > { %v24089_v20 = vadd.f32 %v18033_v29, %v18032_v61  ;;  %18299 = vmatprep.subr.bf16.mxu0 %v21719_v52  ;;  %18362 = vmatpush3.bf16.msra.mxu1 %v21730_v22  ;;  %v21727_v52 = vld [vmem:[#allocation6 + $0x12b0] ss:$28 sps:$4 sm:$0xff]   ;;  %v21731_v22 = vld [vmem:[#allocation6 + $0x14a8] ss:$28 sps:$4 sm:$0xff]  }
 0x5e7   : > { %12394 = vmatmul.mubr.bf16.gmra.mrb[40].mxu0 %v25397_v6  ;;  %18363 = vmatprep.subr.bf16.mxu1 %v21732_v48  ;;  %v21736_v6 = vld [vmem:[#allocation6 + $0x1630] ss:$28 sps:$4 sm:$0xff]   ;;  %v21738_v61 = vld [vmem:[#allocation6 + $0x1828] ss:$28 sps:$4 sm:$0xff]   ;;  %v11992_v31 = vadd.f32 %v24031_v30, %v24094_v26 }
 0x5e8   : > { %11897 = vmatmul.mubr.bf16.gmra.mrb[136].mxu1 %v25449_v36  ;;  %12401 = vmatprep.mubr.bf16.mxu0 %v25400_v60  ;;  %v21733_v60 = vld [vmem:[#allocation6 + $0x12e8] ss:$28 sps:$4 sm:$0xff]  }
 0x5e9   : > { %11906 = vmatprep.mubr.bf16.mxu1 %v25450_v40  ;;  %18300 = vmatpush3.bf16.msra.mxu0 %v21721_v13  ;;  %v11995_v13 = vadd.f32 %v24033_v49, %v24094_v26  ;;  %v21739_v49 = vld [vmem:[#allocation6 + $0x1320] ss:$28 sps:$4 sm:$0xff]  }
 0x5ea   : > { %v18051_v46 = vpop.f32.mrb[192].mxu0  ;;  %18301 = vmatprep.subr.bf16.mxu0 %v21725_v19  ;;  %18364 = vmatpush3.bf16.msra.mxu1 %v21734_v1  ;;  %v21737_v1 = vld [vmem:[#allocation6 + $0x14e0] ss:$28 sps:$4 sm:$0xff]  }
 0x5eb   : > { %v18052_v48 = vpop.f32.mrb[193].mxu0  ;;  %18365 = vmatprep.subr.bf16.mxu1 %v21735_v5  ;;  %v21741_v5 = vld [vmem:[#allocation6 + $0x1860] ss:$28 sps:$4 sm:$0xff]  }
 0x5ec   : > { %v18053_v29 = vadd.f32 %v18052_v48, %v18051_v46  ;;  %v18054_v53 = vpop.f32.mrb[194].mxu0  ;;  %v25451_v46 = vld [vmem:[#allocation84_spill] sm:$0xff] }
 0x5ed   : > { %v18055_v45 = vpop.f32.mrb[195].mxu0  ;;  %18302 = vmatpush3.bf16.msra.mxu0 %v21727_v52  ;;  %v25452_v52 = vld [vmem:[#allocation118_spill] sm:$0xff] }
 0x5ee   : > { %v24103_v11 = vadd.f32 %v18053_v29, %v11992_v31  ;;  %v18056_v19 = vadd.f32 %v18055_v45, %v18054_v53  ;;  %18303 = vmatprep.subr.bf16.mxu0 %v21731_v22  ;;  %18366 = vmatpush3.bf16.msra.mxu1 %v21736_v6  ;;  %v21742_v22 = vld [vmem:[#allocation6 + $0x16a0] ss:$28 sps:$4 sm:$0xff]  }
 0x5ef   : > { %12402 = vmatmul.mubr.bf16.gmra.mrb[44].mxu0 %v25401_v27  ;;  %18367 = vmatprep.subr.bf16.mxu1 %v21738_v61  ;;  %v21745_v6 = vld [vmem:[#allocation9 + $0x4] ss:$16 sps:$4 sm:$0xff]   ;;  %v21748_v27 = vld [vmem:[#allocation9 + $0xc] ss:$16 sps:$4 sm:$0xff]   ;;  %v12000_v61 = vadd.f32 %v24039_v59, %v24094_v26 }
 0x5f0   : > { %v24106_v30 = vadd.f32 %v18056_v19, %v11995_v13  ;;  %11907 = vmatmul.mubr.bf16.gmra.mrb[140].mxu1 %v25451_v46  ;;  %12409 = vmatprep.mubr.bf16.mxu0 %v25403_v43  ;;  %v12003_v43 = vadd.f32 %v24041_v9, %v24094_v26  ;;  %v25453_v19 = vld [vmem:[#allocation117_spill] sm:$0xff]  ;;  %v25454_v59 = vld [vmem:[#allocation120_spill] sm:$0xff]  ;;  %v12008_v9 = vadd.f32 %v24047_v2, %v24094_v26 }
 0x5f1   : > { %11916 = vmatprep.mubr.bf16.mxu1 %v25452_v52  ;;  %18304 = vmatpush3.bf16.msra.mxu0 %v21733_v60 }
 0x5f2   : > { %v18057_v48 = vpop.f32.mrb[196].mxu0  ;;  %18305 = vmatprep.subr.bf16.mxu0 %v21737_v1  ;;  %18368 = vmatpush3.bf16.msra.mxu1 %v21740_v28 }
 0x5f3   : > { %v18058_v31 = vpop.f32.mrb[197].mxu0  ;;  %18369 = vmatprep.subr.bf16.mxu1 %v21741_v5 }
 0x5f4   : > { %v18059_v29 = vadd.f32 %v18058_v31, %v18057_v48  ;;  %v18060_v53 = vpop.f32.mrb[198].mxu0 }
 0x5f5   : > { %v18061_v45 = vpop.f32.mrb[199].mxu0  ;;  %18306 = vmatpush3.bf16.msra.mxu0 %v21739_v49 }
 0x5f6   : > { %v24115_v60 = vadd.f32 %v18059_v29, %v12000_v61  ;;  %v18062_v13 = vadd.f32 %v18061_v45, %v18060_v53  ;;  %18370 = vmatpush3.bf16.msra.mxu1 %v21742_v22  ;;  %14170 = vmatprep.subr.bf16.mxu0 %v21745_v6  ;;  %v25456_v61 = vld [vmem:[#allocation122_spill] sm:$0xff]  ;;  %v12016_v53 = vadd.f32 %v24055_v37, %v24094_v26 }
 0x5f7   : > { %12410 = vmatmul.mubr.bf16.gmra.mrb[48].mxu0 %v25405_v63  ;;  %14622 = vmatprep.subr.bf16.mxu1 %v21748_v27  ;;  %v12011_v63 = vadd.f32 %v24049_v54, %v24094_v26 }
 0x5f8   : > { %v24118_v28 = vadd.f32 %v18062_v13, %v12003_v43  ;;  %11917 = vmatmul.mubr.bf16.gmra.mrb[144].mxu1 %v25453_v19  ;;  %12417 = vmatprep.mubr.bf16.mxu0 %v25407_v34  ;;  %v25455_v34 = vld [vmem:[#allocation119_spill] sm:$0xff]  ;;  %v12019_v13 = vadd.f32 %v24057_v4, %v24094_v26 }
 0x5f9   : > { %11926 = vmatprep.mubr.bf16.mxu1 %v25454_v59 }
 0x5fa   : > { %v18063_v1 = vpop.f32.mrb[200].mxu0 }
 0x5fb   : > { %v18064_v5 = vpop.f32.mrb[201].mxu0 }
 0x5fc   : > { %v18065_v49 = vadd.f32 %v18064_v5, %v18063_v1  ;;  %v18066_v48 = vpop.f32.mrb[202].mxu0 }
 0x5fd   : > { %v18067_v22 = vpop.f32.mrb[203].mxu0 }
 0x5fe   : > { %v24127_v6 = vadd.f32 %v18065_v49, %v12008_v9  ;;  %v18068_v31 = vadd.f32 %v18067_v22, %v18066_v48  ;;  %v25458_v9 = vld [vmem:[#allocation124_spill] sm:$0xff]  ;;  %v12024_v48 = vadd.f32 %v24063_v3, %v24094_v26 }
 0x5ff   : > { %12418 = vmatmul.mubr.bf16.gmra.mrb[52].mxu0 %v25409_v39 }
 0x600   : > { %v24130_v27 = vadd.f32 %v18068_v31, %v12011_v63  ;;  %11927 = vmatmul.mubr.bf16.gmra.mrb[148].mxu1 %v25455_v34  ;;  %12425 = vmatprep.mubr.bf16.mxu0 %v25411_v10  ;;  %v25457_v10 = vld [vmem:[#allocation121_spill] sm:$0xff]  ;;  %v12027_v31 = vadd.f32 %v24065_v58, %v24094_v26 }
 0x601   : > { %11936 = vmatprep.mubr.bf16.mxu1 %v25456_v61 }
 0x602   : > { %v18069_v2 = vpop.f32.mrb[204].mxu0 }
 0x603   : > { %v18070_v29 = vpop.f32.mrb[205].mxu0 }
 0x604   : > { %v18071_v45 = vadd.f32 %v18070_v29, %v18069_v2  ;;  %v18072_v54 = vpop.f32.mrb[206].mxu0 }
 0x605   : > { %v18073_v43 = vpop.f32.mrb[207].mxu0 }
 0x606   : > { %v24139_v39 = vadd.f32 %v18071_v45, %v12016_v53  ;;  %v18074_v1 = vadd.f32 %v18073_v43, %v18072_v54  ;;  %v12032_v45 = vadd.f32 %v24071_v32, %v24094_v26  ;;  %v21749_v32 = vld [vmem:[#allocation9 + $0x20] ss:$16 sps:$4 sm:$0xff]  }
 0x607   : > { %12426 = vmatmul.mubr.bf16.gmra.mrb[56].mxu0 %v25413_v38 }
 0x608   : > { %v24142_v5 = vadd.f32 %v18074_v1, %v12019_v13  ;;  %11937 = vmatmul.mubr.bf16.gmra.mrb[152].mxu1 %v25457_v10  ;;  %12433 = vmatprep.mubr.bf16.mxu0 %v25415_v24  ;;  %v25459_v24 = vld [vmem:[#allocation123_spill] sm:$0xff] }
 0x609   : > { %11946 = vmatprep.mubr.bf16.mxu1 %v25458_v9  ;;  %v21743_v13 = vld [vmem:[#allocation9] ss:$16 sps:$4 sm:$0xff]  }
 0x60a   : > { %v18075_v37 = vpop.f32.mrb[208].mxu0 }
 0x60b   : > { %v18076_v49 = vpop.f32.mrb[209].mxu0 }
 0x60c   : > { %v18077_v22 = vadd.f32 %v18076_v49, %v18075_v37  ;;  %v18078_v4 = vpop.f32.mrb[210].mxu0  ;;  %v21746_v49 = vld [vmem:[#allocation9 + $0x8] ss:$16 sps:$4 sm:$0xff]  }
 0x60d   : > { %v18079_v63 = vpop.f32.mrb[211].mxu0 }
 0x60e   : > { %v24151_v38 = vadd.f32 %v18077_v22, %v12024_v48  ;;  %v18080_v2 = vadd.f32 %v18079_v63, %v18078_v4  ;;  %v21751_v48 = vld [vmem:[#allocation9 + $0x24] ss:$16 sps:$4 sm:$0xff]   ;;  %v21752_v22 = vld [vmem:[#allocation9 + $0x28] ss:$16 sps:$4 sm:$0xff]  }
 0x60f   : > { %12434 = vmatmul.mubr.bf16.gmra.mrb[60].mxu0 %v25417_v44  ;;  %v12035_v44 = vadd.f32 %v24073_v33, %v24094_v26  ;;  %v21757_v4 = vld [vmem:[#allocation9 + $0x44] ss:$16 sps:$4 sm:$0xff]  }
 0x610   : > { %v24154_v29 = vadd.f32 %v18080_v2, %v12027_v31  ;;  %11947 = vmatmul.mubr.bf16.gmra.mrb[156].mxu1 %v25459_v24  ;;  %12474 = vmatprep.mubr.bf16.mxu0 %v25419_v47  ;;  %v21754_v47 = vld [vmem:[#allocation9 + $0x2c] ss:$16 sps:$4 sm:$0xff]  }
 0x611   : > { %12571 = vmatprep.mubr.bf16.mxu1 %v25442_v12  ;;  %v21760_v31 = vld [vmem:[#allocation9 + $0x4c] ss:$16 sps:$4 sm:$0xff]  }
 0x612   : > { %v18081_v3 = vpop.f32.mrb[212].mxu0 }
 0x613   : > { %v18082_v53 = vpop.f32.mrb[213].mxu0 }
 0x614   : > { %v18083_v54 = vadd.f32 %v18082_v53, %v18081_v3  ;;  %v18084_v58 = vpop.f32.mrb[214].mxu0 }
 0x615   : > { %v18085_v43 = vpop.f32.mrb[215].mxu0 }
 0x616   : > { %v24163_v1 = vadd.f32 %v18083_v54, %v12032_v45  ;;  %v18086_v37 = vadd.f32 %v18085_v43, %v18084_v58  ;;  %v21758_v54 = vld [vmem:[#allocation9 + $0x48] ss:$16 sps:$4 sm:$0xff]   ;;  %v21763_v58 = vld [vmem:[#allocation9 + $0x64] ss:$16 sps:$4 sm:$0xff]   ;;  %v21766_v43 = vld [vmem:[#allocation9 + $0x6c] ss:$16 sps:$4 sm:$0xff]  }
 0x617   : > { %12475 = vmatmul.mubr.bf16.vlgmr.msra.gmra.mrb[64].mxu0 %v25421_v0  ;;  %v12040_v0 = vadd.f32 %v24079_v50, %v24094_v26 }
 0x618   : > { %v24166_v12 = vadd.f32 %v18086_v37, %v12035_v44  ;;  %12572 = vmatmul.mubr.bf16.vlgmr.msra.gmra.mrb[160].mxu1 %v25443_v18  ;;  %12482 = vmatprep.mubr.bf16.mxu0 %v25423_v25  ;;  %v21755_v25 = vld [vmem:[#allocation9 + $0x40] ss:$16 sps:$4 sm:$0xff]   ;;  %v21764_v44 = vld [vmem:[#allocation9 + $0x68] ss:$16 sps:$4 sm:$0xff]   ;;  %v21769_v37 = vld [vmem:[#allocation9 + $0x84] ss:$16 sps:$4 sm:$0xff]  }
 0x619   : > { %12579 = vmatprep.mubr.bf16.mxu1 %v25444_v56  ;;  %14171 = vmatpush1.bf16.msra.mxu0 %v21743_v13  ;;  %v12043_v56 = vadd.f32 %v24081_v7, %v24094_v26  ;;  %v21761_v7 = vld [vmem:[#allocation9 + $0x60] ss:$16 sps:$4 sm:$0xff]  }
 0x61a   : > { %14623 = vmatpush1.bf16.msra.mxu1 %v21746_v49  ;;  %v18087_v33 = vpop.f32.mrb[216].mxu0  ;;  %14172 = vmatprep.subr.bf16.mxu0 %v21751_v48  ;;  %v12048_v48 = vadd.f32 %v24087_v35, %v24094_v26 }
 0x61b   : > { %v18088_v63 = vpop.f32.mrb[217].mxu0  ;;  %14624 = vmatprep.subr.bf16.mxu1 %v21754_v47 }
 0x61c   : > { %v18089_v2 = vadd.f32 %v18088_v63, %v18087_v33  ;;  %v18090_v3 = vpop.f32.mrb[218].mxu0  ;;  %v21775_v63 = vld [vmem:[#allocation9 + $0xa4] ss:$16 sps:$4 sm:$0xff]  }
 0x61d   : > { %14173 = vmatpush1.bf16.msra.mxu0 %v21749_v32  ;;  %v18091_v18 = vpop.f32.mrb[219].mxu0 }
 0x61e   : > { %v24175_v53 = vadd.f32 %v18089_v2, %v12040_v0  ;;  %14625 = vmatpush1.bf16.msra.mxu1 %v21752_v22  ;;  %v18092_v45 = vadd.f32 %v18091_v18, %v18090_v3  ;;  %14174 = vmatprep.subr.bf16.mxu0 %v21757_v4  ;;  %v21770_v4 = vld [vmem:[#allocation9 + $0x88] ss:$16 sps:$4 sm:$0xff]   ;;  %v21781_v2 = vld [vmem:[#allocation9 + $0xc4] ss:$16 sps:$4 sm:$0xff]  }
 0x61f   : > { %12483 = vmatmul.mubr.bf16.gmra.mrb[68].mxu0 %v25425_v8  ;;  %14626 = vmatprep.subr.bf16.mxu1 %v21760_v31  ;;  %v21772_v8 = vld [vmem:[#allocation9 + $0x8c] ss:$16 sps:$4 sm:$0xff]   ;;  %v21776_v0 = vld [vmem:[#allocation9 + $0xa8] ss:$16 sps:$4 sm:$0xff]  }
 0x620   : > { %v24178_v50 = vadd.f32 %v18092_v45, %v12043_v56  ;;  %12580 = vmatmul.mubr.bf16.gmra.mrb[164].mxu1 %v25445_v17  ;;  %12490 = vmatprep.mubr.bf16.mxu0 %v25427_v14  ;;  %v21767_v14 = vld [vmem:[#allocation9 + $0x80] ss:$16 sps:$4 sm:$0xff]   ;;  %v21778_v31 = vld [vmem:[#allocation9 + $0xac] ss:$16 sps:$4 sm:$0xff]  }
 0x621   : > { %12587 = vmatprep.mubr.bf16.mxu1 %v25446_v41  ;;  %14175 = vmatpush1.bf16.msra.mxu0 %v21755_v25  ;;  %v12051_v41 = vadd.f32 %v24089_v20, %v24094_v26  ;;  %v21773_v26 = vld [vmem:[#allocation9 + $0xa0] ss:$16 sps:$4 sm:$0xff]  }
 0x622   : > { %14627 = vmatpush1.bf16.msra.mxu1 %v21758_v54  ;;  %v18093_v13 = vpop.f32.mrb[220].mxu0  ;;  %14176 = vmatprep.subr.bf16.mxu0 %v21763_v58  ;;  %v21779_v45 = vld [vmem:[#allocation9 + $0xc0] ss:$16 sps:$4 sm:$0xff]   ;;  %v21787_v54 = vld [vmem:[#allocation9 + $0xe4] ss:$16 sps:$4 sm:$0xff]  }
 0x623   : > { %v18094_v49 = vpop.f32.mrb[221].mxu0  ;;  %14628 = vmatprep.subr.bf16.mxu1 %v21766_v43  ;;  %v21790_v58 = vld [vmem:[#allocation9 + $0xec] ss:$16 sps:$4 sm:$0xff]  }
 0x624   : > { %v18095_v47 = vadd.f32 %v18094_v49, %v18093_v13  ;;  %v18096_v32 = vpop.f32.mrb[222].mxu0  ;;  %v21788_v13 = vld [vmem:[#allocation9 + $0xe8] ss:$16 sps:$4 sm:$0xff]  }
 0x625   : > { %14177 = vmatpush1.bf16.msra.mxu0 %v21761_v7  ;;  %v18097_v17 = vpop.f32.mrb[223].mxu0 }
 0x626   : > { %v24187_v33 = vadd.f32 %v18095_v47, %v12048_v48  ;;  %14629 = vmatpush1.bf16.msra.mxu1 %v21764_v44  ;;  %v18098_v22 = vadd.f32 %v18097_v17, %v18096_v32  ;;  %14178 = vmatprep.subr.bf16.mxu0 %v21769_v37  ;;  %v21793_v44 = vld [vmem:[#allocation9 + $0x104] ss:$16 sps:$4 sm:$0xff]   ;;  %v21791_v48 = vld [vmem:[#allocation9 + $0x100] ss:$16 sps:$4 sm:$0xff]   ;;  %v21802_v32 = vld [vmem:[#allocation9 + $0x12c] ss:$16 sps:$4 sm:$0xff]  }
 0x627   : > { %12491 = vmatmul.mubr.bf16.gmra.mrb[72].mxu0 %v25429_v21  ;;  %14630 = vmatprep.subr.bf16.mxu1 %v21772_v8  ;;  %v21784_v21 = vld [vmem:[#allocation9 + $0xcc] ss:$16 sps:$4 sm:$0xff]   ;;  %v21799_v47 = vld [vmem:[#allocation9 + $0x124] ss:$16 sps:$4 sm:$0xff]  }
 0x628   : > { %v24190_v35 = vadd.f32 %v18098_v22, %v12051_v41  ;;  %12588 = vmatmul.mubr.bf16.gmra.mrb[168].mxu1 %v25449_v36  ;;  %12498 = vmatprep.mubr.bf16.mxu0 %v25431_v62  ;;  %v21800_v41 = vld [vmem:[#allocation9 + $0x128] ss:$16 sps:$4 sm:$0xff]   ;;  %v21805_v22 = vld [vmem:[#allocation9 + $0x144] ss:$16 sps:$4 sm:$0xff]  }
 0x629   : > { %12595 = vmatprep.mubr.bf16.mxu1 %v25450_v40  ;;  %14179 = vmatpush1.bf16.msra.mxu0 %v21767_v14  ;;  %v21782_v40 = vld [vmem:[#allocation9 + $0xc8] ss:$16 sps:$4 sm:$0xff]  }
 0x62a   : > { %14631 = vmatpush1.bf16.msra.mxu1 %v21770_v4  ;;  %v18115_v20 = vpop.f32.mrb[224].mxu0  ;;  %14180 = vmatprep.subr.bf16.mxu0 %v21775_v63 }
 0x62b   : > { %v18116_v3 = vpop.f32.mrb[225].mxu0  ;;  %14632 = vmatprep.subr.bf16.mxu1 %v21778_v31 }
 0x62c   : > { %v18117_v18 = vadd.f32 %v18116_v3, %v18115_v20  ;;  %v18118_v25 = vpop.f32.mrb[226].mxu0  ;;  %v21811_v20 = vld [vmem:[#allocation9 + $0x164] ss:$16 sps:$4 sm:$0xff]  }
 0x62d   : > { %14181 = vmatpush1.bf16.msra.mxu0 %v21773_v26  ;;  %v18119_v56 = vpop.f32.mrb[227].mxu0  ;;  %v21803_v26 = vld [vmem:[#allocation9 + $0x140] ss:$16 sps:$4 sm:$0xff]  }
 0x62e   : > { %v24196_v36 = vadd.f32 %v18117_v18, %v24103_v11  ;;  %14633 = vmatpush1.bf16.msra.mxu1 %v21776_v0  ;;  %v18120_v62 = vadd.f32 %v18119_v56, %v18118_v25  ;;  %14182 = vmatprep.subr.bf16.mxu0 %v21781_v2  ;;  %v21785_v11 = vld [vmem:[#allocation9 + $0xe0] ss:$16 sps:$4 sm:$0xff]   ;;  %v21814_v0 = vld [vmem:[#allocation9 + $0x16c] ss:$16 sps:$4 sm:$0xff]   ;;  %v21817_v18 = vld [vmem:[#allocation9 + $0x184] ss:$16 sps:$4 sm:$0xff]  }
 0x62f   : > { %12499 = vmatmul.mubr.bf16.gmra.mrb[76].mxu0 %v25433_v42  ;;  %14634 = vmatprep.subr.bf16.mxu1 %v21784_v21  ;;  %v21796_v42 = vld [vmem:[#allocation9 + $0x10c] ss:$16 sps:$4 sm:$0xff]   ;;  %v21812_v21 = vld [vmem:[#allocation9 + $0x168] ss:$16 sps:$4 sm:$0xff]  }
 0x630   : > { %v24200_v43 = vadd.f32 %v18120_v62, %v24106_v30  ;;  %12596 = vmatmul.mubr.bf16.gmra.mrb[172].mxu1 %v25451_v46  ;;  %12506 = vmatprep.mubr.bf16.mxu0 %v25434_v55  ;;  %v21815_v62 = vld [vmem:[#allocation9 + $0x180] ss:$16 sps:$4 sm:$0xff]  }
 0x631   : > { %12603 = vmatprep.mubr.bf16.mxu1 %v25452_v52  ;;  %14183 = vmatpush1.bf16.msra.mxu0 %v21779_v45  ;;  %v21794_v52 = vld [vmem:[#allocation9 + $0x108] ss:$16 sps:$4 sm:$0xff]  }
 0x632   : > { %14635 = vmatpush1.bf16.msra.mxu1 %v21782_v40  ;;  %v18121_v7 = vpop.f32.mrb[228].mxu0  ;;  %14184 = vmatprep.subr.bf16.mxu0 %v21787_v54  ;;  %v21823_v40 = vld [vmem:[#allocation9 + $0x1a4] ss:$16 sps:$4 sm:$0xff]   ;;  %v21826_v54 = vld [vmem:[#allocation9 + $0x1ac] ss:$16 sps:$4 sm:$0xff]  }
 0x633   : > { %v18122_v37 = vpop.f32.mrb[229].mxu0  ;;  %14636 = vmatprep.subr.bf16.mxu1 %v21790_v58 }
 0x634   : > { %v18123_v49 = vadd.f32 %v18122_v37, %v18121_v7  ;;  %v18124_v8 = vpop.f32.mrb[230].mxu0 }
 0x635   : > { %14185 = vmatpush1.bf16.msra.mxu0 %v21785_v11  ;;  %v18125_v30 = vpop.f32.mrb[231].mxu0  ;;  %v25460_v11 = vld [vmem:[#allocation115_spill] sm:$0xff] }
 0x636   : > { %v24206_v46 = vadd.f32 %v18123_v49, %v24115_v60  ;;  %14637 = vmatpush1.bf16.msra.mxu1 %v21788_v13  ;;  %v18126_v55 = vadd.f32 %v18125_v30, %v18124_v8  ;;  %14186 = vmatprep.subr.bf16.mxu0 %v21793_v44  ;;  %v21797_v60 = vld [vmem:[#allocation9 + $0x120] ss:$16 sps:$4 sm:$0xff]   ;;  %v21824_v13 = vld [vmem:[#allocation9 + $0x1a8] ss:$16 sps:$4 sm:$0xff]   ;;  %v21829_v44 = vld [vmem:[#allocation9 + $0x1c4] ss:$16 sps:$4 sm:$0xff]  }
 0x637   : > { %12507 = vmatmul.mubr.bf16.gmra.mrb[80].mxu0 %v25435_v51  ;;  %14638 = vmatprep.subr.bf16.mxu1 %v21796_v42  ;;  %v21808_v51 = vld [vmem:[#allocation9 + $0x14c] ss:$16 sps:$4 sm:$0xff]   ;;  %v21827_v8 = vld [vmem:[#allocation9 + $0x1c0] ss:$16 sps:$4 sm:$0xff]   ;;  %v21830_v30 = vld [vmem:[#allocation9 + $0x1c8] ss:$16 sps:$4 sm:$0xff]  }
 0x638   : > { %v24210_v17 = vadd.f32 %v18126_v55, %v24118_v28  ;;  %12604 = vmatmul.mubr.bf16.gmra.mrb[176].mxu1 %v25453_v19  ;;  %12514 = vmatprep.mubr.bf16.mxu0 %v25436_v16  ;;  %v25461_v55 = vld [vmem:[#allocation114_spill] sm:$0xff] }
 0x639   : > { %12611 = vmatprep.mubr.bf16.mxu1 %v25454_v59  ;;  %14187 = vmatpush1.bf16.msra.mxu0 %v21791_v48  ;;  %v21806_v59 = vld [vmem:[#allocation9 + $0x148] ss:$16 sps:$4 sm:$0xff]   ;;  %v21835_v48 = vld [vmem:[#allocation9 + $0x1e4] ss:$16 sps:$4 sm:$0xff]  }
 0x63a   : > { %14639 = vmatpush1.bf16.msra.mxu1 %v21794_v52  ;;  %v18127_v14 = vpop.f32.mrb[232].mxu0  ;;  %14188 = vmatprep.subr.bf16.mxu0 %v21799_v47  ;;  %v21838_v52 = vld [vmem:[#allocation9 + $0x1ec] ss:$16 sps:$4 sm:$0xff]  }
 0x63b   : > { %v18128_v4 = vpop.f32.mrb[233].mxu0  ;;  %14640 = vmatprep.subr.bf16.mxu1 %v21802_v32  ;;  %v25462_v32 = vld [vmem:[#allocation31_spill] sm:$0xff] }
 0x63c   : > { %v18129_v63 = vadd.f32 %v18128_v4, %v18127_v14  ;;  %v18130_v31 = vpop.f32.mrb[234].mxu0  ;;  %v21836_v14 = vld [vmem:[#allocation9 + $0x1e8] ss:$16 sps:$4 sm:$0xff]   ;;  %v21844_v4 = vld [vmem:[#allocation9 + $0x20c] ss:$16 sps:$4 sm:$0xff]  }
 0x63d   : > { %14189 = vmatpush1.bf16.msra.mxu0 %v21797_v60  ;;  %v18131_v28 = vpop.f32.mrb[235].mxu0 }
 0x63e   : > { %v24216_v19 = vadd.f32 %v18129_v63, %v24127_v6  ;;  %14641 = vmatpush1.bf16.msra.mxu1 %v21800_v41  ;;  %v18132_v16 = vadd.f32 %v18131_v28, %v18130_v31  ;;  %14190 = vmatprep.subr.bf16.mxu0 %v21805_v22  ;;  %v21809_v6 = vld [vmem:[#allocation9 + $0x160] ss:$16 sps:$4 sm:$0xff]   ;;  %v21841_v41 = vld [vmem:[#allocation9 + $0x204] ss:$16 sps:$4 sm:$0xff]  }
 0x63f   : > { %12515 = vmatmul.mubr.bf16.gmra.mrb[84].mxu0 %v25437_v23  ;;  %14642 = vmatprep.subr.bf16.mxu1 %v21808_v51  ;;  %v21820_v23 = vld [vmem:[#allocation9 + $0x18c] ss:$16 sps:$4 sm:$0xff]   ;;  %v21839_v28 = vld [vmem:[#allocation9 + $0x200] ss:$16 sps:$4 sm:$0xff]  }
 0x640   : > { %v24220_v2 = vadd.f32 %v18132_v16, %v24130_v27  ;;  %12612 = vmatmul.mubr.bf16.gmra.mrb[180].mxu1 %v25455_v34  ;;  %12522 = vmatprep.mubr.bf16.mxu0 %v25438_v15  ;;  %v21847_v16 = vld [vmem:[#allocation9 + $0x224] ss:$16 sps:$4 sm:$0xff]  }
 0x641   : > { %12619 = vmatprep.mubr.bf16.mxu1 %v25456_v61  ;;  %14191 = vmatpush1.bf16.msra.mxu0 %v21803_v26  ;;  %v21818_v61 = vld [vmem:[#allocation9 + $0x188] ss:$16 sps:$4 sm:$0xff]  }
 0x642   : > { %14643 = vmatpush1.bf16.msra.mxu1 %v21806_v59  ;;  %v18133_v3 = vpop.f32.mrb[236].mxu0  ;;  %14192 = vmatprep.subr.bf16.mxu0 %v21811_v20  ;;  %v21842_v26 = vld [vmem:[#allocation9 + $0x208] ss:$16 sps:$4 sm:$0xff]   ;;  %v25463_v20 = vld [vmem:[#allocation25_spill] sm:$0xff] }
 0x643   : > { %v18134_v25 = vpop.f32.mrb[237].mxu0  ;;  %14644 = vmatprep.subr.bf16.mxu1 %v21814_v0  ;;  %v21850_v0 = vld [vmem:[#allocation9 + $0x22c] ss:$16 sps:$4 sm:$0xff]  }
 0x644   : > { %v18135_v56 = vadd.f32 %v18134_v25, %v18133_v3  ;;  %v18136_v45 = vpop.f32.mrb[238].mxu0  ;;  %v21845_v3 = vld [vmem:[#allocation9 + $0x220] ss:$16 sps:$4 sm:$0xff]   ;;  %v21853_v25 = vld [vmem:[#allocation9 + $0x244] ss:$16 sps:$4 sm:$0xff]  }
 0x645   : > { %14193 = vmatpush1.bf16.msra.mxu0 %v21809_v6  ;;  %v18137_v27 = vpop.f32.mrb[239].mxu0  ;;  %v25464_v6 = vld [vmem:[#allocation35_spill] sm:$0xff] }
 0x646   : > { %v24226_v34 = vadd.f32 %v18135_v56, %v24139_v39  ;;  %14645 = vmatpush1.bf16.msra.mxu1 %v21812_v21  ;;  %v18138_v15 = vadd.f32 %v18137_v27, %v18136_v45  ;;  %14194 = vmatprep.subr.bf16.mxu0 %v21817_v18  ;;  %v21821_v39 = vld [vmem:[#allocation9 + $0x1a0] ss:$16 sps:$4 sm:$0xff]   ;;  %v21848_v18 = vld [vmem:[#allocation9 + $0x228] ss:$16 sps:$4 sm:$0xff]   ;;  %v21856_v56 = vld [vmem:[#allocation9 + $0x24c] ss:$16 sps:$4 sm:$0xff]  }
 0x647   : > { %12523 = vmatmul.mubr.bf16.gmra.mrb[88].mxu0 %v25439_v57  ;;  %14646 = vmatprep.subr.bf16.mxu1 %v21820_v23  ;;  %v21832_v57 = vld [vmem:[#allocation9 + $0x1cc] ss:$16 sps:$4 sm:$0xff]  }
 0x648   : > { %v24230_v58 = vadd.f32 %v18138_v15, %v24142_v5  ;;  %12620 = vmatmul.mubr.bf16.gmra.mrb[184].mxu1 %v25457_v10  ;;  %12530 = vmatprep.mubr.bf16.mxu0 %v25460_v11  ;;  %v21851_v15 = vld [vmem:[#allocation9 + $0x240] ss:$16 sps:$4 sm:$0xff]  }
 0x649   : > { %12627 = vmatprep.mubr.bf16.mxu1 %v25458_v9  ;;  %14195 = vmatpush1.bf16.msra.mxu0 %v21815_v62  ;;  %v25465_v11 = vld [vmem:[#allocation29_spill] sm:$0xff] }
 0x64a   : > { %14647 = vmatpush1.bf16.msra.mxu1 %v21818_v61  ;;  %v18139_v7 = vpop.f32.mrb[240].mxu0  ;;  %14196 = vmatprep.subr.bf16.mxu0 %v21823_v40  ;;  %v21854_v61 = vld [vmem:[#allocation9 + $0x248] ss:$16 sps:$4 sm:$0xff]   ;;  %v21859_v40 = vld [vmem:[#allocation9 + $0x264] ss:$16 sps:$4 sm:$0xff]  }
 0x64b   : > { %v18140_v37 = vpop.f32.mrb[241].mxu0  ;;  %14648 = vmatprep.subr.bf16.mxu1 %v21826_v54 }
 0x64c   : > { %v18141_v42 = vadd.f32 %v18140_v37, %v18139_v7  ;;  %v18142_v49 = vpop.f32.mrb[242].mxu0  ;;  %v25466_v7 = vld [vmem:[#allocation39_spill] sm:$0xff]  ;;  %v21860_v37 = vld [vmem:[#allocation9 + $0x268] ss:$16 sps:$4 sm:$0xff]  }
 0x64d   : > { %14197 = vmatpush1.bf16.msra.mxu0 %v21821_v39  ;;  %v18143_v5 = vpop.f32.mrb[243].mxu0  ;;  %v21862_v39 = vld [vmem:[#allocation9 + $0x26c] ss:$16 sps:$4 sm:$0xff]  }
 0x64e   : > { %v24236_v10 = vadd.f32 %v18141_v42, %v24151_v38  ;;  %14649 = vmatpush1.bf16.msra.mxu1 %v21824_v13  ;;  %v18144_v9 = vadd.f32 %v18143_v5, %v18142_v49  ;;  %14198 = vmatprep.subr.bf16.mxu0 %v21829_v44  ;;  %v21833_v38 = vld [vmem:[#allocation9 + $0x1e0] ss:$16 sps:$4 sm:$0xff]   ;;  %v21868_v49 = vld [vmem:[#allocation9 + $0x28c] ss:$16 sps:$4 sm:$0xff]  }
 0x64f   : > { %12531 = vmatmul.mubr.bf16.gmra.mrb[92].mxu0 %v25461_v55  ;;  %14650 = vmatprep.subr.bf16.mxu1 %v21832_v57  ;;  %v21857_v13 = vld [vmem:[#allocation9 + $0x260] ss:$16 sps:$4 sm:$0xff]   ;;  %v21865_v57 = vld [vmem:[#allocation9 + $0x284] ss:$16 sps:$4 sm:$0xff]  }
 0x650   : > { %v24240_v47 = vadd.f32 %v18144_v9, %v24154_v29  ;;  %12628 = vmatmul.mubr.bf16.gmra.mrb[188].mxu1 %v25459_v24  ;;  %14202 = vmatprep.mubr.bf16.mxu0 %v25462_v32  ;;  %v21871_v55 = vld [vmem:[#allocation9 + $0x2a4] ss:$16 sps:$4 sm:$0xff]  }
 0x651   : > { %14199 = vmatpush1.bf16.msra.mxu0 %v21827_v8  ;;  %14654 = vmatprep.mubr.bf16.mxu1 %v25462_v32  ;;  %v25467_v32 = vld [vmem:[#allocation33_spill] sm:$0xff] }
 0x652   : > { %14651 = vmatpush1.bf16.msra.mxu1 %v21830_v30  ;;  %v18145_v60 = vpop.f32.mrb[244].mxu0  ;;  %14200 = vmatprep.subr.bf16.mxu0 %v21835_v48  ;;  %v21863_v30 = vld [vmem:[#allocation9 + $0x280] ss:$16 sps:$4 sm:$0xff]   ;;  %v21866_v48 = vld [vmem:[#allocation9 + $0x288] ss:$16 sps:$4 sm:$0xff]  }
 0x653   : > { %v18146_v22 = vpop.f32.mrb[245].mxu0  ;;  %14652 = vmatprep.subr.bf16.mxu1 %v21838_v52 }
 0x654   : > { %v18147_v51 = vadd.f32 %v18146_v22, %v18145_v60  ;;  %v18148_v63 = vpop.f32.mrb[246].mxu0  ;;  %v25468_v60 = vld [vmem:[#allocation43_spill] sm:$0xff]  ;;  %v21872_v22 = vld [vmem:[#allocation9 + $0x2a8] ss:$16 sps:$4 sm:$0xff]  }
 0x655   : > { %14201 = vmatpush1.bf16.msra.mxu0 %v21833_v38  ;;  %v18149_v29 = vpop.f32.mrb[247].mxu0  ;;  %v21874_v38 = vld [vmem:[#allocation9 + $0x2ac] ss:$16 sps:$4 sm:$0xff]  }
 0x656   : > { %v24246_v24 = vadd.f32 %v18147_v51, %v24163_v1  ;;  %14653 = vmatpush1.bf16.msra.mxu1 %v21836_v14  ;;  %v18150_v31 = vadd.f32 %v18149_v29, %v18148_v63  ;;  %14283 = vmatprep.subr.bf16.mxu0 %v21841_v41  ;;  %v21869_v14 = vld [vmem:[#allocation9 + $0x2a0] ss:$16 sps:$4 sm:$0xff]   ;;  %v21880_v63 = vld [vmem:[#allocation9 + $0x2cc] ss:$16 sps:$4 sm:$0xff]  }
 0x657   : > { %14735 = vmatprep.subr.bf16.mxu1 %v21844_v4  ;;  %v21877_v4 = vld [vmem:[#allocation9 + $0x2c4] ss:$16 sps:$4 sm:$0xff]  }
 0x658   : > { %v24249_v59 = vadd.f32 %v18150_v31, %v24166_v12  ;;  %14203 = vmatmul.mubr.bf16.vlgmr.msra.gmra.mrb[96].mxu0 %v25463_v20 }
 0x659   : > { %14655 = vmatmul.mubr.bf16.vlgmr.msra.gmra.mrb[192].mxu1 %v25463_v20  ;;  %14212 = vmatprep.mubr.bf16.mxu0 %v25464_v6  ;;  %v21883_v20 = vld [vmem:[#allocation9 + $0x2e4] ss:$16 sps:$4 sm:$0xff]  }
 0x65a   : > { %14284 = vmatpush1.bf16.msra.mxu0 %v21839_v28  ;;  %14664 = vmatprep.mubr.bf16.mxu1 %v25464_v6  ;;  %v18151_v1 = vpop.f32.mrb[248].mxu0  ;;  %v25469_v6 = vld [vmem:[#allocation37_spill] sm:$0xff] }
 0x65b   : > { %14736 = vmatpush1.bf16.msra.mxu1 %v21842_v26  ;;  %v18152_v21 = vpop.f32.mrb[249].mxu0  ;;  %14285 = vmatprep.subr.bf16.mxu0 %v21847_v16  ;;  %v21875_v26 = vld [vmem:[#allocation9 + $0x2c0] ss:$16 sps:$4 sm:$0xff]   ;;  %v21878_v16 = vld [vmem:[#allocation9 + $0x2c8] ss:$16 sps:$4 sm:$0xff]  }
 0x65c   : > { %v18153_v23 = vadd.f32 %v18152_v21, %v18151_v1  ;;  %14737 = vmatprep.subr.bf16.mxu1 %v21850_v0  ;;  %v18154_v12 = vpop.f32.mrb[250].mxu0  ;;  %v21886_v1 = vld [vmem:[#allocation9 + $0x2ec] ss:$16 sps:$4 sm:$0xff]   ;;  %v21881_v21 = vld [vmem:[#allocation9 + $0x2e0] ss:$16 sps:$4 sm:$0xff]  }
 0x65d   : > { %v18155_v45 = vpop.f32.mrb[251].mxu0 }
 0x65e   : > { %v24256_v27 = vadd.f32 %v18153_v23, %v24175_v53  ;;  %14286 = vmatpush1.bf16.msra.mxu0 %v21845_v3  ;;  %v18156_v62 = vadd.f32 %v18155_v45, %v18154_v12  ;;  %v25470_v3 = vld [vmem:[#allocation47_spill] sm:$0xff] }
 0x65f   : > { %14738 = vmatpush1.bf16.msra.mxu1 %v21848_v18  ;;  %14287 = vmatprep.subr.bf16.mxu0 %v21853_v25  ;;  %v21884_v25 = vld [vmem:[#allocation9 + $0x2e8] ss:$16 sps:$4 sm:$0xff]   ;;  %v21889_v23 = vld [vmem:[#allocation9 + $0x304] ss:$16 sps:$4 sm:$0xff]  }
 0x660   : > { %v24259_v54 = vadd.f32 %v18156_v62, %v24178_v50  ;;  %14213 = vmatmul.mubr.bf16.gmra.mrb[100].mxu0 %v25465_v11  ;;  %14739 = vmatprep.subr.bf16.mxu1 %v21856_v56  ;;  %v21892_v56 = vld [vmem:[#allocation9 + $0x30c] ss:$16 sps:$4 sm:$0xff]  }
 0x661   : > { %14665 = vmatmul.mubr.bf16.gmra.mrb[196].mxu1 %v25465_v11  ;;  %14222 = vmatprep.mubr.bf16.mxu0 %v25466_v7  ;;  %v21895_v11 = vld [vmem:[#allocation9 + $0x324] ss:$16 sps:$4 sm:$0xff]  }
 0x662   : > { %14288 = vmatpush1.bf16.msra.mxu0 %v21851_v15  ;;  %14674 = vmatprep.mubr.bf16.mxu1 %v25466_v7  ;;  %v18157_v53 = vpop.f32.mrb[252].mxu0  ;;  %v25471_v7 = vld [vmem:[#allocation41_spill] sm:$0xff] }
 0x663   : > { %14740 = vmatpush1.bf16.msra.mxu1 %v21854_v61  ;;  %v18158_v44 = vpop.f32.mrb[253].mxu0  ;;  %14289 = vmatprep.subr.bf16.mxu0 %v21859_v40  ;;  %v21887_v61 = vld [vmem:[#allocation9 + $0x300] ss:$16 sps:$4 sm:$0xff]   ;;  %v21890_v40 = vld [vmem:[#allocation9 + $0x308] ss:$16 sps:$4 sm:$0xff]  }
 0x664   : > { %v18159_v50 = vadd.f32 %v18158_v44, %v18157_v53  ;;  %14741 = vmatprep.subr.bf16.mxu1 %v21862_v39  ;;  %v18160_v42 = vpop.f32.mrb[254].mxu0  ;;  %v21898_v53 = vld [vmem:[#allocation9 + $0x32c] ss:$16 sps:$4 sm:$0xff]   ;;  %v21893_v44 = vld [vmem:[#allocation9 + $0x320] ss:$16 sps:$4 sm:$0xff]  }
 0x665   : > { %v18161_v5 = vpop.f32.mrb[255].mxu0 }
 0x666   : > { %v24266_v8 = vadd.f32 %v18159_v50, %v24187_v33  ;;  %14290 = vmatpush1.bf16.msra.mxu0 %v21857_v13  ;;  %v18162_v9 = vadd.f32 %v18161_v5, %v18160_v42  ;;  %v25472_v13 = vld [vmem:[#allocation51_spill] sm:$0xff] }
 0x667   : > { %14742 = vmatpush1.bf16.msra.mxu1 %v21860_v37  ;;  %14291 = vmatprep.subr.bf16.mxu0 %v21865_v57  ;;  %v21896_v57 = vld [vmem:[#allocation9 + $0x328] ss:$16 sps:$4 sm:$0xff]   ;;  %v21901_v50 = vld [vmem:[#allocation9 + $0x344] ss:$16 sps:$4 sm:$0xff]  }
 0x668   : > { %v24269_v52 = vadd.f32 %v18162_v9, %v24190_v35  ;;  %14223 = vmatmul.mubr.bf16.gmra.mrb[104].mxu0 %v25467_v32  ;;  %14743 = vmatprep.subr.bf16.mxu1 %v21868_v49  ;;  %v21904_v49 = vld [vmem:[#allocation9 + $0x34c] ss:$16 sps:$4 sm:$0xff]  }
 0x669   : > { %14675 = vmatmul.mubr.bf16.gmra.mrb[200].mxu1 %v25467_v32  ;;  %14232 = vmatprep.mubr.bf16.mxu0 %v25468_v60  ;;  %v21907_v32 = vld [vmem:[#allocation9 + $0x364] ss:$16 sps:$4 sm:$0xff]  }
 0x66a   : > { %14292 = vmatpush1.bf16.msra.mxu0 %v21863_v30  ;;  %14684 = vmatprep.mubr.bf16.mxu1 %v25468_v60  ;;  %v18179_v33 = vpop.f32.mrb[0].mxu0  ;;  %v25473_v60 = vld [vmem:[#allocation45_spill] sm:$0xff] }
 0x66b   : > { %14744 = vmatpush1.bf16.msra.mxu1 %v21866_v48  ;;  %v18180_v41 = vpop.f32.mrb[1].mxu0  ;;  %14293 = vmatprep.subr.bf16.mxu0 %v21871_v55  ;;  %v21899_v48 = vld [vmem:[#allocation9 + $0x340] ss:$16 sps:$4 sm:$0xff]   ;;  %v21902_v55 = vld [vmem:[#allocation9 + $0x348] ss:$16 sps:$4 sm:$0xff]  }
 0x66c   : > { %v18181_v35 = vadd.f32 %v18180_v41, %v18179_v33  ;;  %14745 = vmatprep.subr.bf16.mxu1 %v21874_v38  ;;  %v18182_v51 = vpop.f32.mrb[2].mxu0  ;;  %v21910_v33 = vld [vmem:[#allocation9 + $0x36c] ss:$16 sps:$4 sm:$0xff]   ;;  %v21905_v41 = vld [vmem:[#allocation9 + $0x360] ss:$16 sps:$4 sm:$0xff]  }
 0x66d   : > { %v18183_v29 = vpop.f32.mrb[3].mxu0 }
 0x66e   : > { %v24276_v31 = vadd.f32 %v18181_v35, %v24196_v36  ;;  %14294 = vmatpush1.bf16.msra.mxu0 %v21869_v14  ;;  %v18184_v28 = vadd.f32 %v18183_v29, %v18182_v51  ;;  %v25474_v14 = vld [vmem:[#allocation55_spill] sm:$0xff] }
 0x66f   : > { %14746 = vmatpush1.bf16.msra.mxu1 %v21872_v22  ;;  %14295 = vmatprep.subr.bf16.mxu0 %v21877_v4  ;;  %v21908_v4 = vld [vmem:[#allocation9 + $0x368] ss:$16 sps:$4 sm:$0xff]   ;;  %v21913_v35 = vld [vmem:[#allocation9 + $0x384] ss:$16 sps:$4 sm:$0xff]  }
 0x670   : > { %v24279_v0 = vadd.f32 %v18184_v28, %v24200_v43  ;;  %14233 = vmatmul.mubr.bf16.gmra.mrb[108].mxu0 %v25469_v6  ;;  %14747 = vmatprep.subr.bf16.mxu1 %v21880_v63  ;;  %v21916_v63 = vld [vmem:[#allocation9 + $0x38c] ss:$16 sps:$4 sm:$0xff]  }
 0x671   : > { %14685 = vmatmul.mubr.bf16.gmra.mrb[204].mxu1 %v25469_v6  ;;  %14242 = vmatprep.mubr.bf16.mxu0 %v25470_v3  ;;  %v21919_v6 = vld [vmem:[#allocation9 + $0x3a4] ss:$16 sps:$4 sm:$0xff]  }
 0x672   : > { %14296 = vmatpush1.bf16.msra.mxu0 %v21875_v26  ;;  %14694 = vmatprep.mubr.bf16.mxu1 %v25470_v3  ;;  %v18185_v36 = vpop.f32.mrb[4].mxu0  ;;  %v25475_v3 = vld [vmem:[#allocation49_spill] sm:$0xff] }
 0x673   : > { %14748 = vmatpush1.bf16.msra.mxu1 %v21878_v16  ;;  %v18186_v18 = vpop.f32.mrb[5].mxu0  ;;  %14297 = vmatprep.subr.bf16.mxu0 %v21883_v20  ;;  %v21911_v16 = vld [vmem:[#allocation9 + $0x380] ss:$16 sps:$4 sm:$0xff]   ;;  %v21914_v20 = vld [vmem:[#allocation9 + $0x388] ss:$16 sps:$4 sm:$0xff]  }
 0x674   : > { %v18187_v43 = vadd.f32 %v18186_v18, %v18185_v36  ;;  %14749 = vmatprep.subr.bf16.mxu1 %v21886_v1  ;;  %v18188_v12 = vpop.f32.mrb[6].mxu0  ;;  %v21922_v36 = vld [vmem:[#allocation9 + $0x3ac] ss:$16 sps:$4 sm:$0xff]   ;;  %v21917_v18 = vld [vmem:[#allocation9 + $0x3a0] ss:$16 sps:$4 sm:$0xff]  }
 0x675   : > { %v18189_v45 = vpop.f32.mrb[7].mxu0 }
 0x676   : > { %v24286_v62 = vadd.f32 %v18187_v43, %v24206_v46  ;;  %14298 = vmatpush1.bf16.msra.mxu0 %v21881_v21  ;;  %v18190_v15 = vadd.f32 %v18189_v45, %v18188_v12  ;;  %v25476_v21 = vld [vmem:[#allocation28_spill] sm:$0xff]  ;;  %v21925_v43 = vld [vmem:[#allocation9 + $0x3c4] ss:$16 sps:$4 sm:$0xff]  }
 0x677   : > { %14750 = vmatpush1.bf16.msra.mxu1 %v21884_v25  ;;  %14299 = vmatprep.subr.bf16.mxu0 %v21889_v23  ;;  %v21920_v23 = vld [vmem:[#allocation9 + $0x3a8] ss:$16 sps:$4 sm:$0xff]  }
 0x678   : > { %v24289_v39 = vadd.f32 %v18190_v15, %v24210_v17  ;;  %14243 = vmatmul.mubr.bf16.gmra.mrb[112].mxu0 %v25471_v7  ;;  %14751 = vmatprep.subr.bf16.mxu1 %v21892_v56  ;;  %v21928_v56 = vld [vmem:[#allocation9 + $0x3cc] ss:$16 sps:$4 sm:$0xff]  }
 0x679   : > { %14695 = vmatmul.mubr.bf16.gmra.mrb[208].mxu1 %v25471_v7  ;;  %14252 = vmatprep.mubr.bf16.mxu0 %v25472_v13  ;;  %v21931_v7 = vld [vmem:[#allocation9 + $0x3e4] ss:$16 sps:$4 sm:$0xff]  }
 0x67a   : > { %14300 = vmatpush1.bf16.msra.mxu0 %v21887_v61  ;;  %14704 = vmatprep.mubr.bf16.mxu1 %v25472_v13  ;;  %v18191_v46 = vpop.f32.mrb[8].mxu0  ;;  %v25477_v13 = vld [vmem:[#allocation53_spill] sm:$0xff] }
 0x67b   : > { %14752 = vmatpush1.bf16.msra.mxu1 %v21890_v40  ;;  %v18192_v37 = vpop.f32.mrb[9].mxu0  ;;  %14301 = vmatprep.subr.bf16.mxu0 %v21895_v11  ;;  %v21923_v40 = vld [vmem:[#allocation9 + $0x3c0] ss:$16 sps:$4 sm:$0xff]   ;;  %v21926_v11 = vld [vmem:[#allocation9 + $0x3c8] ss:$16 sps:$4 sm:$0xff]  }
 0x67c   : > { %v18193_v17 = vadd.f32 %v18192_v37, %v18191_v46  ;;  %14753 = vmatprep.subr.bf16.mxu1 %v21898_v53  ;;  %v18194_v42 = vpop.f32.mrb[10].mxu0  ;;  %v21934_v46 = vld [vmem:[#allocation9 + $0x3ec] ss:$16 sps:$4 sm:$0xff]   ;;  %v21929_v37 = vld [vmem:[#allocation9 + $0x3e0] ss:$16 sps:$4 sm:$0xff]  }
 0x67d   : > { %v18195_v5 = vpop.f32.mrb[11].mxu0 }
 0x67e   : > { %v24296_v9 = vadd.f32 %v18193_v17, %v24216_v19  ;;  %14302 = vmatpush1.bf16.msra.mxu0 %v21893_v44  ;;  %v18196_v30 = vadd.f32 %v18195_v5, %v18194_v42  ;;  %v25478_v44 = vld [vmem:[#allocation32_spill] sm:$0xff]  ;;  %v21937_v17 = vld [vmem:[#allocation9 + $0x404] ss:$16 sps:$4 sm:$0xff]  }
 0x67f   : > { %14754 = vmatpush1.bf16.msra.mxu1 %v21896_v57  ;;  %14303 = vmatprep.subr.bf16.mxu0 %v21901_v50  ;;  %v21932_v50 = vld [vmem:[#allocation9 + $0x3e8] ss:$16 sps:$4 sm:$0xff]  }
 0x680   : > { %v24299_v38 = vadd.f32 %v18196_v30, %v24220_v2  ;;  %14253 = vmatmul.mubr.bf16.gmra.mrb[116].mxu0 %v25473_v60  ;;  %14755 = vmatprep.subr.bf16.mxu1 %v21904_v49  ;;  %v21940_v49 = vld [vmem:[#allocation9 + $0x40c] ss:$16 sps:$4 sm:$0xff]  }
 0x681   : > { %14705 = vmatmul.mubr.bf16.gmra.mrb[212].mxu1 %v25473_v60  ;;  %14262 = vmatprep.mubr.bf16.mxu0 %v25474_v14  ;;  %v21938_v60 = vld [vmem:[#allocation9 + $0x408] ss:$16 sps:$4 sm:$0xff]  }
 0x682   : > { %14304 = vmatpush1.bf16.msra.mxu0 %v21899_v48  ;;  %14714 = vmatprep.mubr.bf16.mxu1 %v25474_v14  ;;  %v18197_v19 = vpop.f32.mrb[12].mxu0  ;;  %v25479_v14 = vld [vmem:[#allocation26_spill] sm:$0xff] }
 0x683   : > { %14756 = vmatpush1.bf16.msra.mxu1 %v21902_v55  ;;  %v18198_v22 = vpop.f32.mrb[13].mxu0  ;;  %14305 = vmatprep.subr.bf16.mxu0 %v21907_v32  ;;  %v21935_v55 = vld [vmem:[#allocation9 + $0x400] ss:$16 sps:$4 sm:$0xff]  }
 0x684   : > { %v18199_v2 = vadd.f32 %v18198_v22, %v18197_v19  ;;  %14757 = vmatprep.subr.bf16.mxu1 %v21910_v33  ;;  %v18200_v51 = vpop.f32.mrb[14].mxu0  ;;  %v21943_v33 = vld [vmem:[#allocation9 + $0x424] ss:$16 sps:$4 sm:$0xff]   ;;  %v21946_v19 = vld [vmem:[#allocation9 + $0x42c] ss:$16 sps:$4 sm:$0xff]  }
 0x685   : > { %v18201_v29 = vpop.f32.mrb[15].mxu0 }
 0x686   : > { %v24306_v28 = vadd.f32 %v18199_v2, %v24226_v34  ;;  %14306 = vmatpush1.bf16.msra.mxu0 %v21905_v41  ;;  %v18202_v26 = vadd.f32 %v18201_v29, %v18200_v51  ;;  %v25480_v41 = vld [vmem:[#allocation36_spill] sm:$0xff]  ;;  %v21949_v51 = vld [vmem:[#allocation9 + $0x444] ss:$16 sps:$4 sm:$0xff]  }
 0x687   : > { %14758 = vmatpush1.bf16.msra.mxu1 %v21908_v4  ;;  %14307 = vmatprep.subr.bf16.mxu0 %v21913_v35  ;;  %v21941_v4 = vld [vmem:[#allocation9 + $0x420] ss:$16 sps:$4 sm:$0xff]   ;;  %v21952_v29 = vld [vmem:[#allocation9 + $0x44c] ss:$16 sps:$4 sm:$0xff]  }
 0x688   : > { %v24309_v1 = vadd.f32 %v18202_v26, %v24230_v58  ;;  %14263 = vmatmul.mubr.bf16.gmra.mrb[120].mxu0 %v25475_v3  ;;  %14759 = vmatprep.subr.bf16.mxu1 %v21916_v63 }
 0x689   : > { %14715 = vmatmul.mubr.bf16.gmra.mrb[216].mxu1 %v25475_v3  ;;  %14272 = vmatprep.mubr.bf16.mxu0 %v25476_v21  ;;  %v21950_v3 = vld [vmem:[#allocation9 + $0x448] ss:$16 sps:$4 sm:$0xff]  }
 0x68a   : > { %14308 = vmatpush1.bf16.msra.mxu0 %v21911_v16  ;;  %14724 = vmatprep.mubr.bf16.mxu1 %v25476_v21  ;;  %v18203_v34 = vpop.f32.mrb[16].mxu0  ;;  %v25481_v21 = vld [vmem:[#allocation30_spill] sm:$0xff] }
 0x68b   : > { %14760 = vmatpush1.bf16.msra.mxu1 %v21914_v20  ;;  %v18204_v25 = vpop.f32.mrb[17].mxu0  ;;  %14309 = vmatprep.subr.bf16.mxu0 %v21919_v6  ;;  %v21947_v20 = vld [vmem:[#allocation9 + $0x440] ss:$16 sps:$4 sm:$0xff]  }
 0x68c   : > { %v18205_v58 = vadd.f32 %v18204_v25, %v18203_v34  ;;  %14761 = vmatprep.subr.bf16.mxu1 %v21922_v36  ;;  %v18206_v12 = vpop.f32.mrb[18].mxu0  ;;  %v21955_v36 = vld [vmem:[#allocation9 + $0x464] ss:$16 sps:$4 sm:$0xff]   ;;  %v21958_v34 = vld [vmem:[#allocation9 + $0x46c] ss:$16 sps:$4 sm:$0xff]  }
 0x68d   : > { %v18207_v45 = vpop.f32.mrb[19].mxu0 }
 0x68e   : > { %v24316_v15 = vadd.f32 %v18205_v58, %v24236_v10  ;;  %14310 = vmatpush1.bf16.msra.mxu0 %v21917_v18  ;;  %v18208_v61 = vadd.f32 %v18207_v45, %v18206_v12  ;;  %v25482_v18 = vld [vmem:[#allocation40_spill] sm:$0xff]  ;;  %v21961_v12 = vld [vmem:[#allocation9 + $0x484] ss:$16 sps:$4 sm:$0xff]  }
 0x68f   : > { %14762 = vmatpush1.bf16.msra.mxu1 %v21920_v23  ;;  %14311 = vmatprep.subr.bf16.mxu0 %v21925_v43  ;;  %v21953_v23 = vld [vmem:[#allocation9 + $0x460] ss:$16 sps:$4 sm:$0xff]   ;;  %v21956_v43 = vld [vmem:[#allocation9 + $0x468] ss:$16 sps:$4 sm:$0xff]   ;;  %v21964_v45 = vld [vmem:[#allocation9 + $0x48c] ss:$16 sps:$4 sm:$0xff]  }
 0x690   : > { %v24319_v53 = vadd.f32 %v18208_v61, %v24240_v47  ;;  %14273 = vmatmul.mubr.bf16.gmra.mrb[124].mxu0 %v25477_v13  ;;  %14763 = vmatprep.subr.bf16.mxu1 %v21928_v56 }
 0x691   : > { %14725 = vmatmul.mubr.bf16.gmra.mrb[220].mxu1 %v25477_v13  ;;  %14315 = vmatprep.mubr.bf16.mxu0 %v25478_v44  ;;  %v21962_v13 = vld [vmem:[#allocation9 + $0x488] ss:$16 sps:$4 sm:$0xff]  }
 0x692   : > { %14312 = vmatpush1.bf16.msra.mxu0 %v21923_v40  ;;  %14767 = vmatprep.mubr.bf16.mxu1 %v25478_v44  ;;  %v18209_v10 = vpop.f32.mrb[20].mxu0  ;;  %v25483_v44 = vld [vmem:[#allocation57_spill] sm:$0xff] }
 0x693   : > { %14764 = vmatpush1.bf16.msra.mxu1 %v21926_v11  ;;  %v18210_v57 = vpop.f32.mrb[21].mxu0  ;;  %14313 = vmatprep.subr.bf16.mxu0 %v21931_v7  ;;  %v21959_v11 = vld [vmem:[#allocation9 + $0x480] ss:$16 sps:$4 sm:$0xff]  }
 0x694   : > { %v18211_v47 = vadd.f32 %v18210_v57, %v18209_v10  ;;  %14765 = vmatprep.subr.bf16.mxu1 %v21934_v46  ;;  %v18212_v42 = vpop.f32.mrb[22].mxu0  ;;  %v22278_v46 = vld [vmem:[#allocation7] sm:$0xff] }
 0x695   : > { %v18213_v5 = vpop.f32.mrb[23].mxu0  ;;  %v24352_v10 = vrot.slane %v22278_v46, %v25483_v44  ;;  %v25484_v57 = vld [vmem:[#allocation34_spill] sm:$0xff] }
 0x696   : > { %v24326_v30 = vadd.f32 %v18211_v47, %v24246_v24  ;;  %14314 = vmatpush1.bf16.msra.mxu0 %v21929_v37  ;;  %v18214_v48 = vadd.f32 %v18213_v5, %v18212_v42  ;;  %v21967_v37 = vld [vmem:[#allocation9 + $0x4a4] ss:$16 sps:$4 sm:$0xff]   ;;  %v25486_v47 = vld [vmem:[#allocation44_spill] sm:$0xff]  ;;  %v21965_v5 = vld [vmem:[#allocation9 + $0x4a0] ss:$16 sps:$4 sm:$0xff]  }
 0x697   : > { %14766 = vmatpush1.bf16.msra.mxu1 %v21932_v50  ;;  %14396 = vmatprep.subr.bf16.mxu0 %v21937_v17  ;;  %v25485_v50 = vld [vmem:[#allocation58_spill] sm:$0xff] }
 0x698   : > { %v24329_v32 = vadd.f32 %v18214_v48, %v24249_v59  ;;  %14848 = vmatprep.subr.bf16.mxu1 %v21940_v49  ;;  %v21944_v59 = vld [vmem:[#allocation9 + $0x428] ss:$16 sps:$4 sm:$0xff]   ;;  %v21970_v17 = vld [vmem:[#allocation9 + $0x4ac] ss:$16 sps:$4 sm:$0xff]  }
 0x699   : > { %14316 = vmatmul.mubr.bf16.vlgmr.msra.gmra.mrb[96].mxu0 %v25479_v14 }
 0x69a   : > { %14768 = vmatmul.mubr.bf16.vlgmr.msra.gmra.mrb[192].mxu1 %v25479_v14  ;;  %14325 = vmatprep.mubr.bf16.mxu0 %v25480_v41  ;;  %v18215_v24 = vpop.f32.mrb[24].mxu0 }
 0x69b   : > { %14397 = vmatpush1.bf16.msra.mxu0 %v21935_v55  ;;  %14777 = vmatprep.mubr.bf16.mxu1 %v25480_v41  ;;  %v18216_v22 = vpop.f32.mrb[25].mxu0 }
 0x69c   : > { %14849 = vmatpush1.bf16.msra.mxu1 %v21938_v60  ;;  %v18217_v35 = vadd.f32 %v18216_v22, %v18215_v24  ;;  %14398 = vmatprep.subr.bf16.mxu0 %v21943_v33  ;;  %v18218_v2 = vpop.f32.mrb[26].mxu0  ;;  %v21968_v33 = vld [vmem:[#allocation9 + $0x4a8] ss:$16 sps:$4 sm:$0xff]  }
 0x69d   : > { %14850 = vmatprep.subr.bf16.mxu1 %v21946_v19  ;;  %v18219_v63 = vpop.f32.mrb[27].mxu0  ;;  %v21973_v19 = vld [vmem:[#allocation9 + $0x4c4] ss:$16 sps:$4 sm:$0xff]  }
 0x69e   : > { %v24336_v26 = vadd.f32 %v18217_v35, %v24256_v27  ;;  %v18220_v16 = vadd.f32 %v18219_v63, %v18218_v2 }
 0x69f   : > { %14399 = vmatpush1.bf16.msra.mxu0 %v21941_v4  ;;  %v21976_v4 = vld [vmem:[#allocation9 + $0x4cc] ss:$16 sps:$4 sm:$0xff]  }
 0x6a0   : > { %14851 = vmatpush1.bf16.msra.mxu1 %v21944_v59  ;;  %v24339_v6 = vadd.f32 %v18220_v16, %v24259_v54  ;;  %14400 = vmatprep.subr.bf16.mxu0 %v21949_v51 }
 0x6a1   : > { %14326 = vmatmul.mubr.bf16.gmra.mrb[100].mxu0 %v25481_v21  ;;  %14852 = vmatprep.subr.bf16.mxu1 %v21952_v29  ;;  %v21971_v29 = vld [vmem:[#allocation9 + $0x4c0] ss:$16 sps:$4 sm:$0xff]  }
 0x6a2   : > { %14778 = vmatmul.mubr.bf16.gmra.mrb[196].mxu1 %v25481_v21  ;;  %14335 = vmatprep.mubr.bf16.mxu0 %v25482_v18  ;;  %v18221_v27 = vpop.f32.mrb[28].mxu0  ;;  %v21979_v21 = vld [vmem:[#allocation9 + $0x4e4] ss:$16 sps:$4 sm:$0xff]  }
 0x6a3   : > { %14401 = vmatpush1.bf16.msra.mxu0 %v21947_v20  ;;  %14787 = vmatprep.mubr.bf16.mxu1 %v25482_v18  ;;  %v18222_v25 = vpop.f32.mrb[29].mxu0  ;;  %v25487_v18 = vld [vmem:[#allocation38_spill] sm:$0xff] }
 0x6a4   : > { %14853 = vmatpush1.bf16.msra.mxu1 %v21950_v3  ;;  %v18223_v54 = vadd.f32 %v18222_v25, %v18221_v27  ;;  %14402 = vmatprep.subr.bf16.mxu0 %v21955_v36  ;;  %v18224_v58 = vpop.f32.mrb[30].mxu0  ;;  %v21974_v36 = vld [vmem:[#allocation9 + $0x4c8] ss:$16 sps:$4 sm:$0xff]   ;;  %v21982_v27 = vld [vmem:[#allocation9 + $0x4ec] ss:$16 sps:$4 sm:$0xff]  }
 0x6a5   : > { %14854 = vmatprep.subr.bf16.mxu1 %v21958_v34  ;;  %v18225_v56 = vpop.f32.mrb[31].mxu0 }
 0x6a6   : > { %v24346_v61 = vadd.f32 %v18223_v54, %v24266_v8  ;;  %v18226_v40 = vadd.f32 %v18225_v56, %v18224_v58  ;;  %v24356_v8 = vrot.slane %v22278_v46, %v25485_v50  ;;  %v21985_v46 = vld [vmem:[#allocation9 + $0x504] ss:$16 sps:$4 sm:$0xff]   ;;  %v21988_v50 = vld [vmem:[#allocation9 + $0x50c] ss:$16 sps:$4 sm:$0xff]  }
 0x6a7   : > { %14403 = vmatpush1.bf16.msra.mxu0 %v21953_v23  ;;  %v25488_v23 = vld [vmem:[#allocation48_spill] sm:$0xff] }
 0x6a8   : > { %14855 = vmatpush1.bf16.msra.mxu1 %v21956_v43  ;;  %v24349_v7 = vadd.f32 %v18226_v40, %v24269_v52  ;;  %14404 = vmatprep.subr.bf16.mxu0 %v21961_v12  ;;  %v21977_v12 = vld [vmem:[#allocation9 + $0x4e0] ss:$16 sps:$4 sm:$0xff]  }
 0x6a9   : > { %14336 = vmatmul.mubr.bf16.gmra.mrb[104].mxu0 %v25484_v57  ;;  %14856 = vmatprep.subr.bf16.mxu1 %v21964_v45 }
 0x6aa   : > { %14788 = vmatmul.mubr.bf16.gmra.mrb[200].mxu1 %v25484_v57  ;;  %14345 = vmatprep.mubr.bf16.mxu0 %v25486_v47  ;;  %v18243_v52 = vpop.f32.mrb[32].mxu0 }
 0x6ab   : > { %14405 = vmatpush1.bf16.msra.mxu0 %v21959_v11  ;;  %14797 = vmatprep.mubr.bf16.mxu1 %v25486_v47  ;;  %v11878_v42 = vpop.f32.mrb[128].mxu1  ;;  %v18244_v49 = vpop.f32.mrb[33].mxu0  ;;  %v21980_v11 = vld [vmem:[#allocation9 + $0x4e8] ss:$16 sps:$4 sm:$0xff]  }
 0x6ac   : > { %14857 = vmatpush1.bf16.msra.mxu1 %v21962_v13  ;;  %v18835_v48 = vadd.f32 %v11878_v42, %v24352_v10  ;;  %v11880_v55 = vpop.f32.mrb[129].mxu1  ;;  %v18245_v60 = vadd.f32 %v18244_v49, %v18243_v52  ;;  %14406 = vmatprep.subr.bf16.mxu0 %v21967_v37  ;;  %v18246_v14 = vpop.f32.mrb[34].mxu0 }
 0x6ad   : > { %v18836_v41 = vadd.f32 %v11880_v55, %v24356_v8  ;;  %14858 = vmatprep.subr.bf16.mxu1 %v21970_v17  ;;  %v11882_v24 = vpop.f32.mrb[130].mxu1  ;;  %v18247_v22 = vpop.f32.mrb[35].mxu0 }
 0x6ae   : > { %v24364_v35 = vadd.f32 %v18245_v60, %v24276_v31  ;;  %v18837_v59 = vadd.f32 %v11882_v24, %v24352_v10  ;;  %v11884_v2 = vpop.f32.mrb[131].mxu1  ;;  %v18248_v51 = vadd.f32 %v18247_v22, %v18246_v14  ;;  %v12640_v16 = vmax.f32 %v18835_v48, 0.0  ;;  %v21991_v14 = vld [vmem:[#allocation9 + $0x524] ss:$16 sps:$4 sm:$0xff]   ;;  %v21994_v24 = vld [vmem:[#allocation9 + $0x52c] ss:$16 sps:$4 sm:$0xff]  }
 0x6af   : > { %14407 = vmatpush1.bf16.msra.mxu0 %v21965_v5  ;;  %v18838_v63 = vadd.f32 %v11884_v2, %v24356_v8  ;;  %v12641_v34 = vmax.f32 %v18836_v41, 0.0  ;;  %v21983_v5 = vld [vmem:[#allocation9 + $0x500] ss:$16 sps:$4 sm:$0xff]   ;;  %v25489_v41 = vld [vmem:[#allocation42_spill] sm:$0xff] }
 0x6b0   : > { %v12647_v20 = vmax.f32 %v18837_v59, 0.0  ;;  %14859 = vmatpush1.bf16.msra.mxu1 %v21968_v33  ;;  %v24369_v3 = vadd.f32 %v18248_v51, %v24279_v0  ;;  %14408 = vmatprep.subr.bf16.mxu0 %v21973_v19  ;;  %v21986_v33 = vld [vmem:[#allocation9 + $0x508] ss:$16 sps:$4 sm:$0xff]  }
 0x6b1   : > { %v12648_v31 = vmax.f32 %v18838_v63, 0.0  ;;  %14346 = vmatmul.mubr.bf16.gmra.mrb[108].mxu0 %v25487_v18  ;;  %14860 = vmatprep.subr.bf16.mxu1 %v21976_v4  ;;  %v25490_v4 = vld [vmem:[#allocation52_spill] sm:$0xff]  ;;  %v21989_v63 = vld [vmem:[#allocation9 + $0x520] ss:$16 sps:$4 sm:$0xff]  }
 0x6b2   : > { %v24372_v25 = vpack.c.bf16 %v12647_v20, %v12640_v16  ;;  %14798 = vmatmul.mubr.bf16.gmra.mrb[204].mxu1 %v25487_v18  ;;  %14355 = vmatprep.mubr.bf16.mxu0 %v25488_v23  ;;  %v18249_v54 = vpop.f32.mrb[36].mxu0 }
 0x6b3   : > { %v24376_v43 = vpack.c.bf16 %v12648_v31, %v12641_v34  ;;  %14409 = vmatpush1.bf16.msra.mxu0 %v21971_v29  ;;  %14807 = vmatprep.mubr.bf16.mxu1 %v25488_v23  ;;  %v11888_v0 = vpop.f32.mrb[132].mxu1  ;;  %v18250_v58 = vpop.f32.mrb[37].mxu0  ;;  %v21997_v34 = vld [vmem:[#allocation9 + $0x544] ss:$16 sps:$4 sm:$0xff]   ;;  %v22000_v23 = vld [vmem:[#allocation9 + $0x54c] ss:$16 sps:$4 sm:$0xff]  }
 0x6b4   : > { %14861 = vmatpush1.bf16.msra.mxu1 %v21974_v36  ;;  %v18839_v56 = vadd.f32 %v11888_v0, %v24352_v10  ;;  %v11890_v45 = vpop.f32.mrb[133].mxu1  ;;  %v18251_v40 = vadd.f32 %v18250_v58, %v18249_v54  ;;  %14410 = vmatprep.subr.bf16.mxu0 %v21979_v21  ;;  %v18252_v13 = vpop.f32.mrb[38].mxu0  ;;  %v21992_v36 = vld [vmem:[#allocation9 + $0x528] ss:$16 sps:$4 sm:$0xff]  }
 0x6b5   : > { %v18840_v44 = vadd.f32 %v11890_v45, %v24356_v8  ;;  %14862 = vmatprep.subr.bf16.mxu1 %v21982_v27  ;;  %v11892_v37 = vpop.f32.mrb[134].mxu1  ;;  %v18253_v57 = vpop.f32.mrb[39].mxu0  ;;  %v21995_v45 = vld [vmem:[#allocation9 + $0x540] ss:$16 sps:$4 sm:$0xff]  }
 0x6b6   : > { %v24382_v17 = vadd.f32 %v18251_v40, %v24286_v62  ;;  %v18841_v47 = vadd.f32 %v11892_v37, %v24352_v10  ;;  %v11894_v52 = vpop.f32.mrb[135].mxu1  ;;  %v18254_v42 = vadd.f32 %v18253_v57, %v18252_v13  ;;  %v12654_v48 = vmax.f32 %v18839_v56, 0.0  ;;  %v25491_v57 = vld [vmem:[#allocation46_spill] sm:$0xff] }
 0x6b7   : > { %14411 = vmatpush1.bf16.msra.mxu0 %v21977_v12  ;;  %v18842_v49 = vadd.f32 %v11894_v52, %v24356_v8  ;;  %v12655_v19 = vmax.f32 %v18840_v44, 0.0  ;;  %v22003_v44 = vld [vmem:[#allocation9 + $0x564] ss:$16 sps:$4 sm:$0xff]   ;;  %v25492_v52 = vld [vmem:[#allocation56_spill] sm:$0xff] }
 0x6b8   : > { %v12661_v55 = vmax.f32 %v18841_v47, 0.0  ;;  %14863 = vmatpush1.bf16.msra.mxu1 %v21980_v11  ;;  %v24387_v60 = vadd.f32 %v18254_v42, %v24289_v39  ;;  %14412 = vmatprep.subr.bf16.mxu0 %v21985_v46  ;;  %v21998_v46 = vld [vmem:[#allocation9 + $0x548] ss:$16 sps:$4 sm:$0xff]  }
 0x6b9   : > { %v12662_v62 = vmax.f32 %v18842_v49, 0.0  ;;  %14356 = vmatmul.mubr.bf16.gmra.mrb[112].mxu0 %v25489_v41  ;;  %14864 = vmatprep.subr.bf16.mxu1 %v21988_v50  ;;  %v22006_v50 = vld [vmem:[#allocation9 + $0x56c] ss:$16 sps:$4 sm:$0xff]  }
 0x6ba   : > { %v24390_v22 = vpack.c.bf16 %v12661_v55, %v12654_v48  ;;  %14808 = vmatmul.mubr.bf16.gmra.mrb[208].mxu1 %v25489_v41  ;;  %14365 = vmatprep.mubr.bf16.mxu0 %v25490_v4  ;;  %v18255_v59 = vpop.f32.mrb[40].mxu0  ;;  %v22001_v48 = vld [vmem:[#allocation9 + $0x560] ss:$16 sps:$4 sm:$0xff]   ;;  %v22009_v41 = vld [vmem:[#allocation9 + $0x584] ss:$16 sps:$4 sm:$0xff]  }
 0x6bb   : > { %v24394_v2 = vpack.c.bf16 %v12662_v62, %v12655_v19  ;;  %14413 = vmatpush1.bf16.msra.mxu0 %v21983_v5  ;;  %14817 = vmatprep.mubr.bf16.mxu1 %v25490_v4  ;;  %v11898_v39 = vpop.f32.mrb[136].mxu1  ;;  %v18256_v51 = vpop.f32.mrb[41].mxu0  ;;  %v22004_v19 = vld [vmem:[#allocation9 + $0x568] ss:$16 sps:$4 sm:$0xff]  }
 0x6bc   : > { %14865 = vmatpush1.bf16.msra.mxu1 %v21986_v33  ;;  %v18843_v29 = vadd.f32 %v11898_v39, %v24352_v10  ;;  %v11900_v16 = vpop.f32.mrb[137].mxu1  ;;  %v18257_v20 = vadd.f32 %v18256_v51, %v18255_v59  ;;  %14414 = vmatprep.subr.bf16.mxu0 %v21991_v14  ;;  %v18258_v21 = vpop.f32.mrb[42].mxu0  ;;  %v22012_v39 = vld [vmem:[#allocation9 + $0x58c] ss:$16 sps:$4 sm:$0xff]  }
 0x6bd   : > { %v18844_v31 = vadd.f32 %v11900_v16, %v24356_v8  ;;  %14866 = vmatprep.subr.bf16.mxu1 %v21994_v24  ;;  %v11902_v18 = vpop.f32.mrb[138].mxu1  ;;  %v18259_v27 = vpop.f32.mrb[43].mxu0 }
 0x6be   : > { %v24400_v54 = vadd.f32 %v18257_v20, %v24296_v9  ;;  %v18845_v0 = vadd.f32 %v11902_v18, %v24352_v10  ;;  %v11904_v58 = vpop.f32.mrb[139].mxu1  ;;  %v18260_v12 = vadd.f32 %v18259_v27, %v18258_v21  ;;  %v12668_v40 = vmax.f32 %v18843_v29, 0.0  ;;  %v22010_v18 = vld [vmem:[#allocation9 + $0x588] ss:$16 sps:$4 sm:$0xff]   ;;  %v22015_v27 = vld [vmem:[#allocation9 + $0x5a4] ss:$16 sps:$4 sm:$0xff]  }
 0x6bf   : > { %14415 = vmatpush1.bf16.msra.mxu0 %v21989_v63  ;;  %v18846_v56 = vadd.f32 %v11904_v58, %v24356_v8  ;;  %v12669_v37 = vmax.f32 %v18844_v31, 0.0  ;;  %v22018_v58 = vld [vmem:[#allocation9 + $0x5ac] ss:$16 sps:$4 sm:$0xff]  }
 0x6c0   : > { %v12675_v11 = vmax.f32 %v18845_v0, 0.0  ;;  %14867 = vmatpush1.bf16.msra.mxu1 %v21992_v36  ;;  %v24405_v13 = vadd.f32 %v18260_v12, %v24299_v38  ;;  %14416 = vmatprep.subr.bf16.mxu0 %v21997_v34  ;;  %v22007_v36 = vld [vmem:[#allocation9 + $0x580] ss:$16 sps:$4 sm:$0xff]   ;;  %v25493_v0 = vld [vmem:[#allocation50_spill] sm:$0xff] }
 0x6c1   : > { %v12676_v9 = vmax.f32 %v18846_v56, 0.0  ;;  %14366 = vmatmul.mubr.bf16.gmra.mrb[116].mxu0 %v25491_v57  ;;  %14868 = vmatprep.subr.bf16.mxu1 %v22000_v23  ;;  %v25494_v56 = vld [vmem:[#allocation61_spill] sm:$0xff] }
 0x6c2   : > { %v24408_v47 = vpack.c.bf16 %v12675_v11, %v12668_v40  ;;  %14818 = vmatmul.mubr.bf16.gmra.mrb[212].mxu1 %v25491_v57  ;;  %14375 = vmatprep.mubr.bf16.mxu0 %v25492_v52  ;;  %v18261_v42 = vpop.f32.mrb[44].mxu0  ;;  %v22016_v57 = vld [vmem:[#allocation9 + $0x5a8] ss:$16 sps:$4 sm:$0xff]  }
 0x6c3   : > { %v24412_v49 = vpack.c.bf16 %v12676_v9, %v12669_v37  ;;  %14417 = vmatpush1.bf16.msra.mxu0 %v21995_v45  ;;  %14827 = vmatprep.mubr.bf16.mxu1 %v25492_v52  ;;  %v11908_v38 = vpop.f32.mrb[140].mxu1  ;;  %v18262_v5 = vpop.f32.mrb[45].mxu0  ;;  %v22021_v52 = vld [vmem:[#allocation9 + $0x5c4] ss:$16 sps:$4 sm:$0xff]  }
 0x6c4   : > { %14869 = vmatpush1.bf16.msra.mxu1 %v21998_v46  ;;  %v18847_v55 = vadd.f32 %v11908_v38, %v24352_v10  ;;  %v11910_v33 = vpop.f32.mrb[141].mxu1  ;;  %v18263_v14 = vadd.f32 %v18262_v5, %v18261_v42  ;;  %14418 = vmatprep.subr.bf16.mxu0 %v22003_v44  ;;  %v18264_v62 = vpop.f32.mrb[46].mxu0  ;;  %v22013_v46 = vld [vmem:[#allocation9 + $0x5a0] ss:$16 sps:$4 sm:$0xff]  }
 0x6c5   : > { %v18848_v24 = vadd.f32 %v11910_v33, %v24356_v8  ;;  %14870 = vmatprep.subr.bf16.mxu1 %v22006_v50  ;;  %v11912_v4 = vpop.f32.mrb[142].mxu1  ;;  %v18265_v59 = vpop.f32.mrb[47].mxu0 }
 0x6c6   : > { %v24418_v51 = vadd.f32 %v18263_v14, %v24306_v28  ;;  %v18849_v63 = vadd.f32 %v11912_v4, %v24352_v10  ;;  %v11914_v29 = vpop.f32.mrb[143].mxu1  ;;  %v18266_v16 = vadd.f32 %v18265_v59, %v18264_v62  ;;  %v12682_v21 = vmax.f32 %v18847_v55, 0.0 }
 0x6c7   : > { %14419 = vmatpush1.bf16.msra.mxu0 %v22001_v48  ;;  %v18850_v20 = vadd.f32 %v11914_v29, %v24356_v8  ;;  %v12683_v23 = vmax.f32 %v18848_v24, 0.0  ;;  %v22024_v48 = vld [vmem:[#allocation9 + $0x5cc] ss:$16 sps:$4 sm:$0xff]  }
 0x6c8   : > { %v12689_v34 = vmax.f32 %v18849_v63, 0.0  ;;  %14871 = vmatpush1.bf16.msra.mxu1 %v22004_v19  ;;  %v24423_v31 = vadd.f32 %v18266_v16, %v24309_v1  ;;  %14420 = vmatprep.subr.bf16.mxu0 %v22009_v41  ;;  %v22019_v41 = vld [vmem:[#allocation9 + $0x5c0] ss:$16 sps:$4 sm:$0xff]   ;;  %v22027_v63 = vld [vmem:[#allocation9 + $0x5e4] ss:$16 sps:$4 sm:$0xff]   ;;  %v25495_v16 = vld [vmem:[#allocation54_spill] sm:$0xff] }
 0x6c9   : > { %v12690_v28 = vmax.f32 %v18850_v20, 0.0  ;;  %14376 = vmatmul.mubr.bf16.gmra.mrb[120].mxu0 %v25493_v0  ;;  %14872 = vmatprep.subr.bf16.mxu1 %v22012_v39  ;;  %v22022_v39 = vld [vmem:[#allocation9 + $0x5c8] ss:$16 sps:$4 sm:$0xff]   ;;  %v22030_v20 = vld [vmem:[#allocation9 + $0x5ec] ss:$16 sps:$4 sm:$0xff]  }
 0x6ca   : > { %v24426_v12 = vpack.c.bf16 %v12689_v34, %v12682_v21  ;;  %14828 = vmatmul.mubr.bf16.gmra.mrb[216].mxu1 %v25493_v0  ;;  %14385 = vmatprep.mubr.bf16.mxu0 %v25494_v56  ;;  %v18267_v45 = vpop.f32.mrb[48].mxu0 }
 0x6cb   : > { %v24430_v40 = vpack.c.bf16 %v12690_v28, %v12683_v23  ;;  %14421 = vmatpush1.bf16.msra.mxu0 %v22007_v36  ;;  %14837 = vmatprep.mubr.bf16.mxu1 %v25494_v56  ;;  %v11918_v1 = vpop.f32.mrb[144].mxu1  ;;  %v18268_v11 = vpop.f32.mrb[49].mxu0 }
 0x6cc   : > { %14873 = vmatpush1.bf16.msra.mxu1 %v22010_v18  ;;  %v18851_v44 = vadd.f32 %v11918_v1, %v24352_v10  ;;  %v11920_v37 = vpop.f32.mrb[145].mxu1  ;;  %v18269_v9 = vadd.f32 %v18268_v11, %v18267_v45  ;;  %14422 = vmatprep.subr.bf16.mxu0 %v22015_v27  ;;  %v18270_v50 = vpop.f32.mrb[50].mxu0  ;;  %v22025_v27 = vld [vmem:[#allocation9 + $0x5e0] ss:$16 sps:$4 sm:$0xff]   ;;  %v22033_v45 = vld [vmem:[#allocation9 + $0x604] ss:$16 sps:$4 sm:$0xff]  }
 0x6cd   : > { %v18852_v42 = vadd.f32 %v11920_v37, %v24356_v8  ;;  %14874 = vmatprep.subr.bf16.mxu1 %v22018_v58  ;;  %v11922_v38 = vpop.f32.mrb[146].mxu1  ;;  %v18271_v5 = vpop.f32.mrb[51].mxu0  ;;  %v22028_v58 = vld [vmem:[#allocation9 + $0x5e8] ss:$16 sps:$4 sm:$0xff]  }
 0x6ce   : > { %v24436_v55 = vadd.f32 %v18269_v9, %v24316_v15  ;;  %v18853_v33 = vadd.f32 %v11922_v38, %v24352_v10  ;;  %v11924_v14 = vpop.f32.mrb[147].mxu1  ;;  %v18272_v19 = vadd.f32 %v18271_v5, %v18270_v50  ;;  %v12696_v24 = vmax.f32 %v18851_v44, 0.0  ;;  %v22048_v44 = vld [vmem:[#allocation9 + $0x60c] ss:$16 sps:$4 sm:$0xff]   ;;  %v22031_v5 = vld [vmem:[#allocation9 + $0x600] ss:$16 sps:$4 sm:$0xff]  }
 0x6cf   : > { %14423 = vmatpush1.bf16.msra.mxu0 %v22013_v46  ;;  %v18854_v62 = vadd.f32 %v11924_v14, %v24356_v8  ;;  %v12697_v29 = vmax.f32 %v18852_v42, 0.0  ;;  %v22036_v14 = vld [vmem:[#allocation9 + $0x624] ss:$16 sps:$4 sm:$0xff]  }
 0x6d0   : > { %v12703_v4 = vmax.f32 %v18853_v33, 0.0  ;;  %14875 = vmatpush1.bf16.msra.mxu1 %v22016_v57  ;;  %v24441_v59 = vadd.f32 %v18272_v19, %v24319_v53  ;;  %14424 = vmatprep.subr.bf16.mxu0 %v22021_v52 }
 0x6d1   : > { %v12704_v15 = vmax.f32 %v18854_v62, 0.0  ;;  %14386 = vmatmul.mubr.bf16.gmra.mrb[124].mxu0 %v25495_v16  ;;  %14876 = vmatprep.subr.bf16.mxu1 %v22024_v48 }
 0x6d2   : > { %v24444_v36 = vpack.c.bf16 %v12703_v4, %v12696_v24  ;;  %14838 = vmatmul.mubr.bf16.gmra.mrb[220].mxu1 %v25495_v16  ;;  %14428 = vmatprep.mubr.bf16.mxu0 %v24376_v43  ;;  %v18273_v21 = vpop.f32.mrb[52].mxu0  ;;  %v22034_v16 = vld [vmem:[#allocation9 + $0x620] ss:$16 sps:$4 sm:$0xff]  }
 0x6d3   : > { %v24448_v34 = vpack.c.bf16 %v12704_v15, %v12697_v29  ;;  %14425 = vmatpush1.bf16.msra.mxu0 %v22019_v41  ;;  %14880 = vmatprep.mubr.bf16.mxu1 %v24376_v43  ;;  %v11928_v53 = vpop.f32.mrb[148].mxu1  ;;  %v18274_v18 = vpop.f32.mrb[53].mxu0  ;;  %v22051_v41 = vld [vmem:[#allocation9 + $0x62c] ss:$16 sps:$4 sm:$0xff]  }
 0x6d4   : > { %14877 = vmatpush1.bf16.msra.mxu1 %v22022_v39  ;;  %v18855_v23 = vadd.f32 %v11928_v53, %v24352_v10  ;;  %v11930_v28 = vpop.f32.mrb[149].mxu1  ;;  %v18275_v0 = vadd.f32 %v18274_v18, %v18273_v21  ;;  %14426 = vmatprep.subr.bf16.mxu0 %v22027_v63  ;;  %v18276_v56 = vpop.f32.mrb[54].mxu0  ;;  %v22039_v18 = vld [vmem:[#allocation9 + $0x644] ss:$16 sps:$4 sm:$0xff]  }
 0x6d5   : > { %v18856_v1 = vadd.f32 %v11930_v28, %v24356_v8  ;;  %14878 = vmatprep.subr.bf16.mxu1 %v22030_v20  ;;  %v11932_v11 = vpop.f32.mrb[150].mxu1  ;;  %v18277_v46 = vpop.f32.mrb[55].mxu0 }
 0x6d6   : > { %v24454_v43 = vadd.f32 %v18275_v0, %v24326_v30  ;;  %v18857_v37 = vadd.f32 %v11932_v11, %v24352_v10  ;;  %v11934_v9 = vpop.f32.mrb[151].mxu1  ;;  %v18278_v57 = vadd.f32 %v18277_v46, %v18276_v56  ;;  %v12710_v52 = vmax.f32 %v18855_v23, 0.0  ;;  %v22046_v30 = vld [vmem:[#allocation9 + $0x608] ss:$16 sps:$4 sm:$0xff]   ;;  %v22057_v0 = vld [vmem:[#allocation9 + $0x64c] ss:$16 sps:$4 sm:$0xff]  }
 0x6d7   : > { %14427 = vmatpush1.bf16.msra.mxu0 %v22025_v27  ;;  %v18858_v50 = vadd.f32 %v11934_v9, %v24356_v8  ;;  %v12711_v48 = vmax.f32 %v18856_v1, 0.0  ;;  %v22037_v11 = vld [vmem:[#allocation9 + $0x640] ss:$16 sps:$4 sm:$0xff]  }
 0x6d8   : > { %v12717_v42 = vmax.f32 %v18857_v37, 0.0  ;;  %14879 = vmatpush1.bf16.msra.mxu1 %v22028_v58  ;;  %v24459_v38 = vadd.f32 %v18278_v57, %v24329_v32  ;;  %14509 = vmatprep.subr.bf16.mxu0 %v22033_v45  ;;  %v22055_v37 = vld [vmem:[#allocation9 + $0x648] ss:$16 sps:$4 sm:$0xff]  }
 0x6d9   : > { %v12718_v33 = vmax.f32 %v18858_v50, 0.0  ;;  %14961 = vmatprep.subr.bf16.mxu1 %v22048_v44  ;;  %v22060_v50 = vld [vmem:[#allocation9 + $0x66c] ss:$16 sps:$4 sm:$0xff]  }
 0x6da   : > { %v24461_v19 = vpack.c.bf16 %v12717_v42, %v12710_v52  ;;  %14429 = vmatmul.mubr.bf16.vlgmr.msra.gmra.mrb[96].mxu0 %v24372_v25  ;;  %v18279_v62 = vpop.f32.mrb[56].mxu0 }
 0x6db   : > { %v24464_v24 = vpack.c.bf16 %v12718_v33, %v12711_v48  ;;  %14881 = vmatmul.mubr.bf16.vlgmr.msra.gmra.mrb[192].mxu1 %v24372_v25  ;;  %14438 = vmatprep.mubr.bf16.mxu0 %v24394_v2  ;;  %v11938_v32 = vpop.f32.mrb[152].mxu1  ;;  %v18280_v4 = vpop.f32.mrb[57].mxu0  ;;  %v22049_v25 = vld [vmem:[#allocation9 + $0x628] ss:$16 sps:$4 sm:$0xff]  }
 0x6dc   : > { %14510 = vmatpush1.bf16.msra.mxu0 %v22031_v5  ;;  %14890 = vmatprep.mubr.bf16.mxu1 %v24394_v2  ;;  %v18859_v39 = vadd.f32 %v11938_v32, %v24352_v10  ;;  %v11940_v63 = vpop.f32.mrb[153].mxu1  ;;  %v18281_v29 = vadd.f32 %v18280_v4, %v18279_v62  ;;  %v18282_v15 = vpop.f32.mrb[58].mxu0  ;;  %v22045_v4 = vld [vmem:[#allocation9 + $0x684] ss:$16 sps:$4 sm:$0xff]  }
 0x6dd   : > { %v18860_v20 = vadd.f32 %v11940_v63, %v24356_v8  ;;  %v11942_v21 = vpop.f32.mrb[154].mxu1  ;;  %v18283_v53 = vpop.f32.mrb[59].mxu0  ;;  %14511 = vmatprep.subr.bf16.mxu0 %v22036_v14  ;;  %14962 = vmatpush1.bf16.msra.mxu1 %v22046_v30  ;;  %v22040_v30 = vld [vmem:[#allocation9 + $0x660] ss:$16 sps:$4 sm:$0xff]  }
 0x6de   : > { %v24472_v27 = vadd.f32 %v18281_v29, %v24336_v26  ;;  %v18861_v23 = vadd.f32 %v11942_v21, %v24352_v10  ;;  %v11944_v2 = vpop.f32.mrb[155].mxu1  ;;  %v18284_v28 = vadd.f32 %v18283_v53, %v18282_v15  ;;  %14963 = vmatprep.subr.bf16.mxu1 %v22051_v41  ;;  %v12724_v56 = vmax.f32 %v18859_v39, 0.0  ;;  %v22042_v26 = vld [vmem:[#allocation9 + $0x664] ss:$16 sps:$4 sm:$0xff]   ;;  %v22066_v15 = vld [vmem:[#allocation9 + $0x68c] ss:$16 sps:$4 sm:$0xff]  }
 0x6df   : > { %v18862_v58 = vadd.f32 %v11944_v2, %v24356_v8  ;;  %v12725_v46 = vmax.f32 %v18860_v20, 0.0  ;;  %v22064_v2 = vld [vmem:[#allocation9 + $0x688] ss:$16 sps:$4 sm:$0xff]  }
 0x6e0   : > { %v12731_v45 = vmax.f32 %v18861_v23, 0.0  ;;  %v24477_v1 = vadd.f32 %v18284_v28, %v24339_v6  ;;  %14512 = vmatpush1.bf16.msra.mxu0 %v22034_v16 }
 0x6e1   : > { %v12732_v44 = vmax.f32 %v18862_v58, 0.0  ;;  %14513 = vmatprep.subr.bf16.mxu0 %v22039_v18  ;;  %14964 = vmatpush1.bf16.msra.mxu1 %v22049_v25  ;;  %v22043_v18 = vld [vmem:[#allocation9 + $0x680] ss:$16 sps:$4 sm:$0xff]  }
 0x6e2   : > { %v24479_v9 = vpack.c.bf16 %v12731_v45, %v12724_v56  ;;  %14439 = vmatmul.mubr.bf16.gmra.mrb[100].mxu0 %v24390_v22  ;;  %v18285_v57 = vpop.f32.mrb[60].mxu0  ;;  %14965 = vmatprep.subr.bf16.mxu1 %v22057_v0 }
 0x6e3   : > { %v24482_v52 = vpack.c.bf16 %v12732_v44, %v12725_v46  ;;  %14891 = vmatmul.mubr.bf16.gmra.mrb[196].mxu1 %v24390_v22  ;;  %14448 = vmatprep.mubr.bf16.mxu0 %v24412_v49  ;;  %v11948_v6 = vpop.f32.mrb[156].mxu1  ;;  %v18286_v42 = vpop.f32.mrb[61].mxu0  ;;  %v22058_v22 = vld [vmem:[#allocation9 + $0x668] ss:$16 sps:$4 sm:$0xff]   ;;  %v22052_v46 = vld [vmem:[#allocation9 + $0x6a0] ss:$16 sps:$4 sm:$0xff]  }
 0x6e4   : > { %14900 = vmatprep.mubr.bf16.mxu1 %v24412_v49  ;;  %v18863_v5 = vadd.f32 %v11948_v6, %v24352_v10  ;;  %v11950_v48 = vpop.f32.mrb[157].mxu1  ;;  %v18287_v33 = vadd.f32 %v18286_v42, %v18285_v57  ;;  %v18288_v14 = vpop.f32.mrb[62].mxu0  ;;  %14514 = vmatpush1.bf16.msra.mxu0 %v22037_v11  ;;  %v22063_v57 = vld [vmem:[#allocation9 + $0x6c4] ss:$16 sps:$4 sm:$0xff]  }
 0x6e5   : > { %v18864_v62 = vadd.f32 %v11950_v48, %v24356_v8  ;;  %v11952_v41 = vpop.f32.mrb[158].mxu1  ;;  %v18289_v32 = vpop.f32.mrb[63].mxu0  ;;  %14515 = vmatprep.subr.bf16.mxu0 %v22042_v26  ;;  %14966 = vmatpush1.bf16.msra.mxu1 %v22055_v37 }
 0x6e6   : > { %v24490_v39 = vadd.f32 %v18287_v33, %v24346_v61  ;;  %v18865_v49 = vadd.f32 %v11952_v41, %v24352_v10  ;;  %v11954_v63 = vpop.f32.mrb[159].mxu1  ;;  %v18290_v29 = vadd.f32 %v18289_v32, %v18288_v14  ;;  %14967 = vmatprep.subr.bf16.mxu1 %v22060_v50  ;;  %v12738_v20 = vmax.f32 %v18863_v5, 0.0  ;;  %v22054_v61 = vld [vmem:[#allocation9 + $0x6a4] ss:$16 sps:$4 sm:$0xff]   ;;  %v22067_v50 = vld [vmem:[#allocation9 + $0x6a8] ss:$16 sps:$4 sm:$0xff]  }
 0x6e7   : > { %v18866_v16 = vadd.f32 %v11954_v63, %v24356_v8  ;;  %v12739_v25 = vmax.f32 %v18864_v62, 0.0  ;;  %v22069_v8 = vld [vmem:[#allocation9 + $0x6ac] ss:$16 sps:$4 sm:$0xff]   ;;  %v22061_v14 = vld [vmem:[#allocation9 + $0x6c0] ss:$16 sps:$4 sm:$0xff]  }
 0x6e8   : > { %v12745_v21 = vmax.f32 %v18865_v49, 0.0  ;;  %v24495_v53 = vadd.f32 %v18290_v29, %v24349_v7  ;;  %14516 = vmatpush1.bf16.msra.mxu0 %v22040_v30  ;;  %v22075_v5 = vld [vmem:[#allocation9 + $0x6cc] ss:$16 sps:$4 sm:$0xff]   ;;  %v22072_v30 = vld [vmem:[#allocation9 + $0x6e4] ss:$16 sps:$4 sm:$0xff]  }
 0x6e9   : > { %v12746_v23 = vmax.f32 %v18866_v16, 0.0  ;;  %14517 = vmatprep.subr.bf16.mxu0 %v22045_v4  ;;  %14968 = vmatpush1.bf16.msra.mxu1 %v22058_v22  ;;  %v22073_v62 = vld [vmem:[#allocation9 + $0x6c8] ss:$16 sps:$4 sm:$0xff]   ;;  %v22070_v16 = vld [vmem:[#allocation9 + $0x6e0] ss:$16 sps:$4 sm:$0xff]  }
 0x6ea   : > { %v24497_v10 = vpack.c.bf16 %v12745_v21, %v12738_v20  ;;  %14449 = vmatmul.mubr.bf16.gmra.mrb[104].mxu0 %v24408_v47  ;;  %v18307_v28 = vpop.f32.mrb[64].mxu0  ;;  %14969 = vmatprep.subr.bf16.mxu1 %v22066_v15 }
 0x6eb   : > { %v24500_v0 = vpack.c.bf16 %v12746_v23, %v12739_v25  ;;  %14901 = vmatmul.mubr.bf16.gmra.mrb[200].mxu1 %v24408_v47  ;;  %14458 = vmatprep.mubr.bf16.mxu0 %v24430_v40  ;;  %v18371_v7 = vpop.f32.mrb[160].mxu1  ;;  %v18308_v58 = vpop.f32.mrb[65].mxu0  ;;  %v22076_v25 = vld [vmem:[#allocation9 + $0x6e8] ss:$16 sps:$4 sm:$0xff]  }
 0x6ec   : > { %14910 = vmatprep.mubr.bf16.mxu1 %v24430_v40  ;;  %v18309_v56 = vadd.f32 %v18308_v58, %v18307_v28  ;;  %v18372_v45 = vpop.f32.mrb[161].mxu1  ;;  %v18310_v11 = vpop.f32.mrb[66].mxu0  ;;  %14518 = vmatpush1.bf16.msra.mxu0 %v22043_v18 }
 0x6ed   : > { %v18373_v44 = vadd.f32 %v18372_v45, %v18371_v7  ;;  %v18374_v26 = vpop.f32.mrb[162].mxu1  ;;  %v18311_v37 = vpop.f32.mrb[67].mxu0  ;;  %14519 = vmatprep.subr.bf16.mxu0 %v22054_v61  ;;  %14970 = vmatpush1.bf16.msra.mxu1 %v22064_v2 }
 0x6ee   : > { %v12477_v47 = vadd.f32 %v18309_v56, %v24364_v35  ;;  %v18312_v6 = vadd.f32 %v18311_v37, %v18310_v11  ;;  %v18375_v42 = vpop.f32.mrb[163].mxu1  ;;  %14971 = vmatprep.subr.bf16.mxu1 %v22069_v8  ;;  %v22078_v35 = vld [vmem:[#allocation9 + $0x6ec] ss:$16 sps:$4 sm:$0xff]  }
 0x6ef   : > { %v18376_v48 = vadd.f32 %v18375_v42, %v18374_v26 }
 0x6f0   : > { %v12574_v40 = vadd.f32 %v18373_v44, %v12477_v47  ;;  %v12480_v33 = vadd.f32 %v18312_v6, %v24369_v3  ;;  %14520 = vmatpush1.bf16.msra.mxu0 %v22052_v46 }
 0x6f1   : > { %14521 = vmatprep.subr.bf16.mxu0 %v22063_v57  ;;  %14972 = vmatpush1.bf16.msra.mxu1 %v22067_v50 }
 0x6f2   : > { %v12577_v41 = vadd.f32 %v18376_v48, %v12480_v33  ;;  %14459 = vmatmul.mubr.bf16.gmra.mrb[108].mxu0 %v24426_v12  ;;  %v18313_v32 = vpop.f32.mrb[68].mxu0  ;;  %14973 = vmatprep.subr.bf16.mxu1 %v22075_v5  ;;  %v12642_v49 = vmax.f32 %v12574_v40, 0.0 }
 0x6f3   : > { %14911 = vmatmul.mubr.bf16.gmra.mrb[204].mxu1 %v24426_v12  ;;  %14468 = vmatprep.mubr.bf16.mxu0 %v24448_v34  ;;  %v18377_v4 = vpop.f32.mrb[164].mxu1  ;;  %v18314_v22 = vpop.f32.mrb[69].mxu0  ;;  %v22081_v12 = vld [vmem:[#allocation12 + $0x4] ss:$12 sps:$4 sm:$0xff]  }
 0x6f4   : > { %v12649_v3 = vmax.f32 %v12577_v41, 0.0  ;;  %14920 = vmatprep.mubr.bf16.mxu1 %v24448_v34  ;;  %v18315_v63 = vadd.f32 %v18314_v22, %v18313_v32  ;;  %v18378_v29 = vpop.f32.mrb[165].mxu1  ;;  %v18316_v15 = vpop.f32.mrb[70].mxu0  ;;  %14522 = vmatpush1.bf16.msra.mxu0 %v22061_v14  ;;  %v22082_v34 = vld [vmem:[#allocation12 + $0xc8] ss:$12 sps:$4 sm:$0xff]  }
 0x6f5   : > { %v18379_v20 = vadd.f32 %v18378_v29, %v18377_v4  ;;  %v18380_v21 = vpop.f32.mrb[166].mxu1  ;;  %v18317_v18 = vpop.f32.mrb[71].mxu0  ;;  %14523 = vmatprep.subr.bf16.mxu0 %v22072_v30  ;;  %14974 = vmatpush1.bf16.msra.mxu1 %v22073_v62 }
 0x6f6   : > { %v24511_v23 = vpack.c.bf16 %v12649_v3, %v12642_v49  ;;  %v12485_v61 = vadd.f32 %v18315_v63, %v24382_v17  ;;  %v18318_v2 = vadd.f32 %v18317_v18, %v18316_v15  ;;  %v18381_v28 = vpop.f32.mrb[167].mxu1  ;;  %14975 = vmatprep.subr.bf16.mxu1 %v22078_v35 }
 0x6f7   : > { %v18382_v8 = vadd.f32 %v18381_v28, %v18380_v21 }
 0x6f8   : > { %v12582_v7 = vadd.f32 %v18379_v20, %v12485_v61  ;;  %v12488_v58 = vadd.f32 %v18318_v2, %v24387_v60  ;;  %14524 = vmatpush1.bf16.msra.mxu0 %v22070_v16 }
 0x6f9   : > { %14976 = vmatpush1.bf16.msra.mxu1 %v22076_v25  ;;  %15827 = vmatprep.subr.bf16.mxu0 %v22081_v12 }
 0x6fa   : > { %v12585_v56 = vadd.f32 %v18382_v8, %v12488_v58  ;;  %14469 = vmatmul.mubr.bf16.gmra.mrb[112].mxu0 %v24444_v36  ;;  %v18319_v45 = vpop.f32.mrb[72].mxu0  ;;  %18419 = vmatprep.subr.bf16.mxu1 %v22082_v34  ;;  %v12656_v46 = vmax.f32 %v12582_v7, 0.0 }
 0x6fb   : > { %14921 = vmatmul.mubr.bf16.gmra.mrb[208].mxu1 %v24444_v36  ;;  %14478 = vmatprep.mubr.bf16.mxu0 %v24464_v24  ;;  %v18383_v17 = vpop.f32.mrb[168].mxu1  ;;  %v18320_v11 = vpop.f32.mrb[73].mxu0 }
 0x6fc   : > { %v12663_v44 = vmax.f32 %v12585_v56, 0.0  ;;  %14930 = vmatprep.mubr.bf16.mxu1 %v24464_v24  ;;  %v18321_v26 = vadd.f32 %v18320_v11, %v18319_v45  ;;  %v18384_v60 = vpop.f32.mrb[169].mxu1  ;;  %v18322_v37 = vpop.f32.mrb[74].mxu0 }
 0x6fd   : > { %v18385_v57 = vadd.f32 %v18384_v60, %v18383_v17  ;;  %v18386_v50 = vpop.f32.mrb[170].mxu1  ;;  %v18323_v47 = vpop.f32.mrb[75].mxu0  ;;  %v25496_v60 = vmov 0  }
 0x6fe   : > { %v24519_v6 = vpack.c.bf16 %v12663_v44, %v12656_v46  ;;  %v12493_v42 = vadd.f32 %v18321_v26, %v24400_v54  ;;  %v18324_v5 = vadd.f32 %v18323_v47, %v18322_v37  ;;  %v18387_v36 = vpop.f32.mrb[171].mxu1 }
 0x6ff   : > { %v18388_v48 = vadd.f32 %v18387_v36, %v18386_v50 }
 0x700   : > { %v12590_v40 = vadd.f32 %v18385_v57, %v12493_v42  ;;  %v12496_v33 = vadd.f32 %v18324_v5, %v24405_v13 }
 0x702   : > { %v12593_v14 = vadd.f32 %v18388_v48, %v12496_v33  ;;  %14479 = vmatmul.mubr.bf16.gmra.mrb[116].mxu0 %v24461_v19  ;;  %v18325_v24 = vpop.f32.mrb[76].mxu0  ;;  %v12670_v41 = vmax.f32 %v12590_v40, 0.0 }
 0x703   : > { %14931 = vmatmul.mubr.bf16.gmra.mrb[212].mxu1 %v24461_v19  ;;  %14488 = vmatprep.mubr.bf16.mxu0 %v24482_v52  ;;  %v18389_v30 = vpop.f32.mrb[172].mxu1  ;;  %v18326_v62 = vpop.f32.mrb[77].mxu0 }
 0x704   : > { %v12677_v32 = vmax.f32 %v12593_v14, 0.0  ;;  %14940 = vmatprep.mubr.bf16.mxu1 %v24482_v52  ;;  %v18327_v54 = vadd.f32 %v18326_v62, %v18325_v24  ;;  %v18390_v35 = vpop.f32.mrb[173].mxu1  ;;  %v18328_v4 = vpop.f32.mrb[78].mxu0  ;;  %v22083_v62 = vld [vmem:[#allocation12 + $0x8] ss:$12 sps:$4 sm:$0xff]  }
 0x705   : > { %v18391_v22 = vadd.f32 %v18390_v35, %v18389_v30  ;;  %v18392_v49 = vpop.f32.mrb[174].mxu1  ;;  %v18329_v13 = vpop.f32.mrb[79].mxu0  ;;  %v22079_v30 = vld [vmem:[#allocation12] ss:$12 sps:$4 sm:$0xff]  }
 0x706   : > { %v24527_v3 = vpack.c.bf16 %v12677_v32, %v12670_v41  ;;  %v12501_v63 = vadd.f32 %v18327_v54, %v24418_v51  ;;  %v18330_v29 = vadd.f32 %v18329_v13, %v18328_v4  ;;  %v18393_v19 = vpop.f32.mrb[175].mxu1  ;;  %v22086_v41 = vld [vmem:[#allocation12 + $0x1c] ss:$12 sps:$4 sm:$0xff]   ;;  %v22090_v35 = vld [vmem:[#allocation12 + $0xe0] ss:$12 sps:$4 sm:$0xff]  }
 0x707   : > { %v18394_v15 = vadd.f32 %v18393_v19, %v18392_v49 }
 0x708   : > { %v12598_v16 = vadd.f32 %v18391_v22, %v12501_v63  ;;  %v12504_v20 = vadd.f32 %v18330_v29, %v24423_v31 }
 0x70a   : > { %v12601_v21 = vadd.f32 %v18394_v15, %v12504_v20  ;;  %14489 = vmatmul.mubr.bf16.gmra.mrb[120].mxu0 %v24479_v9  ;;  %v18331_v52 = vpop.f32.mrb[80].mxu0  ;;  %v12684_v12 = vmax.f32 %v12598_v16, 0.0  ;;  %v22089_v20 = vld [vmem:[#allocation12 + $0x34] ss:$12 sps:$4 sm:$0xff]  }
 0x70b   : > { %14941 = vmatmul.mubr.bf16.gmra.mrb[216].mxu1 %v24479_v9  ;;  %14498 = vmatprep.mubr.bf16.mxu0 %v24500_v0  ;;  %v18395_v18 = vpop.f32.mrb[176].mxu1  ;;  %v18332_v25 = vpop.f32.mrb[81].mxu0 }
 0x70c   : > { %v12691_v61 = vmax.f32 %v12601_v21, 0.0  ;;  %14950 = vmatprep.mubr.bf16.mxu1 %v24500_v0  ;;  %v18333_v51 = vadd.f32 %v18332_v25, %v18331_v52  ;;  %v18396_v2 = vpop.f32.mrb[177].mxu1  ;;  %v18334_v28 = vpop.f32.mrb[82].mxu0 }
 0x70d   : > { %v18397_v34 = vadd.f32 %v18396_v2, %v18395_v18  ;;  %v18398_v8 = vpop.f32.mrb[178].mxu1  ;;  %v18335_v31 = vpop.f32.mrb[83].mxu0 }
 0x70e   : > { %v24535_v7 = vpack.c.bf16 %v12691_v61, %v12684_v12  ;;  %v12509_v58 = vadd.f32 %v18333_v51, %v24436_v55  ;;  %v18336_v56 = vadd.f32 %v18335_v31, %v18334_v28  ;;  %v18399_v9 = vpop.f32.mrb[179].mxu1  ;;  %v22098_v12 = vld [vmem:[#allocation12 + $0xf8] ss:$12 sps:$4 sm:$0xff]   ;;  %v22087_v28 = vld [vmem:[#allocation12 + $0x30] ss:$12 sps:$4 sm:$0xff]  }
 0x70f   : > { %v18400_v45 = vadd.f32 %v18399_v9, %v18398_v8  ;;  %v22099_v8 = vld [vmem:[#allocation12 + $0x38] ss:$12 sps:$4 sm:$0xff]  }
 0x710   : > { %v12606_v17 = vadd.f32 %v18397_v34, %v12509_v58  ;;  %v12512_v11 = vadd.f32 %v18336_v56, %v24441_v59  ;;  %v22094_v34 = vld [vmem:[#allocation12 + $0x4c] ss:$12 sps:$4 sm:$0xff]  }
 0x712   : > { %v12609_v46 = vadd.f32 %v18400_v45, %v12512_v11  ;;  %14499 = vmatmul.mubr.bf16.gmra.mrb[124].mxu0 %v24497_v10  ;;  %v18337_v0 = vpop.f32.mrb[84].mxu0  ;;  %v12698_v37 = vmax.f32 %v12606_v17, 0.0 }
 0x713   : > { %14951 = vmatmul.mubr.bf16.gmra.mrb[220].mxu1 %v24497_v10  ;;  %v18401_v44 = vpop.f32.mrb[180].mxu1  ;;  %v18338_v26 = vpop.f32.mrb[85].mxu0  ;;  %14541 = vmatprep.mubr.bf16.mxu0 %v25496_v60 }
 0x714   : > { %v12705_v57 = vmax.f32 %v12609_v46, 0.0  ;;  %v18339_v50 = vadd.f32 %v18338_v26, %v18337_v0  ;;  %v18402_v55 = vpop.f32.mrb[181].mxu1  ;;  %v18340_v47 = vpop.f32.mrb[86].mxu0  ;;  %14993 = vmatprep.mubr.bf16.mxu1 %v25496_v60  ;;  %v22092_v0 = vld [vmem:[#allocation12 + $0x48] ss:$12 sps:$4 sm:$0xff]  }
 0x715   : > { %v18403_v42 = vadd.f32 %v18402_v55, %v18401_v44  ;;  %v18404_v5 = vpop.f32.mrb[182].mxu1  ;;  %v18341_v59 = vpop.f32.mrb[87].mxu0 }
 0x716   : > { %v24543_v36 = vpack.c.bf16 %v12705_v57, %v12698_v37  ;;  %v12517_v48 = vadd.f32 %v18339_v50, %v24454_v43  ;;  %v18342_v40 = vadd.f32 %v18341_v59, %v18340_v47  ;;  %v18405_v10 = vpop.f32.mrb[183].mxu1  ;;  %v22097_v57 = vld [vmem:[#allocation12 + $0x64] ss:$12 sps:$4 sm:$0xff]  }
 0x717   : > { %v18406_v33 = vadd.f32 %v18405_v10, %v18404_v5  ;;  %v22114_v5 = vld [vmem:[#allocation12 + $0x128] ss:$12 sps:$4 sm:$0xff]   ;;  %v22095_v10 = vld [vmem:[#allocation12 + $0x60] ss:$12 sps:$4 sm:$0xff]  }
 0x718   : > { %v12614_v14 = vadd.f32 %v18403_v42, %v12517_v48  ;;  %v12520_v24 = vadd.f32 %v18342_v40, %v24459_v38  ;;  %v22084_v38 = vld [vmem:[#allocation12 + $0x18] ss:$12 sps:$4 sm:$0xff]  }
 0x71a   : > { %v12617_v32 = vadd.f32 %v18406_v33, %v12520_v24  ;;  %14542 = vmatmul.mubr.bf16.vlgmr.msra.gmra.mrb[96].mxu0 %v24511_v23  ;;  %v18343_v54 = vpop.f32.mrb[88].mxu0  ;;  %v12712_v43 = vmax.f32 %v12614_v14, 0.0  ;;  %v22102_v33 = vld [vmem:[#allocation12 + $0x7c] ss:$12 sps:$4 sm:$0xff]  }
 0x71b   : > { %14994 = vmatmul.mubr.bf16.vlgmr.msra.gmra.mrb[192].mxu1 %v24511_v23  ;;  %v18407_v4 = vpop.f32.mrb[184].mxu1  ;;  %v18344_v22 = vpop.f32.mrb[89].mxu0  ;;  %14551 = vmatprep.mubr.bf16.mxu0 %v25496_v60  ;;  %v22091_v23 = vld [vmem:[#allocation12 + $0x20] ss:$12 sps:$4 sm:$0xff]   ;;  %v22115_v14 = vld [vmem:[#allocation12 + $0x68] ss:$12 sps:$4 sm:$0xff]  }
 0x71c   : > { %v12719_v49 = vmax.f32 %v12617_v32, 0.0  ;;  %v18345_v13 = vadd.f32 %v18344_v22, %v18343_v54  ;;  %v18408_v63 = vpop.f32.mrb[185].mxu1  ;;  %v18346_v29 = vpop.f32.mrb[90].mxu0  ;;  %15003 = vmatprep.mubr.bf16.mxu1 %v25496_v60  ;;  %15828 = vmatpush1.bf16.msra.mxu0 %v22079_v30  ;;  %v22122_v30 = vld [vmem:[#allocation12 + $0x140] ss:$12 sps:$4 sm:$0xff]  }
 0x71d   : > { %v18409_v19 = vadd.f32 %v18408_v63, %v18407_v4  ;;  %v18410_v15 = vpop.f32.mrb[186].mxu1  ;;  %v18347_v16 = vpop.f32.mrb[91].mxu0  ;;  %18420 = vmatpush3.bf16.msra.mxu1 %v22083_v62  ;;  %15829 = vmatprep.subr.bf16.mxu0 %v22086_v41  ;;  %v22105_v41 = vld [vmem:[#allocation12 + $0x94] ss:$12 sps:$4 sm:$0xff]   ;;  %v22103_v4 = vld [vmem:[#allocation12 + $0x90] ss:$12 sps:$4 sm:$0xff]  }
 0x71e   : > { %v24551_v21 = vpack.c.bf16 %v12719_v49, %v12712_v43  ;;  %v12525_v52 = vadd.f32 %v18345_v13, %v24472_v27  ;;  %v18348_v18 = vadd.f32 %v18347_v16, %v18346_v29  ;;  %v18411_v25 = vpop.f32.mrb[187].mxu1  ;;  %18421 = vmatprep.subr.bf16.mxu1 %v22090_v35  ;;  %v22106_v27 = vld [vmem:[#allocation12 + $0x110] ss:$12 sps:$4 sm:$0xff]   ;;  %v22123_v32 = vld [vmem:[#allocation12 + $0x80] ss:$12 sps:$4 sm:$0xff]  }
 0x71f   : > { %v18412_v61 = vadd.f32 %v18411_v25, %v18410_v15  ;;  %v22130_v35 = vld [vmem:[#allocation12 + $0x158] ss:$12 sps:$4 sm:$0xff]   ;;  %v22108_v43 = vld [vmem:[#allocation12 + $0xa8] ss:$12 sps:$4 sm:$0xff]   ;;  %v22111_v13 = vld [vmem:[#allocation12 + $0xc0] ss:$12 sps:$4 sm:$0xff]  }
 0x720   : > { %v12622_v51 = vadd.f32 %v18409_v19, %v12525_v52  ;;  %v12528_v2 = vadd.f32 %v18348_v18, %v24477_v1  ;;  %15830 = vmatpush1.bf16.msra.mxu0 %v22084_v38  ;;  %v22110_v22 = vld [vmem:[#allocation12 + $0xac] ss:$12 sps:$4 sm:$0xff]   ;;  %v22113_v49 = vld [vmem:[#allocation12 + $0xc4] ss:$12 sps:$4 sm:$0xff]   ;;  %v22118_v63 = vld [vmem:[#allocation12 + $0xdc] ss:$12 sps:$4 sm:$0xff]  }
 0x721   : > { %15831 = vmatprep.subr.bf16.mxu0 %v22089_v20  ;;  %18422 = vmatpush3.bf16.msra.mxu1 %v22091_v23  ;;  %v22121_v29 = vld [vmem:[#allocation12 + $0xf4] ss:$12 sps:$4 sm:$0xff]   ;;  %v22119_v38 = vld [vmem:[#allocation12 + $0xf0] ss:$12 sps:$4 sm:$0xff]   ;;  %v22126_v19 = vld [vmem:[#allocation12 + $0x10c] ss:$12 sps:$4 sm:$0xff]  }
 0x722   : > { %v12625_v31 = vadd.f32 %v18412_v61, %v12528_v2  ;;  %14552 = vmatmul.mubr.bf16.gmra.mrb[100].mxu0 %v24519_v6  ;;  %v18349_v58 = vpop.f32.mrb[92].mxu0  ;;  %18423 = vmatprep.subr.bf16.mxu1 %v22098_v12  ;;  %v12726_v45 = vmax.f32 %v12622_v51, 0.0  ;;  %v22129_v15 = vld [vmem:[#allocation12 + $0x124] ss:$12 sps:$4 sm:$0xff]   ;;  %v22127_v16 = vld [vmem:[#allocation12 + $0x120] ss:$12 sps:$4 sm:$0xff]  }
 0x723   : > { %15004 = vmatmul.mubr.bf16.gmra.mrb[196].mxu1 %v24519_v6  ;;  %v18413_v56 = vpop.f32.mrb[188].mxu1  ;;  %v18350_v9 = vpop.f32.mrb[93].mxu0  ;;  %14561 = vmatprep.mubr.bf16.mxu0 %v25496_v60  ;;  %v22107_v6 = vld [vmem:[#allocation12 + $0x50] ss:$12 sps:$4 sm:$0xff]   ;;  %v22132_v23 = vld [vmem:[#allocation12 + $0x138] ss:$12 sps:$4 sm:$0xff]  }
 0x724   : > { %v12733_v1 = vmax.f32 %v12625_v31, 0.0  ;;  %v18351_v17 = vadd.f32 %v18350_v9, %v18349_v58  ;;  %v18414_v11 = vpop.f32.mrb[189].mxu1  ;;  %v18352_v46 = vpop.f32.mrb[94].mxu0  ;;  %15013 = vmatprep.mubr.bf16.mxu1 %v25496_v60  ;;  %15832 = vmatpush1.bf16.msra.mxu0 %v22087_v28  ;;  %v22134_v20 = vld [vmem:[#allocation12 + $0x13c] ss:$12 sps:$4 sm:$0xff]   ;;  %v25497_v28 = vld [vmem:[#allocation21_spill] sm:$0xff] }
 0x725   : > { %v18415_v44 = vadd.f32 %v18414_v11, %v18413_v56  ;;  %v18416_v26 = vpop.f32.mrb[190].mxu1  ;;  %v18353_v37 = vpop.f32.mrb[95].mxu0  ;;  %15833 = vmatprep.subr.bf16.mxu0 %v22094_v34  ;;  %18424 = vmatpush3.bf16.msra.mxu1 %v22099_v8  ;;  %v22135_v52 = vld [vmem:[#allocation12 + $0x150] ss:$12 sps:$4 sm:$0xff]   ;;  %v22142_v25 = vld [vmem:[#allocation12 + $0x16c] ss:$12 sps:$4 sm:$0xff]  }
 0x726   : > { %v24559_v50 = vpack.c.bf16 %v12733_v1, %v12726_v45  ;;  %v12533_v55 = vadd.f32 %v18351_v17, %v24490_v39  ;;  %v18354_v47 = vadd.f32 %v18353_v37, %v18352_v46  ;;  %v18417_v42 = vpop.f32.mrb[191].mxu1  ;;  %18425 = vmatprep.subr.bf16.mxu1 %v22106_v27  ;;  %v22138_v18 = vld [vmem:[#allocation12 + $0x170] ss:$12 sps:$4 sm:$0xff]   ;;  %v22140_v61 = vld [vmem:[#allocation12 + $0x168] ss:$12 sps:$4 sm:$0xff]  }
 0x727   : > { %v18418_v59 = vadd.f32 %v18417_v42, %v18416_v26  ;;  %v22139_v12 = vld [vmem:[#allocation12 + $0xb0] ss:$12 sps:$4 sm:$0xff]   ;;  %v25498_v8 = vld [vmem:[#allocation22_spill] sm:$0xff]  ;;  %v25500_v56 = vld [vmem:[#allocation24_spill] sm:$0xff] }
 0x728   : > { %v12630_v48 = vadd.f32 %v18415_v44, %v12533_v55  ;;  %v12536_v40 = vadd.f32 %v18354_v47, %v24495_v53  ;;  %15834 = vmatpush1.bf16.msra.mxu0 %v22092_v0  ;;  %v22100_v53 = vld [vmem:[#allocation12 + $0x78] ss:$12 sps:$4 sm:$0xff]   ;;  %v13028_v2 = vld [vmem:[#allocation10] sm:$0xf] }
 0x729   : > { %15835 = vmatprep.subr.bf16.mxu0 %v22097_v57  ;;  %18426 = vmatpush3.bf16.msra.mxu1 %v22107_v6  ;;  %v22145_v51 = vld [vmem:[#allocation12 + $0x184] ss:$12 sps:$4 sm:$0xff]   ;;  %v24584_v34 = vrot.slane %v13028_v2, %v25497_v28  ;;  %v24587_v31 = vrot.slane %v13028_v2, %v25498_v8  ;;  %v25499_v58 = vld [vmem:[#allocation23_spill] sm:$0xff]  ;;  %v24593_v9 = vrot.slane %v13028_v2, %v25500_v56 }
 0x72a   : > { %v12633_v24 = vadd.f32 %v18418_v59, %v12536_v40  ;;  %14562 = vmatmul.mubr.bf16.gmra.mrb[104].mxu0 %v24527_v3  ;;  %18427 = vmatprep.subr.bf16.mxu1 %v22114_v5  ;;  %v12740_v39 = vmax.f32 %v12630_v48, 0.0  ;;  %v24590_v27 = vrot.slane %v13028_v2, %v25499_v58 }
 0x72b   : > { %15014 = vmatmul.mubr.bf16.gmra.mrb[200].mxu1 %v24527_v3  ;;  %14571 = vmatprep.mubr.bf16.mxu0 %v25496_v60  ;;  %v22131_v3 = vld [vmem:[#allocation12 + $0x98] ss:$12 sps:$4 sm:$0xff]  }
 0x72c   : > { %v12747_v62 = vmax.f32 %v12633_v24, 0.0  ;;  %15023 = vmatprep.mubr.bf16.mxu1 %v25496_v60  ;;  %15836 = vmatpush1.bf16.msra.mxu0 %v22095_v10 }
 0x72d   : > { %15837 = vmatprep.subr.bf16.mxu0 %v22102_v33  ;;  %18428 = vmatpush3.bf16.msra.mxu1 %v22115_v14 }
 0x72e   : > { %v12803_v54 = vpack.c.bf16 %v12747_v62, %v12740_v39  ;;  %18429 = vmatprep.subr.bf16.mxu1 %v22122_v30 }
 0x730   : > { %15838 = vmatpush1.bf16.msra.mxu0 %v22100_v53 }
 0x731   : > { %15839 = vmatprep.subr.bf16.mxu0 %v22105_v41  ;;  %18430 = vmatpush3.bf16.msra.mxu1 %v22123_v32  ;;  %v22143_v32 = vld [vmem:[#allocation12 + $0x180] ss:$12 sps:$4 sm:$0xff]  }
 0x732   : > { %14572 = vmatmul.mubr.bf16.gmra.mrb[108].mxu0 %v24535_v7  ;;  %18431 = vmatprep.subr.bf16.mxu1 %v22130_v35 }
 0x733   : > { %15024 = vmatmul.mubr.bf16.gmra.mrb[204].mxu1 %v24535_v7  ;;  %14581 = vmatprep.mubr.bf16.mxu0 %v25496_v60  ;;  %v22116_v7 = vld [vmem:[#allocation12 + $0xd8] ss:$12 sps:$4 sm:$0xff]  }
 0x734   : > { %15033 = vmatprep.mubr.bf16.mxu1 %v25496_v60  ;;  %15840 = vmatpush1.bf16.msra.mxu0 %v22103_v4 }
 0x735   : > { %15841 = vmatprep.subr.bf16.mxu0 %v22110_v22  ;;  %18432 = vmatpush3.bf16.msra.mxu1 %v22131_v3 }
 0x736   : > { %18433 = vmatprep.subr.bf16.mxu1 %v22138_v18 }
 0x738   : > { %15842 = vmatpush1.bf16.msra.mxu0 %v22108_v43  ;;  %v22150_v43 = vld [vmem:[#allocation12 + $0x19c] ss:$12 sps:$4 sm:$0xff]  }
 0x739   : > { %15843 = vmatprep.subr.bf16.mxu0 %v22113_v49  ;;  %18434 = vmatpush3.bf16.msra.mxu1 %v22139_v12  ;;  %v22154_v49 = vld [vmem:[#allocation12 + $0x260] ss:$12 sps:$4 sm:$0xff]  }
 0x73a   : > { %14582 = vmatmul.mubr.bf16.gmra.mrb[112].mxu0 %v24543_v36 }
 0x73b   : > { %15034 = vmatmul.mubr.bf16.gmra.mrb[208].mxu1 %v24543_v36  ;;  %14591 = vmatprep.mubr.bf16.mxu0 %v25496_v60  ;;  %v22124_v36 = vld [vmem:[#allocation12 + $0x108] ss:$12 sps:$4 sm:$0xff]  }
 0x73c   : > { %15043 = vmatprep.mubr.bf16.mxu1 %v25496_v60  ;;  %15844 = vmatpush1.bf16.msra.mxu0 %v22111_v13 }
 0x73d   : > { %15845 = vmatprep.subr.bf16.mxu0 %v22118_v63 }
 0x740   : > { %15846 = vmatpush1.bf16.msra.mxu0 %v22116_v7 }
 0x741   : > { %15847 = vmatprep.subr.bf16.mxu0 %v22121_v29 }
 0x742   : > { %14592 = vmatmul.mubr.bf16.gmra.mrb[116].mxu0 %v24551_v21 }
 0x743   : > { %15044 = vmatmul.mubr.bf16.gmra.mrb[212].mxu1 %v24551_v21  ;;  %14601 = vmatprep.mubr.bf16.mxu0 %v25496_v60  ;;  %v22137_v21 = vld [vmem:[#allocation12 + $0x154] ss:$12 sps:$4 sm:$0xff]  }
 0x744   : > { %15053 = vmatprep.mubr.bf16.mxu1 %v25496_v60  ;;  %15848 = vmatpush1.bf16.msra.mxu0 %v22119_v38 }
 0x745   : > { %15849 = vmatprep.subr.bf16.mxu0 %v22126_v19 }
 0x748   : > { %15850 = vmatpush1.bf16.msra.mxu0 %v22124_v36 }
 0x749   : > { %15851 = vmatprep.subr.bf16.mxu0 %v22129_v15 }
 0x74a   : > { %14602 = vmatmul.mubr.bf16.gmra.mrb[120].mxu0 %v24559_v50 }
 0x74b   : > { %15054 = vmatmul.mubr.bf16.gmra.mrb[216].mxu1 %v24559_v50  ;;  %14611 = vmatprep.mubr.bf16.mxu0 %v25496_v60 }
 0x74c   : > { %15063 = vmatprep.mubr.bf16.mxu1 %v25496_v60  ;;  %15852 = vmatpush1.bf16.msra.mxu0 %v22127_v16  ;;  %v22146_v60 = vld [vmem:[#allocation12 + $0x248] ss:$12 sps:$4 sm:$0xff]  }
 0x74d   : > { %15853 = vmatprep.subr.bf16.mxu0 %v22134_v20  ;;  %18483 = vmatprep.subr.bf16.mxu1 %v22146_v60 }
 0x750   : > { %15854 = vmatpush1.bf16.msra.mxu0 %v22132_v23 }
 0x751   : > { %15855 = vmatprep.subr.bf16.mxu0 %v22137_v21  ;;  %v22148_v21 = vld [vmem:[#allocation12 + $0x198] ss:$12 sps:$4 sm:$0xff]  }
 0x752   : > { %14612 = vmatmul.mubr.bf16.gmra.mrb[124].mxu0 %v12803_v54 }
 0x753   : > { %15064 = vmatmul.mubr.bf16.gmra.mrb[220].mxu1 %v12803_v54  ;;  %v22147_v54 = vld [vmem:[#allocation12 + $0x188] ss:$12 sps:$4 sm:$0xff]  }
 0x754   : > { %15856 = vmatpush1.bf16.msra.mxu0 %v22135_v52  ;;  %v22155_v52 = vld [vmem:[#allocation12 + $0x1a0] ss:$12 sps:$4 sm:$0xff]  }
 0x755   : > { %15857 = vmatprep.subr.bf16.mxu0 %v22142_v25 }
 0x758   : > { %15858 = vmatpush1.bf16.msra.mxu0 %v22140_v61  ;;  %v22153_v61 = vld [vmem:[#allocation12 + $0x1b4] ss:$12 sps:$4 sm:$0xff]  }
 0x759   : > { %15940 = vmatprep.subr.bf16.mxu0 %v22145_v51  ;;  %v22162_v51 = vld [vmem:[#allocation12 + $0x278] ss:$12 sps:$4 sm:$0xff]  }
 0x7ed   : > { %v14543_v45 = vpop.f32.mrb[96].mxu0 }
 0x7ee   : > { %v18867_v1 = vadd.f32 %v14543_v45, %v24584_v34  ;;  %v14995_v17 = vpop.f32.mrb[192].mxu1  ;;  %v14545_v11 = vpop.f32.mrb[97].mxu0 }
 0x7ef   : > { %v18899_v46 = vadd.f32 %v14995_v17, %v24587_v31  ;;  %v18868_v0 = vadd.f32 %v14545_v11, %v24590_v27  ;;  %v14997_v44 = vpop.f32.mrb[193].mxu1  ;;  %v14547_v26 = vpop.f32.mrb[98].mxu0 }
 0x7f0   : > { %v18900_v37 = vadd.f32 %v14997_v44, %v24593_v9  ;;  %v18869_v57 = vadd.f32 %v14547_v26, %v24584_v34  ;;  %v14999_v6 = vpop.f32.mrb[194].mxu1  ;;  %v14549_v50 = vpop.f32.mrb[99].mxu0  ;;  %v15074_v5 = vmax.f32 %v18867_v1, 0.0  ;;  %v22151_v26 = vld [vmem:[#allocation12 + $0x1b0] ss:$12 sps:$4 sm:$0xff]  }
 0x7f1   : > { %v18901_v55 = vadd.f32 %v14999_v6, %v24587_v31  ;;  %v18870_v47 = vadd.f32 %v14549_v50, %v24590_v27  ;;  %v15001_v42 = vpop.f32.mrb[195].mxu1  ;;  %v15076_v40 = vmax.f32 %v18899_v46, 0.0  ;;  %v15075_v10 = vmax.f32 %v18868_v0, 0.0 }
 0x7f2   : > { %v15078_v59 = vmax.f32 %v18869_v57, 0.0  ;;  %v18902_v48 = vadd.f32 %v15001_v42, %v24593_v9  ;;  %v15077_v24 = vmax.f32 %v18900_v37, 0.0  ;;  %v22163_v37 = vld [vmem:[#allocation12 + $0x1b8] ss:$12 sps:$4 sm:$0xff]   ;;  %v22170_v42 = vld [vmem:[#allocation12 + $0x290] ss:$12 sps:$4 sm:$0xff]  }
 0x7f3   : > { %v15080_v33 = vmax.f32 %v18901_v55, 0.0  ;;  %v15079_v14 = vmax.f32 %v18870_v47, 0.0  ;;  %v22158_v47 = vld [vmem:[#allocation12 + $0x1cc] ss:$12 sps:$4 sm:$0xff]  }
 0x7f4   : > { %v15138_v30 = vpack.c.bf16 %v15078_v59, %v15074_v5  ;;  %v15081_v39 = vmax.f32 %v18902_v48, 0.0 }
 0x7f5   : > { %v24603_v62 = vpack.c.bf16 %v15080_v33, %v15076_v40  ;;  %v15139_v53 = vpack.c.bf16 %v15079_v14, %v15075_v10  ;;  %v14553_v41 = vpop.f32.mrb[100].mxu0 }
 0x7f6   : > { %v24605_v35 = vpack.c.bf16 %v15081_v39, %v15077_v24  ;;  %v18871_v4 = vadd.f32 %v14553_v41, %v24584_v34  ;;  %v15005_v22 = vpop.f32.mrb[196].mxu1  ;;  %v14555_v3 = vpop.f32.mrb[101].mxu0  ;;  %v22156_v41 = vld [vmem:[#allocation12 + $0x1c8] ss:$12 sps:$4 sm:$0xff]  }
 0x7f7   : > { %v18903_v13 = vadd.f32 %v15005_v22, %v24587_v31  ;;  %v18872_v63 = vadd.f32 %v14555_v3, %v24590_v27  ;;  %v15007_v7 = vpop.f32.mrb[197].mxu1  ;;  %v14557_v29 = vpop.f32.mrb[102].mxu0  ;;  %15859 = vmatprep.mubr.bf16.mxu0 %v15139_v53  ;;  %16085 = vmatprep.mubr.bf16.mxu1 %v15139_v53  ;;  %v22161_v3 = vld [vmem:[#allocation12 + $0x1e4] ss:$12 sps:$4 sm:$0xff]  }
 0x7f8   : > { %v18904_v38 = vadd.f32 %v15007_v7, %v24593_v9  ;;  %v18873_v19 = vadd.f32 %v14557_v29, %v24584_v34  ;;  %v15009_v36 = vpop.f32.mrb[198].mxu1  ;;  %v14559_v15 = vpop.f32.mrb[103].mxu0  ;;  %15860 = vmatmul.mubr.bf16.vlgmr.msra.gmra.mrb[128].mxu0 %v15138_v30  ;;  %16086 = vmatmul.mubr.bf16.vlgmr.msra.gmra.mrb[224].mxu1 %v15138_v30  ;;  %v15082_v18 = vmax.f32 %v18871_v4, 0.0 }
 0x7f9   : > { %v18905_v16 = vadd.f32 %v15009_v36, %v24587_v31  ;;  %v18874_v20 = vadd.f32 %v14559_v15, %v24590_v27  ;;  %v15011_v23 = vpop.f32.mrb[199].mxu1  ;;  %15941 = vmatpush1.bf16.msra.mxu0 %v22143_v32  ;;  %18484 = vmatpush3.bf16.msra.mxu1 %v22147_v54  ;;  %v15084_v60 = vmax.f32 %v18903_v13, 0.0  ;;  %v15083_v2 = vmax.f32 %v18872_v63, 0.0  ;;  %v22171_v32 = vld [vmem:[#allocation12 + $0x1d0] ss:$12 sps:$4 sm:$0xff]  }
 0x7fa   : > { %v15086_v25 = vmax.f32 %v18873_v19, 0.0  ;;  %v18906_v12 = vadd.f32 %v15011_v23, %v24593_v9  ;;  %15942 = vmatprep.subr.bf16.mxu0 %v22150_v43  ;;  %18485 = vmatprep.subr.bf16.mxu1 %v22154_v49  ;;  %v15085_v1 = vmax.f32 %v18904_v38, 0.0  ;;  %v22178_v43 = vld [vmem:[#allocation12 + $0x2a8] ss:$12 sps:$4 sm:$0xff]  }
 0x7fb   : > { %v15088_v56 = vmax.f32 %v18905_v16, 0.0  ;;  %v15087_v45 = vmax.f32 %v18874_v20, 0.0  ;;  %v22159_v20 = vld [vmem:[#allocation12 + $0x1e0] ss:$12 sps:$4 sm:$0xff]   ;;  %v22179_v23 = vld [vmem:[#allocation12 + $0x1e8] ss:$12 sps:$4 sm:$0xff]  }
 0x7fc   : > { %v15142_v17 = vpack.c.bf16 %v15086_v25, %v15082_v18  ;;  %v15089_v11 = vmax.f32 %v18906_v12, 0.0  ;;  %v22166_v12 = vld [vmem:[#allocation12 + $0x1fc] ss:$12 sps:$4 sm:$0xff]  }
 0x7fd   : > { %v24615_v46 = vpack.c.bf16 %v15088_v56, %v15084_v60  ;;  %v15143_v0 = vpack.c.bf16 %v15087_v45, %v15083_v2  ;;  %v14563_v44 = vpop.f32.mrb[104].mxu0  ;;  %15943 = vmatpush1.bf16.msra.mxu0 %v22148_v21  ;;  %18486 = vmatpush3.bf16.msra.mxu1 %v22155_v52 }
 0x7fe   : > { %v24617_v57 = vpack.c.bf16 %v15089_v11, %v15085_v1  ;;  %v18875_v6 = vadd.f32 %v14563_v44, %v24584_v34  ;;  %v15015_v50 = vpop.f32.mrb[200].mxu1  ;;  %v14565_v55 = vpop.f32.mrb[105].mxu0  ;;  %15944 = vmatprep.subr.bf16.mxu0 %v22153_v61  ;;  %18487 = vmatprep.subr.bf16.mxu1 %v22162_v51  ;;  %v22186_v61 = vld [vmem:[#allocation12 + $0x2c0] ss:$12 sps:$4 sm:$0xff]  }
 0x7ff   : > { %v18907_v5 = vadd.f32 %v15015_v50, %v24587_v31  ;;  %v18876_v59 = vadd.f32 %v14565_v55, %v24590_v27  ;;  %v15017_v48 = vpop.f32.mrb[201].mxu1  ;;  %v14567_v40 = vpop.f32.mrb[106].mxu0  ;;  %15869 = vmatprep.mubr.bf16.mxu0 %v15143_v0  ;;  %16093 = vmatprep.mubr.bf16.mxu1 %v15143_v0 }
 0x800   : > { %v18908_v10 = vadd.f32 %v15017_v48, %v24593_v9  ;;  %v18877_v33 = vadd.f32 %v14567_v40, %v24584_v34  ;;  %v15019_v14 = vpop.f32.mrb[202].mxu1  ;;  %v14569_v24 = vpop.f32.mrb[107].mxu0  ;;  %15870 = vmatmul.mubr.bf16.gmra.mrb[132].mxu0 %v15142_v17  ;;  %16094 = vmatmul.mubr.bf16.gmra.mrb[228].mxu1 %v15142_v17  ;;  %v15090_v54 = vmax.f32 %v18875_v6, 0.0  ;;  %v22187_v6 = vld [vmem:[#allocation12 + $0x200] ss:$12 sps:$4 sm:$0xff]  }
 0x801   : > { %v18909_v30 = vadd.f32 %v15019_v14, %v24587_v31  ;;  %v18878_v39 = vadd.f32 %v14569_v24, %v24590_v27  ;;  %v15021_v53 = vpop.f32.mrb[203].mxu1  ;;  %15945 = vmatpush1.bf16.msra.mxu0 %v22151_v26  ;;  %18488 = vmatpush3.bf16.msra.mxu1 %v22163_v37  ;;  %v15092_v49 = vmax.f32 %v18907_v5, 0.0  ;;  %v15091_v13 = vmax.f32 %v18876_v59, 0.0  ;;  %v22164_v37 = vld [vmem:[#allocation12 + $0x1f8] ss:$12 sps:$4 sm:$0xff]  }
 0x802   : > { %v15094_v4 = vmax.f32 %v18877_v33, 0.0  ;;  %v18910_v22 = vadd.f32 %v15021_v53, %v24593_v9  ;;  %15946 = vmatprep.subr.bf16.mxu0 %v22158_v47  ;;  %18489 = vmatprep.subr.bf16.mxu1 %v22170_v42  ;;  %v15093_v29 = vmax.f32 %v18908_v10, 0.0  ;;  %v22169_v42 = vld [vmem:[#allocation12 + $0x214] ss:$12 sps:$4 sm:$0xff]   ;;  %v22194_v5 = vld [vmem:[#allocation12 + $0x2d8] ss:$12 sps:$4 sm:$0xff]  }
 0x803   : > { %v15096_v63 = vmax.f32 %v18909_v30, 0.0  ;;  %v15095_v7 = vmax.f32 %v18878_v39, 0.0 }
 0x804   : > { %v15146_v38 = vpack.c.bf16 %v15094_v4, %v15090_v54  ;;  %v15097_v19 = vmax.f32 %v18910_v22, 0.0 }
 0x805   : > { %v24627_v36 = vpack.c.bf16 %v15096_v63, %v15092_v49  ;;  %v15147_v15 = vpack.c.bf16 %v15095_v7, %v15091_v13  ;;  %v14573_v16 = vpop.f32.mrb[108].mxu0  ;;  %15947 = vmatpush1.bf16.msra.mxu0 %v22156_v41  ;;  %18490 = vmatpush3.bf16.msra.mxu1 %v22171_v32  ;;  %v22167_v41 = vld [vmem:[#allocation12 + $0x210] ss:$12 sps:$4 sm:$0xff]   ;;  %v22195_v32 = vld [vmem:[#allocation12 + $0x218] ss:$12 sps:$4 sm:$0xff]  }
 0x806   : > { %v24629_v21 = vpack.c.bf16 %v15097_v19, %v15093_v29  ;;  %v18879_v52 = vadd.f32 %v14573_v16, %v24584_v34  ;;  %v15025_v18 = vpop.f32.mrb[204].mxu1  ;;  %v14575_v25 = vpop.f32.mrb[109].mxu0  ;;  %15948 = vmatprep.subr.bf16.mxu0 %v22161_v3  ;;  %18491 = vmatprep.subr.bf16.mxu1 %v22178_v43  ;;  %v22174_v43 = vld [vmem:[#allocation12 + $0x22c] ss:$12 sps:$4 sm:$0xff]   ;;  %v22202_v49 = vld [vmem:[#allocation12 + $0x2f0] ss:$12 sps:$4 sm:$0xff]  }
 0x807   : > { %v18911_v51 = vadd.f32 %v15025_v18, %v24587_v31  ;;  %v18880_v60 = vadd.f32 %v14575_v25, %v24590_v27  ;;  %v15027_v2 = vpop.f32.mrb[205].mxu1  ;;  %v14577_v56 = vpop.f32.mrb[110].mxu0  ;;  %15879 = vmatprep.mubr.bf16.mxu0 %v15147_v15  ;;  %16101 = vmatprep.mubr.bf16.mxu1 %v15147_v15  ;;  %v22172_v18 = vld [vmem:[#allocation12 + $0x228] ss:$12 sps:$4 sm:$0xff]   ;;  %v22203_v25 = vld [vmem:[#allocation12 + $0x230] ss:$12 sps:$4 sm:$0xff]  }
 0x808   : > { %v18912_v45 = vadd.f32 %v15027_v2, %v24593_v9  ;;  %v18881_v1 = vadd.f32 %v14577_v56, %v24584_v34  ;;  %v15029_v17 = vpop.f32.mrb[206].mxu1  ;;  %v14579_v11 = vpop.f32.mrb[111].mxu0  ;;  %15880 = vmatmul.mubr.bf16.gmra.mrb[136].mxu0 %v15146_v38  ;;  %16102 = vmatmul.mubr.bf16.gmra.mrb[232].mxu1 %v15146_v38  ;;  %v15098_v50 = vmax.f32 %v18879_v52, 0.0 }
 0x809   : > { %v18913_v0 = vadd.f32 %v15029_v17, %v24587_v31  ;;  %v18882_v44 = vadd.f32 %v14579_v11, %v24590_v27  ;;  %v15031_v26 = vpop.f32.mrb[207].mxu1  ;;  %15949 = vmatpush1.bf16.msra.mxu0 %v22159_v20  ;;  %18492 = vmatpush3.bf16.msra.mxu1 %v22179_v23  ;;  %v15100_v59 = vmax.f32 %v18911_v51, 0.0  ;;  %v15099_v48 = vmax.f32 %v18880_v60, 0.0  ;;  %v22177_v60 = vld [vmem:[#allocation12 + $0x244] ss:$12 sps:$4 sm:$0xff]  }
 0x80a   : > { %v15102_v55 = vmax.f32 %v18881_v1, 0.0  ;;  %v18914_v47 = vadd.f32 %v15031_v26, %v24593_v9  ;;  %15950 = vmatprep.subr.bf16.mxu0 %v22166_v12  ;;  %18493 = vmatprep.subr.bf16.mxu1 %v22186_v61  ;;  %v15101_v33 = vmax.f32 %v18912_v45, 0.0 }
 0x80b   : > { %v15104_v40 = vmax.f32 %v18913_v0, 0.0  ;;  %v15103_v10 = vmax.f32 %v18882_v44, 0.0 }
 0x80c   : > { %v15150_v14 = vpack.c.bf16 %v15102_v55, %v15098_v50  ;;  %v15105_v24 = vmax.f32 %v18914_v47, 0.0 }
 0x80d   : > { %v24639_v30 = vpack.c.bf16 %v15104_v40, %v15100_v59  ;;  %v15151_v39 = vpack.c.bf16 %v15103_v10, %v15099_v48  ;;  %v14583_v53 = vpop.f32.mrb[112].mxu0  ;;  %15951 = vmatpush1.bf16.msra.mxu0 %v22164_v37  ;;  %18494 = vmatpush3.bf16.msra.mxu1 %v22187_v6  ;;  %v22175_v6 = vld [vmem:[#allocation12 + $0x240] ss:$12 sps:$4 sm:$0xff]  }
 0x80e   : > { %v24641_v54 = vpack.c.bf16 %v15105_v24, %v15101_v33  ;;  %v18883_v4 = vadd.f32 %v14583_v53, %v24584_v34  ;;  %v15035_v22 = vpop.f32.mrb[208].mxu1  ;;  %v14585_v3 = vpop.f32.mrb[113].mxu0  ;;  %15952 = vmatprep.subr.bf16.mxu0 %v22169_v42  ;;  %18495 = vmatprep.subr.bf16.mxu1 %v22194_v5  ;;  %v22182_v5 = vld [vmem:[#allocation12 + $0x25c] ss:$12 sps:$4 sm:$0xff]  }
 0x80f   : > { %v18915_v13 = vadd.f32 %v15035_v22, %v24587_v31  ;;  %v18884_v63 = vadd.f32 %v14585_v3, %v24590_v27  ;;  %v15037_v7 = vpop.f32.mrb[209].mxu1  ;;  %v14587_v29 = vpop.f32.mrb[114].mxu0  ;;  %15889 = vmatprep.mubr.bf16.mxu0 %v15151_v39  ;;  %16109 = vmatprep.mubr.bf16.mxu1 %v15151_v39 }
 0x810   : > { %v18916_v38 = vadd.f32 %v15037_v7, %v24593_v9  ;;  %v18885_v19 = vadd.f32 %v14587_v29, %v24584_v34  ;;  %v15039_v15 = vpop.f32.mrb[210].mxu1  ;;  %v14589_v16 = vpop.f32.mrb[115].mxu0  ;;  %15890 = vmatmul.mubr.bf16.gmra.mrb[140].mxu0 %v15150_v14  ;;  %16110 = vmatmul.mubr.bf16.gmra.mrb[236].mxu1 %v15150_v14  ;;  %v15106_v12 = vmax.f32 %v18883_v4, 0.0  ;;  %v22180_v4 = vld [vmem:[#allocation12 + $0x258] ss:$12 sps:$4 sm:$0xff]  }
 0x811   : > { %v18917_v20 = vadd.f32 %v15039_v15, %v24587_v31  ;;  %v18886_v23 = vadd.f32 %v14589_v16, %v24590_v27  ;;  %v15041_v52 = vpop.f32.mrb[211].mxu1  ;;  %15953 = vmatpush1.bf16.msra.mxu0 %v22167_v41  ;;  %18496 = vmatpush3.bf16.msra.mxu1 %v22195_v32  ;;  %v15108_v2 = vmax.f32 %v18915_v13, 0.0  ;;  %v15107_v56 = vmax.f32 %v18884_v63, 0.0 }
 0x812   : > { %v15110_v61 = vmax.f32 %v18885_v19, 0.0  ;;  %v18918_v51 = vadd.f32 %v15041_v52, %v24593_v9  ;;  %15954 = vmatprep.subr.bf16.mxu0 %v22174_v43  ;;  %18497 = vmatprep.subr.bf16.mxu1 %v22202_v49  ;;  %v15109_v17 = vmax.f32 %v18916_v38, 0.0  ;;  %v22185_v49 = vld [vmem:[#allocation12 + $0x274] ss:$12 sps:$4 sm:$0xff]   ;;  %v22183_v52 = vld [vmem:[#allocation12 + $0x270] ss:$12 sps:$4 sm:$0xff]  }
 0x813   : > { %v15112_v45 = vmax.f32 %v18917_v20, 0.0  ;;  %v15111_v1 = vmax.f32 %v18886_v23, 0.0 }
 0x814   : > { %v15154_v11 = vpack.c.bf16 %v15110_v61, %v15106_v12  ;;  %v15113_v0 = vmax.f32 %v18918_v51, 0.0  ;;  %v22190_v51 = vld [vmem:[#allocation12 + $0x28c] ss:$12 sps:$4 sm:$0xff]  }
 0x815   : > { %v24651_v44 = vpack.c.bf16 %v15112_v45, %v15108_v2  ;;  %v15155_v26 = vpack.c.bf16 %v15111_v1, %v15107_v56  ;;  %v14593_v37 = vpop.f32.mrb[116].mxu0  ;;  %15955 = vmatpush1.bf16.msra.mxu0 %v22172_v18  ;;  %18498 = vmatpush3.bf16.msra.mxu1 %v22203_v25 }
 0x816   : > { %v24653_v50 = vpack.c.bf16 %v15113_v0, %v15109_v17  ;;  %v18887_v55 = vadd.f32 %v14593_v37, %v24584_v34  ;;  %v15045_v47 = vpop.f32.mrb[212].mxu1  ;;  %v14595_v42 = vpop.f32.mrb[117].mxu0  ;;  %15956 = vmatprep.subr.bf16.mxu0 %v22177_v60 }
 0x817   : > { %v18919_v59 = vadd.f32 %v15045_v47, %v24587_v31  ;;  %v18888_v48 = vadd.f32 %v14595_v42, %v24590_v27  ;;  %v15047_v40 = vpop.f32.mrb[213].mxu1  ;;  %v14597_v10 = vpop.f32.mrb[118].mxu0  ;;  %15899 = vmatprep.mubr.bf16.mxu0 %v15155_v26  ;;  %16117 = vmatprep.mubr.bf16.mxu1 %v15155_v26 }
 0x818   : > { %v18920_v33 = vadd.f32 %v15047_v40, %v24593_v9  ;;  %v18889_v14 = vadd.f32 %v14597_v10, %v24584_v34  ;;  %v15049_v24 = vpop.f32.mrb[214].mxu1  ;;  %v14599_v39 = vpop.f32.mrb[119].mxu0  ;;  %15900 = vmatmul.mubr.bf16.gmra.mrb[144].mxu0 %v15154_v11  ;;  %16118 = vmatmul.mubr.bf16.gmra.mrb[240].mxu1 %v15154_v11  ;;  %v15114_v22 = vmax.f32 %v18887_v55, 0.0  ;;  %v22188_v55 = vld [vmem:[#allocation12 + $0x288] ss:$12 sps:$4 sm:$0xff]  }
 0x819   : > { %v18921_v53 = vadd.f32 %v15049_v24, %v24587_v31  ;;  %v18890_v41 = vadd.f32 %v14599_v39, %v24590_v27  ;;  %v15051_v32 = vpop.f32.mrb[215].mxu1  ;;  %15957 = vmatpush1.bf16.msra.mxu0 %v22175_v6  ;;  %v15116_v13 = vmax.f32 %v18919_v59, 0.0  ;;  %v15115_v63 = vmax.f32 %v18888_v48, 0.0  ;;  %v22193_v59 = vld [vmem:[#allocation12 + $0x2a4] ss:$12 sps:$4 sm:$0xff]  }
 0x81a   : > { %v15118_v3 = vmax.f32 %v18889_v14, 0.0  ;;  %v18922_v43 = vadd.f32 %v15051_v32, %v24593_v9  ;;  %15958 = vmatprep.subr.bf16.mxu0 %v22182_v5  ;;  %v15117_v38 = vmax.f32 %v18920_v33, 0.0 }
 0x81b   : > { %v15120_v7 = vmax.f32 %v18921_v53, 0.0  ;;  %v15119_v29 = vmax.f32 %v18890_v41, 0.0 }
 0x81c   : > { %v15158_v19 = vpack.c.bf16 %v15118_v3, %v15114_v22  ;;  %v15121_v15 = vmax.f32 %v18922_v43, 0.0 }
 0x81d   : > { %v24663_v16 = vpack.c.bf16 %v15120_v7, %v15116_v13  ;;  %v15159_v20 = vpack.c.bf16 %v15119_v29, %v15115_v63  ;;  %v14603_v23 = vpop.f32.mrb[120].mxu0  ;;  %15959 = vmatpush1.bf16.msra.mxu0 %v22180_v4  ;;  %v22191_v4 = vld [vmem:[#allocation12 + $0x2a0] ss:$12 sps:$4 sm:$0xff]   ;;  %v22198_v13 = vld [vmem:[#allocation12 + $0x2bc] ss:$12 sps:$4 sm:$0xff]  }
 0x81e   : > { %v24665_v18 = vpack.c.bf16 %v15121_v15, %v15117_v38  ;;  %v18891_v25 = vadd.f32 %v14603_v23, %v24584_v34  ;;  %v15055_v12 = vpop.f32.mrb[216].mxu1  ;;  %v14605_v61 = vpop.f32.mrb[121].mxu0  ;;  %15960 = vmatprep.subr.bf16.mxu0 %v22185_v49 }
 0x81f   : > { %v18923_v60 = vadd.f32 %v15055_v12, %v24587_v31  ;;  %v18892_v2 = vadd.f32 %v14605_v61, %v24590_v27  ;;  %v15057_v56 = vpop.f32.mrb[217].mxu1  ;;  %v14607_v45 = vpop.f32.mrb[122].mxu0  ;;  %15909 = vmatprep.mubr.bf16.mxu0 %v15159_v20  ;;  %16125 = vmatprep.mubr.bf16.mxu1 %v15159_v20  ;;  %v22196_v61 = vld [vmem:[#allocation12 + $0x2b8] ss:$12 sps:$4 sm:$0xff]  }
 0x820   : > { %v18924_v1 = vadd.f32 %v15057_v56, %v24593_v9  ;;  %v18893_v17 = vadd.f32 %v14607_v45, %v24584_v34  ;;  %v15059_v11 = vpop.f32.mrb[218].mxu1  ;;  %v14609_v0 = vpop.f32.mrb[123].mxu0  ;;  %15910 = vmatmul.mubr.bf16.gmra.mrb[148].mxu0 %v15158_v19  ;;  %16126 = vmatmul.mubr.bf16.gmra.mrb[244].mxu1 %v15158_v19  ;;  %v15122_v47 = vmax.f32 %v18891_v25, 0.0  ;;  %v22201_v56 = vld [vmem:[#allocation12 + $0x2d4] ss:$12 sps:$4 sm:$0xff]  }
 0x821   : > { %v18925_v26 = vadd.f32 %v15059_v11, %v24587_v31  ;;  %v18894_v37 = vadd.f32 %v14609_v0, %v24590_v27  ;;  %v15061_v6 = vpop.f32.mrb[219].mxu1  ;;  %15961 = vmatpush1.bf16.msra.mxu0 %v22183_v52  ;;  %v15124_v48 = vmax.f32 %v18923_v60, 0.0  ;;  %v15123_v40 = vmax.f32 %v18892_v2, 0.0 }
 0x822   : > { %v15126_v42 = vmax.f32 %v18893_v17, 0.0  ;;  %v18926_v5 = vadd.f32 %v15061_v6, %v24593_v9  ;;  %15962 = vmatprep.subr.bf16.mxu0 %v22190_v51  ;;  %v15125_v14 = vmax.f32 %v18924_v1, 0.0 }
 0x823   : > { %v15128_v10 = vmax.f32 %v18925_v26, 0.0  ;;  %v15127_v33 = vmax.f32 %v18894_v37, 0.0 }
 0x824   : > { %v15162_v24 = vpack.c.bf16 %v15126_v42, %v15122_v47  ;;  %v15129_v39 = vmax.f32 %v18926_v5, 0.0 }
 0x825   : > { %v24675_v53 = vpack.c.bf16 %v15128_v10, %v15124_v48  ;;  %v15163_v41 = vpack.c.bf16 %v15127_v33, %v15123_v40  ;;  %v14613_v32 = vpop.f32.mrb[124].mxu0  ;;  %15963 = vmatpush1.bf16.msra.mxu0 %v22188_v55  ;;  %v22206_v55 = vld [vmem:[#allocation12 + $0x2ec] ss:$12 sps:$4 sm:$0xff]  }
 0x826   : > { %v24677_v22 = vpack.c.bf16 %v15129_v39, %v15125_v14  ;;  %v18895_v3 = vadd.f32 %v14613_v32, %v24584_v34  ;;  %v15065_v43 = vpop.f32.mrb[220].mxu1  ;;  %v14615_v49 = vpop.f32.mrb[125].mxu0  ;;  %15964 = vmatprep.subr.bf16.mxu0 %v22193_v59 }
 0x827   : > { %v18927_v63 = vadd.f32 %v15065_v43, %v24587_v31  ;;  %v18896_v7 = vadd.f32 %v14615_v49, %v24590_v27  ;;  %v15067_v29 = vpop.f32.mrb[221].mxu1  ;;  %v14617_v38 = vpop.f32.mrb[126].mxu0  ;;  %15919 = vmatprep.mubr.bf16.mxu0 %v15163_v41  ;;  %16133 = vmatprep.mubr.bf16.mxu1 %v15163_v41 }
 0x828   : > { %v18928_v19 = vadd.f32 %v15067_v29, %v24593_v9  ;;  %v18897_v15 = vadd.f32 %v14617_v38, %v24584_v34  ;;  %v15069_v20 = vpop.f32.mrb[222].mxu1  ;;  %v14619_v23 = vpop.f32.mrb[127].mxu0  ;;  %15920 = vmatmul.mubr.bf16.gmra.mrb[152].mxu0 %v15162_v24  ;;  %16134 = vmatmul.mubr.bf16.gmra.mrb[248].mxu1 %v15162_v24  ;;  %v15130_v51 = vmax.f32 %v18895_v3, 0.0 }
 0x829   : > { %v18929_v52 = vadd.f32 %v15069_v20, %v24587_v31  ;;  %v18898_v25 = vadd.f32 %v14619_v23, %v24590_v27  ;;  %v15071_v12 = vpop.f32.mrb[223].mxu1  ;;  %15965 = vmatpush1.bf16.msra.mxu0 %v22191_v4  ;;  %v15132_v45 = vmax.f32 %v18927_v63, 0.0  ;;  %v15131_v1 = vmax.f32 %v18896_v7, 0.0  ;;  %v22199_v27 = vld [vmem:[#allocation12 + $0x2d0] ss:$12 sps:$4 sm:$0xff]  }
 0x82a   : > { %v15134_v60 = vmax.f32 %v18897_v15, 0.0  ;;  %v18930_v2 = vadd.f32 %v15071_v12, %v24593_v9  ;;  %15966 = vmatprep.subr.bf16.mxu0 %v22198_v13  ;;  %v15133_v11 = vmax.f32 %v18928_v19, 0.0  ;;  %v22204_v9 = vld [vmem:[#allocation12 + $0x2e8] ss:$12 sps:$4 sm:$0xff]  }
 0x82b   : > { %v15136_v34 = vmax.f32 %v18929_v52, 0.0  ;;  %v15135_v17 = vmax.f32 %v18898_v25, 0.0 }
 0x82c   : > { %v15166_v0 = vpack.c.bf16 %v15134_v60, %v15130_v51  ;;  %v15137_v26 = vmax.f32 %v18930_v2, 0.0  ;;  %v15298_v2 = vld [vmem:[#allocation13] sm:$0x7] }
 0x82d   : > { %v15168_v37 = vpack.c.bf16 %v15136_v34, %v15132_v45  ;;  %v15167_v31 = vpack.c.bf16 %v15135_v17, %v15131_v1  ;;  %15967 = vmatpush1.bf16.msra.mxu0 %v22196_v61  ;;  %v24744_v1 = vrot.slane %v15298_v2, %v25497_v28  ;;  %v24747_v34 = vrot.slane %v15298_v2, %v25498_v8 }
 0x82e   : > { %v15169_v6 = vpack.c.bf16 %v15137_v26, %v15133_v11  ;;  %15968 = vmatprep.subr.bf16.mxu0 %v22201_v56  ;;  %v24751_v17 = vrot.slane %v15298_v2, %v25499_v58 }
 0x82f   : > { %15929 = vmatprep.mubr.bf16.mxu0 %v15167_v31  ;;  %16141 = vmatprep.mubr.bf16.mxu1 %v15167_v31 }
 0x830   : > { %15930 = vmatmul.mubr.bf16.gmra.mrb[156].mxu0 %v15166_v0  ;;  %16142 = vmatmul.mubr.bf16.gmra.mrb[252].mxu1 %v15166_v0 }
 0x831   : > { %15969 = vmatpush1.bf16.msra.mxu0 %v22199_v27  ;;  %15972 = vmatprep.mubr.bf16.mxu0 %v24605_v35 }
 0x832   : > { %16182 = vmatprep.mubr.bf16.mxu1 %v24605_v35  ;;  %15970 = vmatprep.subr.bf16.mxu0 %v22206_v55 }
 0x835   : > { %15971 = vmatpush1.bf16.msra.mxu0 %v22204_v9 }
 0x838   : > { %15973 = vmatmul.mubr.bf16.vlgmr.msra.gmra.mrb[128].mxu0 %v24603_v62  ;;  %16183 = vmatmul.mubr.bf16.vlgmr.msra.gmra.mrb[0].mxu1 %v24603_v62 }
 0x839   : > { %15982 = vmatprep.mubr.bf16.mxu0 %v24617_v57  ;;  %16190 = vmatprep.mubr.bf16.mxu1 %v24617_v57 }
 0x840   : > { %15983 = vmatmul.mubr.bf16.gmra.mrb[132].mxu0 %v24615_v46  ;;  %16191 = vmatmul.mubr.bf16.gmra.mrb[4].mxu1 %v24615_v46 }
 0x841   : > { %15992 = vmatprep.mubr.bf16.mxu0 %v24629_v21  ;;  %16198 = vmatprep.mubr.bf16.mxu1 %v24629_v21 }
 0x848   : > { %15993 = vmatmul.mubr.bf16.gmra.mrb[136].mxu0 %v24627_v36  ;;  %16199 = vmatmul.mubr.bf16.gmra.mrb[8].mxu1 %v24627_v36 }
 0x849   : > { %16002 = vmatprep.mubr.bf16.mxu0 %v24641_v54  ;;  %16206 = vmatprep.mubr.bf16.mxu1 %v24641_v54 }
 0x850   : > { %16003 = vmatmul.mubr.bf16.gmra.mrb[140].mxu0 %v24639_v30  ;;  %16207 = vmatmul.mubr.bf16.gmra.mrb[12].mxu1 %v24639_v30 }
 0x851   : > { %16012 = vmatprep.mubr.bf16.mxu0 %v24653_v50  ;;  %16214 = vmatprep.mubr.bf16.mxu1 %v24653_v50 }
 0x858   : > { %16013 = vmatmul.mubr.bf16.gmra.mrb[144].mxu0 %v24651_v44  ;;  %16215 = vmatmul.mubr.bf16.gmra.mrb[16].mxu1 %v24651_v44 }
 0x859   : > { %16022 = vmatprep.mubr.bf16.mxu0 %v24665_v18  ;;  %16222 = vmatprep.mubr.bf16.mxu1 %v24665_v18 }
 0x860   : > { %16023 = vmatmul.mubr.bf16.gmra.mrb[148].mxu0 %v24663_v16  ;;  %16223 = vmatmul.mubr.bf16.gmra.mrb[20].mxu1 %v24663_v16 }
 0x861   : > { %16032 = vmatprep.mubr.bf16.mxu0 %v24677_v22  ;;  %16230 = vmatprep.mubr.bf16.mxu1 %v24677_v22 }
 0x868   : > { %16033 = vmatmul.mubr.bf16.gmra.mrb[152].mxu0 %v24675_v53  ;;  %16231 = vmatmul.mubr.bf16.gmra.mrb[24].mxu1 %v24675_v53 }
 0x869   : > { %16042 = vmatprep.mubr.bf16.mxu0 %v15169_v6  ;;  %16238 = vmatprep.mubr.bf16.mxu1 %v15169_v6 }
 0x870   : > { %16043 = vmatmul.mubr.bf16.gmra.mrb[156].mxu0 %v15168_v37  ;;  %16239 = vmatmul.mubr.bf16.gmra.mrb[28].mxu1 %v15168_v37 }
 0x8cb   : > { %v18435_v62 = vpop.f32.mrb[224].mxu1 }
 0x8cc   : > { %v18436_v35 = vpop.f32.mrb[225].mxu1 }
 0x8cd   : > { %v18437_v46 = vadd.f32 %v18436_v35, %v18435_v62  ;;  %v18438_v57 = vpop.f32.mrb[226].mxu1 }
 0x8ce   : > { %v18439_v36 = vpop.f32.mrb[227].mxu1 }
 0x8cf   : > { %v18440_v21 = vadd.f32 %v18439_v36, %v18438_v57  ;;  %v16088_v27 = vadd.f32 %v18437_v46, %v24747_v34 }
 0x8d1   : > { %v16091_v55 = vadd.f32 %v18440_v21, %v24747_v34 }
 0x8d3   : > { %v18441_v30 = vpop.f32.mrb[228].mxu1 }
 0x8d4   : > { %v18442_v54 = vpop.f32.mrb[229].mxu1 }
 0x8d5   : > { %v24715_v44 = vadd.f32 %v18442_v54, %v18441_v30  ;;  %v18444_v50 = vpop.f32.mrb[230].mxu1 }
 0x8d6   : > { %v18445_v16 = vpop.f32.mrb[231].mxu1 }
 0x8d7   : > { %v24717_v18 = vadd.f32 %v18445_v16, %v18444_v50 }
 0x8db   : > { %v18447_v47 = vpop.f32.mrb[232].mxu1 }
 0x8dc   : > { %v18448_v42 = vpop.f32.mrb[233].mxu1 }
 0x8dd   : > { %v24719_v5 = vadd.f32 %v18448_v42, %v18447_v47  ;;  %v18450_v59 = vpop.f32.mrb[234].mxu1 }
 0x8de   : > { %v18451_v48 = vpop.f32.mrb[235].mxu1 }
 0x8df   : > { %v24721_v40 = vadd.f32 %v18451_v48, %v18450_v59 }
 0x8e3   : > { %v18453_v10 = vpop.f32.mrb[236].mxu1 }
 0x8e4   : > { %v18454_v33 = vpop.f32.mrb[237].mxu1 }
 0x8e5   : > { %v24723_v14 = vadd.f32 %v18454_v33, %v18453_v10  ;;  %v18456_v24 = vpop.f32.mrb[238].mxu1 }
 0x8e6   : > { %v18457_v39 = vpop.f32.mrb[239].mxu1 }
 0x8e7   : > { %v24725_v53 = vadd.f32 %v18457_v39, %v18456_v24  ;;  %v16096_v39 = vadd.f32 %v24715_v44, %v24747_v34 }
 0x8eb   : > { %v18459_v41 = vpop.f32.mrb[240].mxu1 }
 0x8ec   : > { %v18460_v32 = vpop.f32.mrb[241].mxu1 }
 0x8ed   : > { %v24727_v4 = vadd.f32 %v18460_v32, %v18459_v41  ;;  %v18462_v22 = vpop.f32.mrb[242].mxu1 }
 0x8ee   : > { %v18463_v3 = vpop.f32.mrb[243].mxu1 }
 0x8ef   : > { %v24729_v43 = vadd.f32 %v18463_v3, %v18462_v22 }
 0x8f3   : > { %v18465_v49 = vpop.f32.mrb[244].mxu1 }
 0x8f4   : > { %v18466_v13 = vpop.f32.mrb[245].mxu1 }
 0x8f5   : > { %v24731_v63 = vadd.f32 %v18466_v13, %v18465_v49  ;;  %v18468_v7 = vpop.f32.mrb[246].mxu1  ;;  %v16099_v49 = vadd.f32 %v24717_v18, %v24747_v34 }
 0x8f6   : > { %v18469_v29 = vpop.f32.mrb[247].mxu1 }
 0x8f7   : > { %v24733_v38 = vadd.f32 %v18469_v29, %v18468_v7 }
 0x8fb   : > { %v18471_v19 = vpop.f32.mrb[248].mxu1 }
 0x8fc   : > { %v18472_v15 = vpop.f32.mrb[249].mxu1 }
 0x8fd   : > { %v24735_v20 = vadd.f32 %v18472_v15, %v18471_v19  ;;  %v18474_v23 = vpop.f32.mrb[250].mxu1 }
 0x8fe   : > { %v18475_v52 = vpop.f32.mrb[251].mxu1 }
 0x8ff   : > { %v24737_v25 = vadd.f32 %v18475_v52, %v18474_v23 }
 0x903   : > { %v18477_v12 = vpop.f32.mrb[252].mxu1 }
 0x904   : > { %v18478_v61 = vpop.f32.mrb[253].mxu1 }
 0x905   : > { %v24739_v51 = vadd.f32 %v18478_v61, %v18477_v12  ;;  %v18480_v60 = vpop.f32.mrb[254].mxu1 }
 0x906   : > { %v18481_v56 = vpop.f32.mrb[255].mxu1 }
 0x907   : > { %v24741_v45 = vadd.f32 %v18481_v56, %v18480_v60 }
 0x90b   : > { %v15974_v11 = vpop.f32.mrb[128].mxu0  ;;  %v18499_v0 = vpop.f32.mrb[0].mxu1 }
 0x90c   : > { %v18931_v26 = vadd.f32 %v15974_v11, %v24744_v1  ;;  %v15976_v37 = vpop.f32.mrb[129].mxu0  ;;  %v18500_v31 = vpop.f32.mrb[1].mxu1 }
 0x90d   : > { %v18932_v28 = vadd.f32 %v15976_v37, %v24751_v17  ;;  %v18501_v8 = vadd.f32 %v18500_v31, %v18499_v0  ;;  %v15978_v58 = vpop.f32.mrb[130].mxu0  ;;  %v18502_v6 = vpop.f32.mrb[2].mxu1  ;;  %v16104_v31 = vadd.f32 %v24719_v5, %v24747_v34 }
 0x90e   : > { %v16247_v9 = vmax.f32 %v18931_v26, 0.0  ;;  %v18933_v62 = vadd.f32 %v15978_v58, %v24744_v1  ;;  %v15980_v35 = vpop.f32.mrb[131].mxu0  ;;  %v18503_v46 = vpop.f32.mrb[3].mxu1 }
 0x90f   : > { %v16248_v57 = vmax.f32 %v18932_v28, 0.0  ;;  %v16185_v36 = vadd.f32 %v18501_v8, %v16088_v27  ;;  %v18934_v30 = vadd.f32 %v15980_v35, %v24751_v17  ;;  %v18504_v54 = vadd.f32 %v18503_v46, %v18502_v6 }
 0x910   : > { %16295 = vst [vmem:[%s24758_s26] sm:$0xff] %v16247_v9  ;;  %v16250_v50 = vmax.f32 %v18933_v62, 0.0  ;;  %v16107_v6 = vadd.f32 %v24721_v40, %v24747_v34 }
 0x911   : > { %16296 = vst [vmem:[%s24758_s26 + $0x8] sm:$0xff] %v16248_v57  ;;  %v16249_v16 = vmax.f32 %v16185_v36, 0.0  ;;  %v16251_v47 = vmax.f32 %v18934_v30, 0.0  ;;  %v16188_v42 = vadd.f32 %v18504_v54, %v16091_v55 }
 0x912   : > { %16298 = vst [vmem:[%s24758_s26 + $0x18] sm:$0xff] %v16250_v50 }
 0x913   : > { %16297 = vst [vmem:[%s24758_s26 + $0x10] sm:$0xff] %v16249_v16  ;;  %16299 = vst [vmem:[%s24758_s26 + $0x20] sm:$0xff] %v16251_v47  ;;  %v16252_v21 = vmax.f32 %v16188_v42, 0.0  ;;  %v15984_v59 = vpop.f32.mrb[132].mxu0  ;;  %v18505_v48 = vpop.f32.mrb[4].mxu1 }
 0x914   : > { %v18935_v10 = vadd.f32 %v15984_v59, %v24744_v1  ;;  %v15986_v33 = vpop.f32.mrb[133].mxu0  ;;  %v18506_v24 = vpop.f32.mrb[5].mxu1 }
 0x915   : > { %16300 = vst [vmem:[%s24758_s26 + $0x28] sm:$0xff] %v16252_v21  ;;  %v18936_v41 = vadd.f32 %v15986_v33, %v24751_v17  ;;  %v18507_v32 = vadd.f32 %v18506_v24, %v18505_v48  ;;  %v15988_v22 = vpop.f32.mrb[134].mxu0  ;;  %v18508_v3 = vpop.f32.mrb[6].mxu1 }
 0x916   : > { %v16253_v13 = vmax.f32 %v18935_v10, 0.0  ;;  %v18937_v7 = vadd.f32 %v15988_v22, %v24744_v1  ;;  %v15990_v29 = vpop.f32.mrb[135].mxu0  ;;  %v18509_v19 = vpop.f32.mrb[7].mxu1  ;;  %v16112_v10 = vadd.f32 %v24723_v14, %v24747_v34 }
 0x917   : > { %v16254_v15 = vmax.f32 %v18936_v41, 0.0  ;;  %v16193_v44 = vadd.f32 %v18507_v32, %v16096_v39  ;;  %v18938_v23 = vadd.f32 %v15990_v29, %v24751_v17  ;;  %v18510_v52 = vadd.f32 %v18509_v19, %v18508_v3 }
 0x918   : > { %16301 = vst [vmem:[%s24758_s26 + $0x30] sm:$0xff] %v16253_v13  ;;  %v16256_v12 = vmax.f32 %v18937_v7, 0.0  ;;  %v16115_v32 = vadd.f32 %v24725_v53, %v24747_v34 }
 0x919   : > { %16302 = vst [vmem:[%s24758_s26 + $0x38] sm:$0xff] %v16254_v15  ;;  %v16255_v61 = vmax.f32 %v16193_v44, 0.0  ;;  %v16257_v60 = vmax.f32 %v18938_v23, 0.0  ;;  %v16196_v2 = vadd.f32 %v18510_v52, %v16099_v49 }
 0x91a   : > { %16304 = vst [vmem:[%s24758_s26 + $0x48] sm:$0xff] %v16256_v12 }
 0x91b   : > { %16303 = vst [vmem:[%s24758_s26 + $0x40] sm:$0xff] %v16255_v61  ;;  %16305 = vst [vmem:[%s24758_s26 + $0x50] sm:$0xff] %v16257_v60  ;;  %v16258_v18 = vmax.f32 %v16196_v2, 0.0  ;;  %v15994_v56 = vpop.f32.mrb[136].mxu0  ;;  %v18511_v11 = vpop.f32.mrb[8].mxu1 }
 0x91c   : > { %v18939_v0 = vadd.f32 %v15994_v56, %v24744_v1  ;;  %v15996_v26 = vpop.f32.mrb[137].mxu0  ;;  %v18512_v37 = vpop.f32.mrb[9].mxu1  ;;  %v16120_v56 = vadd.f32 %v24727_v4, %v24747_v34 }
 0x91d   : > { %16306 = vst [vmem:[%s24758_s26 + $0x58] sm:$0xff] %v16258_v18  ;;  %v18940_v27 = vadd.f32 %v15996_v26, %v24751_v17  ;;  %v18513_v28 = vadd.f32 %v18512_v37, %v18511_v11  ;;  %v15998_v8 = vpop.f32.mrb[138].mxu0  ;;  %v18514_v58 = vpop.f32.mrb[10].mxu1 }
 0x91e   : > { %v16259_v55 = vmax.f32 %v18939_v0, 0.0  ;;  %v18941_v9 = vadd.f32 %v15998_v8, %v24744_v1  ;;  %v16000_v62 = vpop.f32.mrb[139].mxu0  ;;  %v18515_v35 = vpop.f32.mrb[11].mxu1 }
 0x91f   : > { %v16260_v46 = vmax.f32 %v18940_v27, 0.0  ;;  %v16201_v5 = vadd.f32 %v18513_v28, %v16104_v31  ;;  %v18942_v57 = vadd.f32 %v16000_v62, %v24751_v17  ;;  %v18516_v36 = vadd.f32 %v18515_v35, %v18514_v58 }
 0x920   : > { %16307 = vst [vmem:[%s24758_s26 + $0x60] sm:$0xff] %v16259_v55  ;;  %v16262_v30 = vmax.f32 %v18941_v9, 0.0  ;;  %v16123_v31 = vadd.f32 %v24729_v43, %v24747_v34 }
 0x921   : > { %16308 = vst [vmem:[%s24758_s26 + $0x68] sm:$0xff] %v16260_v46  ;;  %v16261_v54 = vmax.f32 %v16201_v5, 0.0  ;;  %v16263_v50 = vmax.f32 %v18942_v57, 0.0  ;;  %v16204_v16 = vadd.f32 %v18516_v36, %v16107_v6 }
 0x922   : > { %16310 = vst [vmem:[%s24758_s26 + $0x78] sm:$0xff] %v16262_v30 }
 0x923   : > { %16309 = vst [vmem:[%s24758_s26 + $0x70] sm:$0xff] %v16261_v54  ;;  %16311 = vst [vmem:[%s24758_s26 + $0x80] sm:$0xff] %v16263_v50  ;;  %v16264_v40 = vmax.f32 %v16204_v16, 0.0  ;;  %v16004_v47 = vpop.f32.mrb[140].mxu0  ;;  %v18517_v42 = vpop.f32.mrb[12].mxu1  ;;  %v16128_v16 = vadd.f32 %v24731_v63, %v24747_v34 }
 0x924   : > { %v18943_v21 = vadd.f32 %v16004_v47, %v24744_v1  ;;  %v16006_v59 = vpop.f32.mrb[141].mxu0  ;;  %v18518_v48 = vpop.f32.mrb[13].mxu1 }
 0x925   : > { %16312 = vst [vmem:[%s24758_s26 + $0x88] sm:$0xff] %v16264_v40  ;;  %v18944_v33 = vadd.f32 %v16006_v59, %v24751_v17  ;;  %v18519_v24 = vadd.f32 %v18518_v48, %v18517_v42  ;;  %v16008_v39 = vpop.f32.mrb[142].mxu0  ;;  %v18520_v41 = vpop.f32.mrb[14].mxu1  ;;  %v16131_v59 = vadd.f32 %v24733_v38, %v24747_v34 }
 0x926   : > { %v16265_v22 = vmax.f32 %v18943_v21, 0.0  ;;  %v18945_v3 = vadd.f32 %v16008_v39, %v24744_v1  ;;  %v16010_v49 = vpop.f32.mrb[143].mxu0  ;;  %v18521_v13 = vpop.f32.mrb[15].mxu1 }
 0x927   : > { %v16266_v7 = vmax.f32 %v18944_v33, 0.0  ;;  %v16209_v14 = vadd.f32 %v18519_v24, %v16112_v10  ;;  %v18946_v29 = vadd.f32 %v16010_v49, %v24751_v17  ;;  %v18522_v19 = vadd.f32 %v18521_v13, %v18520_v41 }
 0x928   : > { %16313 = vst [vmem:[%s24758_s26 + $0x90] sm:$0xff] %v16265_v22  ;;  %v16268_v15 = vmax.f32 %v18945_v3, 0.0 }
 0x929   : > { %16314 = vst [vmem:[%s24758_s26 + $0x98] sm:$0xff] %v16266_v7  ;;  %v16267_v44 = vmax.f32 %v16209_v14, 0.0  ;;  %v16269_v23 = vmax.f32 %v18946_v29, 0.0  ;;  %v16212_v52 = vadd.f32 %v18522_v19, %v16115_v32 }
 0x92a   : > { %16316 = vst [vmem:[%s24758_s26 + $0xa8] sm:$0xff] %v16268_v15 }
 0x92b   : > { %16315 = vst [vmem:[%s24758_s26 + $0xa0] sm:$0xff] %v16267_v44  ;;  %16317 = vst [vmem:[%s24758_s26 + $0xb0] sm:$0xff] %v16269_v23  ;;  %v16270_v53 = vmax.f32 %v16212_v52, 0.0  ;;  %v16014_v12 = vpop.f32.mrb[144].mxu0  ;;  %v18523_v61 = vpop.f32.mrb[16].mxu1  ;;  %v16136_v44 = vadd.f32 %v24735_v20, %v24747_v34 }
 0x92c   : > { %v18947_v60 = vadd.f32 %v16014_v12, %v24744_v1  ;;  %v16016_v2 = vpop.f32.mrb[145].mxu0  ;;  %v18524_v18 = vpop.f32.mrb[17].mxu1 }
 0x92d   : > { %16318 = vst [vmem:[%s24758_s26 + $0xb8] sm:$0xff] %v16270_v53  ;;  %v18948_v11 = vadd.f32 %v16016_v2, %v24751_v17  ;;  %v18525_v0 = vadd.f32 %v18524_v18, %v18523_v61  ;;  %v16018_v26 = vpop.f32.mrb[146].mxu0  ;;  %v18526_v37 = vpop.f32.mrb[18].mxu1  ;;  %v16139_v61 = vadd.f32 %v24737_v25, %v24747_v34 }
 0x92e   : > { %v16271_v27 = vmax.f32 %v18947_v60, 0.0  ;;  %v18949_v28 = vadd.f32 %v16018_v26, %v24744_v1  ;;  %v16020_v8 = vpop.f32.mrb[147].mxu0  ;;  %v18527_v58 = vpop.f32.mrb[19].mxu1 }
 0x92f   : > { %v16272_v6 = vmax.f32 %v18948_v11, 0.0  ;;  %v16217_v4 = vadd.f32 %v18525_v0, %v16120_v56  ;;  %v18950_v55 = vadd.f32 %v16020_v8, %v24751_v17  ;;  %v18528_v9 = vadd.f32 %v18527_v58, %v18526_v37 }
 0x930   : > { %16319 = vst [vmem:[%s24758_s26 + $0xc0] sm:$0xff] %v16271_v27  ;;  %v16274_v62 = vmax.f32 %v18949_v28, 0.0 }
 0x931   : > { %16320 = vst [vmem:[%s24758_s26 + $0xc8] sm:$0xff] %v16272_v6  ;;  %v16273_v35 = vmax.f32 %v16217_v4, 0.0  ;;  %v16275_v46 = vmax.f32 %v18950_v55, 0.0  ;;  %v16220_v5 = vadd.f32 %v18528_v9, %v16123_v31  ;;  %v16144_v9 = vadd.f32 %v24739_v51, %v24747_v34 }
 0x932   : > { %16322 = vst [vmem:[%s24758_s26 + $0xd8] sm:$0xff] %v16274_v62 }
 0x933   : > { %16321 = vst [vmem:[%s24758_s26 + $0xd0] sm:$0xff] %v16273_v35  ;;  %16323 = vst [vmem:[%s24758_s26 + $0xe0] sm:$0xff] %v16275_v46  ;;  %v16276_v43 = vmax.f32 %v16220_v5, 0.0  ;;  %v16024_v57 = vpop.f32.mrb[148].mxu0  ;;  %v18529_v36 = vpop.f32.mrb[20].mxu1 }
 0x934   : > { %v18951_v30 = vadd.f32 %v16024_v57, %v24744_v1  ;;  %v16026_v54 = vpop.f32.mrb[149].mxu0  ;;  %v18530_v50 = vpop.f32.mrb[21].mxu1 }
 0x935   : > { %16324 = vst [vmem:[%s24758_s26 + $0xe8] sm:$0xff] %v16276_v43  ;;  %v18952_v40 = vadd.f32 %v16026_v54, %v24751_v17  ;;  %v18531_v47 = vadd.f32 %v18530_v50, %v18529_v36  ;;  %v16028_v42 = vpop.f32.mrb[150].mxu0  ;;  %v18532_v21 = vpop.f32.mrb[22].mxu1  ;;  %v16147_v43 = vadd.f32 %v24741_v45, %v24747_v34 }
 0x936   : > { %v16277_v48 = vmax.f32 %v18951_v30, 0.0  ;;  %v18953_v10 = vadd.f32 %v16028_v42, %v24744_v1  ;;  %v16030_v33 = vpop.f32.mrb[151].mxu0  ;;  %v18533_v24 = vpop.f32.mrb[23].mxu1 }
 0x937   : > { %v16278_v39 = vmax.f32 %v18952_v40, 0.0  ;;  %v16225_v63 = vadd.f32 %v18531_v47, %v16128_v16  ;;  %v18954_v41 = vadd.f32 %v16030_v33, %v24751_v17  ;;  %v18534_v32 = vadd.f32 %v18533_v24, %v18532_v21 }
 0x938   : > { %16325 = vst [vmem:[%s24758_s26 + $0xf0] sm:$0xff] %v16277_v48  ;;  %v16280_v22 = vmax.f32 %v18953_v10, 0.0 }
 0x939   : > { %16326 = vst [vmem:[%s24758_s26 + $0xf8] sm:$0xff] %v16278_v39  ;;  %v16279_v3 = vmax.f32 %v16225_v63, 0.0  ;;  %v16281_v49 = vmax.f32 %v18954_v41, 0.0  ;;  %v16228_v13 = vadd.f32 %v18534_v32, %v16131_v59 }
 0x93a   : > { %16328 = vst [vmem:[%s24758_s26 + $0x108] sm:$0xff] %v16280_v22 }
 0x93b   : > { %16327 = vst [vmem:[%s24758_s26 + $0x100] sm:$0xff] %v16279_v3  ;;  %16329 = vst [vmem:[%s24758_s26 + $0x110] sm:$0xff] %v16281_v49  ;;  %v16282_v38 = vmax.f32 %v16228_v13, 0.0  ;;  %v16034_v7 = vpop.f32.mrb[152].mxu0  ;;  %v18535_v14 = vpop.f32.mrb[24].mxu1 }
 0x93c   : > { %v18955_v29 = vadd.f32 %v16034_v7, %v24744_v1  ;;  %v16036_v19 = vpop.f32.mrb[153].mxu0  ;;  %v18536_v15 = vpop.f32.mrb[25].mxu1 }
 0x93d   : > { %16330 = vst [vmem:[%s24758_s26 + $0x118] sm:$0xff] %v16282_v38  ;;  %v18956_v23 = vadd.f32 %v16036_v19, %v24751_v17  ;;  %v18537_v52 = vadd.f32 %v18536_v15, %v18535_v14  ;;  %v16038_v53 = vpop.f32.mrb[154].mxu0  ;;  %v18538_v12 = vpop.f32.mrb[26].mxu1 }
 0x93e   : > { %v16283_v60 = vmax.f32 %v18955_v29, 0.0  ;;  %v18957_v2 = vadd.f32 %v16038_v53, %v24744_v1  ;;  %v16040_v18 = vpop.f32.mrb[155].mxu0  ;;  %v18539_v56 = vpop.f32.mrb[27].mxu1 }
 0x93f   : > { %v16284_v11 = vmax.f32 %v18956_v23, 0.0  ;;  %v16233_v20 = vadd.f32 %v18537_v52, %v16136_v44  ;;  %v18958_v0 = vadd.f32 %v16040_v18, %v24751_v17  ;;  %v18540_v26 = vadd.f32 %v18539_v56, %v18538_v12 }
 0x940   : > { %16331 = vst [vmem:[%s24758_s26 + $0x120] sm:$0xff] %v16283_v60  ;;  %v16286_v37 = vmax.f32 %v18957_v2, 0.0 }
 0x941   : > { %16332 = vst [vmem:[%s24758_s26 + $0x128] sm:$0xff] %v16284_v11  ;;  %v16285_v31 = vmax.f32 %v16233_v20, 0.0  ;;  %v16287_v27 = vmax.f32 %v18958_v0, 0.0  ;;  %v16236_v28 = vadd.f32 %v18540_v26, %v16139_v61 }
 0x942   : > { %16334 = vst [vmem:[%s24758_s26 + $0x138] sm:$0xff] %v16286_v37 }
 0x943   : > { %16333 = vst [vmem:[%s24758_s26 + $0x130] sm:$0xff] %v16285_v31  ;;  %16335 = vst [vmem:[%s24758_s26 + $0x140] sm:$0xff] %v16287_v27  ;;  %v16288_v25 = vmax.f32 %v16236_v28, 0.0  ;;  %v16044_v8 = vpop.f32.mrb[156].mxu0  ;;  %v18541_v58 = vpop.f32.mrb[28].mxu1 }
 0x944   : > { %v18959_v6 = vadd.f32 %v16044_v8, %v24744_v1  ;;  %v16046_v4 = vpop.f32.mrb[157].mxu0  ;;  %v18542_v55 = vpop.f32.mrb[29].mxu1 }
 0x945   : > { %16336 = vst [vmem:[%s24758_s26 + $0x148] sm:$0xff] %v16288_v25  ;;  %v18960_v62 = vadd.f32 %v16046_v4, %v24751_v17  ;;  %v18543_v35 = vadd.f32 %v18542_v55, %v18541_v58  ;;  %v16048_v46 = vpop.f32.mrb[158].mxu0  ;;  %v18544_v5 = vpop.f32.mrb[30].mxu1 }
 0x946   : > { %v16289_v57 = vmax.f32 %v18959_v6, 0.0  ;;  %v18961_v36 = vadd.f32 %v16048_v46, %v24744_v1  ;;  %v16050_v30 = vpop.f32.mrb[159].mxu0  ;;  %v18545_v54 = vpop.f32.mrb[31].mxu1 }
 0x947   : > { %v16290_v51 = vmax.f32 %v18960_v62, 0.0  ;;  %v16241_v50 = vadd.f32 %v18543_v35, %v16144_v9  ;;  %v18962_v16 = vadd.f32 %v16050_v30, %v24751_v17  ;;  %v18546_v40 = vadd.f32 %v18545_v54, %v18544_v5 }
 0x948   : > { %16337 = vst [vmem:[%s24758_s26 + $0x150] sm:$0xff] %v16289_v57  ;;  %v16292_v47 = vmax.f32 %v18961_v36, 0.0 }
 0x949   : > { %16338 = vst [vmem:[%s24758_s26 + $0x158] sm:$0xff] %v16290_v51  ;;  %v16291_v42 = vmax.f32 %v16241_v50, 0.0  ;;  %v16293_v21 = vmax.f32 %v18962_v16, 0.0  ;;  %v16244_v59 = vadd.f32 %v18546_v40, %v16147_v43 }
 0x94a   : > { %16340 = vst [vmem:[%s24758_s26 + $0x168] sm:$0xff] %v16292_v47 }
 0x94b   : > { %16339 = vst [vmem:[%s24758_s26 + $0x160] sm:$0xff] %v16291_v42  ;;  %16341 = vst [vmem:[%s24758_s26 + $0x170] sm:$0xff] %v16293_v21  ;;  %v16294_v45 = vmax.f32 %v16244_v59, 0.0 }
 0x94d   : > { %16342 = vst [vmem:[%s24758_s26 + $0x178] sm:$0xff] %v16294_v45 }
 0x94e PF: > { %s24_s30 = sadd.s32 1, %s22529_s30  }
 0x94f   : > { %p21_p7 = scmp.ge.s32.totalorder %s24_s30, 4  }
 0x951   :  { %23 = sbr.rel (!%p21_p7) target bundleno = 5 (0x5), region = 119 }
 0x958   :  { %16367 = vsyncpa [#allocation3], 1 }
 0x959   :  { %16369 = vsyncpa [#allocation3 + $0x1], 1 }
 0x95a   :  { %16370 = vsyncpa [#allocation5], 1 }
 0x95b   :  { %16371 = vsyncpa [#allocation8], 1 }
 0x95c   :  { %16372 = vsyncpa [#allocation11], 1 }
 0x95d   :  { %16373 = vsyncpa [#allocation14], 1 }

</bundles_post_ra>
